<compile_context>
chip_gen: v7x
topology: tpu7x:2x2x1
jax: 0.10.0
libtpu: 0.0.40
codegen_flags: <defaults>
</compile_context>

<pallas_src>
import functools

import jax
import jax.numpy as jnp
from jax import lax
from jax.experimental import pallas as pl
from jax.experimental.pallas import tpu as pltpu

KSIZE = 4       # conv kernel size for all three layers
CPAD = 128      # channel lane padding
OUT_CH = 96     # real output channels


def _round_up(x, m):
    return (x + m - 1) // m * m


def _smd_kernel(x_ref, w1_ref, b1_ref, w2_ref, b2_ref, w3_ref, b3_ref,
                o_ref, h1_scr, *, lp, n_valid):
    """One batch tile.

    x_ref : (R, 128)    f32  lane-dense input slab; row r holds time samples
                             [r*128, r*128+128) of the tile's flat (b, t) axis
    w1_ref: (4, 128)    f32  tap-major conv1 weights, lanes padded 32 -> 128
    w2_ref: (128, 128)  bf16 tap-packed [tap*cin, cout], cout padded 64 -> 128
    w3_ref: (256, 128)  bf16 tap-packed [tap*cin, cout], cout padded 96 -> 128
    bN_ref: (1, 128)    f32
    o_ref : (TB, 128)   f32  global-max-pooled features (first 96 lanes real)
    h1_scr: (TB*lp,128) f32  scratch slab holding the conv1 activations
    """
    tb = o_ref.shape[0]
    r_chunks = x_ref.shape[0]                 # = tb * lp // 128
    m0 = r_chunks * 128
    m2 = m0 - 2 * (KSIZE - 1)
    m3 = m0 - 3 * (KSIZE - 1)

    # ---- Conv1: 1 -> 32 (k=4) on the VPU, fused with the lanes->sublanes
    # relayout.  Per 128-sample chunk: slice one column of the transposed
    # tile (time on sublanes), grab the 8-sample head of the next chunk for
    # the k=4 halo, broadcast-FMA against the 4 tap rows, write the 128-row
    # h1 chunk into scratch.  Rows whose window crosses a chunk/batch/pad
    # boundary produce garbage that the epilogue never reads.
    x_t = jnp.transpose(x_ref[...])                       # (128, R)
    w1 = w1_ref[...]                                       # (4, 128)
    b1 = b1_ref[...]                                       # (1, 128)
    zeros_tail = jnp.zeros((8, 1), jnp.float32)
    for k in range(r_chunks):
        col = x_t[:, k:k + 1]                              # (128, 1)
        nxt = x_t[0:8, k + 1:k + 2] if k + 1 < r_chunks else zeros_tail
        ce = jnp.concatenate([col, nxt], axis=0)           # (136, 1)
        s = ce[0:128] * w1[0:1, :]
        for i in range(1, KSIZE):
            s = s + ce[i:i + 128] * w1[i:i + 1, :]
        h1_scr[k * 128:(k + 1) * 128, :] = jnp.maximum(s + b1, 0.0)

    h1 = h1_scr[...]                                       # (M0, 128) f32

    # ---- Conv2: 32 -> 64 (k=4).  Taps packed into K: 4*32 = 128 lanes, one
    # bf16 MXU dot with f32 accumulation (no zero K lanes).
    lhs2 = jnp.concatenate(
        [h1[i:i + m2, 0:32].astype(jnp.bfloat16) for i in range(KSIZE)],
        axis=1)                                            # (M2, 128) bf16
    h2 = jnp.dot(lhs2, w2_ref[...], preferred_element_type=jnp.float32)
    h2 = jnp.maximum(h2 + b2_ref[...], 0.0)                # (M2, 128) f32

    # ---- Conv3: 64 -> 96 (k=4).  Taps packed into K: 4*64 = 256, one dot.
    lhs3 = jnp.concatenate(
        [h2[i:i + m3, 0:64].astype(jnp.bfloat16) for i in range(KSIZE)],
        axis=1)                                            # (M3, 256) bf16
    h3 = jnp.dot(lhs3, w3_ref[...], preferred_element_type=jnp.float32)
    h3 = jnp.maximum(h3 + b3_ref[...], 0.0)                # (M3, 128) f32

    # ---- AdaptiveMaxPool1d(1): per batch element, max over its n_valid
    # (= L - 9) valid conv3 rows via a static slice.  No masking slabs.
    for b in range(tb):
        o_ref[b:b + 1, :] = jnp.max(
            h3[b * lp:b * lp + n_valid, :], axis=0, keepdims=True)


def _prep_conv1(w, b):
    # torch Conv1d weight (32, 1, 4) -> (4, 128) tap-major rows, lane-padded.
    wp = jnp.transpose(w[:, 0, :], (1, 0)).astype(jnp.float32)        # (4, 32)
    wp = jnp.pad(wp, ((0, 0), (0, CPAD - wp.shape[1])))
    bp = jnp.pad(b.reshape(1, -1).astype(jnp.float32),
                 ((0, 0), (0, CPAD - b.shape[0])))
    return wp, bp


def _prep_conv(w, b):
    # torch Conv1d weight (Cout, Cin, 4) -> tap-packed (4*Cin, 128) bf16 with
    # row index i*Cin + cin matching the kernel's lane-concat LHS packing.
    cout, cin, k = w.shape
    wp = jnp.transpose(w, (2, 1, 0)).reshape(k * cin, cout)       # (4*Cin, Cout)
    wp = jnp.pad(wp, ((0, 0), (0, CPAD - cout))).astype(jnp.bfloat16)
    bp = jnp.pad(b.reshape(1, -1).astype(jnp.float32),
                 ((0, 0), (0, CPAD - cout)))
    return wp, bp


def single_modal_layers_forward(x_ncl, params, *, max_rows_per_tile=4096):
    """x_ncl: (B, 1, L) float32 (PyTorch NCL). Returns (B, 96) float32."""
    B, c_in, L = x_ncl.shape
    assert c_in == 1
    assert L >= 3 * (KSIZE - 1) + 1, "need L >= 10 for a non-empty conv output"

    # Time padded to a lane multiple (so the input slab is lane-dense).
    lp = _round_up(L, 128)
    q = lp // 128

    # Batch tile: as many batch rows as fit the per-tile row budget (peak
    # VMEM ~ 2.5 KB per row), multiple of 8, but no bigger than the batch.
    bt = max(8, (max_rows_per_tile // lp) // 8 * 8)
    bt = min(bt, _round_up(B, 8))
    b_pad = _round_up(B, bt)
    # v7x megacore: keep >= 2 grid steps when the batch allows it.
    if b_pad == bt and bt >= 16 and bt % 16 == 0:
        bt //= 2

    # C_in == 1: NCL -> (B, L) is a pure reshape; pad batch/time with zeros
    # (padded rows/positions are never read by the epilogue).  The flat
    # (b_pad*q, 128) view is the same row-major bytes -> dense HBM->VMEM DMA.
    x = x_ncl.reshape(B, L).astype(jnp.float32)
    x = jnp.pad(x, ((0, b_pad - B), (0, lp - L)))
    x2d = x.reshape(b_pad * q, 128)

    w1p, b1p = _prep_conv1(params["w1"], params["b1"])
    w2p, b2p = _prep_conv(params["w2"], params["b2"])
    w3p, b3p = _prep_conv(params["w3"], params["b3"])

    grid = (b_pad // bt,)
    kernel = functools.partial(_smd_kernel, lp=lp, n_valid=L - 3 * (KSIZE - 1))

    out = pl.pallas_call(
        kernel,
        out_shape=jax.ShapeDtypeStruct((b_pad, CPAD), jnp.float32),
        grid=grid,
        in_specs=[
            pl.BlockSpec((bt * q, 128), lambda i: (i, 0)),       # x slab
            pl.BlockSpec((KSIZE, CPAD), lambda i: (0, 0)),       # w1
            pl.BlockSpec((1, CPAD), lambda i: (0, 0)),           # b1
            pl.BlockSpec((KSIZE * 32, CPAD), lambda i: (0, 0)),  # w2 packed
            pl.BlockSpec((1, CPAD), lambda i: (0, 0)),           # b2
            pl.BlockSpec((KSIZE * 64, CPAD), lambda i: (0, 0)),  # w3 packed
            pl.BlockSpec((1, CPAD), lambda i: (0, 0)),           # b3
        ],
        out_specs=pl.BlockSpec((bt, CPAD), lambda i: (i, 0)),
        scratch_shapes=[pltpu.VMEM((bt * lp, CPAD), jnp.float32)],
        compiler_params=pltpu.CompilerParams(
            dimension_semantics=("parallel",),
            vmem_limit_bytes=48 * 1024 * 1024),
    )(x2d, w1p, b1p, w2p, b2p, w3p, b3p)

    return out[:B, :OUT_CH]


def _reference_forward(x_ncl, params):
    # Pure-JAX f32 reference using lax conv (NCL layout), for correctness.
    dn = lax.conv_dimension_numbers(x_ncl.shape, params["w1"].shape,
                                    ("NCH", "OIH", "NCH"))
    h = x_ncl
    for wk, bk in (("w1", "b1"), ("w2", "b2"), ("w3", "b3")):
        h = lax.conv_general_dilated(h, params[wk], window_strides=(1,),
                                     padding="VALID", dimension_numbers=dn)
        h = jnp.maximum(h + params[bk][None, :, None], 0.0)
    return jnp.max(h, axis=-1)                                   # (B, 96)


def init_params(key):
    k = jax.random.split(key, 6)
    scale = 0.1
    return {
        "w1": scale * jax.random.normal(k[0], (32, 1, KSIZE), jnp.float32),
        "b1": scale * jax.random.normal(k[1], (32,), jnp.float32),
        "w2": scale * jax.random.normal(k[2], (64, 32, KSIZE), jnp.float32),
        "b2": scale * jax.random.normal(k[3], (64,), jnp.float32),
        "w3": scale * jax.random.normal(k[4], (96, 64, KSIZE), jnp.float32),
        "b3": scale * jax.random.normal(k[5], (96,), jnp.float32),
    }


if __name__ == "__main__":
    key = jax.random.PRNGKey(0)
    pkey, xkey = jax.random.split(key)
    params = init_params(pkey)

    B, L = 2, 32                                  # (B, 1, L) signal input
    x = jax.random.normal(xkey, (B, 1, L), jnp.float32)

    out = single_modal_layers_forward(x, params)
    out = jax.block_until_ready(out)

    ref = _reference_forward(x, params)
    assert out.shape == (B, 96)
    # bf16 MXU operands (f32 accumulation) -> loosened tolerance.
    assert jnp.allclose(out, ref, rtol=2e-2, atol=2e-3), "mismatch vs reference"

    print("KERNEL_OK")
</pallas_src>

<mosaic_0001>
module attributes {stable_mosaic.version = 11 : i64} {
  func.func @_smd_kernel(%arg0: i32, %arg1: memref<8x128xf32, #tpu.memory_space<vmem>>, %arg2: memref<4x128xf32, #tpu.memory_space<vmem>>, %arg3: memref<1x128xf32, #tpu.memory_space<vmem>>, %arg4: memref<128x128xbf16, #tpu.memory_space<vmem>>, %arg5: memref<1x128xf32, #tpu.memory_space<vmem>>, %arg6: memref<256x128xbf16, #tpu.memory_space<vmem>>, %arg7: memref<1x128xf32, #tpu.memory_space<vmem>>, %arg8: memref<8x128xf32, #tpu.memory_space<vmem>>, %arg9: memref<1024x128xf32, #tpu.memory_space<vmem>>) attributes {dimension_semantics = [#tpu.dimension_semantics<parallel>], iteration_bounds = array<i64: 1>, scalar_prefetch = 0 : i64, scratch_operands = 1 : i64, tpu.core_type = #tpu.core_type<tc>, window_params = [{transform_indices = @transform_0, window_bounds = array<i64: 8, 128>}, {pipeline_mode = #tpu.pipeline_mode<synchronous>, transform_indices = @transform_1, window_bounds = array<i64: 4, 128>}, {pipeline_mode = #tpu.pipeline_mode<synchronous>, transform_indices = @transform_2, window_bounds = array<i64: 1, 128>}, {pipeline_mode = #tpu.pipeline_mode<synchronous>, transform_indices = @transform_3, window_bounds = array<i64: 128, 128>}, {pipeline_mode = #tpu.pipeline_mode<synchronous>, transform_indices = @transform_4, window_bounds = array<i64: 1, 128>}, {pipeline_mode = #tpu.pipeline_mode<synchronous>, transform_indices = @transform_5, window_bounds = array<i64: 256, 128>}, {pipeline_mode = #tpu.pipeline_mode<synchronous>, transform_indices = @transform_6, window_bounds = array<i64: 1, 128>}, {transform_indices = @transform_7, window_bounds = array<i64: 8, 128>}]} {
    %c0 = arith.constant 0 : index
    %c0_0 = arith.constant 0 : index
    %0 = vector.load %arg1[%c0, %c0_0] : memref<8x128xf32, #tpu.memory_space<vmem>>, vector<8x128xf32>
    %1 = tpu.transpose %0, [1, 0] : vector<8x128xf32> -> vector<128x8xf32>
    %c0_1 = arith.constant 0 : index
    %c0_2 = arith.constant 0 : index
    %2 = vector.load %arg2[%c0_1, %c0_2] : memref<4x128xf32, #tpu.memory_space<vmem>>, vector<4x128xf32>
    %c0_3 = arith.constant 0 : index
    %c0_4 = arith.constant 0 : index
    %3 = vector.load %arg3[%c0_3, %c0_4] : memref<1x128xf32, #tpu.memory_space<vmem>>, vector<1x128xf32>
    %cst = arith.constant 0.000000e+00 : f32
    %4 = vector.broadcast %cst : f32 to vector<8x1xf32>
    %5 = vector.extract_strided_slice %1 {offsets = [0, 0], sizes = [128, 1], strides = [1, 1]} : vector<128x8xf32> to vector<128x1xf32>
    %6 = vector.extract_strided_slice %1 {offsets = [0, 1], sizes = [8, 1], strides = [1, 1]} : vector<128x8xf32> to vector<8x1xf32>
    %7 = tpu.concatenate %5, %6 in 0 : vector<128x1xf32>, vector<8x1xf32> -> vector<136x1xf32>
    %8 = vector.extract_strided_slice %7 {offsets = [0, 0], sizes = [128, 1], strides = [1, 1]} : vector<136x1xf32> to vector<128x1xf32>
    %9 = vector.extract_strided_slice %2 {offsets = [0, 0], sizes = [1, 128], strides = [1, 1]} : vector<4x128xf32> to vector<1x128xf32>
    %10 = vector.broadcast %8 : vector<128x1xf32> to vector<128x128xf32>
    %11 = vector.broadcast %9 : vector<1x128xf32> to vector<128x128xf32>
    %12 = arith.mulf %10, %11 : vector<128x128xf32>
    %13 = vector.extract_strided_slice %7 {offsets = [1, 0], sizes = [128, 1], strides = [1, 1]} : vector<136x1xf32> to vector<128x1xf32>
    %14 = vector.extract_strided_slice %2 {offsets = [1, 0], sizes = [1, 128], strides = [1, 1]} : vector<4x128xf32> to vector<1x128xf32>
    %15 = vector.broadcast %13 : vector<128x1xf32> to vector<128x128xf32>
    %16 = vector.broadcast %14 : vector<1x128xf32> to vector<128x128xf32>
    %17 = arith.mulf %15, %16 : vector<128x128xf32>
    %18 = arith.addf %12, %17 : vector<128x128xf32>
    %19 = vector.extract_strided_slice %7 {offsets = [2, 0], sizes = [128, 1], strides = [1, 1]} : vector<136x1xf32> to vector<128x1xf32>
    %20 = vector.extract_strided_slice %2 {offsets = [2, 0], sizes = [1, 128], strides = [1, 1]} : vector<4x128xf32> to vector<1x128xf32>
    %21 = vector.broadcast %19 : vector<128x1xf32> to vector<128x128xf32>
    %22 = vector.broadcast %20 : vector<1x128xf32> to vector<128x128xf32>
    %23 = arith.mulf %21, %22 : vector<128x128xf32>
    %24 = arith.addf %18, %23 : vector<128x128xf32>
    %25 = vector.extract_strided_slice %7 {offsets = [3, 0], sizes = [128, 1], strides = [1, 1]} : vector<136x1xf32> to vector<128x1xf32>
    %26 = vector.extract_strided_slice %2 {offsets = [3, 0], sizes = [1, 128], strides = [1, 1]} : vector<4x128xf32> to vector<1x128xf32>
    %27 = vector.broadcast %25 : vector<128x1xf32> to vector<128x128xf32>
    %28 = vector.broadcast %26 : vector<1x128xf32> to vector<128x128xf32>
    %29 = arith.mulf %27, %28 : vector<128x128xf32>
    %30 = arith.addf %24, %29 : vector<128x128xf32>
    %31 = vector.broadcast %3 : vector<1x128xf32> to vector<128x128xf32>
    %32 = arith.addf %30, %31 : vector<128x128xf32>
    %cst_5 = arith.constant 0.000000e+00 : f32
    %33 = vector.broadcast %cst_5 : f32 to vector<128x128xf32>
    %34 = arith.maximumf %32, %33 : vector<128x128xf32>
    %c0_6 = arith.constant 0 : index
    %c0_7 = arith.constant 0 : index
    %35 = vector.load %arg9[%c0_6, %c0_7] : memref<1024x128xf32, #tpu.memory_space<vmem>>, vector<128x128xf32>
    tpu.vector_store %arg9[%c0_6, %c0_7], %34 {strides = array<i32>} : memref<1024x128xf32, #tpu.memory_space<vmem>>, vector<128x128xf32>,
    %36 = vector.extract_strided_slice %1 {offsets = [0, 1], sizes = [128, 1], strides = [1, 1]} : vector<128x8xf32> to vector<128x1xf32>
    %37 = vector.extract_strided_slice %1 {offsets = [0, 2], sizes = [8, 1], strides = [1, 1]} : vector<128x8xf32> to vector<8x1xf32>
    %38 = tpu.concatenate %36, %37 in 0 : vector<128x1xf32>, vector<8x1xf32> -> vector<136x1xf32>
    %39 = vector.extract_strided_slice %38 {offsets = [0, 0], sizes = [128, 1], strides = [1, 1]} : vector<136x1xf32> to vector<128x1xf32>
    %40 = vector.extract_strided_slice %2 {offsets = [0, 0], sizes = [1, 128], strides = [1, 1]} : vector<4x128xf32> to vector<1x128xf32>
    %41 = vector.broadcast %39 : vector<128x1xf32> to vector<128x128xf32>
    %42 = vector.broadcast %40 : vector<1x128xf32> to vector<128x128xf32>
    %43 = arith.mulf %41, %42 : vector<128x128xf32>
    %44 = vector.extract_strided_slice %38 {offsets = [1, 0], sizes = [128, 1], strides = [1, 1]} : vector<136x1xf32> to vector<128x1xf32>
    %45 = vector.extract_strided_slice %2 {offsets = [1, 0], sizes = [1, 128], strides = [1, 1]} : vector<4x128xf32> to vector<1x128xf32>
    %46 = vector.broadcast %44 : vector<128x1xf32> to vector<128x128xf32>
    %47 = vector.broadcast %45 : vector<1x128xf32> to vector<128x128xf32>
    %48 = arith.mulf %46, %47 : vector<128x128xf32>
    %49 = arith.addf %43, %48 : vector<128x128xf32>
    %50 = vector.extract_strided_slice %38 {offsets = [2, 0], sizes = [128, 1], strides = [1, 1]} : vector<136x1xf32> to vector<128x1xf32>
    %51 = vector.extract_strided_slice %2 {offsets = [2, 0], sizes = [1, 128], strides = [1, 1]} : vector<4x128xf32> to vector<1x128xf32>
    %52 = vector.broadcast %50 : vector<128x1xf32> to vector<128x128xf32>
    %53 = vector.broadcast %51 : vector<1x128xf32> to vector<128x128xf32>
    %54 = arith.mulf %52, %53 : vector<128x128xf32>
    %55 = arith.addf %49, %54 : vector<128x128xf32>
    %56 = vector.extract_strided_slice %38 {offsets = [3, 0], sizes = [128, 1], strides = [1, 1]} : vector<136x1xf32> to vector<128x1xf32>
    %57 = vector.extract_strided_slice %2 {offsets = [3, 0], sizes = [1, 128], strides = [1, 1]} : vector<4x128xf32> to vector<1x128xf32>
    %58 = vector.broadcast %56 : vector<128x1xf32> to vector<128x128xf32>
    %59 = vector.broadcast %57 : vector<1x128xf32> to vector<128x128xf32>
    %60 = arith.mulf %58, %59 : vector<128x128xf32>
    %61 = arith.addf %55, %60 : vector<128x128xf32>
    %62 = vector.broadcast %3 : vector<1x128xf32> to vector<128x128xf32>
    %63 = arith.addf %61, %62 : vector<128x128xf32>
    %cst_8 = arith.constant 0.000000e+00 : f32
    %64 = vector.broadcast %cst_8 : f32 to vector<128x128xf32>
    %65 = arith.maximumf %63, %64 : vector<128x128xf32>
    %c128 = arith.constant 128 : index
    %c0_9 = arith.constant 0 : index
    %66 = vector.load %arg9[%c128, %c0_9] : memref<1024x128xf32, #tpu.memory_space<vmem>>, vector<128x128xf32>
    tpu.vector_store %arg9[%c128, %c0_9], %65 {strides = array<i32>} : memref<1024x128xf32, #tpu.memory_space<vmem>>, vector<128x128xf32>,
    %67 = vector.extract_strided_slice %1 {offsets = [0, 2], sizes = [128, 1], strides = [1, 1]} : vector<128x8xf32> to vector<128x1xf32>
    %68 = vector.extract_strided_slice %1 {offsets = [0, 3], sizes = [8, 1], strides = [1, 1]} : vector<128x8xf32> to vector<8x1xf32>
    %69 = tpu.concatenate %67, %68 in 0 : vector<128x1xf32>, vector<8x1xf32> -> vector<136x1xf32>
    %70 = vector.extract_strided_slice %69 {offsets = [0, 0], sizes = [128, 1], strides = [1, 1]} : vector<136x1xf32> to vector<128x1xf32>
    %71 = vector.extract_strided_slice %2 {offsets = [0, 0], sizes = [1, 128], strides = [1, 1]} : vector<4x128xf32> to vector<1x128xf32>
    %72 = vector.broadcast %70 : vector<128x1xf32> to vector<128x128xf32>
    %73 = vector.broadcast %71 : vector<1x128xf32> to vector<128x128xf32>
    %74 = arith.mulf %72, %73 : vector<128x128xf32>
    %75 = vector.extract_strided_slice %69 {offsets = [1, 0], sizes = [128, 1], strides = [1, 1]} : vector<136x1xf32> to vector<128x1xf32>
    %76 = vector.extract_strided_slice %2 {offsets = [1, 0], sizes = [1, 128], strides = [1, 1]} : vector<4x128xf32> to vector<1x128xf32>
    %77 = vector.broadcast %75 : vector<128x1xf32> to vector<128x128xf32>
    %78 = vector.broadcast %76 : vector<1x128xf32> to vector<128x128xf32>
    %79 = arith.mulf %77, %78 : vector<128x128xf32>
    %80 = arith.addf %74, %79 : vector<128x128xf32>
    %81 = vector.extract_strided_slice %69 {offsets = [2, 0], sizes = [128, 1], strides = [1, 1]} : vector<136x1xf32> to vector<128x1xf32>
    %82 = vector.extract_strided_slice %2 {offsets = [2, 0], sizes = [1, 128], strides = [1, 1]} : vector<4x128xf32> to vector<1x128xf32>
    %83 = vector.broadcast %81 : vector<128x1xf32> to vector<128x128xf32>
    %84 = vector.broadcast %82 : vector<1x128xf32> to vector<128x128xf32>
    %85 = arith.mulf %83, %84 : vector<128x128xf32>
    %86 = arith.addf %80, %85 : vector<128x128xf32>
    %87 = vector.extract_strided_slice %69 {offsets = [3, 0], sizes = [128, 1], strides = [1, 1]} : vector<136x1xf32> to vector<128x1xf32>
    %88 = vector.extract_strided_slice %2 {offsets = [3, 0], sizes = [1, 128], strides = [1, 1]} : vector<4x128xf32> to vector<1x128xf32>
    %89 = vector.broadcast %87 : vector<128x1xf32> to vector<128x128xf32>
    %90 = vector.broadcast %88 : vector<1x128xf32> to vector<128x128xf32>
    %91 = arith.mulf %89, %90 : vector<128x128xf32>
    %92 = arith.addf %86, %91 : vector<128x128xf32>
    %93 = vector.broadcast %3 : vector<1x128xf32> to vector<128x128xf32>
    %94 = arith.addf %92, %93 : vector<128x128xf32>
    %cst_10 = arith.constant 0.000000e+00 : f32
    %95 = vector.broadcast %cst_10 : f32 to vector<128x128xf32>
    %96 = arith.maximumf %94, %95 : vector<128x128xf32>
    %c256 = arith.constant 256 : index
    %c0_11 = arith.constant 0 : index
    %97 = vector.load %arg9[%c256, %c0_11] : memref<1024x128xf32, #tpu.memory_space<vmem>>, vector<128x128xf32>
    tpu.vector_store %arg9[%c256, %c0_11], %96 {strides = array<i32>} : memref<1024x128xf32, #tpu.memory_space<vmem>>, vector<128x128xf32>,
    %98 = vector.extract_strided_slice %1 {offsets = [0, 3], sizes = [128, 1], strides = [1, 1]} : vector<128x8xf32> to vector<128x1xf32>
    %99 = vector.extract_strided_slice %1 {offsets = [0, 4], sizes = [8, 1], strides = [1, 1]} : vector<128x8xf32> to vector<8x1xf32>
    %100 = tpu.concatenate %98, %99 in 0 : vector<128x1xf32>, vector<8x1xf32> -> vector<136x1xf32>
    %101 = vector.extract_strided_slice %100 {offsets = [0, 0], sizes = [128, 1], strides = [1, 1]} : vector<136x1xf32> to vector<128x1xf32>
    %102 = vector.extract_strided_slice %2 {offsets = [0, 0], sizes = [1, 128], strides = [1, 1]} : vector<4x128xf32> to vector<1x128xf32>
    %103 = vector.broadcast %101 : vector<128x1xf32> to vector<128x128xf32>
    %104 = vector.broadcast %102 : vector<1x128xf32> to vector<128x128xf32>
    %105 = arith.mulf %103, %104 : vector<128x128xf32>
    %106 = vector.extract_strided_slice %100 {offsets = [1, 0], sizes = [128, 1], strides = [1, 1]} : vector<136x1xf32> to vector<128x1xf32>
    %107 = vector.extract_strided_slice %2 {offsets = [1, 0], sizes = [1, 128], strides = [1, 1]} : vector<4x128xf32> to vector<1x128xf32>
    %108 = vector.broadcast %106 : vector<128x1xf32> to vector<128x128xf32>
    %109 = vector.broadcast %107 : vector<1x128xf32> to vector<128x128xf32>
    %110 = arith.mulf %108, %109 : vector<128x128xf32>
    %111 = arith.addf %105, %110 : vector<128x128xf32>
    %112 = vector.extract_strided_slice %100 {offsets = [2, 0], sizes = [128, 1], strides = [1, 1]} : vector<136x1xf32> to vector<128x1xf32>
    %113 = vector.extract_strided_slice %2 {offsets = [2, 0], sizes = [1, 128], strides = [1, 1]} : vector<4x128xf32> to vector<1x128xf32>
    %114 = vector.broadcast %112 : vector<128x1xf32> to vector<128x128xf32>
    %115 = vector.broadcast %113 : vector<1x128xf32> to vector<128x128xf32>
    %116 = arith.mulf %114, %115 : vector<128x128xf32>
    %117 = arith.addf %111, %116 : vector<128x128xf32>
    %118 = vector.extract_strided_slice %100 {offsets = [3, 0], sizes = [128, 1], strides = [1, 1]} : vector<136x1xf32> to vector<128x1xf32>
    %119 = vector.extract_strided_slice %2 {offsets = [3, 0], sizes = [1, 128], strides = [1, 1]} : vector<4x128xf32> to vector<1x128xf32>
    %120 = vector.broadcast %118 : vector<128x1xf32> to vector<128x128xf32>
    %121 = vector.broadcast %119 : vector<1x128xf32> to vector<128x128xf32>
    %122 = arith.mulf %120, %121 : vector<128x128xf32>
    %123 = arith.addf %117, %122 : vector<128x128xf32>
    %124 = vector.broadcast %3 : vector<1x128xf32> to vector<128x128xf32>
    %125 = arith.addf %123, %124 : vector<128x128xf32>
    %cst_12 = arith.constant 0.000000e+00 : f32
    %126 = vector.broadcast %cst_12 : f32 to vector<128x128xf32>
    %127 = arith.maximumf %125, %126 : vector<128x128xf32>
    %c384 = arith.constant 384 : index
    %c0_13 = arith.constant 0 : index
    %128 = vector.load %arg9[%c384, %c0_13] : memref<1024x128xf32, #tpu.memory_space<vmem>>, vector<128x128xf32>
    tpu.vector_store %arg9[%c384, %c0_13], %127 {strides = array<i32>} : memref<1024x128xf32, #tpu.memory_space<vmem>>, vector<128x128xf32>,
    %129 = vector.extract_strided_slice %1 {offsets = [0, 4], sizes = [128, 1], strides = [1, 1]} : vector<128x8xf32> to vector<128x1xf32>
    %130 = vector.extract_strided_slice %1 {offsets = [0, 5], sizes = [8, 1], strides = [1, 1]} : vector<128x8xf32> to vector<8x1xf32>
    %131 = tpu.concatenate %129, %130 in 0 : vector<128x1xf32>, vector<8x1xf32> -> vector<136x1xf32>
    %132 = vector.extract_strided_slice %131 {offsets = [0, 0], sizes = [128, 1], strides = [1, 1]} : vector<136x1xf32> to vector<128x1xf32>
    %133 = vector.extract_strided_slice %2 {offsets = [0, 0], sizes = [1, 128], strides = [1, 1]} : vector<4x128xf32> to vector<1x128xf32>
    %134 = vector.broadcast %132 : vector<128x1xf32> to vector<128x128xf32>
    %135 = vector.broadcast %133 : vector<1x128xf32> to vector<128x128xf32>
    %136 = arith.mulf %134, %135 : vector<128x128xf32>
    %137 = vector.extract_strided_slice %131 {offsets = [1, 0], sizes = [128, 1], strides = [1, 1]} : vector<136x1xf32> to vector<128x1xf32>
    %138 = vector.extract_strided_slice %2 {offsets = [1, 0], sizes = [1, 128], strides = [1, 1]} : vector<4x128xf32> to vector<1x128xf32>
    %139 = vector.broadcast %137 : vector<128x1xf32> to vector<128x128xf32>
    %140 = vector.broadcast %138 : vector<1x128xf32> to vector<128x128xf32>
    %141 = arith.mulf %139, %140 : vector<128x128xf32>
    %142 = arith.addf %136, %141 : vector<128x128xf32>
    %143 = vector.extract_strided_slice %131 {offsets = [2, 0], sizes = [128, 1], strides = [1, 1]} : vector<136x1xf32> to vector<128x1xf32>
    %144 = vector.extract_strided_slice %2 {offsets = [2, 0], sizes = [1, 128], strides = [1, 1]} : vector<4x128xf32> to vector<1x128xf32>
    %145 = vector.broadcast %143 : vector<128x1xf32> to vector<128x128xf32>
    %146 = vector.broadcast %144 : vector<1x128xf32> to vector<128x128xf32>
    %147 = arith.mulf %145, %146 : vector<128x128xf32>
    %148 = arith.addf %142, %147 : vector<128x128xf32>
    %149 = vector.extract_strided_slice %131 {offsets = [3, 0], sizes = [128, 1], strides = [1, 1]} : vector<136x1xf32> to vector<128x1xf32>
    %150 = vector.extract_strided_slice %2 {offsets = [3, 0], sizes = [1, 128], strides = [1, 1]} : vector<4x128xf32> to vector<1x128xf32>
    %151 = vector.broadcast %149 : vector<128x1xf32> to vector<128x128xf32>
    %152 = vector.broadcast %150 : vector<1x128xf32> to vector<128x128xf32>
    %153 = arith.mulf %151, %152 : vector<128x128xf32>
    %154 = arith.addf %148, %153 : vector<128x128xf32>
    %155 = vector.broadcast %3 : vector<1x128xf32> to vector<128x128xf32>
    %156 = arith.addf %154, %155 : vector<128x128xf32>
    %cst_14 = arith.constant 0.000000e+00 : f32
    %157 = vector.broadcast %cst_14 : f32 to vector<128x128xf32>
    %158 = arith.maximumf %156, %157 : vector<128x128xf32>
    %c512 = arith.constant 512 : index
    %c0_15 = arith.constant 0 : index
    %159 = vector.load %arg9[%c512, %c0_15] : memref<1024x128xf32, #tpu.memory_space<vmem>>, vector<128x128xf32>
    tpu.vector_store %arg9[%c512, %c0_15], %158 {strides = array<i32>} : memref<1024x128xf32, #tpu.memory_space<vmem>>, vector<128x128xf32>,
    %160 = vector.extract_strided_slice %1 {offsets = [0, 5], sizes = [128, 1], strides = [1, 1]} : vector<128x8xf32> to vector<128x1xf32>
    %161 = vector.extract_strided_slice %1 {offsets = [0, 6], sizes = [8, 1], strides = [1, 1]} : vector<128x8xf32> to vector<8x1xf32>
    %162 = tpu.concatenate %160, %161 in 0 : vector<128x1xf32>, vector<8x1xf32> -> vector<136x1xf32>
    %163 = vector.extract_strided_slice %162 {offsets = [0, 0], sizes = [128, 1], strides = [1, 1]} : vector<136x1xf32> to vector<128x1xf32>
    %164 = vector.extract_strided_slice %2 {offsets = [0, 0], sizes = [1, 128], strides = [1, 1]} : vector<4x128xf32> to vector<1x128xf32>
    %165 = vector.broadcast %163 : vector<128x1xf32> to vector<128x128xf32>
    %166 = vector.broadcast %164 : vector<1x128xf32> to vector<128x128xf32>
    %167 = arith.mulf %165, %166 : vector<128x128xf32>
    %168 = vector.extract_strided_slice %162 {offsets = [1, 0], sizes = [128, 1], strides = [1, 1]} : vector<136x1xf32> to vector<128x1xf32>
    %169 = vector.extract_strided_slice %2 {offsets = [1, 0], sizes = [1, 128], strides = [1, 1]} : vector<4x128xf32> to vector<1x128xf32>
    %170 = vector.broadcast %168 : vector<128x1xf32> to vector<128x128xf32>
    %171 = vector.broadcast %169 : vector<1x128xf32> to vector<128x128xf32>
    %172 = arith.mulf %170, %171 : vector<128x128xf32>
    %173 = arith.addf %167, %172 : vector<128x128xf32>
    %174 = vector.extract_strided_slice %162 {offsets = [2, 0], sizes = [128, 1], strides = [1, 1]} : vector<136x1xf32> to vector<128x1xf32>
    %175 = vector.extract_strided_slice %2 {offsets = [2, 0], sizes = [1, 128], strides = [1, 1]} : vector<4x128xf32> to vector<1x128xf32>
    %176 = vector.broadcast %174 : vector<128x1xf32> to vector<128x128xf32>
    %177 = vector.broadcast %175 : vector<1x128xf32> to vector<128x128xf32>
    %178 = arith.mulf %176, %177 : vector<128x128xf32>
    %179 = arith.addf %173, %178 : vector<128x128xf32>
    %180 = vector.extract_strided_slice %162 {offsets = [3, 0], sizes = [128, 1], strides = [1, 1]} : vector<136x1xf32> to vector<128x1xf32>
    %181 = vector.extract_strided_slice %2 {offsets = [3, 0], sizes = [1, 128], strides = [1, 1]} : vector<4x128xf32> to vector<1x128xf32>
    %182 = vector.broadcast %180 : vector<128x1xf32> to vector<128x128xf32>
    %183 = vector.broadcast %181 : vector<1x128xf32> to vector<128x128xf32>
    %184 = arith.mulf %182, %183 : vector<128x128xf32>
    %185 = arith.addf %179, %184 : vector<128x128xf32>
    %186 = vector.broadcast %3 : vector<1x128xf32> to vector<128x128xf32>
    %187 = arith.addf %185, %186 : vector<128x128xf32>
    %cst_16 = arith.constant 0.000000e+00 : f32
    %188 = vector.broadcast %cst_16 : f32 to vector<128x128xf32>
    %189 = arith.maximumf %187, %188 : vector<128x128xf32>
    %c640 = arith.constant 640 : index
    %c0_17 = arith.constant 0 : index
    %190 = vector.load %arg9[%c640, %c0_17] : memref<1024x128xf32, #tpu.memory_space<vmem>>, vector<128x128xf32>
    tpu.vector_store %arg9[%c640, %c0_17], %189 {strides = array<i32>} : memref<1024x128xf32, #tpu.memory_space<vmem>>, vector<128x128xf32>,
    %191 = vector.extract_strided_slice %1 {offsets = [0, 6], sizes = [128, 1], strides = [1, 1]} : vector<128x8xf32> to vector<128x1xf32>
    %192 = vector.extract_strided_slice %1 {offsets = [0, 7], sizes = [8, 1], strides = [1, 1]} : vector<128x8xf32> to vector<8x1xf32>
    %193 = tpu.concatenate %191, %192 in 0 : vector<128x1xf32>, vector<8x1xf32> -> vector<136x1xf32>
    %194 = vector.extract_strided_slice %193 {offsets = [0, 0], sizes = [128, 1], strides = [1, 1]} : vector<136x1xf32> to vector<128x1xf32>
    %195 = vector.extract_strided_slice %2 {offsets = [0, 0], sizes = [1, 128], strides = [1, 1]} : vector<4x128xf32> to vector<1x128xf32>
    %196 = vector.broadcast %194 : vector<128x1xf32> to vector<128x128xf32>
    %197 = vector.broadcast %195 : vector<1x128xf32> to vector<128x128xf32>
    %198 = arith.mulf %196, %197 : vector<128x128xf32>
    %199 = vector.extract_strided_slice %193 {offsets = [1, 0], sizes = [128, 1], strides = [1, 1]} : vector<136x1xf32> to vector<128x1xf32>
    %200 = vector.extract_strided_slice %2 {offsets = [1, 0], sizes = [1, 128], strides = [1, 1]} : vector<4x128xf32> to vector<1x128xf32>
    %201 = vector.broadcast %199 : vector<128x1xf32> to vector<128x128xf32>
    %202 = vector.broadcast %200 : vector<1x128xf32> to vector<128x128xf32>
    %203 = arith.mulf %201, %202 : vector<128x128xf32>
    %204 = arith.addf %198, %203 : vector<128x128xf32>
    %205 = vector.extract_strided_slice %193 {offsets = [2, 0], sizes = [128, 1], strides = [1, 1]} : vector<136x1xf32> to vector<128x1xf32>
    %206 = vector.extract_strided_slice %2 {offsets = [2, 0], sizes = [1, 128], strides = [1, 1]} : vector<4x128xf32> to vector<1x128xf32>
    %207 = vector.broadcast %205 : vector<128x1xf32> to vector<128x128xf32>
    %208 = vector.broadcast %206 : vector<1x128xf32> to vector<128x128xf32>
    %209 = arith.mulf %207, %208 : vector<128x128xf32>
    %210 = arith.addf %204, %209 : vector<128x128xf32>
    %211 = vector.extract_strided_slice %193 {offsets = [3, 0], sizes = [128, 1], strides = [1, 1]} : vector<136x1xf32> to vector<128x1xf32>
    %212 = vector.extract_strided_slice %2 {offsets = [3, 0], sizes = [1, 128], strides = [1, 1]} : vector<4x128xf32> to vector<1x128xf32>
    %213 = vector.broadcast %211 : vector<128x1xf32> to vector<128x128xf32>
    %214 = vector.broadcast %212 : vector<1x128xf32> to vector<128x128xf32>
    %215 = arith.mulf %213, %214 : vector<128x128xf32>
    %216 = arith.addf %210, %215 : vector<128x128xf32>
    %217 = vector.broadcast %3 : vector<1x128xf32> to vector<128x128xf32>
    %218 = arith.addf %216, %217 : vector<128x128xf32>
    %cst_18 = arith.constant 0.000000e+00 : f32
    %219 = vector.broadcast %cst_18 : f32 to vector<128x128xf32>
    %220 = arith.maximumf %218, %219 : vector<128x128xf32>
    %c768 = arith.constant 768 : index
    %c0_19 = arith.constant 0 : index
    %221 = vector.load %arg9[%c768, %c0_19] : memref<1024x128xf32, #tpu.memory_space<vmem>>, vector<128x128xf32>
    tpu.vector_store %arg9[%c768, %c0_19], %220 {strides = array<i32>} : memref<1024x128xf32, #tpu.memory_space<vmem>>, vector<128x128xf32>,
    %222 = vector.extract_strided_slice %1 {offsets = [0, 7], sizes = [128, 1], strides = [1, 1]} : vector<128x8xf32> to vector<128x1xf32>
    %223 = tpu.concatenate %222, %4 in 0 : vector<128x1xf32>, vector<8x1xf32> -> vector<136x1xf32>
    %224 = vector.extract_strided_slice %223 {offsets = [0, 0], sizes = [128, 1], strides = [1, 1]} : vector<136x1xf32> to vector<128x1xf32>
    %225 = vector.extract_strided_slice %2 {offsets = [0, 0], sizes = [1, 128], strides = [1, 1]} : vector<4x128xf32> to vector<1x128xf32>
    %226 = vector.broadcast %224 : vector<128x1xf32> to vector<128x128xf32>
    %227 = vector.broadcast %225 : vector<1x128xf32> to vector<128x128xf32>
    %228 = arith.mulf %226, %227 : vector<128x128xf32>
    %229 = vector.extract_strided_slice %223 {offsets = [1, 0], sizes = [128, 1], strides = [1, 1]} : vector<136x1xf32> to vector<128x1xf32>
    %230 = vector.extract_strided_slice %2 {offsets = [1, 0], sizes = [1, 128], strides = [1, 1]} : vector<4x128xf32> to vector<1x128xf32>
    %231 = vector.broadcast %229 : vector<128x1xf32> to vector<128x128xf32>
    %232 = vector.broadcast %230 : vector<1x128xf32> to vector<128x128xf32>
    %233 = arith.mulf %231, %232 : vector<128x128xf32>
    %234 = arith.addf %228, %233 : vector<128x128xf32>
    %235 = vector.extract_strided_slice %223 {offsets = [2, 0], sizes = [128, 1], strides = [1, 1]} : vector<136x1xf32> to vector<128x1xf32>
    %236 = vector.extract_strided_slice %2 {offsets = [2, 0], sizes = [1, 128], strides = [1, 1]} : vector<4x128xf32> to vector<1x128xf32>
    %237 = vector.broadcast %235 : vector<128x1xf32> to vector<128x128xf32>
    %238 = vector.broadcast %236 : vector<1x128xf32> to vector<128x128xf32>
    %239 = arith.mulf %237, %238 : vector<128x128xf32>
    %240 = arith.addf %234, %239 : vector<128x128xf32>
    %241 = vector.extract_strided_slice %223 {offsets = [3, 0], sizes = [128, 1], strides = [1, 1]} : vector<136x1xf32> to vector<128x1xf32>
    %242 = vector.extract_strided_slice %2 {offsets = [3, 0], sizes = [1, 128], strides = [1, 1]} : vector<4x128xf32> to vector<1x128xf32>
    %243 = vector.broadcast %241 : vector<128x1xf32> to vector<128x128xf32>
    %244 = vector.broadcast %242 : vector<1x128xf32> to vector<128x128xf32>
    %245 = arith.mulf %243, %244 : vector<128x128xf32>
    %246 = arith.addf %240, %245 : vector<128x128xf32>
    %247 = vector.broadcast %3 : vector<1x128xf32> to vector<128x128xf32>
    %248 = arith.addf %246, %247 : vector<128x128xf32>
    %cst_20 = arith.constant 0.000000e+00 : f32
    %249 = vector.broadcast %cst_20 : f32 to vector<128x128xf32>
    %250 = arith.maximumf %248, %249 : vector<128x128xf32>
    %c896 = arith.constant 896 : index
    %c0_21 = arith.constant 0 : index
    %251 = vector.load %arg9[%c896, %c0_21] : memref<1024x128xf32, #tpu.memory_space<vmem>>, vector<128x128xf32>
    tpu.vector_store %arg9[%c896, %c0_21], %250 {strides = array<i32>} : memref<1024x128xf32, #tpu.memory_space<vmem>>, vector<128x128xf32>,
    %c0_22 = arith.constant 0 : index
    %c0_23 = arith.constant 0 : index
    %252 = vector.load %arg9[%c0_22, %c0_23] : memref<1024x128xf32, #tpu.memory_space<vmem>>, vector<1024x128xf32>
    %253 = vector.extract_strided_slice %252 {offsets = [0, 0], sizes = [1018, 32], strides = [1, 1]} : vector<1024x128xf32> to vector<1018x32xf32>
    %254 = arith.truncf %253 : vector<1018x32xf32> to vector<1018x32xbf16>
    %255 = vector.extract_strided_slice %252 {offsets = [1, 0], sizes = [1018, 32], strides = [1, 1]} : vector<1024x128xf32> to vector<1018x32xf32>
    %256 = arith.truncf %255 : vector<1018x32xf32> to vector<1018x32xbf16>
    %257 = vector.extract_strided_slice %252 {offsets = [2, 0], sizes = [1018, 32], strides = [1, 1]} : vector<1024x128xf32> to vector<1018x32xf32>
    %258 = arith.truncf %257 : vector<1018x32xf32> to vector<1018x32xbf16>
    %259 = vector.extract_strided_slice %252 {offsets = [3, 0], sizes = [1018, 32], strides = [1, 1]} : vector<1024x128xf32> to vector<1018x32xf32>
    %260 = arith.truncf %259 : vector<1018x32xf32> to vector<1018x32xbf16>
    %261 = tpu.concatenate %254, %256, %258, %260 in 1 : vector<1018x32xbf16>, vector<1018x32xbf16>, vector<1018x32xbf16>, vector<1018x32xbf16> -> vector<1018x128xbf16>
    %c0_24 = arith.constant 0 : index
    %c0_25 = arith.constant 0 : index
    %262 = vector.load %arg4[%c0_24, %c0_25] : memref<128x128xbf16, #tpu.memory_space<vmem>>, vector<128x128xbf16>
    %cst_26 = arith.constant dense<0.000000e+00> : vector<1018x128xf32>
    %263 = tpu.matmul %261, %262, %cst_26 {dimension_numbers = #tpu.dot_dimension_numbers<[1], [0], [0], [1], [0, 0, 1, 1], [], []>} : vector<1018x128xbf16>, vector<128x128xbf16>, vector<1018x128xf32> -> vector<1018x128xf32>
    %c0_27 = arith.constant 0 : index
    %c0_28 = arith.constant 0 : index
    %264 = vector.load %arg5[%c0_27, %c0_28] : memref<1x128xf32, #tpu.memory_space<vmem>>, vector<1x128xf32>
    %265 = vector.broadcast %264 : vector<1x128xf32> to vector<1018x128xf32>
    %266 = arith.addf %263, %265 : vector<1018x128xf32>
    %cst_29 = arith.constant 0.000000e+00 : f32
    %267 = vector.broadcast %cst_29 : f32 to vector<1018x128xf32>
    %268 = arith.maximumf %266, %267 : vector<1018x128xf32>
    %269 = vector.extract_strided_slice %268 {offsets = [0, 0], sizes = [1015, 64], strides = [1, 1]} : vector<1018x128xf32> to vector<1015x64xf32>
    %270 = arith.truncf %269 : vector<1015x64xf32> to vector<1015x64xbf16>
    %271 = vector.extract_strided_slice %268 {offsets = [1, 0], sizes = [1015, 64], strides = [1, 1]} : vector<1018x128xf32> to vector<1015x64xf32>
    %272 = arith.truncf %271 : vector<1015x64xf32> to vector<1015x64xbf16>
    %273 = vector.extract_strided_slice %268 {offsets = [2, 0], sizes = [1015, 64], strides = [1, 1]} : vector<1018x128xf32> to vector<1015x64xf32>
    %274 = arith.truncf %273 : vector<1015x64xf32> to vector<1015x64xbf16>
    %275 = vector.extract_strided_slice %268 {offsets = [3, 0], sizes = [1015, 64], strides = [1, 1]} : vector<1018x128xf32> to vector<1015x64xf32>
    %276 = arith.truncf %275 : vector<1015x64xf32> to vector<1015x64xbf16>
    %277 = tpu.concatenate %270, %272, %274, %276 in 1 : vector<1015x64xbf16>, vector<1015x64xbf16>, vector<1015x64xbf16>, vector<1015x64xbf16> -> vector<1015x256xbf16>
    %c0_30 = arith.constant 0 : index
    %c0_31 = arith.constant 0 : index
    %278 = vector.load %arg6[%c0_30, %c0_31] : memref<256x128xbf16, #tpu.memory_space<vmem>>, vector<256x128xbf16>
    %cst_32 = arith.constant dense<0.000000e+00> : vector<1015x128xf32>
    %279 = tpu.matmul %277, %278, %cst_32 {dimension_numbers = #tpu.dot_dimension_numbers<[1], [0], [0], [1], [0, 0, 1, 1], [], []>} : vector<1015x256xbf16>, vector<256x128xbf16>, vector<1015x128xf32> -> vector<1015x128xf32>
    %c0_33 = arith.constant 0 : index
    %c0_34 = arith.constant 0 : index
    %280 = vector.load %arg7[%c0_33, %c0_34] : memref<1x128xf32, #tpu.memory_space<vmem>>, vector<1x128xf32>
    %281 = vector.broadcast %280 : vector<1x128xf32> to vector<1015x128xf32>
    %282 = arith.addf %279, %281 : vector<1015x128xf32>
    %cst_35 = arith.constant 0.000000e+00 : f32
    %283 = vector.broadcast %cst_35 : f32 to vector<1015x128xf32>
    %284 = arith.maximumf %282, %283 : vector<1015x128xf32>
    %285 = vector.extract_strided_slice %284 {offsets = [0, 0], sizes = [23, 128], strides = [1, 1]} : vector<1015x128xf32> to vector<23x128xf32>
    %cst_36 = arith.constant dense<0xFF800000> : vector<128xf32>
    %286 = vector.multi_reduction <maximumf>, %285, %cst_36 [0] : vector<23x128xf32> to vector<128xf32>
    %287 = vector.shape_cast %286 : vector<128xf32> to vector<1x128xf32>
    %c0_37 = arith.constant 0 : index
    %c0_38 = arith.constant 0 : index
    %288 = vector.load %arg8[%c0_37, %c0_38] : memref<8x128xf32, #tpu.memory_space<vmem>>, vector<1x128xf32>
    tpu.vector_store %arg8[%c0_37, %c0_38], %287 {strides = array<i32>} : memref<8x128xf32, #tpu.memory_space<vmem>>, vector<1x128xf32>,
    %289 = vector.extract_strided_slice %284 {offsets = [128, 0], sizes = [23, 128], strides = [1, 1]} : vector<1015x128xf32> to vector<23x128xf32>
    %cst_39 = arith.constant dense<0xFF800000> : vector<128xf32>
    %290 = vector.multi_reduction <maximumf>, %289, %cst_39 [0] : vector<23x128xf32> to vector<128xf32>
    %291 = vector.shape_cast %290 : vector<128xf32> to vector<1x128xf32>
    %c1 = arith.constant 1 : index
    %c0_40 = arith.constant 0 : index
    %292 = vector.load %arg8[%c1, %c0_40] : memref<8x128xf32, #tpu.memory_space<vmem>>, vector<1x128xf32>
    tpu.vector_store %arg8[%c1, %c0_40], %291 {strides = array<i32>} : memref<8x128xf32, #tpu.memory_space<vmem>>, vector<1x128xf32>,
    %293 = vector.extract_strided_slice %284 {offsets = [256, 0], sizes = [23, 128], strides = [1, 1]} : vector<1015x128xf32> to vector<23x128xf32>
    %cst_41 = arith.constant dense<0xFF800000> : vector<128xf32>
    %294 = vector.multi_reduction <maximumf>, %293, %cst_41 [0] : vector<23x128xf32> to vector<128xf32>
    %295 = vector.shape_cast %294 : vector<128xf32> to vector<1x128xf32>
    %c2 = arith.constant 2 : index
    %c0_42 = arith.constant 0 : index
    %296 = vector.load %arg8[%c2, %c0_42] : memref<8x128xf32, #tpu.memory_space<vmem>>, vector<1x128xf32>
    tpu.vector_store %arg8[%c2, %c0_42], %295 {strides = array<i32>} : memref<8x128xf32, #tpu.memory_space<vmem>>, vector<1x128xf32>,
    %297 = vector.extract_strided_slice %284 {offsets = [384, 0], sizes = [23, 128], strides = [1, 1]} : vector<1015x128xf32> to vector<23x128xf32>
    %cst_43 = arith.constant dense<0xFF800000> : vector<128xf32>
    %298 = vector.multi_reduction <maximumf>, %297, %cst_43 [0] : vector<23x128xf32> to vector<128xf32>
    %299 = vector.shape_cast %298 : vector<128xf32> to vector<1x128xf32>
    %c3 = arith.constant 3 : index
    %c0_44 = arith.constant 0 : index
    %300 = vector.load %arg8[%c3, %c0_44] : memref<8x128xf32, #tpu.memory_space<vmem>>, vector<1x128xf32>
    tpu.vector_store %arg8[%c3, %c0_44], %299 {strides = array<i32>} : memref<8x128xf32, #tpu.memory_space<vmem>>, vector<1x128xf32>,
    %301 = vector.extract_strided_slice %284 {offsets = [512, 0], sizes = [23, 128], strides = [1, 1]} : vector<1015x128xf32> to vector<23x128xf32>
    %cst_45 = arith.constant dense<0xFF800000> : vector<128xf32>
    %302 = vector.multi_reduction <maximumf>, %301, %cst_45 [0] : vector<23x128xf32> to vector<128xf32>
    %303 = vector.shape_cast %302 : vector<128xf32> to vector<1x128xf32>
    %c4 = arith.constant 4 : index
    %c0_46 = arith.constant 0 : index
    %304 = vector.load %arg8[%c4, %c0_46] : memref<8x128xf32, #tpu.memory_space<vmem>>, vector<1x128xf32>
    tpu.vector_store %arg8[%c4, %c0_46], %303 {strides = array<i32>} : memref<8x128xf32, #tpu.memory_space<vmem>>, vector<1x128xf32>,
    %305 = vector.extract_strided_slice %284 {offsets = [640, 0], sizes = [23, 128], strides = [1, 1]} : vector<1015x128xf32> to vector<23x128xf32>
    %cst_47 = arith.constant dense<0xFF800000> : vector<128xf32>
    %306 = vector.multi_reduction <maximumf>, %305, %cst_47 [0] : vector<23x128xf32> to vector<128xf32>
    %307 = vector.shape_cast %306 : vector<128xf32> to vector<1x128xf32>
    %c5 = arith.constant 5 : index
    %c0_48 = arith.constant 0 : index
    %308 = vector.load %arg8[%c5, %c0_48] : memref<8x128xf32, #tpu.memory_space<vmem>>, vector<1x128xf32>
    tpu.vector_store %arg8[%c5, %c0_48], %307 {strides = array<i32>} : memref<8x128xf32, #tpu.memory_space<vmem>>, vector<1x128xf32>,
    %309 = vector.extract_strided_slice %284 {offsets = [768, 0], sizes = [23, 128], strides = [1, 1]} : vector<1015x128xf32> to vector<23x128xf32>
    %cst_49 = arith.constant dense<0xFF800000> : vector<128xf32>
    %310 = vector.multi_reduction <maximumf>, %309, %cst_49 [0] : vector<23x128xf32> to vector<128xf32>
    %311 = vector.shape_cast %310 : vector<128xf32> to vector<1x128xf32>
    %c6 = arith.constant 6 : index
    %c0_50 = arith.constant 0 : index
    %312 = vector.load %arg8[%c6, %c0_50] : memref<8x128xf32, #tpu.memory_space<vmem>>, vector<1x128xf32>
    tpu.vector_store %arg8[%c6, %c0_50], %311 {strides = array<i32>} : memref<8x128xf32, #tpu.memory_space<vmem>>, vector<1x128xf32>,
    %313 = vector.extract_strided_slice %284 {offsets = [896, 0], sizes = [23, 128], strides = [1, 1]} : vector<1015x128xf32> to vector<23x128xf32>
    %cst_51 = arith.constant dense<0xFF800000> : vector<128xf32>
    %314 = vector.multi_reduction <maximumf>, %313, %cst_51 [0] : vector<23x128xf32> to vector<128xf32>
    %315 = vector.shape_cast %314 : vector<128xf32> to vector<1x128xf32>
    %c7 = arith.constant 7 : index
    %c0_52 = arith.constant 0 : index
    %316 = vector.load %arg8[%c7, %c0_52] : memref<8x128xf32, #tpu.memory_space<vmem>>, vector<1x128xf32>
    tpu.vector_store %arg8[%c7, %c0_52], %315 {strides = array<i32>} : memref<8x128xf32, #tpu.memory_space<vmem>>, vector<1x128xf32>,
    return
  }
  func.func @transform_0(%arg0: i32) -> (i32, i32) {
    %c0_i32 = arith.constant 0 : i32
    %c0_i32_0 = arith.constant 0 : i32
    return %arg0, %c0_i32 : i32, i32
  }
  func.func @transform_1(%arg0: i32) -> (i32, i32) {
    %c0_i32 = arith.constant 0 : i32
    %c0_i32_0 = arith.constant 0 : i32
    %c0_i32_1 = arith.constant 0 : i32
    return %c0_i32, %c0_i32_0 : i32, i32
  }
  func.func @transform_2(%arg0: i32) -> (i32, i32) {
    %c0_i32 = arith.constant 0 : i32
    %c0_i32_0 = arith.constant 0 : i32
    %c0_i32_1 = arith.constant 0 : i32
    return %c0_i32, %c0_i32_0 : i32, i32
  }
  func.func @transform_3(%arg0: i32) -> (i32, i32) {
    %c0_i32 = arith.constant 0 : i32
    %c0_i32_0 = arith.constant 0 : i32
    %c0_i32_1 = arith.constant 0 : i32
    return %c0_i32, %c0_i32_0 : i32, i32
  }
  func.func @transform_4(%arg0: i32) -> (i32, i32) {
    %c0_i32 = arith.constant 0 : i32
    %c0_i32_0 = arith.constant 0 : i32
    %c0_i32_1 = arith.constant 0 : i32
    return %c0_i32, %c0_i32_0 : i32, i32
  }
  func.func @transform_5(%arg0: i32) -> (i32, i32) {
    %c0_i32 = arith.constant 0 : i32
    %c0_i32_0 = arith.constant 0 : i32
    %c0_i32_1 = arith.constant 0 : i32
    return %c0_i32, %c0_i32_0 : i32, i32
  }
  func.func @transform_6(%arg0: i32) -> (i32, i32) {
    %c0_i32 = arith.constant 0 : i32
    %c0_i32_0 = arith.constant 0 : i32
    %c0_i32_1 = arith.constant 0 : i32
    return %c0_i32, %c0_i32_0 : i32, i32
  }
  func.func @transform_7(%arg0: i32) -> (i32, i32) {
    %c0_i32 = arith.constant 0 : i32
    %c0_i32_0 = arith.constant 0 : i32
    return %arg0, %c0_i32 : i32, i32
  }
}

</mosaic_0001>

<bundles_post_ra>
// kernel: tpu_custom_call.1
= control target key start
LH: loop header
LB: loop body
LE: loop exit
PB: predicated region body
PF: predicated region fallthrough
CT: control target
= control target key end

     0   :  { %12 = vsyncpa [#allocation4], 0  ;;  %s16619_s0 = inlined_call_operand.hbm [shape: f32[8,128], index: 0, kind: input, shape index: {}]   ;;  %s16620_s1 = inlined_call_operand.hbm [shape: f32[4,128], index: 1, kind: input, shape index: {}]   ;;  %s16621_s2 = inlined_call_operand.vmem [shape: f32[1,128], index: 2, kind: input, shape index: {}]   ;;  %s16622_s3 = inlined_call_operand.hbm [shape: bf16[128,128], index: 3, kind: input, shape index: {}]   ;;  %s16623_s4 = inlined_call_operand.vmem [shape: f32[1,128], index: 4, kind: input, shape index: {}]   ;;  %s16624_s5 = inlined_call_operand.hbm [shape: bf16[256,128], index: 5, kind: input, shape index: {}]   ;;  %s16625_s6 = inlined_call_operand.vmem [shape: f32[1,128], index: 6, kind: input, shape index: {}]   ;;  %s16626_s7 = inlined_call_operand.hbm [shape: f32[8,128], index: 7, kind: output, shape index: {}]  }
   0x1   :  { %13 = vsyncpa [#allocation7], 0 }
   0x2   :  { %14 = vsyncpa [#allocation10], 0 }
   0x3   :  { %15 = vsyncpa [#allocation5], 0  ;;  %s9249_s24 = smov [#allocation6]   ;;  %s9250_s26 = smov [#allocation3]  }
   0x4   :  { %s32_s25 = sshll.u32 %s9249_s24, 4  ;;  %s22_s27 = sshll.u32 %s9250_s26, 4  ;;  %s33_s25 = int_to_ptr.vmem [resolvable:$true] %s32_s25  ;;  %s23_s27 = int_to_ptr.vmem [resolvable:$true] %s22_s27 }
   0x5   :  { %s9131_s30 = scalar_lea.hbm %s16620_s1, 64 }
   0x6   :  { %p9132_p0 = scmp.ne.s32.totalorder %s16620_s1, %s9131_s30  ;;  %p9135_p1 = scmp.lt.u32.totalorder %s9131_s30, %s16620_s1 }
   0x8   :  { %p9137_p2 = pnand %p9135_p1, %p9132_p0 }
   0xa   :  { %9140 = shalt.err (!%p9137_p2)
}
   0xb   :  { %s9141_s12 = scalar_lea.vmem %s33_s25, 64  ;;  %p9146_p4 = scmp.lt.s32.totalorder %s33_s25, %s33_s25 }
   0xc   :  { %p9142_p3 = scmp.ne.s32.totalorder %s33_s25, %s9141_s12  ;;  %p9147_p5 = scmp.lt.s32.totalorder %s9141_s12, %s9141_s12 }
   0xe   :  { %p9148_p6 = por %p9147_p5, %p9146_p4 }
  0x10   :  { %p9149_p7 = pnand %p9148_p6, %p9142_p3 }
  0x12   :  { %9152 = shalt.err (!%p9149_p7)
}
  0x13   :  { %35 = dma.hbm_to_vmem [thread:$0]  %s16620_s1, 64, %s33_s25, [#allocation7]  }
  0x14   :  { %s9153_s17 = scalar_lea.hbm %s16619_s0, 128 }
  0x15   :  { %p9154_p8 = scmp.ne.s32.totalorder %s16619_s0, %s9153_s17  ;;  %p9157_p9 = scmp.lt.u32.totalorder %s9153_s17, %s16619_s0 }
  0x17   :  { %p9159_p10 = pnand %p9157_p9, %p9154_p8 }
  0x19   :  { %9162 = shalt.err (!%p9159_p10)
}
  0x1a   :  { %s9163_s22 = scalar_lea.vmem %s23_s27, 128  ;;  %p9168_p12 = scmp.lt.s32.totalorder %s23_s27, %s23_s27 }
  0x1b   :  { %p9164_p11 = scmp.ne.s32.totalorder %s23_s27, %s9163_s22  ;;  %p9169_p13 = scmp.lt.s32.totalorder %s9163_s22, %s9163_s22 }
  0x1d   :  { %p9170_p0 = por %p9169_p13, %p9168_p12 }
  0x1f   :  { %p9171_p1 = pnand %p9170_p0, %p9164_p11 }
  0x21   :  { %9174 = shalt.err (!%p9171_p1)
}
  0x22   :  { %25 = dma.hbm_to_vmem [thread:$0]  %s16619_s0, 128, %s23_s27, [#allocation4]  }
  0x23   :  { %s9251_s24 = smov [#allocation8]   ;;  %s9175_s29 = scalar_lea.hbm %s16622_s3, 1024 }
  0x24   :  { %s43_s25 = sshll.u32 %s9251_s24, 4  ;;  %p9176_p2 = scmp.ne.s32.totalorder %s16622_s3, %s9175_s29  ;;  %s44_s25 = int_to_ptr.vmem [resolvable:$true] %s43_s25 }
  0x25   :  { %p9179_p3 = scmp.lt.u32.totalorder %s9175_s29, %s16622_s3 }
  0x27   :  { %p9181_p4 = pnand %p9179_p3, %p9176_p2 }
  0x29   :  { %9184 = shalt.err (!%p9181_p4)
}
  0x2a   :  { %s9185_s11 = scalar_lea.vmem %s44_s25, 1024  ;;  %p9190_p6 = scmp.lt.s32.totalorder %s44_s25, %s44_s25 }
  0x2b   :  { %p9186_p5 = scmp.ne.s32.totalorder %s44_s25, %s9185_s11  ;;  %p9191_p7 = scmp.lt.s32.totalorder %s9185_s11, %s9185_s11 }
  0x2d   :  { %p9192_p8 = por %p9191_p7, %p9190_p6 }
  0x2f   :  { %p9193_p9 = pnand %p9192_p8, %p9186_p5 }
  0x31   :  { %9196 = shalt.err (!%p9193_p9)
}
  0x32   :  { %s9252_s0 = smov 64   ;;  %s9253_s27 = smov 4  }
  0x33   :  { %49 = dma.hbm_to_vmem [thread:$0]  %s16622_s3, 1024, %s44_s25, [#allocation7], %s9252_s0, %s9252_s0, %s9253_s27  }
  0x34   :  { %s9254_s14 = smov [#allocation9]   ;;  %s9197_s18 = scalar_lea.hbm %s16624_s5, 2048 }
  0x35   :  { %s57_s15 = sshll.u32 %s9254_s14, 4  ;;  %p9198_p10 = scmp.ne.s32.totalorder %s16624_s5, %s9197_s18  ;;  %s58_s15 = int_to_ptr.vmem [resolvable:$true] %s57_s15 }
  0x36   :  { %p9201_p11 = scmp.lt.u32.totalorder %s9197_s18, %s16624_s5 }
  0x38   :  { %p9203_p12 = pnand %p9201_p11, %p9198_p10 }
  0x3a   :  { %9206 = shalt.err (!%p9203_p12)
}
  0x3b   :  { %s9207_s1 = scalar_lea.vmem %s58_s15, 2048  ;;  %p9212_p0 = scmp.lt.s32.totalorder %s58_s15, %s58_s15 }
  0x3c   :  { %p9208_p13 = scmp.ne.s32.totalorder %s58_s15, %s9207_s1  ;;  %p9213_p1 = scmp.lt.s32.totalorder %s9207_s1, %s9207_s1 }
  0x3e   :  { %p9214_p2 = por %p9213_p1, %p9212_p0 }
  0x40   :  { %p9215_p3 = pnand %p9214_p2, %p9208_p13 }
  0x42   :  { %9218 = shalt.err (!%p9215_p3)
}
  0x43   :  { %63 = dma.hbm_to_vmem [thread:$0]  %s16624_s5, 2048, %s58_s15, [#allocation10], %s9252_s0, %s9252_s0, %s9253_s27  }
  0x44   :  { %9241 = dma.done.wait [#allocation4], 128  }
  0x45   :  { %9242 = vsyncadd [#allocation4], 4294967168 }
  0x46   :  { %9243 = dma.done.wait [#allocation7], 1088  }
  0x47   :  { %9244 = vsyncadd [#allocation7], 4294966208 }
  0x48   :  { %9245 = dma.done.wait [#allocation10], 2048  }
  0x49   :  { %9246 = vsyncadd [#allocation10], 4294965248  ;;  %v16629_v0 = vmov 0   ;;  %v79_v1 = vld [vmem:[#allocation3] sm:$0xff]  ;;  %v16627_v2 = vmov 2   ;;  %s9257_s5 = smov 127   ;;  %v196_v25 = vlaneseq }
  0x4a   :  { %9043 = vset.pattern.permute.xlu1 %v16629_v0  ;;  %8992 = vmatprep.subr.bf16.mxu1 %v16629_v0  ;;  %v16628_v5 = vmov 1   ;;  %v16634_v20 = vmov 3   ;;  %v112_v30 = vld [vmem:[#allocation6] sm:$0xf]  ;;  %vm258_vm0 = vcmask 1046528   ;;  %vm362_vm1 = vcmask 1045504  }
  0x4b   :  { %80 = vxpose.xlu0.b32.start.end [1/1] (short) %v79_v1, 128  ;;  %v197_v27 = vshrl.u32 %v196_v25, 7  ;;  %vm466_vm2 = vcmask 1044480   ;;  %vm3782_vm3 = vsmask.f32 7424  ;;  %s9260_s26 = smov 32   ;;  %s9261_s28 = smov 96  }
  0x4c   :  { %vm4742_vm4 = vsmask.f32 6400  ;;  %vm5126_vm5 = vcmask 261120   ;;  %vm5255_vm6 = vcmask 523264   ;;  %vm5384_vm7 = vcmask 785408  }
  0x4d   :  { %v222_v29 = vsub.s32 1, %v197_v27  ;;  %v326_v31 = vsub.s32 2, %v197_v27  ;;  %v430_v34 = vsub.s32 3, %v197_v27  ;;  %v198_v35 = vsub.s32 0, %v197_v27 }
  0x4f   :  { %v9489_v33 = vrot.slane %v112_v30, %v222_v29  ;;  %v9499_v38 = vrot.slane %v112_v30, %v326_v31  ;;  %v9501_v39 = vrot.slane %v112_v30, %v430_v34  ;;  %v9506_v42 = vrot.slane %v112_v30, %v198_v35 }
  0x74   :  { %9045 = vset.pattern.permute.xlu0 %v16627_v2 }
  0xcb   :  { %v9362_v3 = vpop.trf.xlu0 }
  0xcc   :  { %16984 = vst [vmem:[#allocation16_spill] sm:$0xff] %v9362_v3  ;;  %118 = vperm.xlu1 %9043, %v9362_v3   ;;  %115 = vrot.lane.b32.xlu0 %v9362_v3, %s9257_s5 }
  0xcf   :  { %v9366_v4 = vpop.trf.xlu0 }
  0xd0   :  { %16985 = vst [vmem:[#allocation17_spill] sm:$0xff] %v9366_v4  ;;  %9044 = vset.pattern.permute.xlu1 %v16628_v5  ;;  %1016 = vperm.xlu0 %9045, %v9362_v3  }
  0xd1   :  { %587 = vperm.xlu1 %9044, %v9362_v3  }
  0xd3   :  { %v9371_v6 = vpop.trf.xlu0 }
  0xd4   :  { %16986 = vst [vmem:[#allocation18_spill] sm:$0xff] %v9371_v6 }
  0xd5   :  { %9046 = vset.pattern.permute.xlu1 %v16629_v0 }
  0xd6   :  { %123 = vperm.xlu1 %9046, %v9366_v4  }
  0xd7   :  { %v9375_v7 = vpop.trf.xlu0 }
  0xd8   :  { %16987 = vst [vmem:[#allocation19_spill] sm:$0xff] %v9375_v7  ;;  %1028 = vperm.xlu0 %9045, %v9375_v7  }
  0xda   :  { %9047 = vset.pattern.permute.xlu1 %v16628_v5 }
  0xdb   :  { %591 = vperm.xlu1 %9047, %v9366_v4   ;;  %v9380_v8 = vpop.trf.xlu0 }
  0xdc   :  { %16988 = vst [vmem:[#allocation20_spill] sm:$0xff] %v9380_v8 }
  0xdf   :  { %9048 = vset.pattern.permute.xlu1 %v16627_v2  ;;  %v9383_v9 = vpop.trf.xlu0 }
  0xe0   :  { %16989 = vst [vmem:[#allocation21_spill] sm:$0xff] %v9383_v9  ;;  %1020 = vperm.xlu1 %9048, %v9366_v4   ;;  %1036 = vperm.xlu0 %9045, %v9383_v9  }
  0xe3   :  { %v9387_v10 = vpop.trf.xlu0 }
  0xe4   :  { %16990 = vst [vmem:[#allocation22_spill] sm:$0xff] %v9387_v10  ;;  %9049 = vset.pattern.permute.xlu1 %v16629_v0 }
  0xe5   :  { %128 = vperm.xlu1 %9049, %v9371_v6  }
  0xe7   :  { %v9391_v11 = vpop.trf.xlu0 }
  0xe8   :  { %16991 = vst [vmem:[#allocation23_spill] sm:$0xff] %v9391_v11  ;;  %1044 = vperm.xlu0 %9045, %v9391_v11  }
  0xe9   :  { %9050 = vset.pattern.permute.xlu1 %v16628_v5 }
  0xea   :  { %595 = vperm.xlu1 %9050, %v9371_v6  }
  0xeb   :  { %v9396_v12 = vpop.trf.xlu0 }
  0xec   :  { %16992 = vst [vmem:[#allocation24_spill] sm:$0xff] %v9396_v12  ;;  %9069 = vset.pattern.permute.xlu0 %v16628_v5 }
  0xee   :  { %9051 = vset.pattern.permute.xlu1 %v16627_v2 }
  0xef   :  { %1024 = vperm.xlu1 %9051, %v9371_v6   ;;  %v9401_v13 = vpop.trf.xlu0 }
  0xf0   :  { %16993 = vst [vmem:[#allocation25_spill] sm:$0xff] %v9401_v13 }
  0xf3   :  { %9052 = vset.pattern.permute.xlu1 %v16629_v0  ;;  %v9404_v14 = vpop.trf.xlu0 }
  0xf4   :  { %16994 = vst [vmem:[#allocation26_spill] sm:$0xff] %v9404_v14  ;;  %133 = vperm.xlu1 %9052, %v9375_v7   ;;  %627 = vperm.xlu0 %9069, %v9404_v14  }
  0xf7   :  { %v9408_v15 = vpop.trf.xlu0 }
  0xf8   :  { %16995 = vst [vmem:[#allocation27_spill] sm:$0xff] %v9408_v15  ;;  %9053 = vset.pattern.permute.xlu1 %v16628_v5 }
  0xf9   :  { %599 = vperm.xlu1 %9053, %v9375_v7  }
  0xfb   :  { %v9412_v16 = vpop.trf.xlu0 }
  0xfc   :  { %16996 = vst [vmem:[#allocation28_spill] sm:$0xff] %v9412_v16 }
  0xfd   :  { %9054 = vset.pattern.permute.xlu1 %v16629_v0 }
  0xfe   :  { %138 = vperm.xlu1 %9054, %v9380_v8  }
  0xff   :  { %v9416_v17 = vpop.trf.xlu0 }
 0x100   :  { %16997 = vst [vmem:[#allocation29_spill] sm:$0xff] %v9416_v17  ;;  %639 = vperm.xlu0 %9069, %v9416_v17  }
 0x102   :  { %9055 = vset.pattern.permute.xlu1 %v16628_v5 }
 0x103   :  { %603 = vperm.xlu1 %9055, %v9380_v8   ;;  %v9421_v18 = vpop.trf.xlu0 }
 0x104   :  { %16998 = vst [vmem:[#allocation30_spill] sm:$0xff] %v9421_v18 }
 0x107   :  { %9056 = vset.pattern.permute.xlu1 %v16627_v2  ;;  %v9424_v19 = vpop.trf.xlu0 }
 0x108   :  { %16999 = vst [vmem:[#allocation31_spill] sm:$0xff] %v9424_v19  ;;  %1032 = vperm.xlu1 %9056, %v9380_v8   ;;  %647 = vperm.xlu0 %9069, %v9424_v19  }
 0x10c   :  { %9057 = vset.pattern.permute.xlu1 %v16629_v0  ;;  %9078 = vset.pattern.permute.xlu0 %v16627_v2 }
 0x10d   :  { %143 = vperm.xlu1 %9057, %v9383_v9   ;;  %1052 = vperm.xlu0 %9078, %v9401_v13  }
 0x111   :  { %9058 = vset.pattern.permute.xlu1 %v16628_v5  ;;  %1060 = vperm.xlu0 %9078, %v9408_v15  }
 0x112   :  { %607 = vperm.xlu1 %9058, %v9383_v9  }
 0x115   :  { %1068 = vperm.xlu0 %9078, %v9416_v17  }
 0x116   :  { %9059 = vset.pattern.permute.xlu1 %v16629_v0 }
 0x117   :  { %148 = vperm.xlu1 %9059, %v9387_v10  }
 0x119   :  { %1076 = vperm.xlu0 %9078, %v9424_v19  }
 0x11b   :  { %9060 = vset.pattern.permute.xlu1 %v16628_v5 }
 0x11c   :  { %611 = vperm.xlu1 %9060, %v9387_v10  }
 0x11d   :  { %9081 = vset.pattern.permute.xlu0 %v16634_v20 }
 0x11e   :  { %1449 = vperm.xlu0 %9081, %v9366_v4  }
 0x120   :  { %9061 = vset.pattern.permute.xlu1 %v16627_v2 }
 0x121   :  { %1040 = vperm.xlu1 %9061, %v9387_v10  }
 0x122   :  { %1457 = vperm.xlu0 %9081, %v9375_v7  }
 0x125   :  { %9062 = vset.pattern.permute.xlu1 %v16629_v0 }
 0x126   :  { %153 = vperm.xlu1 %9062, %v9391_v11   ;;  %1469 = vperm.xlu0 %9081, %v9387_v10  }
 0x12a   :  { %9063 = vset.pattern.permute.xlu1 %v16628_v5  ;;  %1473 = vperm.xlu0 %9081, %v9391_v11  }
 0x12b   :  { %615 = vperm.xlu1 %9063, %v9391_v11  }
 0x12e   :  { %1485 = vperm.xlu0 %9081, %v9404_v14  }
 0x12f   :  { %9064 = vset.pattern.permute.xlu1 %v16629_v0 }
 0x130   :  { %158 = vperm.xlu1 %9064, %v9396_v12  }
 0x132   :  { %1489 = vperm.xlu0 %9081, %v9408_v15  }
 0x134   :  { %9065 = vset.pattern.permute.xlu1 %v16628_v5 }
 0x135   :  { %619 = vperm.xlu1 %9065, %v9396_v12  }
 0x136   :  { %1501 = vperm.xlu0 %9081, %v9421_v18  }
 0x139   :  { %9066 = vset.pattern.permute.xlu1 %v16629_v0 }
 0x13a   :  { %163 = vperm.xlu1 %9066, %v9401_v13   ;;  %1505 = vperm.xlu0 %9081, %v9424_v19  }
 0x13e   :  { %9067 = vset.pattern.permute.xlu1 %v16628_v5  ;;  %v9493_v36 = vpop.permute.xlu0 %115 }
 0x13f   :  { %623 = vperm.xlu1 %9067, %v9401_v13   ;;  %17000 = vst [vmem:[#allocation32_spill] sm:$0xff] %v9493_v36 }
 0x143   :  { %9068 = vset.pattern.permute.xlu1 %v16629_v0 }
 0x144   :  { %168 = vperm.xlu1 %9068, %v9404_v14  }
 0x148   :  { %173 = vperm.xlu1 %9068, %v9408_v15  }
 0x14b   :  { %v119_v21 = vpop.permute.xlu1 %118 }
 0x14c   :  { %9070 = vset.pattern.permute.xlu1 %v16628_v5  ;;  %v224_v40 = vmul.f32 %v9489_v33, %v119_v21  ;;  %v328_v45 = vmul.f32 %v9499_v38, %v119_v21  ;;  %v432_v48 = vmul.f32 %v9501_v39, %v119_v21  ;;  %v200_v50 = vmul.f32 %v9506_v42, %v119_v21 }
 0x14d   :  { %631 = vperm.xlu1 %9070, %v9408_v15  }
 0x14e   :  { %v259_v47 = vrot.slane %v224_v40, 1  ;;  %v363_v58 = vrot.slane %v328_v45, 2  ;;  %v467_v62 = vrot.slane %v432_v48, 3 }
 0x14f   :  { %v1017_v43 = vpop.permute.xlu0 %1016 }
 0x150   :  { %v588_v22 = vpop.permute.xlu1 %587  ;;  %v9523_v51 = vmul.f32 %v1017_v43, %v9489_v33  ;;  %v9529_v54 = vmul.f32 %v1017_v43, %v9499_v38  ;;  %v9532_v55 = vmul.f32 %v1017_v43, %v9501_v39  ;;  %v9547_v63 = vmul.f32 %v1017_v43, %v9506_v42 }
 0x151   :  { %9071 = vset.pattern.permute.xlu1 %v16629_v0  ;;  %v670_v52 = vmul.f32 %v588_v22, %v9489_v33  ;;  %v769_v59 = vmul.f32 %v588_v22, %v9499_v38  ;;  %v868_v60 = vmul.f32 %v588_v22, %v9501_v39  ;;  %v650_v1 = vmul.f32 %v588_v22, %v9506_v42 }
 0x152   :  { %178 = vperm.xlu1 %9071, %v9412_v16   ;;  %v1133_v34 = vrot.slane %v9523_v51, 1 }
 0x153   :  { %v704_v25 = vrot.slane %v670_v52, 1  ;;  %v803_v45 = vrot.slane %v769_v59, 2 }
 0x155   :  { %v9471_v23 = vpop.permute.xlu1 %123 }
 0x156   :  { %9072 = vset.pattern.permute.xlu1 %v16628_v5  ;;  %v9497_v37 = vmul.f32 %v9489_v33, %v9471_v23  ;;  %v9519_v49 = vmul.f32 %v9499_v38, %v9471_v23  ;;  %v9539_v57 = vmul.f32 %v9501_v39, %v9471_v23  ;;  %v201_v51 = vmul.f32 %v9506_v42, %v9471_v23 }
 0x157   :  { %635 = vperm.xlu1 %9072, %v9412_v16   ;;  %v1029_v31 = vpop.permute.xlu0 %1028 }
 0x158   :  { %v260_v44 = vrot.slane %v9497_v37, 1  ;;  %v16633_v21 = vrot.slane %v9519_v49, 2  ;;  %v16632_v22 = vrot.slane %v9539_v57, 3  ;;  %v9582_v59 = vmul.f32 %v1029_v31, %v9499_v38 }
 0x159   :  { %v9597_v40 = vmul.f32 %v1029_v31, %v9501_v39 }
 0x15a   :  { %v9475_v24 = vpop.permute.xlu1 %591  ;;  %v261_v56 = vsel %vm258_vm0, %v259_v47, %v260_v44  ;;  %v902_v47 = vrot.slane %v868_v60, 3  ;;  %v365_v52 = vsel %vm362_vm1, %v363_v58, %v16633_v21  ;;  %v469_v23 = vsel %vm466_vm2, %v467_v62, %v16632_v22 }
 0x15b   :  { %9073 = vset.pattern.permute.xlu1 %v16629_v0  ;;  %v9514_v46 = vmul.f32 %v9475_v24, %v9489_v33  ;;  %v308_v27 = vadd.f32 %v261_v56, %v200_v50  ;;  %v9553_v29 = vmul.f32 %v9475_v24, %v9499_v38  ;;  %v9570_v50 = vmul.f32 %v9475_v24, %v9501_v39 }
 0x15c   :  { %183 = vperm.xlu1 %9073, %v9416_v17   ;;  %v9579_v56 = vmul.f32 %v1029_v31, %v9489_v33 }
 0x15d   :  { %v16631_v61 = vrot.slane %v9514_v46, 1  ;;  %v412_v60 = vadd.f32 %v365_v52, %v308_v27  ;;  %v9601_v27 = vmul.f32 %v9475_v24, %v9506_v42 }
 0x15f   :  { %v9479_v26 = vpop.permute.xlu1 %1020  ;;  %v706_v48 = vsel %vm258_vm0, %v704_v25, %v16631_v61  ;;  %v16636_v25 = vrot.slane %v9553_v29, 2  ;;  %v516_v22 = vadd.f32 %v469_v23, %v412_v60  ;;  %v17001_v23 = vrot.slane %v9570_v50, 3 }
 0x160   :  { %9074 = vset.pattern.permute.xlu1 %v16627_v2  ;;  %v9594_v58 = vmul.f32 %v9479_v26, %v9489_v33  ;;  %v9628_v21 = vmul.f32 %v9479_v26, %v9501_v39 }
 0x161   :  { %1048 = vperm.xlu1 %9074, %v9396_v12   ;;  %v805_v35 = vsel %vm362_vm1, %v803_v45, %v16636_v25  ;;  %v9642_v45 = vld [vmem:[%s16621_s2] ss:$0 sm:$0xff]  ;;  %v904_v37 = vsel %vm466_vm2, %v902_v47, %v17001_v23  ;;  %v17002_v25 = vmov 3  }
 0x164   :  { %v9483_v28 = vpop.permute.xlu1 %128 }
 0x165   :  { %9075 = vset.pattern.permute.xlu1 %v16629_v0  ;;  %v9557_v30 = vmul.f32 %v9489_v33, %v9483_v28  ;;  %v9606_v52 = vmul.f32 %v9499_v38, %v9483_v28  ;;  %v202_v60 = vmul.f32 %v9506_v42, %v9483_v28 }
 0x166   :  { %188 = vperm.xlu1 %9075, %v9421_v18  }
 0x169   :  { %v9487_v32 = vpop.permute.xlu1 %595 }
 0x16a   :  { %9076 = vset.pattern.permute.xlu1 %v16628_v5  ;;  %v9587_v5 = vmul.f32 %v1029_v31, %v9506_v42  ;;  %v9615_v31 = vmul.f32 %v9479_v26, %v9499_v38 }
 0x16b   :  { %643 = vperm.xlu1 %9076, %v9421_v18  }
 0x16e   :  { %v9504_v41 = vpop.permute.xlu1 %1024 }
 0x16f   :  { %9077 = vset.pattern.permute.xlu1 %v16629_v0  ;;  %v753_v0 = vadd.f32 %v706_v48, %v650_v1  ;;  %v9652_v48 = vmul.f32 %v9479_v26, %v9506_v42  ;;  %v9666_v26 = vadd.f32 %v9642_v45, %v516_v22  ;;  %v9683_v22 = vmul.f32 %v9487_v32, %v9499_v38 }
 0x170   :  { %193 = vperm.xlu1 %9077, %v9424_v19   ;;  %v672_v19 = vmul.f32 %v9487_v32, %v9489_v33 }
 0x171   :  { %v852_v24 = vadd.f32 %v805_v35, %v753_v0 }
 0x173   :  { %v9526_v53 = vpop.permute.xlu1 %133  ;;  %v9668_v23 = vadd.f32 %v904_v37, %v852_v24 }
 0x174   :  { %9079 = vset.pattern.permute.xlu1 %v16627_v2  ;;  %v262_v2 = vrot.slane %v9557_v30, 1  ;;  %v227_v62 = vmul.f32 %v9489_v33, %v9526_v53  ;;  %v9636_v30 = vmul.f32 %v9501_v39, %v9483_v28  ;;  %v707_v28 = vrot.slane %v672_v19, 1 }
 0x175   :  { %1056 = vperm.xlu1 %9079, %v9404_v14   ;;  %v17004_v14 = vrot.slane %v9519_v49, 2  ;;  %v435_v11 = vmul.f32 %v9501_v39, %v9526_v53 }
 0x176   :  { %v263_v20 = vsel %vm258_vm0, %v260_v44, %v262_v2  ;;  %v366_v44 = vrot.slane %v9606_v52, 2  ;;  %v264_v0 = vrot.slane %v227_v62, 1  ;;  %v331_v52 = vmul.f32 %v9499_v38, %v9526_v53 }
 0x177   :  { %v470_v47 = vrot.slane %v9636_v30, 3  ;;  %v203_v30 = vmul.f32 %v9506_v42, %v9526_v53 }
 0x178   :  { %v9563_v43 = vpop.permute.xlu1 %599  ;;  %v367_v15 = vsel %vm362_vm1, %v17004_v14, %v366_v44  ;;  %v265_v24 = vsel %vm258_vm0, %v262_v2, %v264_v0  ;;  %v368_v14 = vrot.slane %v331_v52, 2  ;;  %v17006_v52 = vrot.slane %v9615_v31, 2 }
 0x179   :  { %1064 = vperm.xlu1 %9079, %v9412_v16   ;;  %v673_v49 = vmul.f32 %v9563_v43, %v9489_v33  ;;  %v17008_v2 = vrot.slane %v9539_v57, 3 }
 0x17a   :  { %v369_v57 = vsel %vm362_vm1, %v366_v44, %v368_v14 }
 0x17b   :  { %v471_v7 = vsel %vm466_vm2, %v17008_v2, %v470_v47 }
 0x17d   :  { %v9610_v1 = vpop.permute.xlu1 %138  ;;  %1072 = vperm.xlu1 %9079, %v9421_v18   ;;  %v309_v18 = vadd.f32 %v263_v20, %v201_v51  ;;  %v17003_v20 = vrot.slane %v9594_v58, 1 }
 0x17e   :  { %v9621_v61 = vmul.f32 %v9489_v33, %v9610_v1  ;;  %v9663_v62 = vmul.f32 %v9499_v38, %v9610_v1  ;;  %v9699_v10 = vmul.f32 %v9501_v39, %v9610_v1 }
 0x17f   :  { %v1135_v51 = vsel %vm258_vm0, %v1133_v34, %v17003_v20  ;;  %v413_v20 = vadd.f32 %v367_v15, %v309_v18  ;;  %v310_v18 = vadd.f32 %v265_v24, %v202_v60  ;;  %v9721_v60 = vmul.f32 %v9487_v32, %v9501_v39 }
 0x180   :  { %v17005_v37 = vrot.slane %v9621_v61, 1  ;;  %v9702_v15 = vadd.f32 %v1135_v51, %v9547_v63  ;;  %v806_v63 = vrot.slane %v9683_v22, 2  ;;  %v17009_v24 = vrot.slane %v9514_v46, 1 }
 0x181   :  { %9080 = vset.pattern.permute.xlu1 %v17002_v25  ;;  %v517_v51 = vadd.f32 %v471_v7, %v413_v20  ;;  %v472_v22 = vrot.slane %v435_v11, 3  ;;  %v17010_v2 = vrot.slane %v9663_v62, 2  ;;  %v16657_v7 = vrot.slane %v9699_v10, 3 }
 0x182   :  { %1445 = vperm.xlu1 %9080, %v9362_v3   ;;  %v9676_v35 = vpop.permute.xlu1 %603  ;;  %v267_v34 = vsel %vm258_vm0, %v264_v0, %v17005_v37  ;;  %v17007_v37 = vrot.slane %v9529_v54, 2  ;;  %v1101_v54 = vmul.f32 %v9504_v41, %v9489_v33  ;;  %v414_v46 = vadd.f32 %v369_v57, %v310_v18 }
 0x183   :  { %v311_v19 = vadd.f32 %v267_v34, %v203_v30  ;;  %v9706_v0 = vmul.f32 %v9676_v35, %v9489_v33  ;;  %v708_v34 = vsel %vm258_vm0, %v17009_v24, %v707_v28  ;;  %v709_v30 = vrot.slane %v673_v49, 1 }
 0x184   :  { %v9713_v53 = vsel %vm362_vm1, %v17007_v37, %v17006_v52  ;;  %v371_v37 = vsel %vm362_vm1, %v368_v14, %v17010_v2  ;;  %v772_v20 = vmul.f32 %v9563_v43, %v9499_v38  ;;  %v17011_v11 = vrot.slane %v9553_v29, 2 }
 0x185   :  { %v415_v24 = vadd.f32 %v371_v37, %v311_v19  ;;  %v16660_v49 = vrot.slane %v9706_v0, 1  ;;  %v905_v14 = vrot.slane %v9721_v60, 3  ;;  %v1136_v2 = vrot.slane %v1101_v54, 1 }
 0x186   :  { %1453 = vperm.xlu1 %9080, %v9371_v6   ;;  %v652_v6 = vmul.f32 %v9487_v32, %v9506_v42  ;;  %v807_v44 = vsel %vm362_vm1, %v17011_v11, %v806_v63  ;;  %v710_v18 = vsel %vm258_vm0, %v707_v28, %v709_v30  ;;  %v9749_v57 = vmul.f32 %v9676_v35, %v9499_v38 }
 0x187   :  { %v9728_v52 = vpop.permute.xlu1 %1032  ;;  %v539_v19 = vadd.f32 %v9642_v45, %v517_v51  ;;  %v473_v32 = vsel %vm466_vm2, %v470_v47, %v472_v22  ;;  %v871_v29 = vmul.f32 %v9563_v43, %v9501_v39  ;;  %v712_v51 = vsel %vm258_vm0, %v709_v30, %v16660_v49 }
 0x188   :  { %v9761_v28 = vmul.f32 %v9728_v52, %v9489_v33  ;;  %v518_v60 = vadd.f32 %v473_v32, %v414_v46  ;;  %v653_v11 = vmul.f32 %v9563_v43, %v9506_v42  ;;  %v1200_v46 = vmul.f32 %v9504_v41, %v9499_v38 }
 0x189   :  { %v9779_v30 = vmul.f32 %v9676_v35, %v9501_v39  ;;  %v17043_v3 = vrot.slane %v9699_v10, 3 }
 0x18a   :  { %1461 = vperm.xlu1 %9080, %v9380_v8   ;;  %v754_v8 = vadd.f32 %v708_v34, %v9601_v27  ;;  %v475_v27 = vsel %vm466_vm2, %v472_v22, %v16657_v7  ;;  %v808_v34 = vrot.slane %v772_v20, 2  ;;  %v554_v22 = vmax.f32 %v9666_v26, 0.0 }
 0x18b   :  { %v519_v54 = vadd.f32 %v475_v27, %v415_v24  ;;  %v17012_v7 = vrot.slane %v9570_v50, 3  ;;  %v16661_v20 = vrot.slane %v9749_v57, 2  ;;  %v756_v43 = vadd.f32 %v712_v51, %v653_v11 }
 0x18c   :  { %v9766_v37 = vpop.permute.xlu1 %143  ;;  %v853_v47 = vadd.f32 %v807_v44, %v754_v8  ;;  %v17013_v8 = vrot.slane %v9594_v58, 1  ;;  %v1140_v50 = vrot.slane %v9761_v28, 1  ;;  %v555_v26 = vmax.f32 %v539_v19, 0.0 }
 0x18d   :  { %v906_v4 = vsel %vm466_vm2, %v17012_v7, %v905_v14  ;;  %v809_v7 = vsel %vm362_vm1, %v806_v63, %v808_v34  ;;  %v907_v24 = vrot.slane %v871_v29, 3  ;;  %v540_v44 = vadd.f32 %v9642_v45, %v518_v60 }
 0x18e   :  { %1465 = vperm.xlu1 %9080, %v9383_v9   ;;  %v755_v9 = vadd.f32 %v710_v18, %v652_v6  ;;  %v1137_v6 = vsel %vm258_vm0, %v17013_v8, %v1136_v2  ;;  %v541_v18 = vadd.f32 %v9642_v45, %v519_v54  ;;  %v952_v32 = vadd.f32 %v906_v4, %v853_v47 }
 0x18f   :  { %v1081_v27 = vmul.f32 %v9504_v41, %v9506_v42  ;;  %v9793_v58 = vmul.f32 %v9728_v52, %v9499_v38  ;;  %v1235_v51 = vrot.slane %v1200_v46, 2  ;;  %v1299_v19 = vmul.f32 %v9504_v41, %v9501_v39 }
 0x190   :  { %v854_v49 = vadd.f32 %v809_v7, %v755_v9  ;;  %v811_v63 = vsel %vm362_vm1, %v808_v34, %v16661_v20  ;;  %v16672_v29 = vrot.slane %v9779_v30, 3  ;;  %v1183_v4 = vadd.f32 %v1137_v6, %v9652_v48 }
 0x191   :  { %v9801_v60 = vpop.permute.xlu1 %607  ;;  %v17014_v9 = vrot.slane %v9579_v56, 1  ;;  %v855_v47 = vadd.f32 %v811_v63, %v756_v43  ;;  %v908_v34 = vsel %vm466_vm2, %v905_v14, %v907_v24  ;;  %v556_v46 = vmax.f32 %v540_v44, 0.0 }
 0x192   :  { %1477 = vperm.xlu1 %9080, %v9396_v12   ;;  %v557_v8 = vmax.f32 %v541_v18, 0.0  ;;  %v9814_v7 = vpack.c.bf16 %v555_v26, %v554_v22  ;;  %v953_v20 = vadd.f32 %v908_v34, %v854_v49  ;;  %v16671_v48 = vrot.slane %v9793_v58, 2 }
 0x193   :  { %v1139_v54 = vsel %vm258_vm0, %v1136_v2, %v17014_v9  ;;  %v17015_v41 = vmov %v17014_v9  ;;  %v9819_v6 = vmul.f32 %v9728_v52, %v9501_v39  ;;  %v968_v2 = vadd.f32 %v9642_v45, %v952_v32 }
 0x194   :  { %v1141_v11 = vsel %vm258_vm0, %v17015_v41, %v1140_v50  ;;  %17016 = vst [vmem:[#allocation33_spill] sm:$0xff] %v9814_v7  ;;  %v1184_v43 = vadd.f32 %v1139_v54, %v1081_v27  ;;  %v910_v56 = vsel %vm466_vm2, %v907_v24, %v16672_v29  ;;  %v9826_v44 = vpack.c.bf16 %v557_v8, %v556_v46 }
 0x195   :  { %v1185_v14 = vadd.f32 %v1141_v11, %v9587_v5  ;;  %v1281_v49 = vadd.f32 %v9713_v53, %v9702_v15  ;;  %v1334_v22 = vrot.slane %v1299_v19, 3  ;;  %v954_v26 = vadd.f32 %v910_v56, %v855_v47 }
 0x196   :  { %1481 = vperm.xlu1 %9080, %v9401_v13   ;;  %17017 = vst [vmem:[#allocation34_spill] sm:$0xff] %v9826_v44  ;;  %v967_v18 = vadd.f32 %v9642_v45, %v9668_v23  ;;  %v17018_v32 = vrot.slane %v9615_v31, 2  ;;  %v17019_v24 = vrot.slane %v9582_v59, 2  ;;  %v4487_v63 = vrot.slane %v9814_v7, 1  ;;  %v9841_v54 = vpop.permute.xlu1 %148 }
 0x197   :  { %v16667_v9 = vrot.slane %v9826_v44, 1  ;;  %v16669_v31 = vrot.slane %v9819_v6, 3  ;;  %v969_v53 = vadd.f32 %v9642_v45, %v953_v20  ;;  %v984_v19 = vmax.f32 %v968_v2, 0.0 }
 0x198   :  { %v1236_v27 = vsel %vm362_vm1, %v17018_v32, %v1235_v51  ;;  %v1238_v5 = vsel %vm362_vm1, %v1235_v51, %v17019_v24  ;;  %v17020_v15 = vmov %v17019_v24  ;;  %v17021_v34 = vrot.slane %v9628_v21, 3  ;;  %v9867_v32 = vpop.permute.xlu0 %1036 }
 0x199   :  { %v1240_v23 = vsel %vm362_vm1, %v17020_v15, %v16671_v48  ;;  %v1282_v47 = vadd.f32 %v1236_v27, %v1183_v4  ;;  %v1283_v41 = vadd.f32 %v1238_v5, %v1184_v43  ;;  %v4489_v11 = vsel %vm258_vm0, %v4487_v63, %v16667_v9 }
 0x19a   :  { %1493 = vperm.xlu1 %9080, %v9412_v16   ;;  %v1284_v51 = vadd.f32 %v1240_v23, %v1185_v14  ;;  %v17022_v59 = vrot.slane %v9532_v55, 3  ;;  %4614 = vrot.lane.b32.xlu0 %v4489_v11, %s9252_s0  ;;  %v970_v20 = vadd.f32 %v9642_v45, %v954_v26  ;;  %v983_v8 = vmax.f32 %v967_v18, 0.0 }
 0x19b   :  { %v17023_v2 = vmov %v17021_v34  ;;  %v17024_v56 = vrot.slane %v9597_v40, 3  ;;  %v985_v24 = vmax.f32 %v969_v53, 0.0  ;;  %v9876_v63 = vpop.permute.xlu1 %611  ;;  %v17027_v15 = vmov 0  }
 0x19c   :  { %v1333_v46 = vsel %vm466_vm2, %v17022_v59, %v17021_v34  ;;  %v1335_v43 = vsel %vm466_vm2, %v17023_v2, %v1334_v22  ;;  %v986_v26 = vmax.f32 %v970_v20, 0.0  ;;  %v9874_v18 = vpack.c.bf16 %v984_v19, %v983_v8  ;;  %v9885_v11 = vpop.permute.xlu0 %1044 }
 0x19d   :  { %v1380_v4 = vadd.f32 %v1333_v46, %v1281_v49  ;;  %v1337_v14 = vsel %vm466_vm2, %v1334_v22, %v17024_v56  ;;  %v17025_v55 = vmov %v17024_v56  ;;  %v1381_v49 = vadd.f32 %v1335_v43, %v1282_v47 }
 0x19e   :  { %1497 = vperm.xlu1 %9080, %v9416_v17   ;;  %v1339_v27 = vsel %vm466_vm2, %v17025_v55, %v16669_v31  ;;  %17026 = vst [vmem:[#allocation35_spill] sm:$0xff] %v9874_v18  ;;  %v1382_v21 = vadd.f32 %v1337_v14, %v1283_v41  ;;  %v9879_v22 = vpack.c.bf16 %v986_v26, %v985_v24  ;;  %v16662_v40 = vrot.slane %v9874_v18, 1 }
 0x19f   :  { %v1383_v5 = vadd.f32 %v1339_v27, %v1284_v51  ;;  %v1396_v23 = vadd.f32 %v9642_v45, %v1380_v4  ;;  %v1397_v19 = vadd.f32 %v9642_v45, %v1381_v49  ;;  %v9892_v51 = vmul.f32 %v9885_v11, %v9489_v33 }
 0x1a0   :  { %17028 = vst [vmem:[#allocation36_spill] sm:$0xff] %v9879_v22  ;;  %v16663_v53 = vrot.slane %v9879_v22, 1  ;;  %v1398_v47 = vadd.f32 %v9642_v45, %v1382_v21  ;;  %v17029_v59 = vmov 1   ;;  %v9902_v46 = vmul.f32 %v9885_v11, %v9499_v38  ;;  %v1041_v4 = vpop.permute.xlu1 %1040 }
 0x1a1   :  { %v1399_v41 = vadd.f32 %v9642_v45, %v1383_v5  ;;  %v1412_v20 = vmax.f32 %v1396_v23, 0.0  ;;  %v1413_v8 = vmax.f32 %v1397_v19, 0.0  ;;  %v16666_v14 = vrot.slane %v9892_v51, 1 }
 0x1a2   :  { %9082 = vset.pattern.permute.xlu1 %v17027_v15  ;;  %v4505_v34 = vsel %vm258_vm0, %v16662_v40, %v16663_v53  ;;  %17030 = vst [vmem:[#allocation37_spill] sm:$0xff] %v9902_v46  ;;  %v1414_v2 = vmax.f32 %v1398_v47, 0.0  ;;  %v9911_v55 = vmul.f32 %v9885_v11, %v9501_v39  ;;  %v9916_v24 = vmul.f32 %v1041_v4, %v9489_v33 }
 0x1a3   :  { %217 = vperm.xlu1 %9082, %v9493_v36   ;;  %4630 = vrot.lane.b32.xlu0 %v4505_v34, %s9252_s0  ;;  %v1415_v43 = vmax.f32 %v1399_v41, 0.0  ;;  %v9906_v56 = vpack.c.bf16 %v1413_v8, %v1412_v20  ;;  %v16668_v26 = vrot.slane %v9902_v46, 2  ;;  %v9920_v49 = vmul.f32 %v1041_v4, %v9499_v38 }
 0x1a4   :  { %17032 = vst [vmem:[#allocation39_spill] sm:$0xff] %v9911_v55  ;;  %v17034_v21 = vmov 2   ;;  %v16677_v19 = vrot.slane %v9916_v24, 1  ;;  %v9927_v47 = vmul.f32 %v1041_v4, %v9501_v39  ;;  %v1085_v41 = vmul.f32 %v1041_v4, %v9506_v42 }
 0x1a5   :  { %17031 = vst [vmem:[#allocation38_spill] sm:$0xff] %v9906_v56  ;;  %v9913_v27 = vpack.c.bf16 %v1415_v43, %v1414_v2  ;;  %v16664_v5 = vrot.slane %v9906_v56, 1  ;;  %v16670_v34 = vrot.slane %v9920_v49, 2  ;;  %v16676_v20 = vshll.u32 %v9826_v44, 16 }
 0x1a6   :  { %v16673_v8 = vrot.slane %v9911_v55, 3  ;;  %v1147_v4 = vsel %vm258_vm0, %v16677_v19, %v16666_v14  ;;  %v16674_v43 = vrot.slane %v9927_v47, 3  ;;  %v9950_v40 = vmul.f32 %v9867_v32, %v9489_v33 }
 0x1a7   :  { %9083 = vset.pattern.permute.xlu1 %v17029_v59  ;;  %17033 = vst [vmem:[#allocation40_spill] sm:$0xff] %v9913_v27  ;;  %v16665_v23 = vrot.slane %v9913_v27, 1  ;;  %v16678_v59 = vshll.u32 %v9814_v7, 16  ;;  %v1188_v53 = vadd.f32 %v1147_v4, %v1085_v41  ;;  %v9963_v9 = vrot.slane %v16676_v20, 1 }
 0x1a8   :  { %667 = vperm.xlu1 %9083, %v9493_v36   ;;  %v9968_v41 = vmul.f32 %v9867_v32, %v9499_v38  ;;  %v229_v4 = vmul.f32 %v9489_v33, %v9766_v37  ;;  %v16675_v31 = vshll.u32 %v9874_v18, 16  ;;  %v675_v19 = vmul.f32 %v9801_v60, %v9489_v33 }
 0x1a9   :  { %v4521_v2 = vsel %vm258_vm0, %v16664_v5, %v16665_v23  ;;  %v1246_v5 = vsel %vm362_vm1, %v16670_v34, %v16668_v26  ;;  %v16679_v23 = vshrl.u32 %v9814_v7, 16  ;;  %v3788_v14 = vrot.slane %v16678_v59, 1 }
 0x1aa   :  { %4646 = vrot.lane.b32.xlu0 %v4521_v2, %s9252_s0  ;;  %v1287_v2 = vadd.f32 %v1246_v5, %v1188_v53  ;;  %v1345_v26 = vsel %vm466_vm2, %v16674_v43, %v16673_v8  ;;  %v16680_v34 = vrot.slane %v9950_v40, 1  ;;  %v9986_v5 = vmul.f32 %v9867_v32, %v9501_v39 }
 0x1ab   :  { %v9992_v29 = vrot.slane %v16675_v31, 1  ;;  %v10009_v43 = vmul.f32 %v9867_v32, %v9506_v42  ;;  %v268_v20 = vrot.slane %v229_v4, 1  ;;  %v10021_v59 = vmul.f32 %v9876_v63, %v9489_v33 }
 0x1ac   :  { %9084 = vset.pattern.permute.xlu1 %v17034_v21  ;;  %v9946_v21 = vpop.permute.xlu1 %153  ;;  %v9982_v53 = vadd.f32 %v1345_v26, %v1287_v2  ;;  %v10002_v26 = vmul.f32 %v9489_v33, %v9841_v54  ;;  %v16681_v2 = vshrl.u32 %v9874_v18, 16  ;;  %v1083_v28 = vmul.f32 %v9728_v52, %v9506_v42 }
 0x1ad   :  { %1096 = vperm.xlu1 %9084, %v9493_v36   ;;  %17036 = vst [vmem:[#allocation42_spill] sm:$0xff] %v9992_v29  ;;  %v654_v31 = vmul.f32 %v9676_v35, %v9506_v42  ;;  %v17037_v52 = vrot.slane %v9621_v61, 1  ;;  %v713_v17 = vrot.slane %v675_v19, 1  ;;  %v205_v61 = vmul.f32 %v9506_v42, %v9766_v37 }
 0x1ae   :  { %17035 = vst [vmem:[#allocation41_spill] sm:$0xff] %v9982_v53  ;;  %v3853_v32 = vor.u32 %v16681_v2, %v9992_v29  ;;  %v774_v2 = vmul.f32 %v9801_v60, %v9499_v38  ;;  %v17039_v12 = vrot.slane %v9663_v62, 2  ;;  %v17040_v35 = vrot.slane %v10002_v26, 1 }
 0x1af   :  { %v269_v16 = vsel %vm258_vm0, %v17037_v52, %v268_v20  ;;  %v3795_v10 = vshrl.u32 %v9826_v44, 16  ;;  %v17049_v55 = vrot.slane %v9950_v40, 1  ;;  %v16706_v40 = vshrl.u32 %v9879_v22, 16 }
 0x1b0   :  { %v9994_v8 = vpop.permute.xlu1 %615  ;;  %v271_v29 = vsel %vm258_vm0, %v268_v20, %v17040_v35  ;;  %v10095_v35 = vmul.f32 %v9501_v39, %v9841_v54 }
 0x1b1   :  { %9085 = vset.pattern.permute.xlu1 %v17002_v25  ;;  %v3789_v25 = vor.u32 %v3788_v14, %v16679_v23  ;;  %v9998_v14 = vmul.f32 %v9499_v38, %v9766_v37  ;;  %v204_v23 = vmul.f32 %v9506_v42, %v9610_v1 }
 0x1b2   :  { %1525 = vperm.xlu1 %9085, %v9493_v36   ;;  %v16694_v36 = vshll.u32 %v9906_v56, 16 }
 0x1b3   :  { %v3794_v48 = vsel %vm3782_vm3, %v3789_v25, %v9963_v9  ;;  %v16682_v25 = vshll.u32 %v9879_v22, 16  ;;  %v312_v52 = vadd.f32 %v269_v16, %v204_v23  ;;  %v873_v16 = vmul.f32 %v9801_v60, %v9501_v39 }
 0x1b4   :  { %4294 = vrot.lane.b32.xlu0 %v3794_v48, %s9260_s26  ;;  %v1143_v48 = vsel %vm258_vm0, %v1140_v50, %v16680_v34  ;;  %v10037_v50 = vmul.f32 %v9501_v39, %v9766_v37  ;;  %v372_v34 = vrot.slane %v9998_v14, 2  ;;  %v10052_v14 = vpop.permute.xlu1 %158  ;;  %v17041_v37 = vrot.slane %v9706_v0, 1 }
 0x1b5   :  { %v10028_v4 = vrot.slane %v16682_v25, 1  ;;  %v10046_v1 = vadd.f32 %v1143_v48, %v1083_v28  ;;  %v10063_v48 = vrot.slane %v16694_v36, 1  ;;  %v16698_v28 = vshll.u32 %v9913_v27, 16 }
 0x1b6   :  { %v476_v19 = vrot.slane %v10037_v50, 3  ;;  %v373_v13 = vsel %vm362_vm1, %v17039_v12, %v372_v34  ;;  %v10078_v36 = vmul.f32 %v9876_v63, %v9499_v38  ;;  %v714_v50 = vsel %vm258_vm0, %v17041_v37, %v713_v17 }
 0x1b7   :  { %v3858_v25 = vsel %vm3782_vm3, %v3853_v32, %v10028_v4  ;;  %v10058_v32 = vmul.f32 %v9499_v38, %v9841_v54  ;;  %17038 = vst [vmem:[#allocation43_spill] sm:$0xff] %v10063_v48  ;;  %v10090_v62 = vrot.slane %v16698_v28, 1  ;;  %v812_v23 = vrot.slane %v774_v2, 2 }
 0x1b8   :  { %4310 = vrot.lane.b32.xlu0 %v3858_v25, %s9260_s26  ;;  %v16697_v25 = vshrl.u32 %v9906_v56, 16  ;;  %v17042_v0 = vrot.slane %v10021_v59, 1  ;;  %v477_v15 = vsel %vm466_vm2, %v17043_v3, %v476_v19  ;;  %v313_v28 = vadd.f32 %v271_v29, %v205_v61  ;;  %v10107_v20 = vpop.permute.xlu1 %619 }
 0x1b9   :  { %v757_v53 = vadd.f32 %v714_v50, %v654_v31  ;;  %v17044_v29 = vshrl.u32 %v9814_v7, 16  ;;  %v17045_v61 = vshll.u32 %v9814_v7, 16  ;;  %v17047_v50 = vrot.slane %v10058_v32, 2 }
 0x1ba   :  { %v3917_v12 = vor.u32 %v16697_v25, %v10063_v48  ;;  %v716_v37 = vsel %vm258_vm0, %v713_v17, %v17042_v0  ;;  %v655_v25 = vmul.f32 %v9801_v60, %v9506_v42  ;;  %v416_v48 = vadd.f32 %v373_v13, %v312_v52 }
 0x1bb   :  { %v10112_v17 = vmul.f32 %v9876_v63, %v9501_v39  ;;  %v4743_v60 = vrot.slane %v17044_v29, 1  ;;  %v17046_v13 = vrot.slane %v9749_v57, 2  ;;  %v911_v52 = vrot.slane %v873_v16, 3 }
 0x1bc   :  { %v3922_v2 = vsel %vm3782_vm3, %v3917_v12, %v10090_v62  ;;  %v758_v3 = vadd.f32 %v716_v37, %v655_v25  ;;  %v4744_v12 = vrot.slane %v17045_v61, 2  ;;  %v375_v0 = vsel %vm362_vm1, %v372_v34, %v17047_v50 }
 0x1bd   :  { %4326 = vrot.lane.b32.xlu0 %v3922_v2, %s9260_s26  ;;  %v813_v31 = vsel %vm362_vm1, %v17046_v13, %v812_v23  ;;  %v478_v2 = vrot.slane %v10095_v35, 3  ;;  %v417_v25 = vadd.f32 %v375_v0, %v313_v28  ;;  %v17048_v37 = vrot.slane %v9916_v24, 1 }
 0x1be   :  { %v4746_v61 = vrot.slane %v3795_v10, 1  ;;  %v17050_v57 = vshll.u32 %v9826_v44, 16  ;;  %v520_v16 = vadd.f32 %v477_v15, %v416_v48  ;;  %v856_v7 = vadd.f32 %v813_v31, %v757_v53 }
 0x1bf   :  { %v1145_v29 = vsel %vm258_vm0, %v17049_v55, %v17048_v37  ;;  %v17051_v46 = vrot.slane %v10078_v36, 2  ;;  %v913_v28 = vrot.slane %v10112_v17, 3  ;;  %v4745_v24 = vor.u32 %v4744_v12, %v4743_v60  ;;  %v10143_v55 = vpop.permute.xlu1 %163 }
 0x1c0   :  { %v4747_v13 = vrot.slane %v17050_v57, 2  ;;  %v17052_v37 = vrot.slane %v9779_v30, 3  ;;  %v479_v15 = vsel %vm466_vm2, %v476_v19, %v478_v2  ;;  %v17053_v53 = vshrl.u32 %v9874_v18, 16 }
 0x1c1   :  { %v815_v34 = vsel %vm362_vm1, %v812_v23, %v17051_v46  ;;  %v1187_v46 = vadd.f32 %v1145_v29, %v10009_v43  ;;  %v521_v23 = vadd.f32 %v479_v15, %v417_v25  ;;  %v17054_v60 = vshll.u32 %v9874_v18, 16 }
 0x1c2   :  { %v857_v50 = vadd.f32 %v815_v34, %v758_v3  ;;  %v10140_v0 = vor.u32 %v4747_v13, %v4746_v61  ;;  %v912_v57 = vsel %vm466_vm2, %v17052_v37, %v911_v52  ;;  %v4774_v48 = vrot.slane %v17053_v53, 1 }
 0x1c3   :  { %v4775_v12 = vrot.slane %v17054_v60, 2  ;;  %v4778_v30 = vrot.slane %v16706_v40, 1  ;;  %v17055_v31 = vrot.slane %v9968_v41, 2  ;;  %v17056_v61 = vrot.slane %v9793_v58, 2 }
 0x1c4   :  { %v4749_v3 = vsel %vm4742_vm4, %v4745_v24, %v10140_v0  ;;  %v955_v43 = vadd.f32 %v912_v57, %v856_v7  ;;  %v914_v25 = vsel %vm466_vm2, %v911_v52, %v913_v28  ;;  %v17057_v29 = vshll.u32 %v9879_v22, 16 }
 0x1c5   :  { %v1242_v19 = vsel %vm362_vm1, %v17056_v61, %v17055_v31  ;;  %4998 = vrot.lane.b32.xlu0 %v4749_v3, %s9261_s28  ;;  %v542_v24 = vadd.f32 %v9642_v45, %v520_v16  ;;  %v956_v37 = vadd.f32 %v914_v25, %v857_v50  ;;  %v17058_v58 = vrot.slane %v9920_v49, 2 }
 0x1c6   :  { %v4779_v13 = vrot.slane %v17057_v29, 2  ;;  %v1285_v34 = vadd.f32 %v1242_v19, %v10046_v1  ;;  %v17059_v15 = vmov %v17055_v31  ;;  %v231_v52 = vmul.f32 %v9489_v33, %v9946_v21  ;;  %v10190_v31 = vpop.permute.xlu1 %623 }
 0x1c7   :  { %v1244_v7 = vsel %vm362_vm1, %v17059_v15, %v17058_v58  ;;  %v10180_v53 = vor.u32 %v4775_v12, %v4774_v48  ;;  %v543_v60 = vadd.f32 %v9642_v45, %v521_v23  ;;  %v16703_v1 = vshrl.u32 %v9913_v27, 16 }
 0x1c8   :  { %v1286_v57 = vadd.f32 %v1244_v7, %v1187_v46  ;;  %v10182_v3 = vor.u32 %v4779_v13, %v4778_v30  ;;  %v17061_v16 = vshrl.u32 %v9906_v56, 16  ;;  %v17062_v49 = vshll.u32 %v9906_v56, 16  ;;  %v9100_v56 = vld [vmem:[#allocation8 + $0x30] sm:$0xff]  }
 0x1c9   :  { %17060 = vst [vmem:[#allocation44_spill] sm:$0xff] %v10180_v53  ;;  %v17063_v46 = vrot.slane %v9986_v5, 3  ;;  %v17064_v61 = vrot.slane %v9819_v6, 3  ;;  %v971_v12 = vadd.f32 %v9642_v45, %v955_v43  ;;  %v10200_v23 = vmul.f32 %v9489_v33, %v10052_v14 }
 0x1ca   :  { %v4806_v50 = vrot.slane %v17061_v16, 1  ;;  %v4807_v41 = vrot.slane %v17062_v49, 2  ;;  %v4781_v30 = vsel %vm4742_vm4, %v10180_v53, %v10182_v3  ;;  %v972_v19 = vadd.f32 %v9642_v45, %v956_v37 }
 0x1cb   :  { %v1341_v48 = vsel %vm466_vm2, %v17064_v61, %v17063_v46  ;;  %v17065_v25 = vrot.slane %v9927_v47, 3  ;;  %v17066_v29 = vmov %v17063_v46  ;;  %5014 = vrot.lane.b32.xlu0 %v4781_v30, %s9261_s28  ;;  %v4810_v43 = vrot.slane %v16703_v1, 1 }
 0x1cc   :  { %v17067_v13 = vshll.u32 %v9913_v27, 16  ;;  %v1384_v15 = vadd.f32 %v1341_v48, %v1285_v34  ;;  %v272_v16 = vrot.slane %v231_v52, 1  ;;  %v10216_v49 = vor.u32 %v4807_v41, %v4806_v50  ;;  %v10230_v41 = vpop.permute.xlu1 %168 }
 0x1cd   :  { %v1343_v6 = vsel %vm466_vm2, %v17066_v29, %v17065_v25  ;;  %v558_v47 = vmax.f32 %v542_v24, 0.0  ;;  %v559_v46 = vmax.f32 %v543_v60, 0.0  ;;  %v335_v5 = vmul.f32 %v9499_v38, %v9946_v21 }
 0x1ce   :  { %v4811_v58 = vrot.slane %v17067_v13, 2  ;;  %v1385_v7 = vadd.f32 %v1343_v6, %v1286_v57  ;;  %17068 = vst [vmem:[#allocation45_spill] sm:$0xff] %v10216_v49  ;;  %v677_v61 = vmul.f32 %v9994_v8, %v9489_v33  ;;  %v16705_v30 = vrot.slane %v10200_v23, 1 }
 0x1cf   :  { %v10228_v57 = vpack.c.bf16 %v559_v46, %v558_v47  ;;  %v987_v52 = vmax.f32 %v971_v12, 0.0  ;;  %v988_v50 = vmax.f32 %v972_v19, 0.0  ;;  %v1400_v24 = vadd.f32 %v9642_v45, %v1384_v15 }
 0x1d0   :  { %v10218_v37 = vor.u32 %v4811_v58, %v4810_v43  ;;  %v206_v60 = vmul.f32 %v9506_v42, %v9841_v54  ;;  %v17070_v48 = vrot.slane %v10002_v26, 1  ;;  %v10240_v29 = vmul.f32 %v9499_v38, %v10052_v14 }
 0x1d1   :  { %17069 = vst [vmem:[#allocation46_spill] sm:$0xff] %v10228_v57  ;;  %v1401_v12 = vadd.f32 %v9642_v45, %v1385_v7  ;;  %v10246_v19 = vmul.f32 %v10107_v20, %v9489_v33  ;;  %v16704_v6 = vrot.slane %v10228_v57, 1  ;;  %v10249_v43 = vpack.c.bf16 %v988_v50, %v987_v52  ;;  %v10273_v50 = vpop.permute.xlu1 %173 }
 0x1d2   :  { %v4813_v34 = vsel %vm4742_vm4, %v10216_v49, %v10218_v37  ;;  %v273_v25 = vsel %vm258_vm0, %v17070_v48, %v272_v16  ;;  %v207_v54 = vmul.f32 %v9506_v42, %v9946_v21  ;;  %v376_v26 = vrot.slane %v335_v5, 2  ;;  %v17111_v49 = vld [vmem:[#allocation41_spill] sm:$0xff] }
 0x1d3   :  { %5030 = vrot.lane.b32.xlu0 %v4813_v34, %s9261_s28  ;;  %17071 = vst [vmem:[#allocation47_spill] sm:$0xff] %v10249_v43  ;;  %v439_v13 = vmul.f32 %v9501_v39, %v9946_v21  ;;  %v275_v58 = vsel %vm258_vm0, %v272_v16, %v16705_v30  ;;  %v314_v15 = vadd.f32 %v273_v25, %v206_v60  ;;  %v717_v7 = vrot.slane %v677_v61, 1 }
 0x1d4   :  { %v17072_v47 = vrot.slane %v9826_v44, 1  ;;  %v16715_v34 = vrot.slane %v10249_v43, 1  ;;  %v378_v52 = vrot.slane %v10240_v29, 2  ;;  %v10267_v5 = vmul.f32 %v9501_v39, %v10052_v14 }
 0x1d5   :  { %v776_v21 = vmul.f32 %v9994_v8, %v9499_v38  ;;  %v315_v16 = vadd.f32 %v275_v58, %v207_v54  ;;  %v16712_v61 = vrot.slane %v10246_v19, 1  ;;  %v17073_v60 = vrot.slane %v10058_v32, 2 }
 0x1d6   :  { %v4491_v46 = vsel %vm258_vm0, %v17072_v47, %v16704_v6  ;;  %v480_v25 = vrot.slane %v439_v13, 3  ;;  %v1416_v47 = vmax.f32 %v1400_v24, 0.0  ;;  %v1417_v1 = vmax.f32 %v1401_v12, 0.0 }
 0x1d7   :  { %4616 = vrot.lane.b32.xlu1 %v4491_v46, %s9252_s0  ;;  %v377_v48 = vsel %vm362_vm1, %v17073_v60, %v376_v26  ;;  %v17074_v30 = vrot.slane %v10021_v59, 1  ;;  %v10283_v40 = vmul.f32 %v10107_v20, %v9499_v38  ;;  %v17075_v54 = vrot.slane %v9879_v22, 1 }
 0x1d8   :  { %v418_v6 = vadd.f32 %v377_v48, %v314_v15  ;;  %v656_v13 = vmul.f32 %v9876_v63, %v9506_v42  ;;  %v379_v24 = vsel %vm362_vm1, %v376_v26, %v378_v52  ;;  %v482_v59 = vrot.slane %v10267_v5, 3 }
 0x1d9   :  { %v718_v46 = vsel %vm258_vm0, %v17074_v30, %v717_v7  ;;  %v4507_v32 = vsel %vm258_vm0, %v17075_v54, %v16715_v34  ;;  %v10297_v30 = vpack.c.bf16 %v1417_v1, %v1416_v47  ;;  %v816_v12 = vrot.slane %v776_v21, 2  ;;  %v10315_v54 = vpop.permute.xlu1 %631 }
 0x1da   :  { %v875_v58 = vmul.f32 %v9994_v8, %v9501_v39  ;;  %v419_v15 = vadd.f32 %v379_v24, %v315_v16  ;;  %v720_v60 = vsel %vm258_vm0, %v717_v7, %v16712_v61  ;;  %v481_v63 = vsel %vm466_vm2, %v478_v2, %v480_v25 }
 0x1db   :  { %4632 = vrot.lane.b32.xlu1 %v4507_v32, %s9252_s0  ;;  %17076 = vst [vmem:[#allocation48_spill] sm:$0xff] %v10297_v30  ;;  %v657_v26 = vmul.f32 %v9994_v8, %v9506_v42  ;;  %v759_v48 = vadd.f32 %v718_v46, %v656_v13  ;;  %v16707_v1 = vrot.slane %v10297_v30, 1  ;;  %v522_v47 = vadd.f32 %v481_v63, %v418_v6 }
 0x1dc   :  { %v16710_v21 = vrot.slane %v10283_v40, 2  ;;  %v10313_v16 = vmul.f32 %v10107_v20, %v9501_v39  ;;  %v483_v35 = vsel %vm466_vm2, %v480_v25, %v482_v59  ;;  %v17077_v8 = vrot.slane %v9913_v27, 1 }
 0x1dd   :  { %v760_v2 = vadd.f32 %v720_v60, %v657_v26  ;;  %v16714_v6 = vshll.u32 %v10228_v57, 16  ;;  %v17078_v46 = vrot.slane %v10078_v36, 2  ;;  %v915_v13 = vrot.slane %v875_v58, 3 }
 0x1de   :  { %v4523_v7 = vsel %vm258_vm0, %v17077_v8, %v16707_v1  ;;  %v523_v24 = vadd.f32 %v483_v35, %v419_v15  ;;  %v233_v63 = vmul.f32 %v9489_v33, %v10143_v55  ;;  %v3797_v60 = vor.u32 %v3795_v10, %v9963_v9 }
 0x1df   :  { %v817_v32 = vsel %vm362_vm1, %v17078_v46, %v816_v12  ;;  %4648 = vrot.lane.b32.xlu1 %v4523_v7, %s9252_s0  ;;  %v10337_v26 = vrot.slane %v16714_v6, 1  ;;  %v819_v36 = vsel %vm362_vm1, %v816_v12, %v16710_v21  ;;  %v16709_v58 = vrot.slane %v10313_v16, 3  ;;  %v10355_v7 = vpop.permute.xlu1 %178 }
 0x1e0   :  { %v858_v25 = vadd.f32 %v817_v32, %v759_v48  ;;  %v859_v15 = vadd.f32 %v819_v36, %v760_v2  ;;  %v10347_v48 = vmul.f32 %v9489_v33, %v10230_v41  ;;  %v916_v9 = vsel %vm466_vm2, %v913_v28, %v915_v13 }
 0x1e1   :  { %v3802_v35 = vsel %vm3782_vm3, %v3797_v60, %v10337_v26  ;;  %v276_v10 = vrot.slane %v233_v63, 1  ;;  %v544_v8 = vadd.f32 %v9642_v45, %v522_v47  ;;  %v545_v12 = vadd.f32 %v9642_v45, %v523_v24 }
 0x1e2   :  { %v957_v2 = vadd.f32 %v916_v9, %v858_v25  ;;  %v16711_v46 = vshll.u32 %v10249_v43, 16  ;;  %v918_v32 = vsel %vm466_vm2, %v915_v13, %v16709_v58  ;;  %v337_v17 = vmul.f32 %v9499_v38, %v10143_v55 }
 0x1e3   :  { %4296 = vrot.lane.b32.xlu1 %v3802_v35, %s9260_s26  ;;  %v560_v28 = vmax.f32 %v544_v8, 0.0  ;;  %v561_v63 = vmax.f32 %v545_v12, 0.0  ;;  %v958_v60 = vadd.f32 %v918_v32, %v859_v15  ;;  %v16708_v36 = vrot.slane %v10347_v48, 1  ;;  %v10384_v12 = vpop.permute.xlu0 %627 }
 0x1e4   :  { %v17079_v47 = vshrl.u32 %v9879_v22, 16  ;;  %v10369_v25 = vrot.slane %v16711_v46, 1  ;;  %v17080_v35 = vrot.slane %v10200_v23, 1  ;;  %v208_v8 = vmul.f32 %v9506_v42, %v10052_v14  ;;  %v10391_v14 = vpop.permute.xlu1 %635 }
 0x1e5   :  { %v10374_v9 = vpack.c.bf16 %v561_v63, %v560_v28  ;;  %v10380_v15 = vmul.f32 %v9499_v38, %v10230_v41  ;;  %v380_v32 = vrot.slane %v337_v17, 2  ;;  %v441_v23 = vmul.f32 %v9501_v39, %v10143_v55 }
 0x1e6   :  { %v3861_v24 = vor.u32 %v17079_v47, %v10028_v4  ;;  %v277_v13 = vsel %vm258_vm0, %v17080_v35, %v276_v10  ;;  %v973_v28 = vadd.f32 %v9642_v45, %v957_v2  ;;  %v10395_v63 = vmul.f32 %v10384_v12, %v9489_v33 }
 0x1e7   :  { %17081 = vst [vmem:[#allocation49_spill] sm:$0xff] %v10374_v9  ;;  %v16713_v47 = vrot.slane %v10374_v9, 1  ;;  %v316_v35 = vadd.f32 %v277_v13, %v208_v8  ;;  %v279_v17 = vsel %vm258_vm0, %v276_v10, %v16708_v36  ;;  %v10403_v1 = vmul.f32 %v10384_v12, %v9499_v38 }
 0x1e8   :  { %v3866_v4 = vsel %vm3782_vm3, %v3861_v24, %v10369_v25  ;;  %v974_v24 = vadd.f32 %v9642_v45, %v958_v60  ;;  %v209_v2 = vmul.f32 %v9506_v42, %v10143_v55  ;;  %v17082_v13 = vrot.slane %v10228_v57, 1 }
 0x1e9   :  { %4312 = vrot.lane.b32.xlu1 %v3866_v4, %s9260_s26  ;;  %v679_v4 = vmul.f32 %v10190_v31, %v9489_v33  ;;  %v16716_v10 = vrot.slane %v10380_v15, 2  ;;  %v10417_v60 = vmul.f32 %v9501_v39, %v10230_v41  ;;  %v989_v36 = vmax.f32 %v973_v28, 0.0 }
 0x1ea   :  { %v4493_v8 = vsel %vm258_vm0, %v17082_v13, %v16713_v47  ;;  %v990_v58 = vmax.f32 %v974_v24, 0.0  ;;  %v381_v55 = vsel %vm362_vm1, %v378_v52, %v380_v32  ;;  %v484_v21 = vrot.slane %v441_v23, 3 }
 0x1eb   :  { %4618 = vrot.lane.b32.xlu0 %v4493_v8, %s9252_s0  ;;  %v317_v46 = vadd.f32 %v279_v17, %v209_v2  ;;  %v16717_v61 = vshll.u32 %v10297_v30, 16  ;;  %v16721_v13 = vrot.slane %v10395_v63, 1  ;;  %v10427_v47 = vmul.f32 %v10384_v12, %v9501_v39  ;;  %v10440_v17 = vpop.permute.xlu1 %183 }
 0x1ec   :  { %v420_v6 = vadd.f32 %v381_v55, %v316_v35  ;;  %v10429_v34 = vpack.c.bf16 %v990_v58, %v989_v36  ;;  %v17084_v28 = vshrl.u32 %v9913_v27, 16  ;;  %v3803_v52 = vshrl.u32 %v10228_v57, 16  ;;  %v10490_v27 = vpop.permute.xlu0 %639 }
 0x1ed   :  { %v10436_v29 = vrot.slane %v16717_v61, 1  ;;  %v16718_v23 = vshll.u32 %v10374_v9, 16  ;;  %v721_v2 = vrot.slane %v679_v4, 1  ;;  %v383_v58 = vsel %vm362_vm1, %v380_v32, %v16716_v10 }
 0x1ee   :  { %17083 = vst [vmem:[#allocation50_spill] sm:$0xff] %v10429_v34  ;;  %v3925_v24 = vor.u32 %v17084_v28, %v10090_v62  ;;  %v16719_v35 = vrot.slane %v10429_v34, 1  ;;  %v658_v62 = vmul.f32 %v10107_v20, %v9506_v42  ;;  %v485_v8 = vsel %vm466_vm2, %v482_v59, %v484_v21 }
 0x1ef   :  { %v421_v55 = vadd.f32 %v383_v58, %v317_v46  ;;  %v659_v4 = vmul.f32 %v10190_v31, %v9506_v42  ;;  %v778_v32 = vmul.f32 %v10190_v31, %v9499_v38  ;;  %v17085_v10 = vrot.slane %v10249_v43, 1 }
 0x1f0   :  { %v3930_v28 = vsel %vm3782_vm3, %v3925_v24, %v10436_v29  ;;  %v10466_v5 = vrot.slane %v16718_v23, 1  ;;  %v524_v59 = vadd.f32 %v485_v8, %v420_v6  ;;  %v877_v46 = vmul.f32 %v10190_v31, %v9501_v39 }
 0x1f1   :  { %v4509_v20 = vsel %vm258_vm0, %v17085_v10, %v16719_v35  ;;  %4328 = vrot.lane.b32.xlu1 %v3930_v28, %s9260_s26  ;;  %v4750_v24 = vrot.slane %v3803_v52, 1  ;;  %v17086_v58 = vshll.u32 %v10228_v57, 16  ;;  %v17087_v36 = vrot.slane %v10246_v19, 1  ;;  %v10487_v19 = vpop.permute.xlu1 %1048 }
 0x1f2   :  { %4634 = vrot.lane.b32.xlu0 %v4509_v20, %s9252_s0  ;;  %v724_v28 = vsel %vm258_vm0, %v721_v2, %v16721_v13  ;;  %v17088_v23 = vrot.slane %v10417_v60, 3  ;;  %v3805_v31 = vor.u32 %v3803_v52, %v10337_v26  ;;  %v3867_v35 = vshrl.u32 %v10249_v43, 16 }
 0x1f3   :  { %v4751_v61 = vrot.slane %v17086_v58, 2  ;;  %v722_v10 = vsel %vm258_vm0, %v17087_v36, %v721_v2  ;;  %v16727_v58 = vshll.u32 %v10429_v34, 16  ;;  %v16725_v36 = vrot.slane %v10403_v1, 2 }
 0x1f4   :  { %v487_v6 = vsel %vm466_vm2, %v484_v21, %v17088_v23  ;;  %v820_v2 = vrot.slane %v778_v32, 2  ;;  %v3810_v13 = vsel %vm3782_vm3, %v3805_v31, %v10466_v5  ;;  %v17089_v21 = vshll.u32 %v10249_v43, 16 }
 0x1f5   :  { %v525_v8 = vadd.f32 %v487_v6, %v421_v55  ;;  %v10483_v20 = vor.u32 %v4751_v61, %v4750_v24  ;;  %v761_v52 = vadd.f32 %v722_v10, %v658_v62  ;;  %v762_v61 = vadd.f32 %v724_v28, %v659_v4 }
 0x1f6   :  { %v4783_v26 = vrot.slane %v17089_v21, 2  ;;  %4298 = vrot.lane.b32.xlu0 %v3810_v13, %s9260_s26  ;;  %v10502_v55 = vrot.slane %v16727_v58, 1  ;;  %v3869_v32 = vor.u32 %v3867_v35, %v10369_v25  ;;  %v4782_v24 = vrot.slane %v3867_v35, 1 }
 0x1f7   :  { %v4753_v23 = vsel %vm4742_vm4, %v10140_v0, %v10483_v20  ;;  %v16723_v6 = vrot.slane %v10427_v47, 3  ;;  %v546_v62 = vadd.f32 %v9642_v45, %v524_v59  ;;  %v919_v4 = vrot.slane %v877_v46, 3 }
 0x1f8   :  { %5000 = vrot.lane.b32.xlu1 %v4753_v23, %s9261_s28  ;;  %v547_v13 = vadd.f32 %v9642_v45, %v525_v8  ;;  %v17090_v10 = vrot.slane %v10283_v40, 2  ;;  %v823_v28 = vsel %vm362_vm1, %v820_v2, %v16725_v36  ;;  %v3874_v31 = vsel %vm3782_vm3, %v3869_v32, %v10502_v55  ;;  %v10521_v45 = vpop.permute.xlu1 %188  ;;  %v10523_v40 = vpop.permute.xlu0 %647 }
 0x1f9   :  { %v10517_v25 = vor.u32 %v4783_v26, %v4782_v24  ;;  %v861_v21 = vadd.f32 %v823_v28, %v762_v61  ;;  %v16728_v59 = vshrl.u32 %v10297_v30, 16  ;;  %v17091_v8 = vshll.u32 %v10297_v30, 16 }
 0x1fa   :  { %v821_v0 = vsel %vm362_vm1, %v17090_v10, %v820_v2  ;;  %4314 = vrot.lane.b32.xlu0 %v3874_v31, %s9260_s26  ;;  %v17092_v61 = vrot.slane %v10313_v16, 3  ;;  %v922_v32 = vsel %vm466_vm2, %v919_v4, %v16723_v6  ;;  %v562_v24 = vmax.f32 %v546_v62, 0.0  ;;  %v10554_v62 = vld [vmem:[%s16621_s2] ss:$0 sm:$0xff] }
 0x1fb   :  { %v860_v35 = vadd.f32 %v821_v0, %v761_v52  ;;  %v4785_v46 = vsel %vm4742_vm4, %v10182_v3, %v10517_v25  ;;  %v4815_v2 = vrot.slane %v17091_v8, 2  ;;  %v4814_v26 = vrot.slane %v16728_v59, 1  ;;  %v9097_v59 = vld [vmem:[#allocation8 + $0x18] sm:$0xff]  }
 0x1fc   :  { %5016 = vrot.lane.b32.xlu1 %v4785_v46, %s9261_s28  ;;  %v563_v52 = vmax.f32 %v547_v13, 0.0  ;;  %v920_v23 = vsel %vm466_vm2, %v17092_v61, %v919_v4  ;;  %v960_v3 = vadd.f32 %v922_v32, %v861_v21  ;;  %v10543_v31 = vpop.permute.xlu1 %643  ;;  %v10545_v46 = vpop.permute.xlu0 %1052  ;;  %v17096_v21 = vrot.slane %v10374_v9, 1 }
 0x1fd   :  { %v959_v10 = vadd.f32 %v920_v23, %v860_v35  ;;  %v10539_v0 = vor.u32 %v4815_v2, %v4814_v26  ;;  %17095 = vst [vmem:[#allocation53_spill] sm:$0xff] %v10543_v31  ;;  %v10571_v23 = vmul.f32 %v10487_v19, %v9489_v33  ;;  %v235_v22 = vmul.f32 %v9489_v33, %v10273_v50 }
 0x1fe   :  { %v10541_v28 = vpack.c.bf16 %v563_v52, %v562_v24  ;;  %v976_v35 = vadd.f32 %v10554_v62, %v960_v3  ;;  %v10577_v24 = vmul.f32 %v10487_v19, %v9499_v38  ;;  %v1402_v53 = vadd.f32 %v10554_v62, %v17111_v49 }
 0x1ff   :  { %17093 = vst [vmem:[#allocation51_spill] sm:$0xff] %v10539_v0  ;;  %v4817_v16 = vsel %vm4742_vm4, %v10218_v37, %v10539_v0  ;;  %v975_v4 = vadd.f32 %v10554_v62, %v959_v10  ;;  %v9094_v37 = vld [vmem:[#allocation8] sm:$0xff]   ;;  %v16726_v10 = vrot.slane %v10571_v23, 1  ;;  %v10672_v18 = vmul.f32 %v10384_v12, %v9506_v42 }
 0x200   :  { %17094 = vst [vmem:[#allocation52_spill] sm:$0xff] %v10541_v28  ;;  %v16722_v13 = vrot.slane %v10541_v28, 1  ;;  %5032 = vrot.lane.b32.xlu1 %v4817_v16, %s9261_s28  ;;  %v992_v26 = vmax.f32 %v976_v35, 0.0  ;;  %v10565_v52 = vpop.permute.xlu1 %193  ;;  %v10567_v61 = vpop.permute.xlu0 %1060  ;;  %8848 = vmatprep.subr.bf16.mxu0 %v9094_v37  ;;  %v1086_v16 = vmul.f32 %v9885_v11, %v9506_v42  ;;  %v9095_v11 = vld [vmem:[#allocation8 + $0x8] sm:$0xff]   ;;  %v17113_v44 = vrot.slane %v10347_v48, 1 }
 0x201   :  { %v991_v2 = vmax.f32 %v975_v4, 0.0  ;;  %17097 = vst [vmem:[#allocation54_spill] sm:$0xff] %v10565_v52  ;;  %8849 = vmatpush3.bf16.msra.mxu0 %v9094_v37  ;;  %v17099_v4 = vrot.slane %v9892_v51, 1  ;;  %v16731_v37 = vrot.slane %v10577_v24, 2  ;;  %v10686_v0 = vmul.f32 %v9499_v38, %v10355_v7 }
 0x202   :  { %v4495_v8 = vsel %vm258_vm0, %v17096_v21, %v16722_v13  ;;  %v17100_v21 = vrot.slane %v10429_v34, 1  ;;  %v9096_v13 = vld [vmem:[#allocation8 + $0x10] sm:$0xff]   ;;  %8850 = vmatprep.subr.bf16.mxu0 %v9095_v11  ;;  %v1418_v49 = vmax.f32 %v1402_v53, 0.0  ;;  %v10704_v48 = vmul.f32 %v10523_v40, %v9499_v38  ;;  %v9101_v53 = vld [vmem:[#allocation8 + $0x38] sm:$0xff]  }
 0x203   :  { %v10573_v32 = vpack.c.bf16 %v992_v26, %v991_v2  ;;  %v1149_v35 = vsel %vm258_vm0, %v17099_v4, %v16726_v10  ;;  %v10596_v2 = vmul.f32 %v10487_v19, %v9501_v39  ;;  %v16732_v4 = vshrl.u32 %v10374_v9, 16 }
 0x204   :  { %4620 = vrot.lane.b32.xlu1 %v4495_v8, %s9252_s0  ;;  %v10598_v26 = vpop.permute.xlu1 %1056  ;;  %v10600_v6 = vpop.permute.xlu0 %1068  ;;  %v1189_v51 = vadd.f32 %v1149_v35, %v1086_v16  ;;  %v10719_v52 = vmul.f32 %v10523_v40, %v9501_v39 }
 0x205   :  { %17098 = vst [vmem:[#allocation55_spill] sm:$0xff] %v10573_v32  ;;  %v16724_v3 = vrot.slane %v10573_v32, 1  ;;  %8851 = vmatpush3.bf16.msra.mxu0 %v9095_v11  ;;  %v16735_v58 = vrot.slane %v10596_v2, 3  ;;  %v3813_v16 = vor.u32 %v16732_v4, %v10466_v5  ;;  %v9098_v5 = vld [vmem:[#allocation8 + $0x20] sm:$0xff]   ;;  %v16734_v4 = vshll.u32 %v10573_v32, 16 }
 0x206   :  { %8852 = vmatprep.subr.bf16.mxu0 %v9096_v13 }
 0x207   :  { %v4511_v8 = vsel %vm258_vm0, %v17100_v21, %v16724_v3  ;;  %v16730_v21 = vshll.u32 %v10541_v28, 16  ;;  %v17101_v3 = vld [vmem:[#allocation37_spill] sm:$0xff] }
 0x208   :  { %4636 = vrot.lane.b32.xlu1 %v4511_v8, %s9252_s0  ;;  %v17102_v36 = vrot.slane %v17101_v3, 2  ;;  %v10618_v8 = vpop.permute.xlu1 %1064  ;;  %v10620_v11 = vpop.permute.xlu0 %1076  ;;  %v17105_v3 = vld [vmem:[#allocation39_spill] sm:$0xff] }
 0x209   :  { %v10616_v35 = vrot.slane %v16730_v21, 1  ;;  %17104 = vst [vmem:[#allocation56_spill] sm:$0xff] %v10618_v8  ;;  %8853 = vmatpush3.bf16.msra.mxu0 %v9096_v13 }
 0x20a   :  { %v1248_v10 = vsel %vm362_vm1, %v17102_v36, %v16731_v37  ;;  %8854 = vmatprep.subr.bf16.mxu0 %v9097_v59  ;;  %v16736_v37 = vshrl.u32 %v10429_v34, 16 }
 0x20b   :  { %v1288_v43 = vadd.f32 %v1248_v10, %v1189_v51  ;;  %17103 = vst [vmem:[#allocation37_spill] sm:$0xff] %v10616_v35  ;;  %v3818_v36 = vsel %vm3782_vm3, %v3813_v16, %v10616_v35  ;;  %v17106_v10 = vrot.slane %v17105_v3, 3  ;;  %v10639_v16 = vrot.slane %v16734_v4, 1  ;;  %v9099_v3 = vld [vmem:[#allocation8 + $0x28] sm:$0xff]  }
 0x20c   :  { %4300 = vrot.lane.b32.xlu1 %v3818_v36, %s9260_s26  ;;  %v3877_v13 = vor.u32 %v16736_v37, %v10502_v55  ;;  %v10643_v36 = vmul.f32 %v9489_v33, %v10355_v7  ;;  %v280_v37 = vrot.slane %v235_v22, 1  ;;  %v10676_v22 = vmul.f32 %v10490_v27, %v9506_v42 }
 0x20d   :  { %v1347_v51 = vsel %vm466_vm2, %v17106_v10, %v16735_v58  ;;  %17107 = vst [vmem:[#allocation39_spill] sm:$0xff] %v10639_v16  ;;  %8855 = vmatpush3.bf16.msra.mxu0 %v9097_v59  ;;  %v10649_v10 = vmul.f32 %v10490_v27, %v9489_v33  ;;  %v10658_v59 = vmul.f32 %v10490_v27, %v9499_v38 }
 0x20e   :  { %v1387_v21 = vadd.f32 %v1347_v51, %v1288_v43  ;;  %v10645_v43 = vpop.permute.xlu1 %1072  ;;  %8856 = vmatprep.subr.bf16.mxu0 %v9098_v5  ;;  %v10651_v51 = vpop.permute.xlu0 %1449  ;;  %v3882_v4 = vsel %vm3782_vm3, %v3877_v13, %v10639_v16  ;;  %v10662_v58 = vmul.f32 %v10490_v27, %v9501_v39  ;;  %17112 = vst [vmem:[#allocation41_spill] sm:$0xff] %v10676_v22 }
 0x20f   :  { %17108 = vst [vmem:[#allocation57_spill] sm:$0xff] %v10645_v43  ;;  %17109 = vst [vmem:[#allocation58_spill] sm:$0xff] %v10658_v59  ;;  %v281_v13 = vsel %vm258_vm0, %v17113_v44, %v280_v37  ;;  %v10692_v27 = vmul.f32 %v10523_v40, %v9506_v42  ;;  %v210_v44 = vmul.f32 %v9506_v42, %v10230_v41 }
 0x210   :  { %v1403_v55 = vadd.f32 %v10554_v62, %v1387_v21  ;;  %17110 = vst [vmem:[#allocation59_spill] sm:$0xff] %v10662_v58  ;;  %4316 = vrot.lane.b32.xlu1 %v3882_v4, %s9260_s26  ;;  %v339_v21 = vmul.f32 %v9499_v38, %v10273_v50  ;;  %v211_v4 = vmul.f32 %v9506_v42, %v10273_v50  ;;  %v17124_v58 = vshrl.u32 %v10297_v30, 16 }
 0x211   :  { %8857 = vmatpush3.bf16.msra.mxu0 %v9098_v5  ;;  %17115 = vst [vmem:[#allocation61_spill] sm:$0xff] %v10692_v27  ;;  %v17117_v27 = vrot.slane %v10643_v36, 1  ;;  %v318_v8 = vadd.f32 %v281_v13, %v210_v44  ;;  %v443_v22 = vmul.f32 %v9501_v39, %v10273_v50  ;;  %v681_v41 = vmul.f32 %v10315_v54, %v9489_v33 }
 0x212   :  { %8858 = vmatprep.subr.bf16.mxu0 %v9099_v3  ;;  %v1419_v57 = vmax.f32 %v1403_v55, 0.0  ;;  %v10688_v12 = vpop.permute.xlu1 %1445  ;;  %v10696_v55 = vmul.f32 %v10523_v40, %v9489_v33  ;;  %v10698_v5 = vpop.permute.xlu0 %1457  ;;  %v10728_v13 = vmul.f32 %v10391_v14, %v9489_v33  ;;  %v1108_v50 = vmul.f32 %v10545_v46, %v9489_v33 }
 0x213   :  { %17114 = vst [vmem:[#allocation60_spill] sm:$0xff] %v10688_v12  ;;  %17116 = vst [vmem:[#allocation62_spill] sm:$0xff] %v10698_v5  ;;  %v384_v12 = vrot.slane %v339_v21, 2  ;;  %v283_v43 = vsel %vm258_vm0, %v280_v37, %v17117_v27  ;;  %v10723_v21 = vmul.f32 %v10545_v46, %v9506_v42  ;;  %v10738_v40 = vmul.f32 %v9501_v39, %v10355_v7 }
 0x214   :  { %v10742_v27 = vmul.f32 %v10545_v46, %v9501_v39  ;;  %v17120_v44 = vrot.slane %v10380_v15, 2  ;;  %v10749_v16 = vmul.f32 %v10598_v26, %v9489_v33  ;;  %v488_v5 = vrot.slane %v443_v22, 3 }
 0x215   :  { %8859 = vmatpush3.bf16.msra.mxu0 %v9099_v3  ;;  %v10715_v3 = vpack.c.bf16 %v1419_v57, %v1418_v49  ;;  %v10734_v57 = vmul.f32 %v10545_v46, %v9499_v38  ;;  %v319_v49 = vadd.f32 %v283_v43, %v211_v4  ;;  %17119 = vst [vmem:[#allocation64_spill] sm:$0xff] %v10738_v40  ;;  %v725_v31 = vrot.slane %v681_v41, 1 }
 0x216   :  { %8860 = vmatprep.subr.bf16.mxu0 %v9100_v56  ;;  %v385_v37 = vsel %vm362_vm1, %v17120_v44, %v384_v12  ;;  %v10752_v43 = vpop.permute.xlu1 %1453  ;;  %v10754_v4 = vpop.permute.xlu0 %1469  ;;  %v780_v46 = vmul.f32 %v10315_v54, %v9499_v38  ;;  %v17123_v15 = vrot.slane %v10686_v0, 2  ;;  %v3933_v59 = vor.u32 %v17124_v58, %v10436_v29 }
 0x217   :  { %17118 = vst [vmem:[#allocation63_spill] sm:$0xff] %v10715_v3  ;;  %17121 = vst [vmem:[#allocation65_spill] sm:$0xff] %v10752_v43  ;;  %v17125_v43 = vshll.u32 %v10715_v3, 16  ;;  %v17126_v58 = vshrl.u32 %v10374_v9, 16  ;;  %v17128_v30 = vmov 0   ;;  %v17129_v41 = vrot.slane %v10417_v60, 3 }
 0x218   :  { %17122 = vst [vmem:[#allocation66_spill] sm:$0xff] %v10754_v4  ;;  %v387_v44 = vsel %vm362_vm1, %v384_v12, %v17123_v15  ;;  %v17127_v15 = vshll.u32 %v10374_v9, 16  ;;  %v661_v12 = vmul.f32 %v10315_v54, %v9506_v42 }
 0x219   :  { %8861 = vmatpush3.bf16.msra.mxu0 %v9100_v56  ;;  %v422_v56 = vadd.f32 %v385_v37, %v318_v8  ;;  %v10767_v32 = vrot.slane %v17125_v43, 1  ;;  %v879_v8 = vmul.f32 %v10315_v54, %v9501_v39  ;;  %v423_v22 = vadd.f32 %v387_v44, %v319_v49 }
 0x21a   :  { %8862 = vmatprep.subr.bf16.mxu0 %v9101_v53  ;;  %v10774_v37 = vmul.f32 %v10391_v14, %v9499_v38  ;;  %v4754_v43 = vrot.slane %v17126_v58, 1  ;;  %v4755_v35 = vrot.slane %v17127_v15, 2  ;;  %v1150_v49 = vrot.slane %v1108_v50, 1  ;;  %v10801_v60 = vpop.permute.xlu1 %1461 }
 0x21b   :  { %v3938_v29 = vsel %vm3782_vm3, %v3933_v59, %v10767_v32  ;;  %v1249_v44 = vrot.slane %v10734_v57, 2  ;;  %v17130_v58 = vrot.slane %v10395_v63, 1  ;;  %v17131_v15 = vrot.slane %v10728_v13, 1  ;;  %17132 = vst [vmem:[#allocation67_spill] sm:$0xff] %v10801_v60 }
 0x21c   :  { %4330 = vrot.lane.b32.xlu0 %v3938_v29, %s9260_s26  ;;  %v10799_v57 = vmul.f32 %v10598_v26, %v9499_v38  ;;  %v824_v54 = vrot.slane %v780_v46, 2  ;;  %v10810_v29 = vmul.f32 %v10391_v14, %v9501_v39  ;;  %v10816_v60 = vor.u32 %v4755_v35, %v4754_v43 }
 0x21d   :  { %8863 = vmatpush3.bf16.msra.mxu0 %v9101_v53  ;;  %v489_v53 = vsel %vm466_vm2, %v17129_v41, %v488_v5  ;;  %v726_v9 = vsel %vm258_vm0, %v17130_v58, %v725_v31  ;;  %v728_v50 = vsel %vm258_vm0, %v725_v31, %v17131_v15  ;;  %v10803_v41 = vpop.permute.xlu0 %1473  ;;  %v16772_v31 = vrot.slane %v10774_v37, 2 }
 0x21e   :  { %8187 = vmatprep.subr.bf16.mxu0 %v17128_v30  ;;  %v526_v59 = vadd.f32 %v489_v53, %v422_v56  ;;  %17133 = vst [vmem:[#allocation68_spill] sm:$0xff] %v10803_v41  ;;  %v923_v30 = vrot.slane %v879_v8, 3  ;;  %v17134_v56 = vrot.slane %v10738_v40, 3  ;;  %v17135_v58 = vrot.slane %v10749_v16, 1 }
 0x21f   :  { %v763_v46 = vadd.f32 %v726_v9, %v10672_v18  ;;  %v764_v8 = vadd.f32 %v728_v50, %v661_v12  ;;  %v17136_v41 = vshrl.u32 %v10429_v34, 16  ;;  %v17138_v40 = vrot.slane %v10571_v23, 1 }
 0x220   :  { %v491_v63 = vsel %vm466_vm2, %v488_v5, %v17134_v56  ;;  %v1153_v15 = vsel %vm258_vm0, %v1150_v49, %v17135_v58  ;;  %v17137_v5 = vshll.u32 %v10429_v34, 16  ;;  %v10829_v58 = vmul.f32 %v10598_v26, %v9501_v39 }
 0x221   :  { %v527_v53 = vadd.f32 %v491_v63, %v423_v22  ;;  %v4786_v4 = vrot.slane %v17136_v41, 1  ;;  %v1151_v22 = vsel %vm258_vm0, %v17138_v40, %v1150_v49  ;;  %v16768_v63 = vrot.slane %v10799_v57, 2  ;;  %v10834_v9 = vpop.permute.xlu0 %1485  ;;  %v10851_v41 = vpop.permute.xlu1 %1465 }
 0x222   :  { %v4787_v56 = vrot.slane %v17137_v5, 2  ;;  %v4757_v18 = vsel %vm4742_vm4, %v10483_v20, %v10816_v60  ;;  %17139 = vst [vmem:[#allocation69_spill] sm:$0xff] %v10834_v9  ;;  %v548_v35 = vadd.f32 %v10554_v62, %v526_v59  ;;  %v1087_v12 = vmul.f32 %v10487_v19, %v9506_v42  ;;  %17141 = vst [vmem:[#allocation70_spill] sm:$0xff] %v10851_v41 }
 0x223   :  { %v1191_v23 = vadd.f32 %v1153_v15, %v10723_v21  ;;  %5002 = vrot.lane.b32.xlu0 %v4757_v18, %s9261_s28  ;;  %v17140_v43 = vrot.slane %v10403_v1, 2  ;;  %v549_v50 = vadd.f32 %v10554_v62, %v527_v53  ;;  %v827_v20 = vsel %vm362_vm1, %v824_v54, %v16772_v31 }
 0x224   :  { %v10841_v40 = vor.u32 %v4787_v56, %v4786_v4  ;;  %v16771_v59 = vrot.slane %v10810_v29, 3  ;;  %v863_v15 = vadd.f32 %v827_v20, %v764_v8  ;;  %v1190_v4 = vadd.f32 %v1151_v22, %v1087_v12 }
 0x225   :  { %v825_v49 = vsel %vm362_vm1, %v17140_v43, %v824_v54  ;;  %v1348_v1 = vrot.slane %v10742_v27, 3  ;;  %v1252_v53 = vsel %vm362_vm1, %v1249_v44, %v16768_v63  ;;  %v16769_v56 = vrot.slane %v10829_v58, 3 }
 0x226   :  { %v862_v21 = vadd.f32 %v825_v49, %v763_v46  ;;  %v10862_v54 = vmul.f32 %v10567_v61, %v9489_v33  ;;  %v17142_v18 = vrot.slane %v10427_v47, 3  ;;  %v1290_v8 = vadd.f32 %v1252_v53, %v1191_v23 }
 0x227   :  { %v4789_v22 = vsel %vm4742_vm4, %v10517_v25, %v10841_v40  ;;  %v926_v27 = vsel %vm466_vm2, %v923_v30, %v16771_v59  ;;  %v17143_v12 = vrot.slane %v10577_v24, 2  ;;  %v564_v49 = vmax.f32 %v548_v35, 0.0  ;;  %v10893_v35 = vpop.permute.xlu1 %1477 }
 0x228   :  { %v924_v46 = vsel %vm466_vm2, %v17142_v18, %v923_v30  ;;  %5018 = vrot.lane.b32.xlu0 %v4789_v22, %s9261_s28  ;;  %v565_v20 = vmax.f32 %v549_v50, 0.0  ;;  %v10878_v18 = vpop.permute.xlu0 %1489  ;;  %v962_v53 = vadd.f32 %v926_v27, %v863_v15  ;;  %v10882_v25 = vmul.f32 %v10567_v61, %v9506_v42  ;;  %17145 = vst [vmem:[#allocation72_spill] sm:$0xff] %v10893_v35 }
 0x229   :  { %v1250_v43 = vsel %vm362_vm1, %v17143_v12, %v1249_v44  ;;  %17144 = vst [vmem:[#allocation71_spill] sm:$0xff] %v10878_v18  ;;  %v961_v23 = vadd.f32 %v924_v46, %v862_v21  ;;  %v10886_v30 = vmul.f32 %v10567_v61, %v9499_v38  ;;  %v1351_v24 = vsel %vm466_vm2, %v1348_v1, %v16769_v56 }
 0x22a   :  { %v1289_v63 = vadd.f32 %v1250_v43, %v1190_v4  ;;  %v10891_v44 = vpack.c.bf16 %v565_v20, %v564_v49  ;;  %v10898_v21 = vmul.f32 %v10567_v61, %v9501_v39  ;;  %v10902_v15 = vmul.f32 %v10600_v6, %v9489_v33 }
 0x22b   :  { %v1389_v4 = vadd.f32 %v1351_v24, %v1290_v8  ;;  %v10906_v46 = vmul.f32 %v10600_v6, %v9499_v38  ;;  %v10910_v22 = vmul.f32 %v10600_v6, %v9501_v39  ;;  %v17146_v27 = vrot.slane %v10596_v2, 3 }
 0x22c   :  { %v16770_v61 = vrot.slane %v10891_v44, 1  ;;  %v977_v43 = vadd.f32 %v10554_v62, %v961_v23  ;;  %v978_v49 = vadd.f32 %v10554_v62, %v962_v53  ;;  %v10920_v8 = vmul.f32 %v9489_v33, %v10440_v17  ;;  %v10922_v20 = vpop.permute.xlu0 %1501 }
 0x22d   :  { %v1349_v12 = vsel %vm466_vm2, %v17146_v27, %v1348_v1  ;;  %17147 = vst [vmem:[#allocation73_spill] sm:$0xff] %v10922_v20  ;;  %v10926_v56 = vmul.f32 %v10620_v11, %v9489_v33  ;;  %v10930_v2 = vmul.f32 %v10620_v11, %v9499_v38  ;;  %v10934_v1 = vmul.f32 %v10620_v11, %v9501_v39 }
 0x22e   :  { %v1388_v24 = vadd.f32 %v1349_v12, %v1289_v63  ;;  %v17150_v23 = vrot.slane %v10541_v28, 1  ;;  %v10945_v12 = vmul.f32 %v10600_v6, %v9506_v42  ;;  %v1405_v47 = vadd.f32 %v10554_v62, %v1389_v4 }
 0x22f   :  { %17148 = vst [vmem:[#allocation74_spill] sm:$0xff] %v10930_v2  ;;  %17149 = vst [vmem:[#allocation75_spill] sm:$0xff] %v10934_v1  ;;  %v284_v27 = vrot.slane %v10920_v8, 1  ;;  %v993_v63 = vmax.f32 %v977_v43, 0.0  ;;  %v994_v4 = vmax.f32 %v978_v49, 0.0  ;;  %v10965_v19 = vmul.f32 %v9499_v38, %v10440_v17 }
 0x230   :  { %v4497_v53 = vsel %vm258_vm0, %v17150_v23, %v16770_v61  ;;  %v10954_v23 = vmul.f32 %v10620_v11, %v9506_v42  ;;  %v10956_v61 = vpop.permute.xlu1 %1481  ;;  %v1404_v6 = vadd.f32 %v10554_v62, %v1388_v24  ;;  %v10969_v11 = vmul.f32 %v10651_v51, %v9506_v42  ;;  %v10976_v49 = vpop.permute.xlu0 %1505 }
 0x231   :  { %4622 = vrot.lane.b32.xlu0 %v4497_v53, %s9252_s0  ;;  %17152 = vst [vmem:[#allocation77_spill] sm:$0xff] %v10956_v61  ;;  %v17154_v8 = vrot.slane %v10649_v10, 1  ;;  %v17155_v24 = vrot.slane %v10728_v13, 1  ;;  %17156 = vst [vmem:[#allocation79_spill] sm:$0xff] %v10976_v49  ;;  %v1421_v53 = vmax.f32 %v1405_v47, 0.0  ;;  %v10978_v5 = vpack.c.bf16 %v994_v4, %v993_v63 }
 0x232   :  { %17151 = vst [vmem:[#allocation76_spill] sm:$0xff] %v10954_v23  ;;  %17153 = vst [vmem:[#allocation78_spill] sm:$0xff] %v10969_v11  ;;  %v10982_v50 = vmul.f32 %v10651_v51, %v9489_v33  ;;  %v10986_v59 = vmul.f32 %v10651_v51, %v9499_v38  ;;  %v662_v31 = vmul.f32 %v10391_v14, %v9506_v42  ;;  %v17161_v63 = vrot.slane %v10643_v36, 1  ;;  %v17163_v36 = vld [vmem:[#allocation55_spill] sm:$0xff] }
 0x233   :  { %v730_v43 = vsel %vm258_vm0, %v17155_v24, %v17154_v8  ;;  %17157 = vst [vmem:[#allocation80_spill] sm:$0xff] %v10978_v5  ;;  %v10992_v13 = vmul.f32 %v9489_v33, %v10521_v45  ;;  %v10996_v47 = vmul.f32 %v10651_v51, %v9501_v39  ;;  %v1420_v8 = vmax.f32 %v1404_v6, 0.0 }
 0x234   :  { %17158 = vst [vmem:[#allocation81_spill] sm:$0xff] %v10982_v50  ;;  %17159 = vst [vmem:[#allocation82_spill] sm:$0xff] %v10986_v59  ;;  %v285_v4 = vsel %vm258_vm0, %v17161_v63, %v284_v27  ;;  %v16782_v24 = vrot.slane %v10978_v5, 1  ;;  %v212_v34 = vmul.f32 %v9506_v42, %v10355_v7  ;;  %v765_v49 = vadd.f32 %v730_v43, %v662_v31  ;;  %v11009_v61 = vpop.permute.xlu1 %1493  ;;  %v11011_v51 = vpop.permute.xlu0 %4614  ;;  %v17166_v43 = vld [vmem:[#allocation58_spill] sm:$0xff] }
 0x235   :  { %17160 = vst [vmem:[#allocation83_spill] sm:$0xff] %v10996_v47  ;;  %v388_v14 = vrot.slane %v10965_v19, 2  ;;  %v11007_v20 = vmul.f32 %v9501_v39, %v10440_v17  ;;  %17162 = vst [vmem:[#allocation84_spill] sm:$0xff] %v11009_v61  ;;  %v17164_v6 = vrot.slane %v17163_v36, 1  ;;  %v3819_v18 = vshrl.u32 %v10541_v28, 16 }
 0x236   :  { %v16785_v7 = vshll.u32 %v10891_v44, 16  ;;  %v11020_v31 = vpack.c.bf16 %v1421_v53, %v1420_v8  ;;  %v17167_v35 = vrot.slane %v17166_v43, 2  ;;  %v17168_v61 = vrot.slane %v10774_v37, 2 }
 0x237   :  { %v4513_v63 = vsel %vm258_vm0, %v17164_v6, %v16782_v24  ;;  %v320_v11 = vadd.f32 %v285_v4, %v212_v34  ;;  %v17169_v6 = vld [vmem:[#allocation37_spill] sm:$0xff]  ;;  %v16789_v53 = vshrl.u32 %v10715_v3, 16  ;;  %v17170_v37 = vrot.slane %v10686_v0, 2 }
 0x238   :  { %17165 = vst [vmem:[#allocation85_spill] sm:$0xff] %v11020_v31  ;;  %v829_v41 = vsel %vm362_vm1, %v17168_v61, %v17167_v35  ;;  %4638 = vrot.lane.b32.xlu0 %v4513_v63, %s9252_s0  ;;  %v3821_v24 = vor.u32 %v3819_v18, %v17169_v6  ;;  %v11033_v1 = vrot.slane %v16785_v7, 1  ;;  %v16788_v8 = vshll.u32 %v11020_v31, 16  ;;  %v17171_v4 = vld [vmem:[#allocation53_spill] sm:$0xff] }
 0x239   :  { %v864_v19 = vadd.f32 %v829_v41, %v765_v49  ;;  %v389_v35 = vsel %vm362_vm1, %v17170_v37, %v388_v14  ;;  %v492_v34 = vrot.slane %v11007_v20, 3  ;;  %v11043_v61 = vmul.f32 %v9499_v38, %v10521_v45  ;;  %v17173_v37 = vld [vmem:[#allocation62_spill] sm:$0xff]  ;;  %v11072_v20 = vpop.permute.xlu0 %4630 }
 0x23a   :  { %v684_v63 = vmul.f32 %v17171_v4, %v9489_v33  ;;  %v3826_v6 = vsel %vm3782_vm3, %v3821_v24, %v11033_v1  ;;  %v3941_v41 = vor.u32 %v16789_v53, %v10767_v32  ;;  %v11054_v0 = vrot.slane %v16788_v8, 1  ;;  %v11063_v24 = vpop.permute.xlu1 %1497  ;;  %17177 = vst [vmem:[#allocation86_spill] sm:$0xff] %v11072_v20 }
 0x23b   :  { %v11060_v7 = vmul.f32 %v17173_v37, %v9506_v42  ;;  %v424_v9 = vadd.f32 %v389_v35, %v320_v11  ;;  %17175 = vst [vmem:[#allocation53_spill] sm:$0xff] %v11063_v24  ;;  %v17176_v50 = vrot.slane %v10992_v13, 1  ;;  %v11070_v8 = vmul.f32 %v9501_v39, %v10521_v45  ;;  %v17178_v11 = vld [vmem:[#allocation59_spill] sm:$0xff] }
 0x23c   :  { %17172 = vst [vmem:[#allocation58_spill] sm:$0xff] %v11054_v0  ;;  %4302 = vrot.lane.b32.xlu0 %v3826_v6, %s9260_s26  ;;  %v3946_v49 = vsel %vm3782_vm3, %v3941_v41, %v11054_v0  ;;  %v17179_v35 = vrot.slane %v17178_v11, 3  ;;  %v17180_v6 = vrot.slane %v10810_v29, 3  ;;  %v4758_v47 = vrot.slane %v3819_v18, 1  ;;  %v17183_v29 = vld [vmem:[#allocation39_spill] sm:$0xff] }
 0x23d   :  { %17174 = vst [vmem:[#allocation37_spill] sm:$0xff] %v11060_v7  ;;  %v287_v32 = vsel %vm258_vm0, %v284_v27, %v17176_v50  ;;  %v213_v50 = vmul.f32 %v9506_v42, %v10440_v17  ;;  %4332 = vrot.lane.b32.xlu1 %v3946_v49, %s9260_s26  ;;  %v3883_v27 = vshrl.u32 %v17163_v36, 16  ;;  %v17181_v7 = vld [vmem:[#allocation64_spill] sm:$0xff]  ;;  %v16802_v53 = vrot.slane %v11043_v61, 2 }
 0x23e   :  { %v928_v24 = vsel %vm466_vm2, %v17180_v6, %v17179_v35  ;;  %v17182_v59 = vrot.slane %v17181_v7, 3  ;;  %v731_v23 = vrot.slane %v684_v63, 1  ;;  %v17184_v35 = vshll.u32 %v10978_v5, 16 }
 0x23f   :  { %v963_v20 = vadd.f32 %v928_v24, %v864_v19  ;;  %v321_v0 = vadd.f32 %v287_v32, %v213_v50  ;;  %v3885_v2 = vor.u32 %v3883_v27, %v17183_v29  ;;  %v17186_v17 = vshll.u32 %v10541_v28, 16  ;;  %v17189_v24 = vld [vmem:[#allocation66_spill] sm:$0xff] }
 0x240   :  { %v493_v41 = vsel %vm466_vm2, %v17182_v59, %v492_v34  ;;  %v11093_v6 = vrot.slane %v17184_v35, 1  ;;  %v11099_v18 = vmul.f32 %v17173_v37, %v9489_v33  ;;  %v783_v19 = vmul.f32 %v17171_v4, %v9499_v38  ;;  %v11114_v35 = vpop.permute.xlu1 %217 }
 0x241   :  { %v4759_v49 = vrot.slane %v17186_v17, 2  ;;  %v528_v7 = vadd.f32 %v493_v41, %v424_v9  ;;  %v11106_v63 = vmul.f32 %v17173_v37, %v9499_v38  ;;  %v11110_v32 = vmul.f32 %v17189_v24, %v9489_v33  ;;  %v17191_v9 = vld [vmem:[#allocation68_spill] sm:$0xff] }
 0x242   :  { %17185 = vst [vmem:[#allocation59_spill] sm:$0xff] %v11093_v6  ;;  %17187 = vst [vmem:[#allocation64_spill] sm:$0xff] %v11099_v18  ;;  %v3890_v50 = vsel %vm3782_vm3, %v3885_v2, %v11093_v6  ;;  %v11118_v41 = vmul.f32 %v17191_v9, %v9489_v33  ;;  %v11121_v17 = vadd.f32 %v10554_v62, %v963_v20  ;;  %v17193_v28 = vrot.slane %v10649_v10, 1  ;;  %v11129_v18 = vpop.permute.xlu0 %4646 }
 0x243   :  { %17188 = vst [vmem:[#allocation39_spill] sm:$0xff] %v11106_v63  ;;  %17190 = vst [vmem:[#allocation87_spill] sm:$0xff] %v11110_v32  ;;  %v4760_v29 = vor.u32 %v4759_v49, %v4758_v47  ;;  %v391_v59 = vsel %vm362_vm1, %v388_v14, %v16802_v53  ;;  %4318 = vrot.lane.b32.xlu0 %v3890_v50, %s9260_s26  ;;  %v17195_v47 = vld [vmem:[#allocation54_spill] sm:$0xff]  ;;  %v16807_v37 = vshrl.u32 %v10891_v44, 16  ;;  %v17196_v10 = vrot.slane %v11070_v8, 3 }
 0x244   :  { %17192 = vst [vmem:[#allocation88_spill] sm:$0xff] %v11118_v41  ;;  %v732_v63 = vsel %vm258_vm0, %v17193_v28, %v731_v23  ;;  %17194 = vst [vmem:[#allocation89_spill] sm:$0xff] %v11129_v18  ;;  %v425_v2 = vadd.f32 %v391_v59, %v321_v0  ;;  %v11134_v49 = vmul.f32 %v9489_v33, %v17195_v47  ;;  %v830_v53 = vrot.slane %v783_v19, 2  ;;  %v17200_v19 = vld [vmem:[#allocation56_spill] sm:$0xff] }
 0x245   :  { %v4761_v20 = vsel %vm4742_vm4, %v10816_v60, %v4760_v29  ;;  %v11140_v14 = vadd.f32 %v10554_v62, %v528_v7  ;;  %v495_v28 = vsel %vm466_vm2, %v492_v34, %v17196_v10  ;;  %v882_v0 = vmul.f32 %v17171_v4, %v9501_v39  ;;  %v17198_v60 = vld [vmem:[#allocation41_spill] sm:$0xff] }
 0x246   :  { %5004 = vrot.lane.b32.xlu1 %v4761_v20, %s9261_s28  ;;  %v17197_v59 = vrot.slane %v10696_v55, 1  ;;  %v766_v18 = vadd.f32 %v732_v63, %v17198_v60  ;;  %v4762_v7 = vrot.slane %v16807_v37, 1  ;;  %v17199_v32 = vshll.u32 %v10891_v44, 16 }
 0x247   :  { %v664_v34 = vmul.f32 %v17171_v4, %v9506_v42  ;;  %v1111_v10 = vmul.f32 %v17200_v19, %v9489_v33  ;;  %v4790_v41 = vrot.slane %v3883_v27, 1  ;;  %v17201_v20 = vshll.u32 %v17163_v36, 16  ;;  %v11174_v27 = vpop.permute.xlu0 %4294 }
 0x248   :  { %v734_v50 = vsel %vm258_vm0, %v731_v23, %v17197_v59  ;;  %v4763_v9 = vrot.slane %v17199_v32, 2  ;;  %v529_v31 = vadd.f32 %v495_v28, %v425_v2  ;;  %v11165_v63 = vmul.f32 %v9499_v38, %v17195_v47  ;;  %v11169_v32 = vpop.permute.xlu1 %667 }
 0x249   :  { %v4791_v24 = vrot.slane %v17201_v20, 2  ;;  %v767_v60 = vadd.f32 %v734_v50, %v664_v34  ;;  %v17202_v4 = vrot.slane %v17166_v43, 2  ;;  %v929_v2 = vrot.slane %v882_v0, 3 }
 0x24a   :  { %v11167_v59 = vor.u32 %v4763_v9, %v4762_v7  ;;  %v17203_v28 = vrot.slane %v10862_v54, 1  ;;  %v17204_v23 = vrot.slane %v10749_v16, 1  ;;  %v9262_v7 = vmov 4  }
 0x24b   :  { %v831_v37 = vsel %vm362_vm1, %v17202_v4, %v830_v53  ;;  %v4792_v36 = vor.u32 %v4791_v24, %v4790_v41  ;;  %9086 = vset.pattern.permute.xlu1 %v9262_v7  ;;  %9087 = vset.pattern.permute.xlu0 %v9262_v7  ;;  %v1089_v43 = vmul.f32 %v10598_v26, %v9506_v42  ;;  %v1156_v50 = vrot.slane %v1111_v10, 1 }
 0x24c   :  { %v865_v20 = vadd.f32 %v831_v37, %v766_v18  ;;  %v1155_v6 = vsel %vm258_vm0, %v17204_v23, %v17203_v28  ;;  %v4765_v9 = vsel %vm4742_vm4, %v4760_v29, %v11167_v59  ;;  %v16810_v18 = vshrl.u32 %v10978_v5, 16 }
 0x24d   :  { %5006 = vrot.lane.b32.xlu0 %v4765_v9, %s9261_s28  ;;  %v4793_v37 = vsel %vm4742_vm4, %v10841_v40, %v4792_v36  ;;  %v214_v16 = vmul.f32 %v9506_v42, %v10521_v45  ;;  %v11193_v24 = vmul.f32 %v9506_v42, %v17195_v47  ;;  %v11197_v29 = vmul.f32 %v9501_v39, %v17195_v47 }
 0x24e   :  { %5020 = vrot.lane.b32.xlu1 %v4793_v37, %s9261_s28  ;;  %v17205_v26 = vshll.u32 %v10978_v5, 16  ;;  %v17206_v40 = vrot.slane %v10704_v48, 2  ;;  %v17207_v34 = vrot.slane %v11134_v49, 1  ;;  %v17208_v45 = vrot.slane %v10992_v13, 1  ;;  %v11221_v13 = vpop.permute.xlu1 %1096 }
 0x24f   :  { %v1192_v23 = vadd.f32 %v1155_v6, %v1089_v43  ;;  %v1210_v47 = vmul.f32 %v17200_v19, %v9499_v38  ;;  %v551_v4 = vadd.f32 %v10554_v62, %v529_v31  ;;  %v17209_v28 = vrot.slane %v17178_v11, 3  ;;  %v11227_v11 = vpop.permute.xlu0 %4310 }
 0x250   :  { %v4795_v41 = vrot.slane %v17205_v26, 2  ;;  %v833_v0 = vsel %vm362_vm1, %v830_v53, %v17206_v40  ;;  %v289_v10 = vsel %vm258_vm0, %v17208_v45, %v17207_v34  ;;  %v17210_v7 = vrot.slane %v10719_v52, 3  ;;  %17212 = vst [vmem:[#allocation54_spill] sm:$0xff] %v11227_v11 }
 0x251   :  { %v930_v9 = vsel %vm466_vm2, %v17209_v28, %v929_v2  ;;  %v4794_v37 = vrot.slane %v16810_v18, 1  ;;  %v866_v26 = vadd.f32 %v833_v0, %v767_v60  ;;  %v16811_v43 = vrot.slane %v11165_v63, 2  ;;  %v17215_v60 = vld [vmem:[#allocation16_spill] sm:$0xff] }
 0x252   :  { %v932_v53 = vsel %vm466_vm2, %v929_v2, %v17210_v7  ;;  %v964_v6 = vadd.f32 %v930_v9, %v865_v20  ;;  %v17211_v40 = vrot.slane %v10862_v54, 1  ;;  %v322_v34 = vadd.f32 %v289_v10, %v214_v16  ;;  %1874 = vperm.xlu1 %9086, %v17215_v60  }
 0x253   :  { %v17213_v2 = vrot.slane %v10886_v30, 2  ;;  %v17214_v28 = vrot.slane %v10799_v57, 2  ;;  %v11235_v18 = vor.u32 %v4795_v41, %v4794_v37  ;;  %v17216_v54 = vrot.slane %v10902_v15, 1 }
 0x254   :  { %v1157_v31 = vsel %vm258_vm0, %v17211_v40, %v1156_v50  ;;  %v1255_v9 = vrot.slane %v1210_v47, 2  ;;  %v1309_v16 = vmul.f32 %v17200_v19, %v9501_v39  ;;  %v1091_v10 = vmul.f32 %v17200_v19, %v9506_v42 }
 0x255   :  { %v1254_v7 = vsel %vm362_vm1, %v17214_v28, %v17213_v2  ;;  %v1159_v0 = vsel %vm258_vm0, %v1156_v50, %v17216_v54  ;;  %v1193_v57 = vadd.f32 %v1157_v31, %v10882_v25  ;;  %v4797_v41 = vsel %vm4742_vm4, %v4792_v36, %v11235_v18  ;;  %v17218_v2 = vld [vmem:[#allocation57_spill] sm:$0xff]  ;;  %v11266_v28 = vpop.permute.xlu1 %1525 }
 0x256   :  { %v1291_v20 = vadd.f32 %v1254_v7, %v1192_v23  ;;  %v16818_v37 = vrot.slane %v10715_v3, 1  ;;  %v11249_v40 = vadd.f32 %v932_v53, %v866_v26  ;;  %v980_v23 = vadd.f32 %v10554_v62, %v964_v6  ;;  %5022 = vrot.lane.b32.xlu0 %v4797_v41, %s9261_s28  ;;  %v11271_v41 = vpop.permute.xlu0 %4326 }
 0x257   :  { %v17217_v50 = vrot.slane %v11043_v61, 2  ;;  %v1113_v19 = vmul.f32 %v17218_v2, %v9489_v33  ;;  %v17219_v25 = vrot.slane %v10898_v21, 3  ;;  %v17220_v36 = vrot.slane %v10829_v58, 3  ;;  %17222 = vst [vmem:[#allocation41_spill] sm:$0xff] %v11271_v41 }
 0x258   :  { %v1194_v26 = vadd.f32 %v1159_v0, %v1091_v10  ;;  %v566_v6 = vmax.f32 %v11140_v14, 0.0  ;;  %v567_v31 = vmax.f32 %v551_v4, 0.0  ;;  %v17221_v54 = vrot.slane %v10886_v30, 2  ;;  %v17224_v14 = vld [vmem:[#allocation48_spill] sm:$0xff] }
 0x259   :  { %v393_v47 = vsel %vm362_vm1, %v17217_v50, %v16811_v43  ;;  %v1353_v53 = vsel %vm466_vm2, %v17220_v36, %v17219_v25  ;;  %v1354_v43 = vrot.slane %v1309_v16, 3  ;;  %v17223_v45 = vrot.slane %v10906_v46, 2 }
 0x25a   :  { %v426_v61 = vadd.f32 %v393_v47, %v322_v34  ;;  %v1390_v7 = vadd.f32 %v1353_v53, %v1291_v20  ;;  %v1256_v50 = vsel %vm362_vm1, %v17221_v54, %v1255_v9  ;;  %v17225_v4 = vrot.slane %v17224_v14, 1 }
 0x25b   :  { %v1258_v58 = vsel %vm362_vm1, %v1255_v9, %v17223_v45  ;;  %v1292_v25 = vadd.f32 %v1256_v50, %v1193_v57  ;;  %v11281_v34 = vpack.c.bf16 %v567_v31, %v566_v6  ;;  %v1160_v20 = vrot.slane %v1113_v19, 1 }
 0x25c   :  { %v4525_v0 = vsel %vm258_vm0, %v17225_v4, %v16818_v37  ;;  %v995_v30 = vmax.f32 %v11121_v17, 0.0  ;;  %v996_v16 = vmax.f32 %v980_v23, 0.0  ;;  %v17227_v10 = vrot.slane %v11197_v29, 3 }
 0x25d   :  { %17226 = vst [vmem:[#allocation56_spill] sm:$0xff] %v11281_v34  ;;  %4650 = vrot.lane.b32.xlu0 %v4525_v0, %s9252_s0  ;;  %v17228_v45 = vrot.slane %v11070_v8, 3  ;;  %v1293_v57 = vadd.f32 %v1258_v58, %v1194_v26  ;;  %v11292_v47 = vmul.f32 %v17218_v2, %v9499_v38  ;;  %v16816_v36 = vrot.slane %v11281_v34, 1  ;;  %v17231_v26 = vld [vmem:[#allocation33_spill] sm:$0xff] }
 0x25e   :  { %v17229_v53 = vrot.slane %v10898_v21, 3  ;;  %v1093_v23 = vmul.f32 %v17218_v2, %v9506_v42  ;;  %v11302_v6 = vpack.c.bf16 %v996_v16, %v995_v30  ;;  %v5128_v31 = vsel %vm5126_vm5, %v17231_v26, %v11174_v27  ;;  %v11312_v21 = vpop.permute.xlu1 %4616  ;;  %v4999_v30 = vpop.permute.xlu0 %4998 }
 0x25f   :  { %v497_v9 = vsel %vm466_vm2, %v17228_v45, %v17227_v10  ;;  %v17232_v54 = vrot.slane %v10891_v44, 1  ;;  %v1406_v50 = vadd.f32 %v10554_v62, %v1390_v7  ;;  %v17233_v58 = vrot.slane %v10910_v22, 3 }
 0x260   :  { %v11295_v19 = vadd.f32 %v497_v9, %v426_v61  ;;  %v1355_v17 = vsel %vm466_vm2, %v17229_v53, %v1354_v43  ;;  %17230 = vst [vmem:[#allocation57_spill] sm:$0xff] %v11302_v6  ;;  %v11323_v27 = vmul.f32 %v17218_v2, %v9501_v39  ;;  %v17235_v10 = vrot.slane %v10926_v56, 1  ;;  %v17236_v9 = vld [vmem:[#allocation17_spill] sm:$0xff] }
 0x261   :  { %v1391_v8 = vadd.f32 %v1355_v17, %v1292_v25  ;;  %v4499_v61 = vsel %vm258_vm0, %v17232_v54, %v16816_v36  ;;  %v1357_v4 = vsel %vm466_vm2, %v1354_v43, %v17233_v58  ;;  %v17234_v25 = vrot.slane %v10902_v15, 1  ;;  %1878 = vperm.xlu0 %9087, %v17236_v9  }
 0x262   :  { %4624 = vrot.lane.b32.xlu1 %v4499_v61, %s9252_s0  ;;  %v1392_v16 = vadd.f32 %v1357_v4, %v1293_v57  ;;  %v1163_v7 = vsel %vm258_vm0, %v1160_v20, %v17235_v10  ;;  %v1259_v45 = vrot.slane %v11292_v47, 2  ;;  %v16815_v15 = vrot.slane %v11302_v6, 1 }
 0x263   :  { %v1161_v0 = vsel %vm258_vm0, %v17234_v25, %v1160_v20  ;;  %v5257_v43 = vsel %vm5255_vm6, %v5128_v31, %v11011_v51  ;;  %v240_v2 = vmul.f32 %v9489_v33, %v11114_v35  ;;  %v344_v57 = vmul.f32 %v9499_v38, %v11114_v35 }
 0x264   :  { %v1407_v53 = vadd.f32 %v10554_v62, %v1391_v8  ;;  %v1195_v20 = vadd.f32 %v1161_v0, %v10945_v12  ;;  %v17237_v47 = vrot.slane %v10978_v5, 1  ;;  %v5386_v26 = vsel %vm5384_vm7, %v5257_v43, %v4999_v30  ;;  %v11359_v0 = vpop.permute.xlu1 %4632 }
 0x265   :  { %v1422_v51 = vmax.f32 %v1406_v50, 0.0  ;;  %8864 = vmatprep.mubr.bf16.mxu0 %v5386_v26  ;;  %v290_v31 = vrot.slane %v240_v2, 1  ;;  %v448_v54 = vmul.f32 %v9501_v39, %v11114_v35  ;;  %v17238_v8 = vshrl.u32 %v10715_v3, 16  ;;  %17240 = vst [vmem:[#allocation33_spill] sm:$0xff] %v11359_v0 }
 0x266   :  { %v4515_v17 = vsel %vm258_vm0, %v17237_v47, %v16815_v15  ;;  %v11352_v12 = vadd.f32 %v10554_v62, %v1392_v16  ;;  %v11354_v58 = vadd.f32 %v1163_v7, %v1093_v23  ;;  %v1358_v4 = vrot.slane %v11323_v27, 3 }
 0x267   :  { %4640 = vrot.lane.b32.xlu1 %v4515_v17, %s9252_s0  ;;  %v4818_v61 = vrot.slane %v17238_v8, 1  ;;  %v17239_v25 = vshll.u32 %v10715_v3, 16  ;;  %v17241_v30 = vrot.slane %v10906_v46, 2  ;;  %v17242_v35 = vrot.slane %v11134_v49, 1 }
 0x268   :  { %v394_v2 = vrot.slane %v344_v57, 2  ;;  %v3831_v16 = vshll.u32 %v11281_v34, 16  ;;  %v1423_v23 = vmax.f32 %v1407_v53, 0.0  ;;  %v498_v26 = vrot.slane %v448_v54, 3  ;;  %v17244_v57 = vld [vmem:[#allocation51_spill] sm:$0xff] }
 0x269   :  { %v4819_v50 = vrot.slane %v17239_v25, 2  ;;  %v1260_v10 = vsel %vm362_vm1, %v17241_v30, %v1259_v45  ;;  %v291_v43 = vsel %vm258_vm0, %v17242_v35, %v290_v31  ;;  %v17243_v8 = vshrl.u32 %v10891_v44, 16 }
 0x26a   :  { %v1294_v7 = vadd.f32 %v1260_v10, %v1195_v20  ;;  %v323_v47 = vadd.f32 %v291_v43, %v11193_v24  ;;  %v11374_v25 = vrot.slane %v3831_v16, 1  ;;  %v686_v49 = vmul.f32 %v11169_v32, %v9489_v33 }
 0x26b   :  { %v11369_v17 = vor.u32 %v4819_v50, %v4818_v61  ;;  %v3829_v46 = vor.u32 %v17243_v8, %v11033_v1  ;;  %v785_v53 = vmul.f32 %v11169_v32, %v9499_v38  ;;  %v884_v24 = vmul.f32 %v11169_v32, %v9501_v39 }
 0x26c   :  { %v3895_v20 = vshll.u32 %v11302_v6, 16  ;;  %v17245_v1 = vrot.slane %v10910_v22, 3  ;;  %v17246_v61 = vrot.slane %v11165_v63, 2  ;;  %v735_v10 = vrot.slane %v686_v49, 1  ;;  %v11402_v22 = vpop.permute.xlu1 %4648 }
 0x26d   :  { %v4821_v31 = vsel %vm4742_vm4, %v17244_v57, %v11369_v17  ;;  %v3834_v30 = vsel %vm3782_vm3, %v3829_v46, %v11374_v25  ;;  %v11400_v8 = vpack.c.bf16 %v1423_v23, %v1422_v51  ;;  %17248 = vst [vmem:[#allocation90_spill] sm:$0xff] %v11402_v22  ;;  %v17249_v63 = vrot.slane %v11197_v29, 3  ;;  %v17251_v46 = vld [vmem:[#allocation59_spill] sm:$0xff] }
 0x26e   :  { %v1359_v54 = vsel %vm466_vm2, %v17245_v1, %v1358_v4  ;;  %v395_v50 = vsel %vm362_vm1, %v17246_v61, %v394_v2  ;;  %5034 = vrot.lane.b32.xlu0 %v4821_v31, %s9261_s28  ;;  %4304 = vrot.lane.b32.xlu1 %v3834_v30, %s9260_s26  ;;  %v11398_v43 = vrot.slane %v3895_v20, 1  ;;  %v17250_v57 = vrot.slane %v10696_v55, 1  ;;  %v17253_v1 = vld [vmem:[#allocation61_spill] sm:$0xff] }
 0x26f   :  { %v1393_v35 = vadd.f32 %v1359_v54, %v1294_v7  ;;  %v427_v32 = vadd.f32 %v395_v50, %v323_v47  ;;  %17247 = vst [vmem:[#allocation51_spill] sm:$0xff] %v11400_v8  ;;  %v499_v2 = vsel %vm466_vm2, %v17249_v63, %v498_v26  ;;  %v17252_v7 = vshrl.u32 %v10978_v5, 16  ;;  %v17254_v61 = vld [vmem:[#allocation85_spill] sm:$0xff] }
 0x270   :  { %v736_v31 = vsel %vm258_vm0, %v17250_v57, %v735_v10  ;;  %v16812_v49 = vshrl.u32 %v11281_v34, 16  ;;  %v834_v51 = vrot.slane %v785_v53, 2  ;;  %v933_v23 = vrot.slane %v884_v24, 3  ;;  %v17255_v10 = vld [vmem:[#allocation74_spill] sm:$0xff] }
 0x271   :  { %v3893_v47 = vor.u32 %v17252_v7, %v17251_v46  ;;  %v768_v54 = vadd.f32 %v736_v31, %v17253_v1  ;;  %v3947_v50 = vshrl.u32 %v17254_v61, 16  ;;  %v3951_v26 = vshll.u32 %v11400_v8, 16  ;;  %v17257_v31 = vld [vmem:[#allocation58_spill] sm:$0xff] }
 0x272   :  { %v4766_v55 = vrot.slane %v16812_v49, 1  ;;  %v4767_v30 = vrot.slane %v3831_v16, 2  ;;  %v17256_v63 = vrot.slane %v17255_v10, 2  ;;  %v11425_v46 = vadd.f32 %v10554_v62, %v1393_v35  ;;  %v11444_v49 = vpop.permute.xlu1 %4296 }
 0x273   :  { %v3898_v29 = vsel %vm3782_vm3, %v3893_v47, %v11398_v43  ;;  %v531_v53 = vadd.f32 %v499_v2, %v427_v32  ;;  %v1115_v24 = vmul.f32 %v11221_v13, %v9489_v33  ;;  %v3949_v7 = vor.u32 %v3947_v50, %v17257_v31 }
 0x274   :  { %v1262_v57 = vsel %vm362_vm1, %v1259_v45, %v17256_v63  ;;  %4320 = vrot.lane.b32.xlu1 %v3898_v29, %s9260_s26  ;;  %v11431_v47 = vrot.slane %v3951_v26, 1  ;;  %v11433_v1 = vor.u32 %v4767_v30, %v4766_v55  ;;  %v1214_v16 = vmul.f32 %v11221_v13, %v9499_v38 }
 0x275   :  { %v17258_v45 = vrot.slane %v10704_v48, 2  ;;  %v17259_v32 = vrot.slane %v10719_v52, 3  ;;  %v1164_v29 = vrot.slane %v1115_v24, 1  ;;  %v16813_v63 = vshrl.u32 %v11302_v6, 16 }
 0x276   :  { %v3954_v55 = vsel %vm3782_vm3, %v3949_v7, %v11431_v47  ;;  %v4769_v30 = vsel %vm4742_vm4, %v11167_v59, %v11433_v1  ;;  %v16814_v48 = vrot.slane %v11400_v8, 1  ;;  %v17260_v52 = vrot.slane %v10926_v56, 1  ;;  %v11460_v7 = vpop.permute.xlu0 %5014 }
 0x277   :  { %v835_v35 = vsel %vm362_vm1, %v17258_v45, %v834_v51  ;;  %v934_v2 = vsel %vm466_vm2, %v17259_v32, %v933_v23  ;;  %v553_v51 = vadd.f32 %v10554_v62, %v531_v53  ;;  %4334 = vrot.lane.b32.xlu0 %v3954_v55, %s9260_s26  ;;  %v4799_v24 = vrot.slane %v3895_v20, 2  ;;  %17261 = vst [vmem:[#allocation59_spill] sm:$0xff] %v11460_v7 }
 0x278   :  { %v867_v31 = vadd.f32 %v835_v35, %v768_v54  ;;  %5008 = vrot.lane.b32.xlu1 %v4769_v30, %s9261_s28  ;;  %v1165_v23 = vsel %vm258_vm0, %v17260_v52, %v1164_v29  ;;  %v4798_v54 = vrot.slane %v16813_v63, 1  ;;  %v4526_v59 = vrot.slane %v17254_v61, 1  ;;  %v17262_v35 = vld [vmem:[#allocation76_spill] sm:$0xff] }
 0x279   :  { %v1263_v45 = vrot.slane %v1214_v16, 2  ;;  %v1313_v62 = vmul.f32 %v11221_v13, %v9501_v39  ;;  %v16817_v53 = vshrl.u32 %v11400_v8, 16  ;;  %v1197_v32 = vadd.f32 %v1165_v23, %v17262_v35  ;;  %v11479_v13 = vld [vmem:[%s16621_s2] ss:$0 sm:$0xff] }
 0x27a   :  { %v11467_v55 = vor.u32 %v4799_v24, %v4798_v54  ;;  %v4822_v56 = vrot.slane %v3947_v50, 1  ;;  %v17263_v29 = vshll.u32 %v17254_v61, 16  ;;  %v966_v52 = vadd.f32 %v934_v2, %v867_v31  ;;  %v11489_v54 = vpop.permute.xlu1 %4312  ;;  %v17281_v61 = vld [vmem:[#allocation19_spill] sm:$0xff] }
 0x27b   :  { %v4529_v20 = vsel %vm258_vm0, %v4526_v59, %v16814_v48  ;;  %v4826_v16 = vrot.slane %v16817_v53, 1  ;;  %v4827_v63 = vrot.slane %v3951_v26, 2  ;;  %v552_v50 = vadd.f32 %v11479_v13, %v11295_v19  ;;  %17264 = vst [vmem:[#allocation61_spill] sm:$0xff] %v11489_v54  ;;  %v17274_v53 = vld [vmem:[#allocation18_spill] sm:$0xff] }
 0x27c   :  { %v4823_v30 = vrot.slane %v17263_v29, 2  ;;  %v1295_v23 = vadd.f32 %v1262_v57, %v11354_v58  ;;  %v1425_v2 = vmax.f32 %v11425_v46, 0.0  ;;  %4654 = vrot.lane.b32.xlu0 %v4529_v20, %s9252_s0  ;;  %v4801_v31 = vsel %vm4742_vm4, %v11235_v18, %v11467_v55  ;;  %v17266_v58 = vld [vmem:[#allocation66_spill] sm:$0xff]  ;;  %v17267_v46 = vld [vmem:[#allocation88_spill] sm:$0xff] }
 0x27d   :  { %v17265_v26 = vrot.slane %v17255_v10, 2  ;;  %v1362_v35 = vrot.slane %v1313_v62, 3  ;;  %5024 = vrot.lane.b32.xlu1 %v4801_v31, %s9261_s28  ;;  %v11495_v29 = vor.u32 %v4827_v63, %v4826_v16  ;;  %v11499_v57 = vmul.f32 %v17266_v58, %v9499_v38  ;;  %v17268_v18 = vld [vmem:[#allocation68_spill] sm:$0xff]  ;;  %v11507_v62 = vpop.permute.xlu0 %5030 }
 0x27e   :  { %v4824_v19 = vor.u32 %v4823_v30, %v4822_v56  ;;  %v11504_v48 = vmul.f32 %v17268_v18, %v9499_v38  ;;  %v1424_v10 = vmax.f32 %v11352_v12, 0.0  ;;  %17269 = vst [vmem:[#allocation74_spill] sm:$0xff] %v11507_v62  ;;  %v982_v56 = vadd.f32 %v11479_v13, %v966_v52  ;;  %v17270_v30 = vld [vmem:[#allocation87_spill] sm:$0xff] }
 0x27f   :  { %v1264_v24 = vsel %vm362_vm1, %v17265_v26, %v1263_v45  ;;  %v569_v45 = vmax.f32 %v553_v51, 0.0  ;;  %v11515_v31 = vmul.f32 %v17268_v18, %v9501_v39  ;;  %v981_v26 = vadd.f32 %v11479_v13, %v11249_v40  ;;  %v17276_v40 = vld [vmem:[#allocation62_spill] sm:$0xff] }
 0x280   :  { %v1296_v15 = vadd.f32 %v1264_v24, %v1197_v32  ;;  %v4829_v63 = vsel %vm4742_vm4, %v4824_v19, %v11495_v29  ;;  %v17271_v32 = vld [vmem:[#allocation75_spill] sm:$0xff]  ;;  %v568_v37 = vmax.f32 %v552_v50, 0.0  ;;  %v11529_v16 = vpack.c.bf16 %v1425_v2, %v1424_v10 }
 0x281   :  { %v17272_v24 = vrot.slane %v17271_v32, 3  ;;  %5038 = vrot.lane.b32.xlu0 %v4829_v63, %s9261_s28  ;;  %1882 = vperm.xlu1 %9086, %v17274_v53   ;;  %v11533_v20 = vmul.f32 %v17276_v40, %v9501_v39  ;;  %v11537_v27 = vmul.f32 %v17266_v58, %v9501_v39  ;;  %v11544_v32 = vpop.permute.xlu1 %4328  ;;  %v1514_v50 = vmul.f32 %v17266_v58, %v9506_v42  ;;  %v17285_v40 = vld [vmem:[#allocation39_spill] sm:$0xff] }
 0x282   :  { %17275 = vst [vmem:[#allocation58_spill] sm:$0xff] %v11529_v16  ;;  %17279 = vst [vmem:[#allocation76_spill] sm:$0xff] %v11544_v32  ;;  %v998_v10 = vmax.f32 %v982_v56, 0.0  ;;  %v17283_v56 = vld [vmem:[#allocation60_spill] sm:$0xff]  ;;  %v17290_v62 = vrot.slane %v11515_v31, 3  ;;  %v4825_v5 = vsel %vm4742_vm4, %v11369_v17, %v4824_v19  ;;  %v17295_v19 = vshrl.u32 %v11400_v8, 16 }
 0x283   :  { %v1361_v12 = vsel %vm466_vm2, %v1358_v4, %v17272_v24  ;;  %v17273_v52 = vmov %v17272_v24  ;;  %v17277_v4 = vrot.slane %v17267_v46, 1  ;;  %v11549_v24 = vpop.permute.xlu0 %4618  ;;  %v1528_v2 = vmul.f32 %v17283_v56, %v9489_v33 }
 0x284   :  { %v1394_v51 = vadd.f32 %v1361_v12, %v1295_v23  ;;  %v1363_v36 = vsel %vm466_vm2, %v17273_v52, %v1362_v35  ;;  %v17278_v23 = vrot.slane %v17270_v30, 1  ;;  %v11551_v12 = vpack.c.bf16 %v569_v45, %v568_v37  ;;  %v17284_v45 = vld [vmem:[#allocation64_spill] sm:$0xff]  ;;  %v17291_v52 = vld [vmem:[#allocation21_spill] sm:$0xff] }
 0x285   :  { %v1395_v35 = vadd.f32 %v1363_v36, %v1296_v15  ;;  %1886 = vperm.xlu0 %9087, %v17281_v61   ;;  %v17282_v36 = vrot.slane %v10715_v3, 1  ;;  %v997_v37 = vmax.f32 %v981_v26, 0.0  ;;  %v16822_v22 = vrot.slane %v11537_v27, 3  ;;  %v17289_v26 = vld [vmem:[#allocation34_spill] sm:$0xff] }
 0x286   :  { %v1576_v63 = vsel %vm258_vm0, %v17278_v23, %v17277_v4  ;;  %17280 = vst [vmem:[#allocation66_spill] sm:$0xff] %v11551_v12  ;;  %v3959_v4 = vshll.u32 %v11529_v16, 16  ;;  %v1410_v23 = vadd.f32 %v11479_v13, %v1394_v51  ;;  %v1562_v14 = vrot.slane %v1528_v2, 1 }
 0x287   :  { %v4527_v15 = vsel %vm258_vm0, %v17282_v36, %v4526_v59  ;;  %v1617_v58 = vadd.f32 %v1576_v63, %v1514_v50  ;;  %v1411_v3 = vadd.f32 %v11479_v13, %v1395_v35  ;;  %v17286_v59 = vrot.slane %v11504_v48, 2  ;;  %v11593_v32 = vpop.permute.xlu0 %4634 }
 0x288   :  { %4652 = vrot.lane.b32.xlu1 %v4527_v15, %s9252_s0  ;;  %v17287_v63 = vrot.slane %v11499_v57, 2  ;;  %v11574_v36 = vpack.c.bf16 %v998_v10, %v997_v37  ;;  %v5130_v15 = vsel %vm5126_vm5, %v17289_v26, %v11444_v49  ;;  %v1774_v35 = vsel %vm466_vm2, %v16822_v22, %v17290_v62  ;;  %v5001_v37 = vpop.permute.xlu1 %5000  ;;  %v17292_v49 = vld [vmem:[#allocation65_spill] sm:$0xff]  ;;  %17293 = vst [vmem:[#allocation68_spill] sm:$0xff] %v11593_v32  ;;  %v17294_v62 = vld [vmem:[#allocation67_spill] sm:$0xff] }
 0x289   :  { %1894 = vperm.xlu0 %9087, %v17291_v52   ;;  %v1426_v50 = vmax.f32 %v1410_v23, 0.0  ;;  %v1530_v26 = vmul.f32 %v17292_v49, %v9489_v33  ;;  %v11597_v22 = vmul.f32 %v17294_v62, %v9489_v33  ;;  %v1427_v17 = vmax.f32 %v1411_v3, 0.0 }
 0x28a   :  { %v1675_v51 = vsel %vm362_vm1, %v17287_v63, %v17286_v59  ;;  %17288 = vst [vmem:[#allocation88_spill] sm:$0xff] %v11574_v36  ;;  %v11587_v59 = vrot.slane %v3959_v4, 1  ;;  %v3957_v10 = vor.u32 %v17295_v19, %v11431_v47  ;;  %v17296_v2 = vrot.slane %v11551_v12, 1 }
 0x28b   :  { %v1716_v63 = vadd.f32 %v1675_v51, %v1617_v58  ;;  %v5259_v58 = vsel %vm5255_vm6, %v5130_v15, %v11312_v21  ;;  %v17297_v23 = vrot.slane %v11281_v34, 1  ;;  %v3839_v41 = vshll.u32 %v11551_v12, 16  ;;  %v11643_v0 = vpop.permute.xlu0 %4298 }
 0x28c   :  { %5036 = vrot.lane.b32.xlu1 %v4825_v5, %s9261_s28  ;;  %v5389_v32 = vsel %vm5384_vm7, %v5259_v58, %v5001_v37  ;;  %v3962_v3 = vsel %vm3782_vm3, %v3957_v10, %v11587_v59  ;;  %v17298_v21 = vshrl.u32 %v11529_v16, 16  ;;  %v4831_v19 = vrot.slane %v3959_v4, 2  ;;  %v17299_v37 = vld [vmem:[#allocation69_spill] sm:$0xff] }
 0x28d   :  { %v4501_v5 = vsel %vm258_vm0, %v17297_v23, %v17296_v2  ;;  %8865 = vmatmul.mubr.bf16.vlgmr.msra.gmra.mrb[0].mxu0 %v5389_v32  ;;  %v11621_v23 = vmul.f32 %v17268_v18, %v9506_v42  ;;  %v11623_v51 = vadd.f32 %v1774_v35, %v1716_v63  ;;  %v11627_v58 = vmul.f32 %v17299_v37, %v9506_v42  ;;  %v17300_v10 = vld [vmem:[#allocation81_spill] sm:$0xff] }
 0x28e   :  { %4626 = vrot.lane.b32.xlu0 %v4501_v5, %s9252_s0  ;;  %v4830_v15 = vrot.slane %v17298_v21, 1  ;;  %v17301_v5 = vrot.slane %v17300_v10, 1  ;;  %v1627_v32 = vmul.f32 %v17283_v56, %v9499_v38  ;;  %v1565_v4 = vrot.slane %v1530_v26, 1 }
 0x28f   :  { %v11635_v2 = vpack.c.bf16 %v1427_v17, %v1426_v50  ;;  %v17303_v35 = vrot.slane %v11574_v36, 1  ;;  %v17304_v63 = vrot.slane %v11302_v6, 1  ;;  %v1629_v50 = vmul.f32 %v17292_v49, %v9499_v38 }
 0x290   :  { %4336 = vrot.lane.b32.xlu1 %v3962_v3, %s9260_s26  ;;  %v1564_v21 = vsel %vm258_vm0, %v1562_v14, %v17301_v5  ;;  %v11645_v3 = vrot.slane %v3839_v41, 1  ;;  %v3903_v14 = vshll.u32 %v11574_v36, 16  ;;  %v1508_v5 = vmul.f32 %v17283_v56, %v9506_v42 }
 0x291   :  { %17302 = vst [vmem:[#allocation87_spill] sm:$0xff] %v11635_v2  ;;  %v4517_v47 = vsel %vm258_vm0, %v17304_v63, %v17303_v35  ;;  %v17305_v26 = vrot.slane %v11529_v16, 1  ;;  %v17306_v17 = vrot.slane %v11400_v8, 1  ;;  %v11658_v63 = vor.u32 %v4831_v19, %v4830_v15 }
 0x292   :  { %4642 = vrot.lane.b32.xlu0 %v4517_v47, %s9252_s0  ;;  %v1726_v18 = vmul.f32 %v17283_v56, %v9501_v39  ;;  %v1510_v54 = vmul.f32 %v17292_v49, %v9506_v42  ;;  %v11666_v7 = vmul.f32 %v17294_v62, %v9499_v38  ;;  %v17307_v47 = vshrl.u32 %v11281_v34, 16 }
 0x293   :  { %v4531_v35 = vsel %vm258_vm0, %v17306_v17, %v17305_v26  ;;  %v1611_v8 = vadd.f32 %v1564_v21, %v1508_v5  ;;  %v1661_v26 = vrot.slane %v1627_v32, 2  ;;  %v17308_v15 = vrot.slane %v17300_v10, 1 }
 0x294   :  { %v3837_v11 = vor.u32 %v17307_v47, %v11374_v25  ;;  %4656 = vrot.lane.b32.xlu1 %v4531_v35, %s9252_s0  ;;  %v16826_v56 = vshll.u32 %v11635_v2, 16  ;;  %v17309_v17 = vrot.slane %v11597_v22, 1  ;;  %v17310_v53 = vrot.slane %v17284_v45, 1  ;;  %v17312_v47 = vld [vmem:[#allocation78_spill] sm:$0xff]  ;;  %v11701_v45 = vpop.permute.xlu0 %4314 }
 0x295   :  { %v1566_v19 = vsel %vm258_vm0, %v17308_v15, %v1565_v4  ;;  %v11683_v25 = vrot.slane %v3903_v14, 1  ;;  %v1664_v5 = vrot.slane %v1629_v50, 2  ;;  %v1728_v35 = vmul.f32 %v17292_v49, %v9501_v39  ;;  %17313 = vst [vmem:[#allocation75_spill] sm:$0xff] %v11701_v45 }
 0x296   :  { %v1570_v9 = vsel %vm258_vm0, %v17310_v53, %v17309_v17  ;;  %v3842_v34 = vsel %vm3782_vm3, %v3837_v11, %v11645_v3  ;;  %v17311_v32 = vmov %v17310_v53  ;;  %v4833_v53 = vsel %vm4742_vm4, %v11495_v29, %v11658_v63 }
 0x297   :  { %v1568_v10 = vsel %vm258_vm0, %v1565_v4, %v17311_v32  ;;  %4306 = vrot.lane.b32.xlu0 %v3842_v34, %s9260_s26  ;;  %v1612_v11 = vadd.f32 %v1566_v19, %v17312_v47  ;;  %v11699_v17 = vmul.f32 %v17294_v62, %v9501_v39  ;;  %v17314_v4 = vshrl.u32 %v11302_v6, 16  ;;  %v17315_v34 = vld [vmem:[#allocation82_spill] sm:$0xff]  ;;  %v17317_v19 = vld [vmem:[#allocation37_spill] sm:$0xff] }
 0x298   :  { %5040 = vrot.lane.b32.xlu1 %v4833_v53, %s9261_s28  ;;  %v17316_v50 = vrot.slane %v17315_v34, 2  ;;  %v1760_v32 = vrot.slane %v1726_v18, 3  ;;  %v1614_v47 = vadd.f32 %v1570_v9, %v17317_v19  ;;  %v11713_v15 = vrot.slane %v16826_v56, 1 }
 0x299   :  { %v3901_v49 = vor.u32 %v17314_v4, %v11398_v43  ;;  %v17318_v45 = vshrl.u32 %v11551_v12, 16  ;;  %v4771_v43 = vrot.slane %v3839_v41, 2  ;;  %v16828_v53 = vshrl.u32 %v11574_v36, 16  ;;  %v17328_v41 = vld [vmem:[#allocation83_spill] sm:$0xff] }
 0x29a   :  { %v1663_v29 = vsel %vm362_vm1, %v1661_v26, %v17316_v50  ;;  %v1613_v52 = vadd.f32 %v1568_v10, %v1510_v54  ;;  %v17319_v26 = vmov %v17316_v50  ;;  %v1763_v9 = vrot.slane %v1728_v35, 3  ;;  %v11734_v10 = vpop.permute.xlu1 %5016  ;;  %v11736_v35 = vpop.permute.xlu0 %4330 }
 0x29b   :  { %v3906_v21 = vsel %vm3782_vm3, %v3901_v49, %v11683_v25  ;;  %v4770_v6 = vrot.slane %v17318_v45, 1  ;;  %v1710_v4 = vadd.f32 %v1663_v29, %v1611_v8  ;;  %v1665_v18 = vsel %vm362_vm1, %v17319_v26, %v1664_v5  ;;  %v17322_v45 = vld [vmem:[#allocation20_spill] sm:$0xff]  ;;  %17324 = vst [vmem:[#allocation62_spill] sm:$0xff] %v11734_v10  ;;  %17325 = vst [vmem:[#allocation60_spill] sm:$0xff] %v11736_v35  ;;  %v17327_v26 = vld [vmem:[#allocation70_spill] sm:$0xff] }
 0x29c   :  { %4322 = vrot.lane.b32.xlu0 %v3906_v21, %s9260_s26  ;;  %v1711_v50 = vadd.f32 %v1665_v18, %v1612_v11  ;;  %v17320_v19 = vrot.slane %v11666_v7, 2  ;;  %v17321_v49 = vrot.slane %v17285_v40, 2  ;;  %1890 = vperm.xlu1 %9086, %v17322_v45   ;;  %v17323_v8 = vshrl.u32 %v11529_v16, 16 }
 0x29d   :  { %v11740_v21 = vmul.f32 %v17299_v37, %v9489_v33  ;;  %v1533_v18 = vmul.f32 %v17327_v26, %v9489_v33  ;;  %v17329_v35 = vrot.slane %v17328_v41, 3  ;;  %v17334_v41 = vld [vmem:[#allocation22_spill] sm:$0xff] }
 0x29e   :  { %v1669_v56 = vsel %vm362_vm1, %v17321_v49, %v17320_v19  ;;  %v3965_v54 = vor.u32 %v17323_v8, %v11587_v59  ;;  %v17326_v11 = vmov %v17321_v49  ;;  %v11749_v59 = vor.u32 %v4771_v43, %v4770_v6 }
 0x29f   :  { %v1667_v34 = vsel %vm362_vm1, %v1664_v5, %v17326_v11  ;;  %v1713_v29 = vadd.f32 %v1669_v56, %v1614_v47  ;;  %v4802_v49 = vrot.slane %v16828_v53, 1  ;;  %v4803_v8 = vrot.slane %v3903_v14, 2  ;;  %v17331_v47 = vld [vmem:[#allocation46_spill] sm:$0xff] }
 0x2a0   :  { %v3970_v19 = vsel %vm3782_vm3, %v3965_v54, %v11713_v15  ;;  %v1762_v10 = vsel %vm466_vm2, %v1760_v32, %v17329_v35  ;;  %v1712_v40 = vadd.f32 %v1667_v34, %v1613_v52  ;;  %v17330_v5 = vmov %v17329_v35  ;;  %1898 = vperm.xlu1 %9086, %v17334_v41  }
 0x2a1   :  { %v1764_v56 = vsel %vm466_vm2, %v17330_v5, %v1763_v9  ;;  %v5132_v11 = vsel %vm5126_vm5, %v17331_v47, %v11643_v0  ;;  %4338 = vrot.lane.b32.xlu0 %v3970_v19, %s9260_s26  ;;  %v11765_v6 = vmul.f32 %v17299_v37, %v9499_v38  ;;  %v1809_v14 = vadd.f32 %v1762_v10, %v1710_v4  ;;  %v17336_v5 = vld [vmem:[#allocation72_spill] sm:$0xff]  ;;  %v11785_v10 = vpop.permute.xlu1 %5032 }
 0x2a2   :  { %v1810_v43 = vadd.f32 %v1764_v56, %v1711_v50  ;;  %v17332_v54 = vrot.slane %v11699_v17, 3  ;;  %v17333_v52 = vrot.slane %v11533_v20, 3  ;;  %v1571_v19 = vrot.slane %v1533_v18, 1  ;;  %17337 = vst [vmem:[#allocation64_spill] sm:$0xff] %v11785_v10  ;;  %v17338_v18 = vld [vmem:[#allocation35_spill] sm:$0xff] }
 0x2a3   :  { %v11778_v47 = vmul.f32 %v17336_v5, %v9489_v33  ;;  %v4773_v4 = vsel %vm4742_vm4, %v11433_v1, %v11749_v59  ;;  %v11783_v50 = vor.u32 %v4803_v8, %v4802_v49  ;;  %v16827_v56 = vshrl.u32 %v11635_v2, 16 }
 0x2a4   :  { %v1768_v32 = vsel %vm466_vm2, %v17333_v52, %v17332_v54  ;;  %v17335_v35 = vmov %v17333_v52  ;;  %v5003_v54 = vpop.permute.xlu0 %5002  ;;  %v5261_v20 = vsel %vm5255_vm6, %v5132_v11, %v11549_v24  ;;  %v17339_v52 = vrot.slane %v17338_v18, 1 }
 0x2a5   :  { %v1766_v0 = vsel %vm466_vm2, %v1763_v9, %v17335_v35  ;;  %v1812_v34 = vadd.f32 %v1768_v32, %v1713_v29  ;;  %5010 = vrot.lane.b32.xlu0 %v4773_v4, %s9261_s28  ;;  %v17340_v32 = vrot.slane %v11551_v12, 1  ;;  %v5392_v49 = vsel %vm5384_vm7, %v5261_v20, %v5003_v54 }
 0x2a6   :  { %v1811_v29 = vadd.f32 %v1766_v0, %v1712_v40  ;;  %v1826_v35 = vadd.f32 %v11479_v13, %v1810_v43  ;;  %v1512_v24 = vmul.f32 %v17294_v62, %v9506_v42  ;;  %v1632_v40 = vmul.f32 %v17327_v26, %v9499_v38  ;;  %8868 = vmatprep.mubr.bf16.mxu0 %v5392_v49 }
 0x2a7   :  { %v4503_v1 = vsel %vm258_vm0, %v17340_v32, %v17339_v52  ;;  %v1825_v11 = vadd.f32 %v11479_v13, %v1809_v14  ;;  %v1828_v0 = vadd.f32 %v11479_v13, %v1812_v34  ;;  %v17341_v4 = vrot.slane %v11597_v22, 1 }
 0x2a8   :  { %4628 = vrot.lane.b32.xlu1 %v4503_v1, %s9252_s0  ;;  %v4805_v62 = vsel %vm4742_vm4, %v11467_v55, %v11783_v50  ;;  %v4834_v52 = vrot.slane %v16827_v56, 1  ;;  %v17342_v32 = vshll.u32 %v11635_v2, 16  ;;  %v1827_v34 = vadd.f32 %v11479_v13, %v1811_v29  ;;  %v17343_v1 = vld [vmem:[#allocation38_spill] sm:$0xff] }
 0x2a9   :  { %v1572_v54 = vsel %vm258_vm0, %v17341_v4, %v1571_v19  ;;  %v1731_v22 = vmul.f32 %v17327_v26, %v9501_v39  ;;  %5026 = vrot.lane.b32.xlu0 %v4805_v62, %s9261_s28  ;;  %v17344_v49 = vrot.slane %v17343_v1, 1  ;;  %v17345_v4 = vrot.slane %v11574_v36, 1  ;;  %v11839_v62 = vpop.permute.xlu1 %4620 }
 0x2aa   :  { %v4835_v14 = vrot.slane %v17342_v32, 2  ;;  %v17346_v8 = vshrl.u32 %v11551_v12, 16  ;;  %v1842_v9 = vmax.f32 %v1826_v35, 0.0  ;;  %v17347_v32 = vrot.slane %v17270_v30, 1 }
 0x2ab   :  { %v4519_v55 = vsel %vm258_vm0, %v17345_v4, %v17344_v49  ;;  %v1670_v53 = vrot.slane %v1632_v40, 2  ;;  %v11836_v43 = vmul.f32 %v17336_v5, %v9499_v38  ;;  %v17348_v49 = vld [vmem:[#allocation71_spill] sm:$0xff]  ;;  %v1841_v20 = vmax.f32 %v1825_v11, 0.0 }
 0x2ac   :  { %v3845_v56 = vor.u32 %v17346_v8, %v11645_v3  ;;  %v1574_v29 = vsel %vm258_vm0, %v1571_v19, %v17347_v32  ;;  %4644 = vrot.lane.b32.xlu1 %v4519_v55, %s9252_s0  ;;  %v11843_v4 = vmul.f32 %v17348_v49, %v9489_v33  ;;  %v1513_v3 = vmul.f32 %v17327_v26, %v9506_v42  ;;  %v17353_v26 = vld [vmem:[#allocation42_spill] sm:$0xff] }
 0x2ad   :  { %v1615_v30 = vadd.f32 %v1572_v54, %v1512_v24  ;;  %v1844_v8 = vmax.f32 %v1828_v0, 0.0  ;;  %v17349_v19 = vrot.slane %v11778_v47, 1  ;;  %v17350_v35 = vrot.slane %v17267_v46, 1 }
 0x2ae   :  { %v17351_v55 = vrot.slane %v11635_v2, 1  ;;  %v17352_v32 = vrot.slane %v11529_v16, 1  ;;  %v11857_v1 = vor.u32 %v4835_v14, %v4834_v52  ;;  %v1843_v11 = vmax.f32 %v1827_v34, 0.0  ;;  %v11873_v14 = vpop.permute.xlu0 %5018 }
 0x2af   :  { %v1578_v40 = vsel %vm258_vm0, %v17350_v35, %v17349_v19  ;;  %v1616_v18 = vadd.f32 %v1574_v29, %v1513_v3  ;;  %v1769_v12 = vrot.slane %v1731_v22, 3  ;;  %v3850_v24 = vsel %vm3782_vm3, %v3845_v56, %v17353_v26  ;;  %v11891_v3 = vpop.permute.xlu1 %4636 }
 0x2b0   :  { %v4533_v10 = vsel %vm258_vm0, %v17352_v32, %v17351_v55  ;;  %v17354_v46 = vrot.slane %v11666_v7, 2  ;;  %v16831_v54 = vrot.slane %v11836_v43, 2  ;;  %v11868_v19 = vmul.f32 %v17336_v5, %v9501_v39  ;;  %4308 = vrot.lane.b32.xlu1 %v3850_v24, %s9260_s26 }
 0x2b1   :  { %4658 = vrot.lane.b32.xlu0 %v4533_v10, %s9252_s0  ;;  %v11871_v52 = vpack.c.bf16 %v1842_v9, %v1841_v20  ;;  %v16833_v10 = vrot.slane %v11843_v4, 1  ;;  %v11878_v56 = vmul.f32 %v17348_v49, %v9499_v38  ;;  %v1618_v34 = vadd.f32 %v1578_v40, %v11621_v23 }
 0x2b2   :  { %v1671_v0 = vsel %vm362_vm1, %v17354_v46, %v1670_v53  ;;  %v11883_v22 = vmul.f32 %v17299_v37, %v9501_v39  ;;  %v17356_v29 = vrot.slane %v11499_v57, 2  ;;  %v4837_v20 = vsel %vm4742_vm4, %v11658_v63, %v11857_v1  ;;  %v17358_v37 = vld [vmem:[#allocation44_spill] sm:$0xff] }
 0x2b3   :  { %17355 = vst [vmem:[#allocation39_spill] sm:$0xff] %v11871_v52  ;;  %v1714_v7 = vadd.f32 %v1671_v0, %v1615_v30  ;;  %v11893_v35 = vpack.c.bf16 %v1844_v8, %v1843_v11  ;;  %v11897_v30 = vmul.f32 %v17348_v49, %v9501_v39  ;;  %v4777_v57 = vsel %vm4742_vm4, %v11749_v59, %v17358_v37 }
 0x2b4   :  { %v1673_v9 = vsel %vm362_vm1, %v1670_v53, %v17356_v29  ;;  %v17359_v53 = vshrl.u32 %v11574_v36, 16  ;;  %v17360_v63 = vrot.slane %v11699_v17, 3  ;;  %v17361_v55 = vrot.slane %v11504_v48, 2  ;;  %5012 = vrot.lane.b32.xlu1 %v4777_v57, %s9261_s28  ;;  %v17364_v57 = vld [vmem:[#allocation77_spill] sm:$0xff] }
 0x2b5   :  { %17357 = vst [vmem:[#allocation34_spill] sm:$0xff] %v11893_v35  ;;  %v1715_v23 = vadd.f32 %v1673_v9, %v1616_v18  ;;  %5042 = vrot.lane.b32.xlu0 %v4837_v20, %s9261_s28  ;;  %v16830_v32 = vrot.slane %v11868_v19, 3  ;;  %v3975_v59 = vshll.u32 %v11871_v52, 16  ;;  %v16832_v11 = vrot.slane %v11878_v56, 2  ;;  %v11931_v9 = vpop.permute.xlu0 %4622 }
 0x2b6   :  { %v3909_v40 = vor.u32 %v17359_v53, %v11683_v25  ;;  %v1770_v8 = vsel %vm466_vm2, %v17360_v63, %v1769_v12  ;;  %v1677_v18 = vsel %vm362_vm1, %v17361_v55, %v16831_v54  ;;  %v17362_v25 = vrot.slane %v11740_v21, 1  ;;  %v11946_v55 = vpop.permute.xlu1 %4300  ;;  %v17370_v54 = vld [vmem:[#allocation25_spill] sm:$0xff] }
 0x2b7   :  { %v1813_v26 = vadd.f32 %v1770_v8, %v1714_v7  ;;  %v1717_v24 = vadd.f32 %v1677_v18, %v1618_v34  ;;  %v11925_v48 = vadd.f32 %v11479_v13, %v11623_v51  ;;  %v17363_v46 = vrot.slane %v11537_v27, 3  ;;  %v17365_v7 = vld [vmem:[#allocation23_spill] sm:$0xff] }
 0x2b8   :  { %v1584_v17 = vsel %vm258_vm0, %v17362_v25, %v16833_v10  ;;  %v3983_v29 = vshll.u32 %v11893_v35, 16  ;;  %v16835_v20 = vrot.slane %v11883_v22, 3  ;;  %v1537_v53 = vmul.f32 %v17364_v57, %v9489_v33  ;;  %v17366_v34 = vld [vmem:[#allocation43_spill] sm:$0xff] }
 0x2b9   :  { %v1772_v0 = vsel %vm466_vm2, %v1769_v12, %v17363_v46  ;;  %1902 = vperm.xlu0 %9087, %v17365_v7   ;;  %v3914_v51 = vsel %vm3782_vm3, %v3909_v40, %v17366_v34  ;;  %v1621_v63 = vadd.f32 %v1584_v17, %v11627_v58  ;;  %v16834_v27 = vrot.slane %v11897_v30, 3  ;;  %v17369_v17 = vld [vmem:[#allocation84_spill] sm:$0xff]  ;;  %v11980_v10 = vpop.permute.xlu0 %4638 }
 0x2ba   :  { %v1814_v37 = vadd.f32 %v1772_v0, %v1715_v23  ;;  %v17367_v12 = vrot.slane %v11515_v31, 3  ;;  %4324 = vrot.lane.b32.xlu1 %v3914_v51, %s9260_s26  ;;  %v3977_v23 = vrot.slane %v3975_v59, 1  ;;  %v17368_v18 = vrot.slane %v11765_v6, 2  ;;  %17373 = vst [vmem:[#allocation65_spill] sm:$0xff] %v11980_v10 }
 0x2bb   :  { %v1829_v58 = vadd.f32 %v11479_v13, %v1813_v26  ;;  %v11957_v46 = vmul.f32 %v17369_v17, %v9489_v33  ;;  %v1847_v31 = vmax.f32 %v11925_v48, 0.0  ;;  %v3979_v0 = vshrl.u32 %v11871_v52, 16 }
 0x2bc   :  { %v1776_v8 = vsel %vm466_vm2, %v17367_v12, %v16830_v32  ;;  %v1683_v40 = vsel %vm362_vm1, %v17368_v18, %v16832_v11  ;;  %v11961_v34 = vrot.slane %v3983_v29, 1  ;;  %v16838_v51 = vshrl.u32 %v11893_v35, 16  ;;  %v17371_v18 = vld [vmem:[#allocation45_spill] sm:$0xff] }
 0x2bd   :  { %v1816_v25 = vadd.f32 %v1776_v8, %v1717_v24  ;;  %v1830_v12 = vadd.f32 %v11479_v13, %v1814_v37  ;;  %v1579_v32 = vrot.slane %v1537_v53, 1  ;;  %1910 = vperm.xlu0 %9087, %v17370_v54   ;;  %v4809_v26 = vsel %vm4742_vm4, %v11783_v50, %v17371_v18 }
 0x2be   :  { %v17372_v24 = vshrl.u32 %v11635_v2, 16  ;;  %v1519_v48 = vmul.f32 %v17348_v49, %v9506_v42  ;;  %v1720_v11 = vadd.f32 %v1683_v40, %v1621_v63  ;;  %v1782_v37 = vsel %vm466_vm2, %v16835_v20, %v16834_v27  ;;  %5028 = vrot.lane.b32.xlu1 %v4809_v26, %s9261_s28  ;;  %v11986_v63 = vpop.permute.xlu1 %4316 }
 0x2bf   :  { %v3981_v53 = vor.u32 %v3979_v0, %v3977_v23  ;;  %v1845_v50 = vmax.f32 %v1829_v58, 0.0  ;;  %v1832_v18 = vadd.f32 %v11479_v13, %v1816_v25  ;;  %v4842_v26 = vrot.slane %v16838_v51, 1  ;;  %v4303_v51 = vpop.permute.xlu0 %4302 }
 0x2c0   :  { %v3973_v8 = vor.u32 %v17372_v24, %v11713_v15  ;;  %v1636_v15 = vmul.f32 %v17364_v57, %v9499_v38  ;;  %v16842_v24 = vrot.slane %v11893_v35, 1  ;;  %v4843_v27 = vrot.slane %v3983_v29, 2 }
 0x2c1   :  { %v3986_v40 = vsel %vm3782_vm3, %v3981_v53, %v11961_v34  ;;  %v1846_v20 = vmax.f32 %v1830_v12, 0.0  ;;  %v17374_v58 = vrot.slane %v11778_v47, 1  ;;  %v17375_v36 = vrot.slane %v11740_v21, 1 }
 0x2c2   :  { %4342 = vrot.lane.b32.xlu0 %v3986_v40, %s9260_s26  ;;  %v3978_v16 = vsel %vm3782_vm3, %v3973_v8, %v3977_v23  ;;  %v12003_v53 = vmul.f32 %v17369_v17, %v9499_v38  ;;  %v4534_v29 = vrot.slane %v11871_v52, 1  ;;  %v4838_v12 = vrot.slane %v3979_v0, 1 }
 0x2c3   :  { %v1580_v25 = vsel %vm258_vm0, %v17374_v58, %v1579_v32  ;;  %v1582_v49 = vsel %vm258_vm0, %v1579_v32, %v17375_v36  ;;  %4340 = vrot.lane.b32.xlu1 %v3978_v16, %s9260_s26  ;;  %v4839_v47 = vrot.slane %v3975_v59, 2  ;;  %v1516_v58 = vmul.f32 %v17336_v5, %v9506_v42  ;;  %v12023_v5 = vpop.permute.xlu1 %4332 }
 0x2c4   :  { %v1517_v36 = vmul.f32 %v17364_v57, %v9506_v42  ;;  %v1678_v21 = vrot.slane %v1636_v15, 2  ;;  %v1735_v32 = vmul.f32 %v17364_v57, %v9501_v39  ;;  %v1848_v23 = vmax.f32 %v1832_v18, 0.0  ;;  %17378 = vst [vmem:[#allocation67_spill] sm:$0xff] %v12023_v5 }
 0x2c5   :  { %v17376_v8 = vrot.slane %v11957_v46, 1  ;;  %v17377_v40 = vrot.slane %v11843_v4, 1  ;;  %v4537_v59 = vsel %vm258_vm0, %v4534_v29, %v16842_v24  ;;  %v12021_v0 = vor.u32 %v4843_v27, %v4842_v26 }
 0x2c6   :  { %v1819_v15 = vadd.f32 %v1782_v37, %v1720_v11  ;;  %v1619_v52 = vadd.f32 %v1580_v25, %v1516_v58  ;;  %v1620_v10 = vadd.f32 %v1582_v49, %v1517_v36  ;;  %4662 = vrot.lane.b32.xlu0 %v4537_v59, %s9252_s0  ;;  %v17379_v57 = vrot.slane %v11635_v2, 1  ;;  %v17381_v11 = vld [vmem:[#allocation73_spill] sm:$0xff] }
 0x2c7   :  { %v1586_v16 = vsel %vm258_vm0, %v17377_v40, %v17376_v8  ;;  %v16841_v18 = vrot.slane %v12003_v53, 2  ;;  %v12032_v8 = vmul.f32 %v17369_v17, %v9501_v39  ;;  %v4840_v27 = vor.u32 %v4839_v47, %v4838_v12  ;;  %v17382_v58 = vld [vmem:[#allocation49_spill] sm:$0xff]  ;;  %v17386_v47 = vld [vmem:[#allocation79_spill] sm:$0xff] }
 0x2c8   :  { %v4535_v4 = vsel %vm258_vm0, %v17379_v57, %v4534_v29  ;;  %v12035_v26 = vpack.c.bf16 %v1846_v20, %v1845_v50  ;;  %v12039_v37 = vmul.f32 %v17381_v11, %v9489_v33  ;;  %v1777_v49 = vrot.slane %v1735_v32, 3 }
 0x2c9   :  { %4660 = vrot.lane.b32.xlu1 %v4535_v4, %s9252_s0  ;;  %v1622_v25 = vadd.f32 %v1586_v16, %v1519_v48  ;;  %v5134_v29 = vsel %vm5126_vm5, %v17382_v58, %v11946_v55  ;;  %v17383_v36 = vrot.slane %v11836_v43, 2  ;;  %v17384_v59 = vrot.slane %v11765_v6, 2 }
 0x2ca   :  { %17380 = vst [vmem:[#allocation69_spill] sm:$0xff] %v12035_v26  ;;  %v4845_v20 = vsel %vm4742_vm4, %v4840_v27, %v12021_v0  ;;  %v12052_v50 = vpack.c.bf16 %v1848_v23, %v1847_v31  ;;  %v12056_v48 = vmul.f32 %v17386_v47, %v9489_v33  ;;  %v4841_v43 = vsel %vm4742_vm4, %v11857_v1, %v4840_v27  ;;  %v5005_v23 = vpop.permute.xlu1 %5004 }
 0x2cb   :  { %v1679_v40 = vsel %vm362_vm1, %v17383_v36, %v1678_v21  ;;  %v1681_v12 = vsel %vm362_vm1, %v1678_v21, %v17384_v59  ;;  %5046 = vrot.lane.b32.xlu0 %v4845_v20, %s9261_s28  ;;  %v17387_v6 = vrot.slane %v11878_v56, 2  ;;  %v16840_v31 = vrot.slane %v12032_v8, 3 }
 0x2cc   :  { %17385 = vst [vmem:[#allocation81_spill] sm:$0xff] %v12052_v50  ;;  %v1718_v32 = vadd.f32 %v1679_v40, %v1619_v52  ;;  %v1719_v16 = vadd.f32 %v1681_v12, %v1620_v10  ;;  %v3991_v21 = vshll.u32 %v12035_v26, 16  ;;  %v12069_v52 = vpop.permute.xlu0 %4318  ;;  %v5263_v10 = vsel %vm5255_vm6, %v5134_v29, %v11839_v62  ;;  %v17390_v12 = vld [vmem:[#allocation27_spill] sm:$0xff] }
 0x2cd   :  { %v1685_v55 = vsel %vm362_vm1, %v17387_v6, %v16841_v18  ;;  %5044 = vrot.lane.b32.xlu1 %v4841_v43, %s9261_s28  ;;  %v12074_v1 = vadd.f32 %v11479_v13, %v1819_v15  ;;  %v12078_v56 = vmul.f32 %v17381_v11, %v9506_v42  ;;  %v5395_v4 = vsel %vm5384_vm7, %v5263_v10, %v5005_v23 }
 0x2ce   :  { %v1721_v57 = vadd.f32 %v1685_v55, %v1622_v25  ;;  %v1589_v27 = vrot.slane %v12039_v37, 1  ;;  %v12084_v58 = vmul.f32 %v17381_v11, %v9499_v38  ;;  %v17388_v36 = vrot.slane %v11868_v19, 3  ;;  %8869 = vmatmul.mubr.bf16.gmra.mrb[4].mxu0 %v5395_v4  ;;  %v17391_v37 = vld [vmem:[#allocation52_spill] sm:$0xff] }
 0x2cf   :  { %v3999_v15 = vshll.u32 %v12052_v50, 16  ;;  %v1591_v29 = vrot.slane %v12056_v48, 1  ;;  %v17389_v40 = vrot.slane %v11883_v22, 3  ;;  %1918 = vperm.xlu0 %9087, %v17390_v12   ;;  %v5136_v20 = vsel %vm5126_vm5, %v17391_v37, %v4303_v51  ;;  %v17393_v22 = vld [vmem:[#allocation24_spill] sm:$0xff]  ;;  %v17394_v51 = vld [vmem:[#allocation53_spill] sm:$0xff] }
 0x2d0   :  { %v1778_v62 = vsel %vm466_vm2, %v17388_v36, %v1777_v49  ;;  %v12099_v19 = vmul.f32 %v17381_v11, %v9501_v39  ;;  %v17392_v6 = vrot.slane %v11897_v30, 3  ;;  %v1541_v23 = vmul.f32 %v17394_v51, %v9489_v33  ;;  %v5007_v4 = vpop.permute.xlu0 %5006 }
 0x2d1   :  { %v1780_v25 = vsel %vm466_vm2, %v1777_v49, %v17389_v40  ;;  %v1817_v59 = vadd.f32 %v1778_v62, %v1718_v32  ;;  %1906 = vperm.xlu1 %9086, %v17393_v22   ;;  %v3993_v49 = vrot.slane %v3991_v21, 1  ;;  %v1523_v32 = vmul.f32 %v17386_v47, %v9506_v42 }
 0x2d2   :  { %v1818_v43 = vadd.f32 %v1780_v25, %v1719_v16  ;;  %v1784_v48 = vsel %vm466_vm2, %v17392_v6, %v16840_v31  ;;  %v1544_v11 = vmul.f32 %v11266_v28, %v9489_v33  ;;  %v3995_v16 = vshrl.u32 %v12035_v26, 16  ;;  %v17395_v25 = vld [vmem:[#allocation29_spill] sm:$0xff] }
 0x2d3   :  { %v1820_v55 = vadd.f32 %v1784_v48, %v1721_v57  ;;  %v12114_v10 = vrot.slane %v3999_v15, 1  ;;  %v5265_v36 = vsel %vm5255_vm6, %v5136_v20, %v11931_v9  ;;  %v1592_v62 = vsel %vm258_vm0, %v1589_v27, %v1591_v29  ;;  %1926 = vperm.xlu0 %9087, %v17395_v25   ;;  %v17396_v9 = vld [vmem:[#allocation26_spill] sm:$0xff] }
 0x2d4   :  { %v12122_v57 = vmul.f32 %v17386_v47, %v9499_v38  ;;  %v1833_v40 = vadd.f32 %v11479_v13, %v1817_v59  ;;  %v5398_v37 = vsel %vm5384_vm7, %v5265_v36, %v5007_v4  ;;  %v1688_v6 = vrot.slane %v12084_v58, 2 }
 0x2d5   :  { %v1834_v48 = vadd.f32 %v11479_v13, %v1818_v43  ;;  %v1640_v31 = vmul.f32 %v17394_v51, %v9499_v38  ;;  %1914 = vperm.xlu1 %9086, %v17396_v9   ;;  %v3997_v20 = vor.u32 %v3995_v16, %v3993_v49  ;;  %8872 = vmatprep.mubr.bf16.mxu0 %v5398_v37  ;;  %v1587_v24 = vrot.slane %v1541_v23, 1 }
 0x2d6   :  { %v1836_v18 = vadd.f32 %v11479_v13, %v1820_v55  ;;  %v1593_v30 = vrot.slane %v1544_v11, 1  ;;  %v17397_v59 = vshrl.u32 %v11893_v35, 16  ;;  %v4540_v43 = vrot.slane %v12052_v50, 1 }
 0x2d7   :  { %v4002_v58 = vsel %vm3782_vm3, %v3997_v20, %v12114_v10  ;;  %v17398_v4 = vshrl.u32 %v12052_v50, 16  ;;  %v4851_v25 = vrot.slane %v3999_v15, 2  ;;  %v4538_v55 = vrot.slane %v12035_v26, 1 }
 0x2d8   :  { %v3989_v2 = vor.u32 %v17397_v59, %v11961_v34  ;;  %4346 = vrot.lane.b32.xlu0 %v4002_v58, %s9260_s26  ;;  %v4846_v23 = vrot.slane %v3995_v16, 1  ;;  %v4847_v11 = vrot.slane %v3991_v21, 2  ;;  %v1690_v5 = vrot.slane %v12122_v57, 2 }
 0x2d9   :  { %v4850_v36 = vrot.slane %v17398_v4, 1  ;;  %v1849_v34 = vmax.f32 %v1833_v40, 0.0  ;;  %v1520_v20 = vmul.f32 %v17369_v17, %v9506_v42  ;;  %v1643_v59 = vmul.f32 %v11266_v28, %v9499_v38 }
 0x2da   :  { %v3994_v37 = vsel %vm3782_vm3, %v3989_v2, %v3993_v49  ;;  %v1850_v15 = vmax.f32 %v1834_v48, 0.0  ;;  %v1521_v58 = vmul.f32 %v17394_v51, %v9506_v42  ;;  %v17399_v2 = vrot.slane %v11957_v46, 1 }
 0x2db   :  { %4344 = vrot.lane.b32.xlu1 %v3994_v37, %s9260_s26  ;;  %v1739_v21 = vmul.f32 %v17394_v51, %v9501_v39  ;;  %v1590_v16 = vsel %vm258_vm0, %v1587_v24, %v1589_v27  ;;  %v1594_v17 = vsel %vm258_vm0, %v1591_v29, %v1593_v30  ;;  %v4541_v57 = vsel %vm258_vm0, %v4538_v55, %v4540_v43 }
 0x2dc   :  { %v1588_v49 = vsel %vm258_vm0, %v17399_v2, %v1587_v24  ;;  %v12162_v40 = vor.u32 %v4851_v25, %v4850_v36  ;;  %v1852_v48 = vmax.f32 %v1836_v18, 0.0  ;;  %v1686_v4 = vrot.slane %v1640_v31, 2  ;;  %4666 = vrot.lane.b32.xlu0 %v4541_v57, %s9252_s0 }
 0x2dd   :  { %v17400_v46 = vrot.slane %v11893_v35, 1  ;;  %v4848_v2 = vor.u32 %v4847_v11, %v4846_v23  ;;  %v1851_v51 = vmax.f32 %v12074_v1, 0.0  ;;  %v1623_v24 = vadd.f32 %v1588_v49, %v1520_v20 }
 0x2de   :  { %v1692_v27 = vrot.slane %v1643_v59, 2  ;;  %v1742_v29 = vmul.f32 %v11266_v28, %v9501_v39  ;;  %v1741_v18 = vmul.f32 %v17386_v47, %v9501_v39  ;;  %v1624_v31 = vadd.f32 %v1590_v16, %v1521_v58  ;;  %v12191_v59 = vpop.permute.xlu1 %5020 }
 0x2df   :  { %v4539_v37 = vsel %vm258_vm0, %v17400_v46, %v4538_v55  ;;  %v1626_v30 = vadd.f32 %v1594_v17, %v1523_v32  ;;  %v12174_v25 = vpack.c.bf16 %v1850_v15, %v1849_v34  ;;  %v1787_v36 = vrot.slane %v12099_v19, 3  ;;  %v17405_v17 = vld [vmem:[#allocation31_spill] sm:$0xff] }
 0x2e0   :  { %4664 = vrot.lane.b32.xlu1 %v4539_v37, %s9252_s0  ;;  %v1625_v55 = vadd.f32 %v1592_v62, %v12078_v56  ;;  %v1691_v1 = vsel %vm362_vm1, %v1688_v6, %v1690_v5  ;;  %v4853_v23 = vsel %vm4742_vm4, %v4848_v2, %v12162_v40  ;;  %v17402_v28 = vrot.slane %v12003_v53, 2 }
 0x2e1   :  { %17401 = vst [vmem:[#allocation78_spill] sm:$0xff] %v12174_v25  ;;  %v1785_v20 = vrot.slane %v1739_v21, 3  ;;  %5050 = vrot.lane.b32.xlu0 %v4853_v23, %s9261_s28  ;;  %v4849_v47 = vsel %vm4742_vm4, %v12021_v0, %v4848_v2  ;;  %v12187_v32 = vpack.c.bf16 %v1852_v48, %v1851_v51  ;;  %v1689_v19 = vsel %vm362_vm1, %v1686_v4, %v1688_v6 }
 0x2e2   :  { %v1687_v11 = vsel %vm362_vm1, %v17402_v28, %v1686_v4  ;;  %v1693_v62 = vsel %vm362_vm1, %v1690_v5, %v1692_v27  ;;  %v1791_v34 = vrot.slane %v1742_v29, 3  ;;  %v1789_v53 = vrot.slane %v1741_v18, 3  ;;  %v17406_v4 = vld [vmem:[#allocation28_spill] sm:$0xff]  ;;  %v12203_v46 = vpop.permute.xlu1 %1874 }
 0x2e3   :  { %17403 = vst [vmem:[#allocation82_spill] sm:$0xff] %v12187_v32  ;;  %v1722_v56 = vadd.f32 %v1687_v11, %v1623_v24  ;;  %v1723_v15 = vadd.f32 %v1689_v19, %v1624_v31  ;;  %v1725_v58 = vadd.f32 %v1693_v62, %v1626_v30  ;;  %v4007_v49 = vshll.u32 %v12174_v25, 16  ;;  %v12206_v24 = vpop.permute.xlu0 %5022 }
 0x2e4   :  { %5048 = vrot.lane.b32.xlu1 %v4849_v47, %s9261_s28  ;;  %v1724_v21 = vadd.f32 %v1691_v1, %v1625_v55  ;;  %v17404_v0 = vrot.slane %v12032_v8, 3  ;;  %v4015_v6 = vshll.u32 %v12187_v32, 16  ;;  %v1788_v5 = vsel %vm466_vm2, %v1785_v20, %v1787_v36  ;;  %v17407_v1 = vld [vmem:[#allocation30_spill] sm:$0xff] }
 0x2e5   :  { %1934 = vperm.xlu0 %9087, %v17405_v17   ;;  %v1792_v48 = vsel %vm466_vm2, %v1789_v53, %v1791_v34  ;;  %v1790_v37 = vsel %vm466_vm2, %v1787_v36, %v1789_v53  ;;  %v1822_v2 = vadd.f32 %v1788_v5, %v1723_v15  ;;  %v4009_v8 = vrot.slane %v4007_v49, 1 }
 0x2e6   :  { %v1786_v16 = vsel %vm466_vm2, %v17404_v0, %v1785_v20  ;;  %v1824_v51 = vadd.f32 %v1792_v48, %v1725_v58  ;;  %v4011_v27 = vshrl.u32 %v12174_v25, 16  ;;  %v9263_v29 = vmov 5   ;;  %v4625_v36 = vpop.permute.xlu1 %4624 }
 0x2e7   :  { %v1821_v57 = vadd.f32 %v1786_v16, %v1722_v56  ;;  %v12209_v18 = vrot.slane %v4015_v6, 1  ;;  %v4019_v31 = vshrl.u32 %v12187_v32, 16  ;;  %v1823_v30 = vadd.f32 %v1790_v37, %v1724_v21  ;;  %v12227_v0 = vpop.permute.xlu0 %4650 }
 0x2e8   :  { %1922 = vperm.xlu1 %9086, %v17406_v4   ;;  %v1838_v23 = vadd.f32 %v11479_v13, %v1822_v2  ;;  %v1840_v28 = vadd.f32 %v11479_v13, %v1824_v51  ;;  %v4013_v11 = vor.u32 %v4011_v27, %v4009_v8  ;;  %v17408_v20 = vshrl.u32 %v12052_v50, 16 }
 0x2e9   :  { %9088 = vset.pattern.permute.xlu0 %v9263_v29  ;;  %v1837_v55 = vadd.f32 %v11479_v13, %v1821_v57  ;;  %v4542_v19 = vrot.slane %v12174_v25, 1  ;;  %v4544_v56 = vrot.slane %v12187_v32, 1  ;;  %v4854_v62 = vrot.slane %v4011_v27, 1 }
 0x2ea   :  { %2303 = vperm.xlu0 %9088, %v17215_v60   ;;  %v4005_v47 = vor.u32 %v17408_v20, %v12114_v10  ;;  %v4855_v34 = vrot.slane %v4007_v49, 2  ;;  %v4018_v53 = vsel %vm3782_vm3, %v4013_v11, %v12209_v18  ;;  %v4858_v58 = vrot.slane %v4019_v31, 1  ;;  %v12231_v10 = vpop.permute.xlu1 %4640 }
 0x2eb   :  { %v4859_v21 = vrot.slane %v4015_v6, 2  ;;  %v1839_v16 = vadd.f32 %v11479_v13, %v1823_v30  ;;  %v1853_v49 = vmax.f32 %v1837_v55, 0.0  ;;  %v1854_v5 = vmax.f32 %v1838_v23, 0.0  ;;  %v12244_v51 = vpop.permute.xlu0 %1878 }
 0x2ec   :  { %1930 = vperm.xlu1 %9086, %v17407_v1   ;;  %v4010_v15 = vsel %vm3782_vm3, %v4005_v47, %v4009_v8  ;;  %v1856_v57 = vmax.f32 %v1840_v28, 0.0  ;;  %v4545_v48 = vsel %vm258_vm0, %v4542_v19, %v4544_v56  ;;  %v4543_v6 = vsel %vm258_vm0, %v4540_v43, %v4542_v19  ;;  %v17411_v19 = vld [vmem:[#allocation32_spill] sm:$0xff] }
 0x2ed   :  { %v4856_v37 = vor.u32 %v4855_v34, %v4854_v62  ;;  %v12240_v2 = vor.u32 %v4859_v21, %v4858_v58  ;;  %v1855_v8 = vmax.f32 %v1839_v16, 0.0  ;;  %v12246_v27 = vpack.c.bf16 %v1854_v5, %v1853_v49  ;;  %v17412_v21 = vld [vmem:[#allocation21_spill] sm:$0xff] }
 0x2ee   :  { %4350 = vrot.lane.b32.xlu0 %v4018_v53, %s9260_s26  ;;  %v4305_v13 = vpop.permute.xlu1 %4304  ;;  %v17413_v49 = vld [vmem:[#allocation17_spill] sm:$0xff] }
 0x2ef   :  { %17409 = vst [vmem:[#allocation37_spill] sm:$0xff] %v12246_v27  ;;  %v12248_v30 = vpack.c.bf16 %v1856_v57, %v1855_v8  ;;  %v4861_v55 = vsel %vm4742_vm4, %v4856_v37, %v12240_v2  ;;  %v4857_v43 = vsel %vm4742_vm4, %v12162_v40, %v4856_v37  ;;  %v5138_v28 = vsel %vm5126_vm5, %v10891_v44, %v4305_v13  ;;  %v12261_v20 = vpop.permute.xlu0 %5034  ;;  %v17414_v13 = vld [vmem:[#allocation18_spill] sm:$0xff] }
 0x2f0   :  { %4348 = vrot.lane.b32.xlu1 %v4010_v15, %s9260_s26  ;;  %v4023_v11 = vshll.u32 %v12246_v27, 16  ;;  %v5267_v62 = vsel %vm5255_vm6, %v5138_v28, %v4625_v36  ;;  %v4027_v15 = vshrl.u32 %v12246_v27, 16  ;;  %v1958_v36 = vmul.f32 %v12244_v51, %v9489_v33 }
 0x2f1   :  { %17410 = vst [vmem:[#allocation70_spill] sm:$0xff] %v12248_v30  ;;  %v4031_v47 = vshll.u32 %v12248_v30, 16  ;;  %v16845_v58 = vshrl.u32 %v12248_v30, 16  ;;  %v4546_v8 = vrot.slane %v12246_v27, 1  ;;  %v17416_v32 = vshrl.u32 %v12248_v30, 16 }
 0x2f2   :  { %4670 = vrot.lane.b32.xlu0 %v4545_v48, %s9252_s0  ;;  %v12256_v23 = vpop.permute.xlu1 %4320  ;;  %v4025_v34 = vrot.slane %v4023_v11, 1  ;;  %v16844_v48 = vrot.slane %v12248_v30, 1  ;;  %v1992_v28 = vrot.slane %v1958_v36, 1 }
 0x2f3   :  { %v12269_v44 = vrot.slane %v4031_v47, 1  ;;  %v12273_v16 = vpop.permute.xlu0 %4334  ;;  %v4867_v37 = vrot.slane %v4031_v47, 2 }
 0x2f4   :  { %4668 = vrot.lane.b32.xlu1 %v4543_v6, %s9252_s0  ;;  %v4029_v5 = vor.u32 %v4027_v15, %v4025_v34  ;;  %v4866_v6 = vrot.slane %v16845_v58, 1  ;;  %v4549_v47 = vsel %vm258_vm0, %v4546_v8, %v16844_v48 }
 0x2f6   :  { %5054 = vrot.lane.b32.xlu0 %v4861_v55, %s9261_s28  ;;  %v5009_v40 = vpop.permute.xlu1 %5008  ;;  %v4034_v57 = vsel %vm3782_vm3, %v4029_v5, %v12269_v44  ;;  %v4862_v55 = vrot.slane %v4027_v15, 1 }
 0x2f7   :  { %v5401_v53 = vsel %vm5384_vm7, %v5267_v62, %v5009_v40  ;;  %v12288_v40 = vpop.permute.xlu0 %4654  ;;  %v4021_v62 = vor.u32 %v4019_v31, %v12209_v18  ;;  %v2056_v18 = vmul.f32 %v12203_v46, %v9499_v38 }
 0x2f8   :  { %5052 = vrot.lane.b32.xlu1 %v4857_v43, %s9261_s28  ;;  %8873 = vmatmul.mubr.bf16.gmra.mrb[8].mxu0 %v5401_v53  ;;  %v4863_v43 = vrot.slane %v4023_v11, 2  ;;  %v12296_v53 = vor.u32 %v4867_v37, %v4866_v6  ;;  %v1937_v6 = vmul.f32 %v12203_v46, %v9506_v42  ;;  %v2156_v37 = vmul.f32 %v12244_v51, %v9501_v39 }
 0x2f9   :  { %v4026_v11 = vsel %vm3782_vm3, %v4021_v62, %v4025_v34 }
 0x2fa   :  { %2315 = vperm.xlu0 %9088, %v17281_v61   ;;  %v4864_v15 = vor.u32 %v4863_v43, %v4862_v55  ;;  %v12303_v36 = vpop.permute.xlu1 %5024  ;;  %v4547_v43 = vsel %vm258_vm0, %v4544_v56, %v4546_v8 }
 0x2fb   :  { %v12315_v55 = vpop.permute.xlu0 %5038 }
 0x2fc   :  { %1954 = vperm.xlu1 %9086, %v17411_v19  }
 0x2fe   :  { %2323 = vperm.xlu0 %9088, %v17412_v21  }
 0x300   :  { %9089 = vset.pattern.permute.xlu1 %v9263_v29  ;;  %v1957_v29 = vmul.f32 %v12203_v46, %v9489_v33  ;;  %v1883_v48 = vpop.permute.xlu1 %1882 }
 0x301   :  { %2307 = vperm.xlu1 %9089, %v17413_v49   ;;  %v1959_v58 = vmul.f32 %v1883_v48, %v9489_v33  ;;  %v2058_v56 = vmul.f32 %v1883_v48, %v9499_v38  ;;  %v12330_v8 = vmul.f32 %v1883_v48, %v9501_v39 }
 0x302   :  { %4354 = vrot.lane.b32.xlu0 %v4034_v57, %s9260_s26  ;;  %v1991_v5 = vrot.slane %v1957_v29, 1  ;;  %v2057_v57 = vmul.f32 %v12244_v51, %v9499_v38  ;;  %v4869_v29 = vsel %vm4742_vm4, %v4864_v15, %v12296_v53 }
 0x304   :  { %v1993_v31 = vsel %vm258_vm0, %v1991_v5, %v1992_v28  ;;  %v2091_v34 = vrot.slane %v2057_v57, 2  ;;  %v2155_v5 = vmul.f32 %v12203_v46, %v9501_v39  ;;  %v4865_v57 = vsel %vm4742_vm4, %v12240_v2, %v4864_v15  ;;  %v12335_v15 = vpop.permute.xlu1 %4652 }
 0x305   :  { %2311 = vperm.xlu1 %9089, %v17414_v13   ;;  %v2040_v62 = vadd.f32 %v1993_v31, %v1937_v6  ;;  %v1994_v31 = vrot.slane %v1959_v58, 1  ;;  %v2093_v6 = vrot.slane %v2058_v56, 2  ;;  %v1938_v2 = vmul.f32 %v12244_v51, %v9506_v42 }
 0x306   :  { %4674 = vrot.lane.b32.xlu0 %v4549_v47, %s9252_s0  ;;  %v2090_v47 = vrot.slane %v2056_v18, 2  ;;  %v2189_v46 = vrot.slane %v2155_v5, 3 }
 0x307   :  { %v2094_v58 = vsel %vm362_vm1, %v2091_v34, %v2093_v6 }
 0x308   :  { %v12345_v51 = vpop.permute.xlu1 %5036 }
 0x309   :  { %4352 = vrot.lane.b32.xlu1 %v4026_v11, %s9260_s26  ;;  %v2190_v11 = vrot.slane %v2156_v37, 3  ;;  %v1887_v37 = vpop.permute.xlu0 %1886 }
 0x30a   :  { %5058 = vrot.lane.b32.xlu0 %v4869_v29, %s9261_s28  ;;  %v2092_v29 = vsel %vm362_vm1, %v2090_v47, %v2091_v34  ;;  %v1995_v47 = vsel %vm258_vm0, %v1992_v28, %v1994_v31  ;;  %v12352_v28 = vld [vmem:[%s16621_s2] ss:$0 sm:$0xff] }
 0x30b   :  { %v2139_v18 = vadd.f32 %v2092_v29, %v2040_v62  ;;  %v2041_v29 = vadd.f32 %v1995_v47, %v1938_v2 }
 0x30d   :  { %4672 = vrot.lane.b32.xlu1 %v4547_v43, %s9252_s0  ;;  %v2191_v43 = vsel %vm466_vm2, %v2189_v46, %v2190_v11  ;;  %v12343_v5 = vpop.permute.xlu0 %1894  ;;  %v1960_v46 = vmul.f32 %v1887_v37, %v9489_v33 }
 0x30e   :  { %2331 = vperm.xlu0 %9088, %v17365_v7   ;;  %v2192_v7 = vrot.slane %v12330_v8, 3  ;;  %v2238_v62 = vadd.f32 %v2191_v43, %v2139_v18  ;;  %v12357_v43 = vpop.permute.xlu1 %4336 }
 0x30f   :  { %v1996_v47 = vrot.slane %v1960_v46, 1  ;;  %v2158_v46 = vmul.f32 %v1887_v37, %v9501_v39 }
 0x310   :  { %v2193_v56 = vsel %vm466_vm2, %v2190_v11, %v2192_v7  ;;  %v2254_v8 = vadd.f32 %v12352_v28, %v2238_v62 }
 0x311   :  { %5056 = vrot.lane.b32.xlu1 %v4865_v57, %s9261_s28  ;;  %v2140_v57 = vadd.f32 %v2094_v58, %v2041_v29  ;;  %v4627_v34 = vpop.permute.xlu0 %4626  ;;  %v2059_v58 = vmul.f32 %v1887_v37, %v9499_v38  ;;  %v1997_v62 = vsel %vm258_vm0, %v1994_v31, %v1996_v47 }
 0x312   :  { %2339 = vperm.xlu0 %9088, %v17370_v54   ;;  %v2270_v29 = vmax.f32 %v2254_v8, 0.0 }
 0x313   :  { %v2239_v18 = vadd.f32 %v2193_v56, %v2140_v57  ;;  %v1939_v57 = vmul.f32 %v1883_v48, %v9506_v42 }
 0x315   :  { %2319 = vperm.xlu1 %9089, %v17322_v45   ;;  %v2255_v2 = vadd.f32 %v12352_v28, %v2239_v18  ;;  %v12360_v54 = vpop.permute.xlu0 %4642  ;;  %v12362_v45 = vpop.permute.xlu1 %4656 }
 0x317   :  { %v2271_v11 = vmax.f32 %v2255_v2, 0.0  ;;  %v2042_v2 = vadd.f32 %v1997_v62, %v1939_v57  ;;  %v2194_v62 = vrot.slane %v2158_v46, 3  ;;  %v1962_v57 = vmul.f32 %v12343_v5, %v9489_v33  ;;  %v17417_v46 = vld [vmem:[#allocation56_spill] sm:$0xff] }
 0x319   :  { %2327 = vperm.xlu1 %9089, %v17334_v41   ;;  %v12364_v21 = vpack.c.bf16 %v2271_v11, %v2270_v29  ;;  %v2095_v41 = vrot.slane %v2059_v58, 2  ;;  %v4307_v8 = vpop.permute.xlu0 %4306  ;;  %v12371_v61 = vpop.permute.xlu1 %5040  ;;  %v4037_v29 = vor.u32 %v17416_v32, %v12269_v44  ;;  %v2061_v44 = vmul.f32 %v12343_v5, %v9499_v38 }
 0x31a   :  { %v5140_v19 = vsel %vm5126_vm5, %v17417_v46, %v4307_v8  ;;  %v2195_v17 = vsel %vm466_vm2, %v2192_v7, %v2194_v62  ;;  %v2000_v50 = vrot.slane %v1962_v57, 1  ;;  %v2160_v8 = vmul.f32 %v12343_v5, %v9501_v39 }
 0x31b   :  { %17415 = vst [vmem:[#allocation83_spill] sm:$0xff] %v12364_v21  ;;  %v4039_v56 = vshll.u32 %v12364_v21, 16  ;;  %v16853_v18 = vshrl.u32 %v12364_v21, 16  ;;  %v2096_v13 = vsel %vm362_vm1, %v2093_v6, %v2095_v41  ;;  %v1940_v6 = vmul.f32 %v1887_v37, %v9506_v42 }
 0x31c   :  { %v2141_v32 = vadd.f32 %v2096_v13, %v2042_v2  ;;  %v17418_v60 = vrot.slane %v12364_v21, 1  ;;  %v2099_v1 = vrot.slane %v2061_v44, 2 }
 0x31d   :  { %v12376_v11 = vrot.slane %v4039_v56, 1  ;;  %v4870_v58 = vrot.slane %v16853_v18, 1  ;;  %v4871_v27 = vrot.slane %v4039_v56, 2  ;;  %v12386_v49 = vpop.permute.xlu0 %4322 }
 0x31e   :  { %v2240_v37 = vadd.f32 %v2195_v17, %v2141_v32 }
 0x31f   :  { %v4042_v48 = vsel %vm3782_vm3, %v4037_v29, %v12376_v11  ;;  %v1891_v29 = vpop.permute.xlu1 %1890  ;;  %v12402_v2 = vor.u32 %v4871_v27, %v4870_v58 }
 0x320   :  { %4356 = vrot.lane.b32.xlu1 %v4042_v48, %s9260_s26  ;;  %v1961_v31 = vmul.f32 %v1891_v29, %v9489_v33  ;;  %v2060_v18 = vmul.f32 %v1891_v29, %v9499_v38  ;;  %v2159_v56 = vmul.f32 %v1891_v29, %v9501_v39  ;;  %v17419_v48 = vrot.slane %v12248_v30, 1 }
 0x321   :  { %v12405_v26 = vpop.permute.xlu0 %4338  ;;  %v1941_v46 = vmul.f32 %v1891_v29, %v9506_v42  ;;  %v4873_v17 = vsel %vm4742_vm4, %v12296_v53, %v12402_v2  ;;  %v2198_v29 = vrot.slane %v2160_v8, 3 }
 0x322   :  { %v4551_v13 = vsel %vm258_vm0, %v17419_v48, %v17418_v60  ;;  %v1998_v25 = vrot.slane %v1961_v31, 1  ;;  %v2097_v35 = vrot.slane %v2060_v18, 2  ;;  %v2196_v27 = vrot.slane %v2159_v56, 3 }
 0x323   :  { %v12411_v30 = vpop.permute.xlu1 %1898  ;;  %v5269_v18 = vsel %vm5255_vm6, %v5140_v19, %v4627_v34 }
 0x324   :  { %4676 = vrot.lane.b32.xlu1 %v4551_v13, %s9252_s0  ;;  %v1999_v60 = vsel %vm258_vm0, %v1996_v47, %v1998_v25  ;;  %v2001_v7 = vsel %vm258_vm0, %v1998_v25, %v2000_v50  ;;  %v2098_v57 = vsel %vm362_vm1, %v2095_v41, %v2097_v35  ;;  %v2100_v32 = vsel %vm362_vm1, %v2097_v35, %v2099_v1 }
 0x325   :  { %v2043_v31 = vadd.f32 %v1999_v60, %v1940_v6  ;;  %v2044_v58 = vadd.f32 %v2001_v7, %v1941_v46  ;;  %v12423_v44 = vmul.f32 %v12411_v30, %v9489_v33  ;;  %v12427_v25 = vmul.f32 %v12411_v30, %v9499_v38  ;;  %v5011_v34 = vpop.permute.xlu0 %5010 }
 0x326   :  { %v12431_v19 = vmul.f32 %v12411_v30, %v9501_v39  ;;  %v5404_v53 = vsel %vm5384_vm7, %v5269_v18, %v5011_v34  ;;  %v2197_v56 = vsel %vm466_vm2, %v2194_v62, %v2196_v27  ;;  %v2256_v13 = vadd.f32 %v12352_v28, %v2240_v37 }
 0x327   :  { %v2142_v41 = vadd.f32 %v2098_v57, %v2043_v31  ;;  %v2143_v47 = vadd.f32 %v2100_v32, %v2044_v58  ;;  %v4629_v35 = vpop.permute.xlu1 %4628  ;;  %v16862_v6 = vrot.slane %v12423_v44, 1  ;;  %v16861_v48 = vrot.slane %v12427_v25, 2  ;;  %8876 = vmatprep.mubr.bf16.mxu0 %v5404_v53 }
 0x328   :  { %5060 = vrot.lane.b32.xlu1 %v4873_v17, %s9261_s28  ;;  %v1942_v46 = vmul.f32 %v12343_v5, %v9506_v42  ;;  %v2199_v7 = vsel %vm466_vm2, %v2196_v27, %v2198_v29  ;;  %v16860_v8 = vrot.slane %v12431_v19, 3  ;;  %v2272_v27 = vmax.f32 %v2256_v13, 0.0  ;;  %v17422_v13 = vld [vmem:[#allocation54_spill] sm:$0xff] }
 0x329   :  { %v2241_v60 = vadd.f32 %v2197_v56, %v2142_v41  ;;  %v2003_v18 = vsel %vm258_vm0, %v2000_v50, %v16862_v6  ;;  %v12446_v62 = vpop.permute.xlu0 %5026  ;;  %v2242_v31 = vadd.f32 %v2199_v7, %v2143_v47  ;;  %v2102_v5 = vsel %vm362_vm1, %v2099_v1, %v16861_v48  ;;  %v17426_v6 = vld [vmem:[#allocation59_spill] sm:$0xff] }
 0x32a   :  { %v2045_v37 = vadd.f32 %v2003_v18, %v1942_v46  ;;  %v2201_v50 = vsel %vm466_vm2, %v2198_v29, %v16860_v8  ;;  %v17421_v46 = vld [vmem:[#allocation66_spill] sm:$0xff] }
 0x32b   :  { %v2257_v58 = vadd.f32 %v12352_v28, %v2241_v60  ;;  %v12450_v57 = vpop.permute.xlu1 %4644  ;;  %v2258_v41 = vadd.f32 %v12352_v28, %v2242_v31  ;;  %v17423_v60 = vld [vmem:[#allocation35_spill] sm:$0xff]  ;;  %v17424_v31 = vshrl.u32 %v12364_v21, 16 }
 0x32c   :  { %2335 = vperm.xlu1 %9089, %v17393_v22   ;;  %v2144_v32 = vadd.f32 %v2102_v5, %v2045_v37  ;;  %v5144_v7 = vsel %vm5126_vm5, %v17423_v60, %v17422_v13  ;;  %v17425_v13 = vld [vmem:[#allocation86_spill] sm:$0xff] }
 0x32d   :  { %v2273_v17 = vmax.f32 %v2257_v58, 0.0  ;;  %v12458_v34 = vpop.permute.xlu0 %4658  ;;  %v4045_v37 = vor.u32 %v17424_v31, %v12376_v11 }
 0x32e   :  { %v2243_v47 = vadd.f32 %v2201_v50, %v2144_v32 }
 0x32f   :  { %v4309_v53 = vpop.permute.xlu1 %4308  ;;  %v12462_v56 = vpack.c.bf16 %v2273_v17, %v2272_v27  ;;  %v2274_v27 = vmax.f32 %v2258_v41, 0.0 }
 0x330   :  { %2343 = vperm.xlu1 %9089, %v17396_v9   ;;  %v5142_v1 = vsel %vm5126_vm5, %v17421_v46, %v4309_v53  ;;  %v2259_v18 = vadd.f32 %v12352_v28, %v2243_v47  ;;  %v5273_v47 = vsel %vm5255_vm6, %v5144_v7, %v17425_v13  ;;  %v17428_v7 = vld [vmem:[#allocation36_spill] sm:$0xff]  ;;  %v17436_v9 = vld [vmem:[#allocation41_spill] sm:$0xff] }
 0x331   :  { %17420 = vst [vmem:[#allocation46_spill] sm:$0xff] %v12462_v56  ;;  %v4047_v29 = vshll.u32 %v12462_v56, 16  ;;  %v12471_v58 = vpop.permute.xlu0 %5042  ;;  %v4051_v5 = vshrl.u32 %v12462_v56, 16  ;;  %v5271_v50 = vsel %vm5255_vm6, %v5142_v1, %v4629_v35  ;;  %v5410_v11 = vsel %vm5384_vm7, %v5273_v47, %v17426_v6  ;;  %v17427_v1 = vld [vmem:[#allocation61_spill] sm:$0xff]  ;;  %v17430_v6 = vld [vmem:[#allocation47_spill] sm:$0xff] }
 0x332   :  { %v2275_v17 = vmax.f32 %v2259_v18, 0.0  ;;  %v4552_v41 = vrot.slane %v12462_v56, 1 }
 0x333   :  { %v5013_v32 = vpop.permute.xlu1 %5012  ;;  %v4049_v53 = vrot.slane %v4047_v29, 1  ;;  %v4874_v60 = vrot.slane %v4051_v5, 1  ;;  %v4875_v8 = vrot.slane %v4047_v29, 2  ;;  %v5146_v29 = vsel %vm5126_vm5, %v17428_v7, %v17427_v1 }
 0x334   :  { %v5407_v46 = vsel %vm5384_vm7, %v5271_v50, %v5013_v32  ;;  %v12485_v18 = vpack.c.bf16 %v2275_v17, %v2274_v27  ;;  %v17429_v50 = vld [vmem:[#allocation75_spill] sm:$0xff]  ;;  %v17431_v27 = vrot.slane %v12364_v21, 1  ;;  %v17437_v21 = vld [vmem:[#allocation38_spill] sm:$0xff] }
 0x335   :  { %8877 = vmatmul.mubr.bf16.gmra.mrb[12].mxu0 %v5407_v46  ;;  %v4050_v48 = vsel %vm3782_vm3, %v4045_v37, %v4049_v53  ;;  %v4876_v32 = vor.u32 %v4875_v8, %v4874_v60  ;;  %v5148_v46 = vsel %vm5126_vm5, %v17430_v6, %v17429_v50  ;;  %v17432_v8 = vld [vmem:[#allocation33_spill] sm:$0xff]  ;;  %v17433_v50 = vld [vmem:[#allocation62_spill] sm:$0xff] }
 0x336   :  { %4358 = vrot.lane.b32.xlu0 %v4050_v48, %s9260_s26  ;;  %8880 = vmatprep.mubr.bf16.mxu0 %v5410_v11  ;;  %v4055_v37 = vshll.u32 %v12485_v18, 16  ;;  %v4553_v17 = vsel %vm258_vm0, %v17431_v27, %v4552_v41  ;;  %v4053_v11 = vor.u32 %v4051_v5, %v4049_v53  ;;  %v5275_v60 = vsel %vm5255_vm6, %v5146_v29, %v17432_v8  ;;  %v17434_v48 = vld [vmem:[#allocation68_spill] sm:$0xff] }
 0x337   :  { %v12490_v35 = vpop.permute.xlu1 %4324  ;;  %v5413_v6 = vsel %vm5384_vm7, %v5275_v60, %v17433_v50  ;;  %v4877_v27 = vsel %vm4742_vm4, %v12402_v2, %v4876_v32  ;;  %v16866_v53 = vrot.slane %v12485_v18, 1  ;;  %v17435_v29 = vshrl.u32 %v12485_v18, 16  ;;  %v17438_v50 = vld [vmem:[#allocation50_spill] sm:$0xff] }
 0x338   :  { %v12487_v31 = vpop.permute.xlu0 %1902  ;;  %v12506_v47 = vrot.slane %v4055_v37, 1  ;;  %v4879_v56 = vrot.slane %v4055_v37, 2  ;;  %v5160_v60 = vsel %vm5126_vm5, %v17437_v21, %v17436_v9  ;;  %v5150_v2 = vsel %vm5126_vm5, %v17438_v50, %v11986_v63  ;;  %v17441_v9 = vld [vmem:[#allocation60_spill] sm:$0xff] }
 0x339   :  { %v12514_v7 = vmul.f32 %v12487_v31, %v9489_v33  ;;  %v4878_v8 = vrot.slane %v17435_v29, 1  ;;  %v17442_v21 = vld [vmem:[#allocation48_spill] sm:$0xff] }
 0x33a   :  { %4678 = vrot.lane.b32.xlu0 %v4553_v17, %s9252_s0  ;;  %v5277_v17 = vsel %vm5255_vm6, %v5148_v46, %v17434_v48  ;;  %v4058_v5 = vsel %vm3782_vm3, %v4053_v11, %v12506_v47  ;;  %v17439_v11 = vld [vmem:[#allocation76_spill] sm:$0xff]  ;;  %v5164_v63 = vsel %vm5126_vm5, %v17442_v21, %v17441_v9 }
 0x33b   :  { %v12508_v1 = vpop.permute.xlu1 %5028  ;;  %4360 = vrot.lane.b32.xlu1 %v4058_v5, %s9260_s26  ;;  %v5416_v48 = vsel %vm5384_vm7, %v5277_v17, %v11873_v14  ;;  %v17443_v5 = vld [vmem:[#allocation55_spill] sm:$0xff]  ;;  %v4555_v14 = vsel %vm258_vm0, %v4552_v41, %v16866_v53  ;;  %v12554_v17 = vor.u32 %v4879_v56, %v4878_v8  ;;  %v17445_v9 = vld [vmem:[#allocation80_spill] sm:$0xff]  ;;  %v17446_v56 = vld [vmem:[#allocation90_spill] sm:$0xff] }
 0x33c   :  { %v12503_v13 = vpop.permute.xlu0 %1910  ;;  %v5152_v50 = vsel %vm5126_vm5, %v17443_v5, %v12069_v52  ;;  %v5154_v21 = vsel %vm5126_vm5, %v17445_v9, %v12256_v23  ;;  %v12565_v52 = vmul.f32 %v12487_v31, %v9499_v38  ;;  %v17447_v41 = vld [vmem:[#allocation67_spill] sm:$0xff]  ;;  %v17449_v23 = vld [vmem:[#allocation65_spill] sm:$0xff]  ;;  %v17450_v9 = vld [vmem:[#allocation74_spill] sm:$0xff] }
 0x33d   :  { %8881 = vmatmul.mubr.bf16.gmra.mrb[16].mxu0 %v5413_v6  ;;  %v17440_v6 = vld [vmem:[#allocation40_spill] sm:$0xff]  ;;  %v17448_v8 = vld [vmem:[#allocation63_spill] sm:$0xff] }
 0x33e   :  { %5062 = vrot.lane.b32.xlu0 %v4877_v27, %s9261_s28  ;;  %v5162_v37 = vsel %vm5126_vm5, %v17440_v6, %v17439_v11  ;;  %8884 = vmatprep.mubr.bf16.mxu0 %v5416_v48  ;;  %v5279_v48 = vsel %vm5255_vm6, %v5150_v2, %v11891_v3  ;;  %v17444_v11 = vld [vmem:[#allocation89_spill] sm:$0xff] }
 0x33f   :  { %v12542_v29 = vpop.permute.xlu1 %4340  ;;  %v5289_v6 = vsel %vm5255_vm6, %v5160_v60, %v17444_v11  ;;  %4680 = vrot.lane.b32.xlu1 %v4555_v14, %s9252_s0  ;;  %v5291_v3 = vsel %vm5255_vm6, %v5162_v37, %v17446_v56  ;;  %v5166_v60 = vsel %vm5126_vm5, %v17448_v8, %v17447_v41  ;;  %v5281_v11 = vsel %vm5255_vm6, %v5152_v50, %v17449_v23  ;;  %v17451_v14 = vld [vmem:[#allocation64_spill] sm:$0xff] }
 0x340   :  { %v12534_v46 = vpop.permute.xlu0 %4342  ;;  %v12582_v53 = vsel %vm5384_vm7, %v5289_v6, %v17450_v9  ;;  %v12586_v27 = vsel %vm5384_vm7, %v5291_v3, %v17451_v14  ;;  %v5293_v37 = vsel %vm5255_vm6, %v5164_v63, %v12227_v0  ;;  %v17452_v56 = vrot.slane %v12514_v7, 1  ;;  %v17454_v63 = vld [vmem:[#allocation85_spill] sm:$0xff] }
 0x341   :  { %v17453_v41 = vrot.slane %v12423_v44, 1  ;;  %v5419_v50 = vsel %vm5384_vm7, %v5279_v48, %v12191_v59  ;;  %v5422_v6 = vsel %vm5384_vm7, %v5281_v11, %v12206_v24  ;;  %v1943_v23 = vmul.f32 %v12411_v30, %v9506_v42  ;;  %v17455_v24 = vld [vmem:[#allocation57_spill] sm:$0xff] }
 0x342   :  { %2347 = vperm.xlu0 %9088, %v17390_v12   ;;  %v12603_v3 = vmul.f32 %v12487_v31, %v9501_v39  ;;  %v4881_v0 = vsel %vm4742_vm4, %v4876_v32, %v12554_v17  ;;  %v5283_v44 = vsel %vm5255_vm6, %v5154_v21, %v12231_v10  ;;  %v5168_v59 = vsel %vm5126_vm5, %v17454_v63, %v12273_v16  ;;  %v17456_v9 = vld [vmem:[#allocation29_spill] sm:$0xff]  ;;  %v17457_v16 = vld [vmem:[#allocation51_spill] sm:$0xff] }
 0x343   :  { %v12576_v2 = vpop.permute.xlu1 %4660  ;;  %v2005_v8 = vsel %vm258_vm0, %v17453_v41, %v17452_v56  ;;  %v5156_v48 = vsel %vm5126_vm5, %v17455_v24, %v12386_v49  ;;  %v2103_v30 = vrot.slane %v12565_v52, 2  ;;  %5064 = vrot.lane.b32.xlu1 %v4881_v0, %s9261_s28  ;;  %v12622_v32 = vsel %vm5384_vm7, %v5293_v37, %v12261_v20 }
 0x344   :  { %v12568_v5 = vpop.permute.xlu0 %4662  ;;  %v5297_v10 = vsel %vm5255_vm6, %v5168_v59, %v12288_v40  ;;  %v5170_v21 = vsel %vm5126_vm5, %v17457_v16, %v12357_v43  ;;  %v2046_v49 = vadd.f32 %v2005_v8, %v1943_v23  ;;  %v5425_v14 = vsel %vm5384_vm7, %v5283_v44, %v12303_v36  ;;  %v17460_v8 = vld [vmem:[#allocation88_spill] sm:$0xff] }
 0x345   :  { %8885 = vmatmul.mubr.bf16.gmra.mrb[20].mxu0 %v5419_v50  ;;  %v5295_v56 = vsel %vm5255_vm6, %v5166_v60, %v12335_v15  ;;  %v5299_v20 = vsel %vm5255_vm6, %v5170_v21, %v12362_v45  ;;  %v12639_v40 = vsel %vm5384_vm7, %v5297_v10, %v12315_v55  ;;  %v2202_v37 = vrot.slane %v12603_v3, 3  ;;  %v17458_v15 = vld [vmem:[#allocation58_spill] sm:$0xff] }
 0x346   :  { %2355 = vperm.xlu0 %9088, %v17456_v9   ;;  %8888 = vmatprep.mubr.bf16.mxu0 %v5422_v6  ;;  %v5285_v43 = vsel %vm5255_vm6, %v5156_v48, %v12360_v54  ;;  %v12646_v41 = vsel %vm5384_vm7, %v5295_v56, %v12345_v51  ;;  %v12650_v36 = vsel %vm5384_vm7, %v5299_v20, %v12371_v61  ;;  %v17459_v55 = vrot.slane %v12427_v25, 2  ;;  %v17462_v10 = vld [vmem:[#allocation30_spill] sm:$0xff] }
 0x347   :  { %v12629_v52 = vpop.permute.xlu1 %5044  ;;  %v5172_v45 = vsel %vm5126_vm5, %v17458_v15, %v12405_v26  ;;  %v5158_v54 = vsel %vm5126_vm5, %v17460_v8, %v12490_v35  ;;  %v12663_v51 = vmul.f32 %v12503_v13, %v9489_v33  ;;  %2351 = vperm.xlu1 %9089, %v17406_v4   ;;  %v12672_v25 = vmul.f32 %v12503_v13, %v9499_v38 }
 0x348   :  { %v12617_v11 = vpop.permute.xlu0 %5046  ;;  %v2104_v60 = vsel %vm362_vm1, %v17459_v55, %v2103_v30  ;;  %v5301_v50 = vsel %vm5255_vm6, %v5172_v45, %v12458_v34  ;;  %v5428_v35 = vsel %vm5384_vm7, %v5285_v43, %v12446_v62  ;;  %v1944_v34 = vmul.f32 %v12487_v31, %v9506_v42 }
 0x349   :  { %v2145_v26 = vadd.f32 %v2104_v60, %v2046_v49  ;;  %v12681_v44 = vsel %vm5384_vm7, %v5301_v50, %v12471_v58  ;;  %v17461_v63 = vrot.slane %v12431_v19, 3  ;;  %v12690_v62 = vmul.f32 %v12503_v13, %v9501_v39 }
 0x34a   :  { %v5287_v24 = vsel %vm5255_vm6, %v5158_v54, %v12450_v57  ;;  %v1946_v48 = vmul.f32 %v12503_v13, %v9506_v42  ;;  %v2008_v58 = vrot.slane %v12663_v51, 1  ;;  %v2107_v49 = vrot.slane %v12672_v25, 2 }
 0x34b   :  { %v2203_v59 = vsel %vm466_vm2, %v17461_v63, %v2202_v37  ;;  %2359 = vperm.xlu1 %9089, %v17462_v10   ;;  %v5431_v57 = vsel %vm5384_vm7, %v5287_v24, %v12508_v1  ;;  %v17463_v20 = vrot.slane %v12514_v7, 1  ;;  %v2206_v55 = vrot.slane %v12690_v62, 3  ;;  %v17465_v1 = vld [vmem:[#allocation39_spill] sm:$0xff] }
 0x34c   :  { %v2244_v21 = vadd.f32 %v2203_v59, %v2145_v26  ;;  %v17464_v54 = vshrl.u32 %v12485_v18, 16  ;;  %v5176_v50 = vsel %vm5126_vm5, %v17465_v1, %v12534_v46  ;;  %v17466_v7 = vld [vmem:[#allocation87_spill] sm:$0xff] }
 0x34d   :  { %8889 = vmatmul.mubr.bf16.gmra.mrb[24].mxu0 %v5425_v14  ;;  %v5174_v26 = vsel %vm5126_vm5, %v17466_v7, %v12542_v29 }
 0x34e   :  { %v12666_v61 = vpop.permute.xlu0 %1918  ;;  %8892 = vmatprep.mubr.bf16.mxu0 %v5428_v35  ;;  %v12716_v51 = vor.u32 %v17464_v54, %v12506_v47  ;;  %v2260_v63 = vadd.f32 %v12352_v28, %v2244_v21 }
 0x34f   :  { %v12706_v13 = vmul.f32 %v12666_v61, %v9489_v33 }
 0x350   :  { %v1907_v6 = vpop.permute.xlu1 %1906 }
 0x351   :  { %v1965_v23 = vmul.f32 %v1907_v6, %v9489_v33  ;;  %v2064_v3 = vmul.f32 %v1907_v6, %v9499_v38  ;;  %v2163_v0 = vmul.f32 %v1907_v6, %v9501_v39  ;;  %v1945_v14 = vmul.f32 %v1907_v6, %v9506_v42 }
 0x352   :  { %v12698_v19 = vpop.permute.xlu0 %1926  ;;  %v2012_v46 = vrot.slane %v12706_v13, 1 }
 0x353   :  { %v2006_v31 = vrot.slane %v1965_v23, 1  ;;  %v2105_v16 = vrot.slane %v2064_v3, 2  ;;  %v2204_v45 = vrot.slane %v2163_v0, 3  ;;  %v12754_v1 = vmul.f32 %v12698_v19, %v9489_v33 }
 0x354   :  { %v1915_v56 = vpop.permute.xlu1 %1914 }
 0x355   :  { %v2007_v43 = vsel %vm258_vm0, %v17463_v20, %v2006_v31  ;;  %v2009_v15 = vsel %vm258_vm0, %v2006_v31, %v2008_v58  ;;  %v2106_v25 = vsel %vm362_vm1, %v2103_v30, %v2105_v16  ;;  %v2108_v6 = vsel %vm362_vm1, %v2105_v16, %v2107_v49  ;;  %8893 = vmatmul.mubr.bf16.gmra.mrb[28].mxu0 %v5431_v57 }
 0x356   :  { %v2047_v60 = vadd.f32 %v2007_v43, %v1944_v34  ;;  %v2048_v8 = vadd.f32 %v2009_v15, %v1945_v14  ;;  %v4347_v35 = vpop.permute.xlu0 %4346  ;;  %v1967_v0 = vmul.f32 %v1915_v56, %v9489_v33  ;;  %v2066_v47 = vmul.f32 %v1915_v56, %v9499_v38  ;;  %8896 = vmatprep.mubr.bf16.mxu0 %v12582_v53 }
 0x357   :  { %v2205_v59 = vsel %vm466_vm2, %v2202_v37, %v2204_v45  ;;  %v2165_v29 = vmul.f32 %v1915_v56, %v9501_v39  ;;  %v2207_v30 = vsel %vm466_vm2, %v2204_v45, %v2206_v55  ;;  %v5305_v16 = vsel %vm5255_vm6, %v5176_v50, %v12568_v5 }
 0x358   :  { %v2146_v23 = vadd.f32 %v2106_v25, %v2047_v60  ;;  %v2147_v3 = vadd.f32 %v2108_v6, %v2048_v8  ;;  %v4345_v34 = vpop.permute.xlu1 %4344  ;;  %v2010_v24 = vrot.slane %v1967_v0, 1  ;;  %v2109_v31 = vrot.slane %v2066_v47, 2 }
 0x359   :  { %v12737_v14 = vmul.f32 %v12666_v61, %v9499_v38  ;;  %v1947_v20 = vmul.f32 %v1915_v56, %v9506_v42  ;;  %v2208_v45 = vrot.slane %v2165_v29, 3  ;;  %v2276_v60 = vmax.f32 %v2260_v63, 0.0 }
 0x35a   :  { %v2245_v62 = vadd.f32 %v2205_v59, %v2146_v23  ;;  %v2246_v21 = vadd.f32 %v2207_v30, %v2147_v3  ;;  %v4667_v43 = vpop.permute.xlu0 %4666  ;;  %v2011_v15 = vsel %vm258_vm0, %v2008_v58, %v2010_v24  ;;  %v2013_v57 = vsel %vm258_vm0, %v2010_v24, %v2012_v46 }
 0x35b   :  { %v5303_v8 = vsel %vm5255_vm6, %v5174_v26, %v12576_v2  ;;  %v12750_v56 = vmul.f32 %v12666_v61, %v9501_v39  ;;  %v2049_v54 = vadd.f32 %v2011_v15, %v1946_v48  ;;  %v2050_v58 = vadd.f32 %v2013_v57, %v1947_v20 }
 0x35c   :  { %v2261_v37 = vadd.f32 %v12352_v28, %v2245_v62  ;;  %v4665_v5 = vpop.permute.xlu1 %4664  ;;  %v2110_v50 = vsel %vm362_vm1, %v2107_v49, %v2109_v31  ;;  %v2111_v7 = vrot.slane %v12737_v14, 2  ;;  %v12760_v25 = vmul.f32 %v12698_v19, %v9499_v38 }
 0x35d   :  { %v12764_v2 = vmul.f32 %v12698_v19, %v9501_v39  ;;  %v2148_v26 = vadd.f32 %v2110_v50, %v2049_v54  ;;  %v12767_v6 = vadd.f32 %v12352_v28, %v2246_v21  ;;  %v2209_v23 = vsel %vm466_vm2, %v2206_v55, %v2208_v45  ;;  %8897 = vmatmul.mubr.bf16.gmra.mrb[32].mxu0 %v12586_v27 }
 0x35e   :  { %v2277_v53 = vmax.f32 %v2261_v37, 0.0  ;;  %v5051_v48 = vpop.permute.xlu0 %5050  ;;  %v12774_v49 = vsel %vm5384_vm7, %v5305_v16, %v12617_v11  ;;  %v1948_v47 = vmul.f32 %v12666_v61, %v9506_v42  ;;  %v2112_v63 = vsel %vm362_vm1, %v2109_v31, %v2111_v7  ;;  %v17467_v31 = vld [vmem:[#allocation69_spill] sm:$0xff]  ;;  %8900 = vmatprep.mubr.bf16.mxu0 %v12622_v32 }
 0x35f   :  { %v2247_v59 = vadd.f32 %v2209_v23, %v2148_v26  ;;  %v12781_v29 = vsel %vm5384_vm7, %v5303_v8, %v12629_v52  ;;  %v2210_v30 = vrot.slane %v12750_v56, 3  ;;  %v12786_v55 = vmul.f32 %v12698_v19, %v9506_v42  ;;  %v17468_v52 = vld [vmem:[#allocation34_spill] sm:$0xff] }
 0x360   :  { %v5049_v3 = vpop.permute.xlu1 %5048  ;;  %v12770_v0 = vpack.c.bf16 %v2277_v53, %v2276_v60  ;;  %v2016_v62 = vrot.slane %v12754_v1, 1  ;;  %v2149_v11 = vadd.f32 %v2112_v63, %v2050_v58  ;;  %v2115_v61 = vrot.slane %v12760_v25, 2 }
 0x361   :  { %v2214_v24 = vrot.slane %v12764_v2, 3  ;;  %v5180_v16 = vsel %vm5126_vm5, %v17467_v31, %v4347_v35  ;;  %v5178_v14 = vsel %vm5126_vm5, %v17468_v52, %v4345_v34  ;;  %v2278_v19 = vmax.f32 %v12767_v6, 0.0 }
 0x362   :  { %v2263_v20 = vadd.f32 %v12352_v28, %v2247_v59  ;;  %v5309_v37 = vsel %vm5255_vm6, %v5180_v16, %v4667_v43  ;;  %v4063_v15 = vshll.u32 %v12770_v0, 16  ;;  %v2211_v57 = vsel %vm466_vm2, %v2208_v45, %v2210_v30 }
 0x363   :  { %v5307_v60 = vsel %vm5255_vm6, %v5178_v14, %v4665_v5  ;;  %v12805_v34 = vsel %vm5384_vm7, %v5309_v37, %v5051_v48  ;;  %v2248_v8 = vadd.f32 %v2211_v57, %v2149_v11  ;;  %v16867_v56 = vrot.slane %v12770_v0, 1 }
 0x364   :  { %v1935_v21 = vpop.permute.xlu0 %1934  ;;  %v12810_v54 = vsel %vm5384_vm7, %v5307_v60, %v5049_v3  ;;  %v2279_v58 = vmax.f32 %v2263_v20, 0.0  ;;  %v4065_v6 = vrot.slane %v4063_v15, 1  ;;  %v4067_v14 = vshrl.u32 %v12770_v0, 16 }
 0x365   :  { %v12813_v43 = vmul.f32 %v1935_v21, %v9489_v33  ;;  %v12816_v45 = vmul.f32 %v1935_v21, %v9499_v38  ;;  %v12823_v3 = vmul.f32 %v1935_v21, %v9501_v39  ;;  %v12832_v31 = vadd.f32 %v12352_v28, %v2248_v8  ;;  %8901 = vmatmul.mubr.bf16.gmra.mrb[36].mxu0 %v12646_v41 }
 0x366   :  { %v12837_v20 = vmul.f32 %v1935_v21, %v9506_v42  ;;  %8904 = vmatprep.mubr.bf16.mxu0 %v12639_v40  ;;  %v4066_v41 = vsel %vm3782_vm3, %v12716_v51, %v4065_v6  ;;  %v12851_v21 = vpack.c.bf16 %v2279_v58, %v2278_v19  ;;  %v17470_v19 = vrot.slane %v12485_v18, 1 }
 0x367   :  { %v1923_v27 = vpop.permute.xlu1 %1922  ;;  %v2020_v13 = vrot.slane %v12813_v43, 1  ;;  %v2218_v8 = vrot.slane %v12823_v3, 3  ;;  %4362 = vrot.lane.b32.xlu0 %v4066_v41, %s9260_s26 }
 0x368   :  { %v1969_v35 = vmul.f32 %v1923_v27, %v9489_v33  ;;  %v2068_v32 = vmul.f32 %v1923_v27, %v9499_v38  ;;  %v2167_v53 = vmul.f32 %v1923_v27, %v9501_v39  ;;  %v1949_v50 = vmul.f32 %v1923_v27, %v9506_v42  ;;  %v12845_v27 = vpop.f32.mrb[0].mxu0  ;;  %17469 = vst [vmem:[#allocation72_spill] sm:$0xff] %v12851_v21 }
 0x369   :  { %v12820_v48 = vpop.permute.xlu0 %2303  ;;  %v4557_v58 = vsel %vm258_vm0, %v17470_v19, %v16867_v56  ;;  %v4071_v41 = vshll.u32 %v12851_v21, 16 }
 0x36a   :  { %v2014_v5 = vrot.slane %v1969_v35, 1  ;;  %v2113_v26 = vrot.slane %v2068_v32, 2  ;;  %v2212_v11 = vrot.slane %v2167_v53, 3 }
 0x36b   :  { %v1931_v23 = vpop.permute.xlu1 %1930  ;;  %4682 = vrot.lane.b32.xlu0 %v4557_v58, %s9252_s0 }
 0x36c   :  { %v2015_v63 = vsel %vm258_vm0, %v2012_v46, %v2014_v5  ;;  %v2017_v59 = vsel %vm258_vm0, %v2014_v5, %v2016_v62  ;;  %v2114_v46 = vsel %vm362_vm1, %v2111_v7, %v2113_v26  ;;  %v2116_v37 = vsel %vm362_vm1, %v2113_v26, %v2115_v61  ;;  %v12860_v5 = vpop.f32.mrb[1].mxu0 }
 0x36d   :  { %v2051_v16 = vadd.f32 %v2015_v63, %v1948_v47  ;;  %v2052_v52 = vadd.f32 %v2017_v59, %v1949_v50  ;;  %v12849_v60 = vpop.permute.xlu0 %4350  ;;  %v2119_v7 = vrot.slane %v12816_v45, 2  ;;  %v2213_v32 = vsel %vm466_vm2, %v2210_v30, %v2212_v11  ;;  %v12868_v26 = vpop.f32.mrb[2].mxu0  ;;  %8905 = vmatmul.mubr.bf16.gmra.mrb[40].mxu0 %v12650_v36 }
 0x36e   :  { %v1971_v40 = vmul.f32 %v1931_v23, %v9489_v33  ;;  %v2070_v51 = vmul.f32 %v1931_v23, %v9499_v38  ;;  %v4882_v50 = vrot.slane %v4067_v14, 1  ;;  %v2215_v30 = vsel %vm466_vm2, %v2212_v11, %v2214_v24  ;;  %8908 = vmatprep.mubr.bf16.mxu0 %v12681_v44 }
 0x36f   :  { %v2150_v47 = vadd.f32 %v2114_v46, %v2051_v16  ;;  %v2151_v57 = vadd.f32 %v2116_v37, %v2052_v52  ;;  %v12853_v35 = vpop.permute.xlu1 %4348  ;;  %v2169_v59 = vmul.f32 %v1931_v23, %v9501_v39  ;;  %v4883_v16 = vrot.slane %v4063_v15, 2  ;;  %v12874_v52 = vpop.f32.mrb[3].mxu0 }
 0x370   :  { %v2018_v63 = vrot.slane %v1971_v40, 1  ;;  %v1951_v37 = vmul.f32 %v1931_v23, %v9506_v42  ;;  %v12888_v23 = vmul.f32 %v12820_v48, %v9489_v33 }
 0x371   :  { %v2249_v53 = vadd.f32 %v2213_v32, %v2150_v47  ;;  %v2250_v46 = vadd.f32 %v2215_v30, %v2151_v57  ;;  %v2117_v47 = vrot.slane %v2070_v51, 2  ;;  %v4671_v32 = vpop.permute.xlu0 %4670  ;;  %v2216_v40 = vrot.slane %v2169_v59, 3 }
 0x372   :  { %v2019_v11 = vsel %vm258_vm0, %v2016_v62, %v2018_v63  ;;  %v2021_v15 = vsel %vm258_vm0, %v2018_v63, %v2020_v13  ;;  %v12892_v57 = vmul.f32 %v12820_v48, %v9499_v38  ;;  %v12898_v62 = vmul.f32 %v12820_v48, %v9501_v39 }
 0x373   :  { %v4669_v19 = vpop.permute.xlu1 %4668  ;;  %v2265_v56 = vadd.f32 %v12352_v28, %v2249_v53  ;;  %v2053_v53 = vadd.f32 %v2019_v11, %v12786_v55  ;;  %v2054_v1 = vadd.f32 %v2021_v15, %v1951_v37  ;;  %v2118_v51 = vsel %vm362_vm1, %v2115_v61, %v2117_v47 }
 0x374   :  { %v2120_v58 = vsel %vm362_vm1, %v2117_v47, %v2119_v7  ;;  %v4069_v30 = vor.u32 %v4067_v14, %v4065_v6  ;;  %v12908_v55 = vadd.f32 %v12352_v28, %v2250_v46  ;;  %v4073_v59 = vrot.slane %v4071_v41, 1 }
 0x375   :  { %v2152_v63 = vadd.f32 %v2118_v51, %v2053_v53  ;;  %v2153_v36 = vadd.f32 %v2120_v58, %v2054_v1  ;;  %v12910_v37 = vpop.permute.xlu0 %5054  ;;  %v2281_v25 = vmax.f32 %v2265_v56, 0.0  ;;  %v2217_v61 = vsel %vm466_vm2, %v2214_v24, %v2216_v40  ;;  %8909 = vmatmul.mubr.bf16.gmra.mrb[44].mxu0 %v12781_v29 }
 0x376   :  { %v4884_v15 = vor.u32 %v4883_v16, %v4882_v50  ;;  %v4075_v6 = vshrl.u32 %v12851_v21, 16  ;;  %v2219_v44 = vsel %vm466_vm2, %v2216_v40, %v2218_v8  ;;  %v4074_v14 = vsel %vm3782_vm3, %v4069_v30, %v4073_v59  ;;  %v17471_v40 = vld [vmem:[#allocation78_spill] sm:$0xff]  ;;  %8912 = vmatprep.mubr.bf16.mxu0 %v12774_v49 }
 0x377   :  { %v12912_v11 = vpop.permute.xlu1 %5052  ;;  %v16869_v46 = vrot.slane %v12851_v21, 1  ;;  %v4887_v47 = vrot.slane %v4071_v41, 2  ;;  %v2251_v53 = vadd.f32 %v2217_v61, %v2152_v63  ;;  %v2252_v1 = vadd.f32 %v2219_v44, %v2153_v36  ;;  %4364 = vrot.lane.b32.xlu1 %v4074_v14, %s9260_s26  ;;  %v12956_v14 = vld [vmem:[%s16623_s4] ss:$0 sm:$0xff] }
 0x378   :  { %v4885_v2 = vsel %vm4742_vm4, %v12554_v17, %v4884_v15  ;;  %v4886_v24 = vrot.slane %v4075_v6, 1  ;;  %v2280_v56 = vmax.f32 %v12832_v31, 0.0  ;;  %v12929_v50 = vmul.f32 %v12820_v48, %v9506_v42  ;;  %v17472_v31 = vld [vmem:[#allocation81_spill] sm:$0xff] }
 0x379   :  { %v2420_v16 = vrot.slane %v12888_v23, 1  ;;  %v5184_v41 = vsel %vm5126_vm5, %v17471_v40, %v12849_v60  ;;  %5066 = vrot.lane.b32.xlu0 %v4885_v2, %s9261_s28  ;;  %v2316_v51 = vpop.permute.xlu0 %2315  ;;  %v2519_v30 = vrot.slane %v12892_v57, 2  ;;  %v5182_v63 = vsel %vm5126_vm5, %v17472_v31, %v12853_v35 }
 0x37a   :  { %v12942_v48 = vsel %vm5255_vm6, %v5184_v41, %v4671_v32  ;;  %v17473_v36 = vrot.slane %v12770_v0, 1  ;;  %v12949_v61 = vor.u32 %v4887_v47, %v4886_v24  ;;  %v12958_v35 = vpack.c.bf16 %v2281_v25, %v2280_v56  ;;  %v17475_v24 = vld [vmem:[#allocation31_spill] sm:$0xff] }
 0x37b   :  { %v1955_v58 = vpop.permute.xlu1 %1954  ;;  %v12962_v2 = vadd.f32 %v12352_v28, %v2251_v53  ;;  %v12965_v40 = vadd.f32 %v12352_v28, %v2252_v1  ;;  %v12971_v29 = vsel %vm5255_vm6, %v5182_v63, %v4669_v19  ;;  %v12975_v25 = vmul.f32 %v2316_v51, %v9489_v33 }
 0x37c   :  { %v4559_v60 = vsel %vm258_vm0, %v17473_v36, %v16869_v46  ;;  %v1973_v44 = vmul.f32 %v1955_v58, %v9489_v33  ;;  %17474 = vst [vmem:[#allocation71_spill] sm:$0xff] %v12958_v35  ;;  %v2072_v47 = vmul.f32 %v1955_v58, %v9499_v38  ;;  %v2171_v53 = vmul.f32 %v1955_v58, %v9501_v39 }
 0x37d   :  { %4684 = vrot.lane.b32.xlu1 %v4559_v60, %s9252_s0  ;;  %2363 = vperm.xlu0 %9088, %v17475_v24   ;;  %v12978_v41 = vpop.permute.xlu0 %2323  ;;  %v12981_v1 = vmul.f32 %v2316_v51, %v9506_v42  ;;  %v5691_v49 = vadd.f32 %v12845_v27, %v12956_v14  ;;  %v4077_v36 = vor.u32 %v4075_v6, %v4073_v59  ;;  %v9264_v6 = vmov 6  }
 0x37e   :  { %v2022_v56 = vrot.slane %v1973_v44, 1  ;;  %v2121_v31 = vrot.slane %v2072_v47, 2  ;;  %v4889_v63 = vsel %vm4742_vm4, %v4884_v15, %v12949_v61  ;;  %v12988_v60 = vmul.f32 %v2316_v51, %v9499_v38  ;;  %8913 = vmatmul.mubr.bf16.gmra.mrb[48].mxu0 %v12810_v54 }
 0x37f   :  { %v16868_v44 = vshll.u32 %v12958_v35, 16  ;;  %v12998_v27 = vmul.f32 %v2316_v51, %v9501_v39  ;;  %v17476_v51 = vld [vmem:[#allocation16_spill] sm:$0xff]  ;;  %v6195_v32 = vmax.f32 %v5691_v49, 0.0  ;;  %8916 = vmatprep.mubr.bf16.mxu0 %v12805_v34  ;;  %v13038_v49 = vmul.f32 %v12978_v41, %v9506_v42 }
 0x380   :  { %v2308_v19 = vpop.permute.xlu1 %2307  ;;  %v2023_v58 = vsel %vm258_vm0, %v2020_v13, %v2022_v56  ;;  %v2122_v43 = vsel %vm362_vm1, %v2119_v7, %v2121_v31  ;;  %v2220_v13 = vrot.slane %v2171_v53, 3  ;;  %v5683_v31 = vadd.f32 %v12956_v14, %v12860_v5 }
 0x381   :  { %5068 = vrot.lane.b32.xlu1 %v4889_v63, %s9261_s28  ;;  %v2055_v59 = vadd.f32 %v2023_v58, %v12837_v20  ;;  %9090 = vset.pattern.permute.xlu0 %v9264_v6  ;;  %v13007_v56 = vrot.slane %v16868_v44, 1  ;;  %v13009_v47 = vpop.permute.xlu0 %4354  ;;  %v2387_v20 = vmul.f32 %v2308_v19, %v9489_v33  ;;  %v2486_v58 = vmul.f32 %v2308_v19, %v9499_v38  ;;  %v17477_v44 = vld [vmem:[#allocation32_spill] sm:$0xff] }
 0x382   :  { %2732 = vperm.xlu0 %9090, %v17476_v51   ;;  %v13015_v15 = vmul.f32 %v2308_v19, %v9501_v39  ;;  %v5686_v5 = vadd.f32 %v12956_v14, %v12874_v52  ;;  %v2367_v57 = vmul.f32 %v2308_v19, %v9506_v42  ;;  %v17484_v19 = vmax.f32 %v12962_v2, 0.0 }
 0x383   :  { %v2154_v63 = vadd.f32 %v2122_v43, %v2055_v59  ;;  %v4082_v53 = vsel %vm3782_vm3, %v4077_v36, %v13007_v56  ;;  %v5694_v59 = vadd.f32 %v12868_v26, %v12956_v14  ;;  %v2421_v17 = vrot.slane %v2387_v20, 1 }
 0x384   :  { %v2312_v45 = vpop.permute.xlu1 %2311  ;;  %v2520_v46 = vrot.slane %v2486_v58, 2  ;;  %v2221_v36 = vsel %vm466_vm2, %v2218_v8, %v2220_v13  ;;  %v16870_v26 = vrot.slane %v12958_v35, 1  ;;  %v2619_v3 = vrot.slane %v13015_v15, 3 }
 0x385   :  { %2383 = vperm.xlu1 %9089, %v17477_v44   ;;  %v6196_v7 = vmax.f32 %v5694_v59, 0.0  ;;  %v13034_v54 = vpop.permute.xlu0 %4674  ;;  %v2253_v43 = vadd.f32 %v2221_v36, %v2154_v63  ;;  %v2422_v34 = vsel %vm258_vm0, %v2420_v16, %v2421_v17  ;;  %v6193_v13 = vmax.f32 %v5683_v31, 0.0 }
 0x386   :  { %4366 = vrot.lane.b32.xlu0 %v4082_v53, %s9260_s26  ;;  %v2469_v52 = vadd.f32 %v2422_v34, %v12929_v50  ;;  %v6194_v63 = vmax.f32 %v5686_v5, 0.0  ;;  %v13052_v58 = vmul.f32 %v12978_v41, %v9489_v33  ;;  %v2521_v23 = vsel %vm362_vm1, %v2519_v30, %v2520_v46  ;;  %v17479_v53 = vld [vmem:[#allocation17_spill] sm:$0xff] }
 0x387   :  { %v13048_v20 = vpack.c.bf16 %v6196_v7, %v6195_v32  ;;  %v2388_v16 = vmul.f32 %v2312_v45, %v9489_v33  ;;  %v2487_v15 = vmul.f32 %v2312_v45, %v9499_v38  ;;  %v17481_v32 = vrot.slane %v12851_v21, 1 }
 0x388   :  { %v13045_v8 = vpop.permute.xlu1 %4352  ;;  %v2568_v50 = vadd.f32 %v2521_v23, %v2469_v52  ;;  %v13060_v31 = vpack.c.bf16 %v6194_v63, %v6193_v13  ;;  %v4083_v36 = vshrl.u32 %v12958_v35, 16  ;;  %v2269_v52 = vadd.f32 %v12352_v28, %v2253_v43 }
 0x389   :  { %17478 = vst [vmem:[#allocation42_spill] sm:$0xff] %v13048_v20  ;;  %9091 = vset.pattern.permute.xlu1 %v9264_v6  ;;  %v4561_v7 = vsel %vm258_vm0, %v17481_v32, %v16870_v26  ;;  %v2586_v6 = vmul.f32 %v2312_v45, %v9501_v39  ;;  %v2423_v30 = vrot.slane %v2388_v16, 1  ;;  %v2522_v59 = vrot.slane %v2487_v15, 2  ;;  %v13071_v5 = vpop.permute.xlu0 %5058 }
 0x38a   :  { %2736 = vperm.xlu1 %9091, %v17479_v53   ;;  %17480 = vst [vmem:[#allocation44_spill] sm:$0xff] %v13060_v31  ;;  %4686 = vrot.lane.b32.xlu0 %v4561_v7, %s9252_s0  ;;  %v17482_v13 = vrot.slane %v12898_v62, 3  ;;  %v2368_v23 = vmul.f32 %v2312_v45, %v9506_v42  ;;  %v17483_v32 = vmax.f32 %v12908_v55, 0.0  ;;  %v17486_v15 = vrot.slane %v12975_v25, 1  ;;  %v17488_v55 = vld [vmem:[#allocation18_spill] sm:$0xff] }
 0x38b   :  { %v2424_v16 = vsel %vm258_vm0, %v2421_v17, %v2423_v30  ;;  %v2621_v31 = vrot.slane %v2586_v6, 3  ;;  %v17487_v28 = vshll.u32 %v12958_v35, 16  ;;  %v13092_v43 = vmul.f32 %v12978_v41, %v9499_v38 }
 0x38c   :  { %v4673_v34 = vpop.permute.xlu1 %4672  ;;  %v2620_v63 = vsel %vm466_vm2, %v17482_v13, %v2619_v3  ;;  %v13082_v7 = vpack.c.bf16 %v17484_v19, %v17483_v32  ;;  %v2426_v26 = vsel %vm258_vm0, %v2423_v30, %v17486_v15  ;;  %v2470_v2 = vadd.f32 %v2424_v16, %v2367_v57 }
 0x38d   :  { %v4891_v62 = vrot.slane %v17487_v28, 2  ;;  %v2667_v45 = vadd.f32 %v2620_v63, %v2568_v50  ;;  %v2471_v13 = vadd.f32 %v2426_v26, %v2368_v23  ;;  %v2523_v32 = vsel %vm362_vm1, %v2520_v46, %v2522_v59  ;;  %v13106_v16 = vpop.permute.xlu0 %2331 }
 0x38e   :  { %17485 = vst [vmem:[#allocation77_spill] sm:$0xff] %v13082_v7  ;;  %2740 = vperm.xlu1 %9091, %v17488_v55   ;;  %v17489_v17 = vrot.slane %v12988_v60, 2  ;;  %v4890_v30 = vrot.slane %v4083_v36, 1  ;;  %v4087_v6 = vshll.u32 %v13082_v7, 16  ;;  %v2285_v28 = vmax.f32 %v2269_v52, 0.0 }
 0x38f   :  { %v13102_v20 = vmul.f32 %v12978_v41, %v9501_v39  ;;  %v2569_v50 = vadd.f32 %v2523_v32, %v2470_v2  ;;  %v2622_v57 = vsel %vm466_vm2, %v2619_v3, %v2621_v31  ;;  %v4085_v46 = vor.u32 %v4083_v36, %v13007_v56  ;;  %v13113_v52 = vld [vmem:[%s16621_s2] ss:$0 sm:$0xff] }
 0x390   :  { %v2525_v19 = vsel %vm362_vm1, %v2522_v59, %v17489_v17  ;;  %v5057_v15 = vpop.permute.xlu1 %5056  ;;  %v4892_v26 = vor.u32 %v4891_v62, %v4890_v30  ;;  %v4089_v23 = vrot.slane %v4087_v6, 1  ;;  %v2429_v59 = vrot.slane %v13052_v58, 1 }
 0x391   :  { %v2570_v63 = vadd.f32 %v2525_v19, %v2471_v13  ;;  %v13116_v41 = vadd.f32 %v13113_v52, %v2667_v45  ;;  %v2668_v2 = vadd.f32 %v2622_v57, %v2569_v50  ;;  %v17490_v3 = vrot.slane %v12998_v27, 3 }
 0x392   :  { %v4893_v36 = vsel %vm4742_vm4, %v12949_v61, %v4892_v26  ;;  %v4090_v62 = vsel %vm3782_vm3, %v4085_v46, %v4089_v23  ;;  %v16873_v13 = vrot.slane %v13082_v7, 1  ;;  %v17491_v19 = vmax.f32 %v12965_v40, 0.0  ;;  %v17492_v61 = vld [vmem:[#allocation37_spill] sm:$0xff]  ;;  %v17493_v46 = vld [vmem:[#allocation82_spill] sm:$0xff] }
 0x393   :  { %v2624_v56 = vsel %vm466_vm2, %v2621_v31, %v17490_v3  ;;  %v16874_v45 = vrot.slane %v13102_v20, 3  ;;  %5070 = vrot.lane.b32.xlu0 %v4893_v36, %s9261_s28  ;;  %4368 = vrot.lane.b32.xlu1 %v4090_v62, %s9260_s26  ;;  %v13134_v31 = vmul.f32 %v13106_v16, %v9489_v33  ;;  %v5188_v50 = vsel %vm5126_vm5, %v17492_v61, %v13009_v47 }
 0x394   :  { %v2320_v32 = vpop.permute.xlu1 %2319  ;;  %v13127_v30 = vpack.c.bf16 %v2285_v28, %v17491_v19  ;;  %v2669_v17 = vadd.f32 %v2624_v56, %v2570_v63  ;;  %v13140_v57 = vadd.f32 %v13113_v52, %v2668_v2  ;;  %v5467_v40 = vsel %vm5384_vm7, %v12971_v29, %v12912_v11  ;;  %v17495_v19 = vld [vmem:[#allocation19_spill] sm:$0xff] }
 0x395   :  { %v4091_v28 = vshrl.u32 %v13082_v7, 16  ;;  %v5317_v63 = vsel %vm5255_vm6, %v5188_v50, %v13034_v54  ;;  %v5186_v3 = vsel %vm5126_vm5, %v17493_v46, %v13045_v8  ;;  %8917 = vmatmul.mubr.bf16.gmra.mrb[52].mxu0 %v5467_v40  ;;  %v5470_v47 = vsel %vm5384_vm7, %v12942_v48, %v12910_v37 }
 0x396   :  { %v4895_v2 = vrot.slane %v4087_v6, 2  ;;  %v17494_v11 = vrot.slane %v12958_v35, 1  ;;  %v5315_v54 = vsel %vm5255_vm6, %v5186_v3, %v4673_v34  ;;  %8920 = vmatprep.mubr.bf16.mxu0 %v5470_v47  ;;  %v13162_v8 = vadd.f32 %v13113_v52, %v2669_v17 }
 0x397   :  { %v4894_v36 = vrot.slane %v4091_v28, 1  ;;  %2744 = vperm.xlu0 %9090, %v17495_v19   ;;  %v13169_v48 = vmul.f32 %v13106_v16, %v9499_v38  ;;  %v4095_v6 = vshll.u32 %v13127_v30, 16  ;;  %v2700_v34 = vmax.f32 %v13140_v57, 0.0 }
 0x398   :  { %v4563_v29 = vsel %vm258_vm0, %v17494_v11, %v16873_v13  ;;  %v2328_v62 = vpop.permute.xlu1 %2327  ;;  %v13175_v61 = vmul.f32 %v13106_v16, %v9501_v39  ;;  %v2390_v50 = vmul.f32 %v2320_v32, %v9489_v33  ;;  %v4093_v40 = vor.u32 %v4091_v28, %v4089_v23 }
 0x399   :  { %4688 = vrot.lane.b32.xlu1 %v4563_v29, %s9252_s0  ;;  %v13177_v17 = vor.u32 %v4895_v2, %v4894_v36  ;;  %v13180_v46 = vrot.slane %v4095_v6, 1  ;;  %v2489_v3 = vmul.f32 %v2320_v32, %v9499_v38  ;;  %v2588_v47 = vmul.f32 %v2320_v32, %v9501_v39  ;;  %v17496_v2 = vld [vmem:[#allocation21_spill] sm:$0xff] }
 0x39a   :  { %v2370_v57 = vmul.f32 %v2320_v32, %v9506_v42  ;;  %v2427_v29 = vrot.slane %v2390_v50, 1  ;;  %v5473_v56 = vsel %vm5384_vm7, %v5315_v54, %v5057_v15  ;;  %v5476_v13 = vsel %vm5384_vm7, %v5317_v63, %v13071_v5 }
 0x39b   :  { %v4897_v11 = vsel %vm4742_vm4, %v4892_v26, %v13177_v17  ;;  %2752 = vperm.xlu0 %9090, %v17496_v2   ;;  %v4098_v23 = vsel %vm3782_vm3, %v4093_v40, %v13180_v46  ;;  %v2526_v28 = vrot.slane %v2489_v3, 2  ;;  %v2625_v36 = vrot.slane %v2588_v47, 3 }
 0x39c   :  { %v13188_v37 = vpop.permute.xlu1 %4356  ;;  %v17497_v26 = vrot.slane %v12975_v25, 1  ;;  %v2430_v15 = vsel %vm258_vm0, %v2427_v29, %v2429_v59  ;;  %v16876_v54 = vrot.slane %v13127_v30, 1  ;;  %v2392_v50 = vmul.f32 %v2328_v62, %v9489_v33 }
 0x39d   :  { %5072 = vrot.lane.b32.xlu1 %v4897_v11, %s9261_s28  ;;  %v2473_v40 = vadd.f32 %v2430_v15, %v2370_v57  ;;  %v17498_v3 = vrot.slane %v12988_v60, 2  ;;  %8921 = vmatmul.mubr.bf16.gmra.mrb[56].mxu0 %v5473_v56  ;;  %v2372_v25 = vmul.f32 %v2328_v62, %v9506_v42  ;;  %v17499_v5 = vrot.slane %v13092_v43, 2  ;;  %v17501_v60 = vld [vmem:[#allocation20_spill] sm:$0xff] }
 0x39e   :  { %v2428_v32 = vsel %vm258_vm0, %v17497_v26, %v2427_v29  ;;  %v17500_v29 = vrot.slane %v12998_v27, 3  ;;  %8924 = vmatprep.mubr.bf16.mxu0 %v5476_v13  ;;  %v2431_v57 = vrot.slane %v2392_v50, 1  ;;  %v2491_v15 = vmul.f32 %v2328_v62, %v9499_v38 }
 0x39f   :  { %v2472_v11 = vadd.f32 %v2428_v32, %v12981_v1  ;;  %v2527_v47 = vsel %vm362_vm1, %v17498_v3, %v2526_v28  ;;  %v2529_v63 = vsel %vm362_vm1, %v2526_v28, %v17499_v5  ;;  %v2628_v1 = vsel %vm466_vm2, %v2625_v36, %v16874_v45  ;;  %4370 = vrot.lane.b32.xlu0 %v4098_v23, %s9260_s26 }
 0x3a0   :  { %v2626_v26 = vsel %vm466_vm2, %v17500_v29, %v2625_v36  ;;  %v2572_v32 = vadd.f32 %v2529_v63, %v2473_v40  ;;  %v4099_v28 = vshrl.u32 %v13127_v30, 16  ;;  %v17502_v27 = vrot.slane %v13082_v7, 1  ;;  %v2340_v40 = vpop.permute.xlu0 %2339 }
 0x3a1   :  { %2748 = vperm.xlu1 %9091, %v17501_v60   ;;  %v2571_v56 = vadd.f32 %v2527_v47, %v2472_v11  ;;  %v2432_v13 = vsel %vm258_vm0, %v2429_v59, %v2431_v57  ;;  %v17503_v36 = vrot.slane %v13134_v31, 1  ;;  %v2590_v50 = vmul.f32 %v2328_v62, %v9501_v39  ;;  %v4677_v11 = vpop.permute.xlu1 %4676 }
 0x3a2   :  { %v4565_v3 = vsel %vm258_vm0, %v17502_v27, %v16876_v54  ;;  %v2671_v5 = vadd.f32 %v2628_v1, %v2572_v32  ;;  %v2474_v63 = vadd.f32 %v2432_v13, %v13038_v49  ;;  %v4899_v29 = vrot.slane %v4095_v6, 2 }
 0x3a3   :  { %v2434_v23 = vsel %vm258_vm0, %v2431_v57, %v17503_v36  ;;  %v2670_v47 = vadd.f32 %v2626_v26, %v2571_v56  ;;  %v2530_v45 = vrot.slane %v2491_v15, 2  ;;  %v2629_v7 = vrot.slane %v2590_v50, 3  ;;  %v17506_v36 = vld [vmem:[#allocation22_spill] sm:$0xff]  ;;  %4690 = vrot.lane.b32.xlu0 %v4565_v3, %s9252_s0  ;;  %v8870_v26 = vpop.f32.mrb[4].mxu0 }
 0x3a4   :  { %v4898_v27 = vrot.slane %v4099_v28, 1  ;;  %v17504_v58 = vmax.f32 %v13116_v41, 0.0  ;;  %v16879_v59 = vrot.slane %v13169_v48, 2  ;;  %v2475_v62 = vadd.f32 %v2434_v23, %v2372_v25  ;;  %v5698_v56 = vpop.f32.mrb[5].mxu0 }
 0x3a5   :  { %v2686_v57 = vadd.f32 %v13113_v52, %v2670_v47  ;;  %2756 = vperm.xlu1 %9091, %v17506_v36   ;;  %v2701_v49 = vmax.f32 %v13162_v8, 0.0  ;;  %v13246_v1 = vmul.f32 %v2340_v40, %v9489_v33  ;;  %v17507_v41 = vrot.slane %v13092_v43, 2  ;;  %v8871_v3 = vpop.f32.mrb[6].mxu0 }
 0x3a6   :  { %v13237_v54 = vpack.c.bf16 %v2700_v34, %v17504_v58  ;;  %v13252_v32 = vmul.f32 %v2340_v40, %v9499_v38  ;;  %v2687_v15 = vadd.f32 %v13113_v52, %v2671_v5  ;;  %v2533_v25 = vsel %vm362_vm1, %v2530_v45, %v16879_v59  ;;  %v5061_v58 = vpop.permute.xlu1 %5060  ;;  %v17509_v5 = vld [vmem:[#allocation70_spill] sm:$0xff] }
 0x3a7   :  { %v2531_v34 = vsel %vm362_vm1, %v17507_v41, %v2530_v45  ;;  %v2702_v13 = vmax.f32 %v2686_v57, 0.0  ;;  %v17508_v23 = vrot.slane %v13102_v20, 3  ;;  %v4900_v43 = vor.u32 %v4899_v29, %v4898_v27  ;;  %v13262_v41 = vpop.f32.mrb[7].mxu0 }
 0x3a8   :  { %17505 = vst [vmem:[#allocation43_spill] sm:$0xff] %v13237_v54  ;;  %v2573_v8 = vadd.f32 %v2531_v34, %v2474_v63  ;;  %v4103_v47 = vshll.u32 %v13237_v54, 16  ;;  %v2574_v6 = vadd.f32 %v2533_v25, %v2475_v62  ;;  %v5190_v21 = vsel %vm5126_vm5, %v17509_v5, %v13188_v37 }
 0x3a9   :  { %v2630_v50 = vsel %vm466_vm2, %v17508_v23, %v2629_v7  ;;  %v4107_v45 = vshrl.u32 %v13237_v54, 16  ;;  %v4901_v63 = vsel %vm4742_vm4, %v13177_v17, %v4900_v43  ;;  %v4101_v20 = vor.u32 %v4099_v28, %v13180_v46 }
 0x3aa   :  { %v2672_v35 = vadd.f32 %v2630_v50, %v2573_v8  ;;  %v4105_v57 = vrot.slane %v4103_v47, 1  ;;  %v5319_v29 = vsel %vm5255_vm6, %v5190_v21, %v4677_v11  ;;  %5074 = vrot.lane.b32.xlu0 %v4901_v63, %s9261_s28  ;;  %v4903_v34 = vrot.slane %v4103_v47, 2 }
 0x3ab   :  { %v4902_v62 = vrot.slane %v4107_v45, 1  ;;  %v5479_v25 = vsel %vm5384_vm7, %v5319_v29, %v5061_v58  ;;  %v17510_v37 = vrot.slane %v13175_v61, 3  ;;  %v4566_v17 = vrot.slane %v13237_v54, 1  ;;  %v4359_v29 = vpop.permute.xlu0 %4358 }
 0x3ac   :  { %v2688_v27 = vadd.f32 %v13113_v52, %v2672_v35  ;;  %v4106_v23 = vsel %vm3782_vm3, %v4101_v20, %v4105_v57  ;;  %8925 = vmatmul.mubr.bf16.gmra.mrb[60].mxu0 %v5479_v25  ;;  %v13280_v46 = vpack.c.bf16 %v2702_v13, %v2701_v49  ;;  %v13283_v21 = vmul.f32 %v2340_v40, %v9501_v39  ;;  %v17511_v13 = vld [vmem:[#allocation23_spill] sm:$0xff] }
 0x3ad   :  { %v2632_v8 = vsel %vm466_vm2, %v2629_v7, %v17510_v37  ;;  %v2703_v35 = vmax.f32 %v2687_v15, 0.0  ;;  %4372 = vrot.lane.b32.xlu1 %v4106_v23, %s9260_s26  ;;  %v2373_v50 = vmul.f32 %v13106_v16, %v9506_v42  ;;  %v13289_v7 = vmul.f32 %v2340_v40, %v9506_v42 }
 0x3ae   :  { %v2673_v28 = vadd.f32 %v2632_v8, %v2574_v6  ;;  %v2704_v11 = vmax.f32 %v2688_v27, 0.0  ;;  %v4111_v47 = vshll.u32 %v13280_v46, 16  ;;  %v5707_v58 = vadd.f32 %v8870_v26, %v12956_v14  ;;  %2760 = vperm.xlu0 %9090, %v17511_v13  }
 0x3af   :  { %v13295_v5 = vor.u32 %v4903_v34, %v4902_v62  ;;  %v5710_v15 = vadd.f32 %v8871_v3, %v12956_v14  ;;  %v17512_v16 = vrot.slane %v13127_v30, 1  ;;  %v5699_v26 = vadd.f32 %v12956_v14, %v5698_v56  ;;  %v2336_v3 = vpop.permute.xlu1 %2335  ;;  %v4679_v8 = vpop.permute.xlu0 %4678 }
 0x3b0   :  { %v13297_v6 = vpack.c.bf16 %v2704_v11, %v2703_v35  ;;  %v4113_v20 = vrot.slane %v4111_v47, 1  ;;  %v13307_v25 = vadd.f32 %v13113_v52, %v2673_v28  ;;  %v4115_v62 = vshrl.u32 %v13280_v46, 16  ;;  %v17513_v11 = vld [vmem:[#allocation25_spill] sm:$0xff] }
 0x3b1   :  { %v4567_v40 = vsel %vm258_vm0, %v17512_v16, %v4566_v17  ;;  %v6200_v34 = vmax.f32 %v5710_v15, 0.0  ;;  %v4109_v37 = vor.u32 %v4107_v45, %v4105_v57  ;;  %v2394_v23 = vmul.f32 %v2336_v3, %v9489_v33 }
 0x3b2   :  { %4692 = vrot.lane.b32.xlu1 %v4567_v40, %s9252_s0  ;;  %v6199_v35 = vmax.f32 %v5707_v58, 0.0  ;;  %2768 = vperm.xlu0 %9090, %v17513_v11   ;;  %v4905_v56 = vsel %vm4742_vm4, %v4900_v43, %v13295_v5  ;;  %v2493_v16 = vmul.f32 %v2336_v3, %v9499_v38  ;;  %v2592_v40 = vmul.f32 %v2336_v3, %v9501_v39 }
 0x3b3   :  { %v4114_v27 = vsel %vm3782_vm3, %v4109_v37, %v4113_v20  ;;  %v2435_v15 = vrot.slane %v2394_v23, 1  ;;  %v6197_v45 = vmax.f32 %v5699_v26, 0.0  ;;  %v2374_v58 = vmul.f32 %v2336_v3, %v9506_v42  ;;  %v13324_v43 = vpop.permute.xlu1 %2343 }
 0x3b4   :  { %v13320_v57 = vpack.c.bf16 %v6200_v34, %v6199_v35  ;;  %v2534_v63 = vrot.slane %v2493_v16, 2  ;;  %v4906_v59 = vrot.slane %v4115_v62, 1  ;;  %v5702_v28 = vadd.f32 %v12956_v14, %v13262_v41 }
 0x3b5   :  { %v17515_v49 = vrot.slane %v13134_v31, 1  ;;  %v17516_v26 = vrot.slane %v13246_v1, 1  ;;  %v2633_v23 = vrot.slane %v2592_v40, 3  ;;  %v4907_v35 = vrot.slane %v4111_v47, 2 }
 0x3b6   :  { %17514 = vst [vmem:[#allocation84_spill] sm:$0xff] %v13320_v57  ;;  %5076 = vrot.lane.b32.xlu1 %v4905_v56, %s9261_s28  ;;  %4374 = vrot.lane.b32.xlu0 %v4114_v27, %s9260_s26  ;;  %v17517_v3 = vrot.slane %v13280_v46, 1  ;;  %v17518_v16 = vshll.u32 %v13297_v6, 16  ;;  %v13350_v27 = vmul.f32 %v13324_v43, %v9489_v33 }
 0x3b7   :  { %v2436_v37 = vsel %vm258_vm0, %v17515_v49, %v2435_v15  ;;  %v2438_v34 = vsel %vm258_vm0, %v2435_v15, %v17516_v26  ;;  %v17519_v49 = vrot.slane %v13169_v48, 2  ;;  %v17520_v15 = vrot.slane %v13252_v32, 2 }
 0x3b8   :  { %v4569_v56 = vsel %vm258_vm0, %v4566_v17, %v17517_v3  ;;  %v13340_v57 = vrot.slane %v17518_v16, 1  ;;  %v2476_v41 = vadd.f32 %v2436_v37, %v2373_v50  ;;  %v2477_v31 = vadd.f32 %v2438_v34, %v2374_v58  ;;  %v4361_v37 = vpop.permute.xlu1 %4360 }
 0x3b9   :  { %v2535_v54 = vsel %vm362_vm1, %v17519_v49, %v2534_v63  ;;  %v2537_v47 = vsel %vm362_vm1, %v2534_v63, %v17520_v15  ;;  %v13354_v17 = vmul.f32 %v13324_v43, %v9499_v38  ;;  %v13359_v48 = vmul.f32 %v13324_v43, %v9501_v39 }
 0x3ba   :  { %2764 = vperm.xlu1 %9091, %v17393_v22   ;;  %v2575_v50 = vadd.f32 %v2535_v54, %v2476_v41  ;;  %v2576_v40 = vadd.f32 %v2537_v47, %v2477_v31  ;;  %v6198_v58 = vmax.f32 %v5702_v28, 0.0  ;;  %v17521_v63 = vrot.slane %v13175_v61, 3  ;;  %4694 = vrot.lane.b32.xlu0 %v4569_v56, %s9252_s0  ;;  %v17522_v54 = vld [vmem:[#allocation83_spill] sm:$0xff]  ;;  %v5063_v28 = vpop.permute.xlu0 %5062 }
 0x3bb   :  { %v4908_v34 = vor.u32 %v4907_v35, %v4906_v59  ;;  %v2439_v3 = vrot.slane %v13350_v27, 1  ;;  %v2538_v16 = vrot.slane %v13354_v17, 2  ;;  %v4117_v49 = vor.u32 %v4115_v62, %v4113_v20  ;;  %v17526_v62 = vld [vmem:[#allocation26_spill] sm:$0xff] }
 0x3bc   :  { %v2634_v26 = vsel %vm466_vm2, %v17521_v63, %v2633_v23  ;;  %v5192_v41 = vsel %vm5126_vm5, %v17522_v54, %v4359_v29  ;;  %v13369_v15 = vpack.c.bf16 %v6198_v58, %v6197_v45  ;;  %v17524_v47 = vrot.slane %v13283_v21, 3 }
 0x3bd   :  { %v2674_v31 = vadd.f32 %v2634_v26, %v2575_v50  ;;  %v17525_v59 = vrot.slane %v13246_v1, 1  ;;  %v2637_v56 = vrot.slane %v13359_v48, 3  ;;  %v4123_v20 = vshrl.u32 %v13297_v6, 16 }
 0x3be   :  { %17523 = vst [vmem:[#allocation45_spill] sm:$0xff] %v13369_v15  ;;  %v2636_v61 = vsel %vm466_vm2, %v2633_v23, %v17524_v47  ;;  %2772 = vperm.xlu1 %9091, %v17526_v62   ;;  %v5321_v50 = vsel %vm5255_vm6, %v5192_v41, %v4679_v8  ;;  %v4681_v23 = vpop.permute.xlu1 %4680  ;;  %v4122_v63 = vsel %vm3782_vm3, %v4117_v49, %v13340_v57  ;;  %v17527_v26 = vrot.slane %v13252_v32, 2 }
 0x3bf   :  { %v2440_v35 = vsel %vm258_vm0, %v17525_v59, %v2439_v3  ;;  %v2675_v29 = vadd.f32 %v2636_v61, %v2576_v40  ;;  %v2690_v45 = vadd.f32 %v13113_v52, %v2674_v31  ;;  %v4909_v1 = vsel %vm4742_vm4, %v13295_v5, %v4908_v34 }
 0x3c0   :  { %v2478_v58 = vadd.f32 %v2440_v35, %v13289_v7  ;;  %v2539_v54 = vsel %vm362_vm1, %v17527_v26, %v2538_v16  ;;  %v5482_v40 = vsel %vm5384_vm7, %v5321_v50, %v5063_v28  ;;  %v2705_v31 = vmax.f32 %v13307_v25, 0.0  ;;  %5078 = vrot.lane.b32.xlu0 %v4909_v1, %s9261_s28  ;;  %v17530_v28 = vld [vmem:[#allocation46_spill] sm:$0xff] }
 0x3c1   :  { %v2706_v8 = vmax.f32 %v2690_v45, 0.0  ;;  %v4570_v7 = vrot.slane %v13297_v6, 1  ;;  %8928 = vmatprep.mubr.bf16.mxu0 %v5482_v40  ;;  %v17528_v5 = vmov %v17524_v47  ;;  %v4910_v32 = vrot.slane %v4123_v20, 1 }
 0x3c2   :  { %v2577_v41 = vadd.f32 %v2539_v54, %v2478_v58  ;;  %v2638_v49 = vsel %vm466_vm2, %v17528_v5, %v2637_v56  ;;  %v17529_v47 = vshll.u32 %v13297_v6, 16  ;;  %v5194_v25 = vsel %vm5126_vm5, %v17530_v28, %v4361_v37  ;;  %4376 = vrot.lane.b32.xlu1 %v4122_v63, %s9260_s26  ;;  %v5065_v50 = vpop.permute.xlu1 %5064 }
 0x3c3   :  { %v2691_v59 = vadd.f32 %v13113_v52, %v2675_v29  ;;  %v5323_v45 = vsel %vm5255_vm6, %v5194_v25, %v4681_v23  ;;  %v13410_v58 = vpack.c.bf16 %v2706_v8, %v2705_v31  ;;  %v17532_v63 = vrot.slane %v13280_v46, 1 }
 0x3c4   :  { %v4911_v61 = vrot.slane %v17529_v47, 2  ;;  %v2676_v35 = vadd.f32 %v2638_v49, %v2577_v41  ;;  %v5485_v21 = vsel %vm5384_vm7, %v5323_v45, %v5065_v50  ;;  %2776 = vperm.xlu0 %9090, %v17390_v12   ;;  %v4125_v8 = vor.u32 %v4123_v20, %v13340_v57 }
 0x3c5   :  { %17531 = vst [vmem:[#allocation73_spill] sm:$0xff] %v13410_v58  ;;  %8929 = vmatmul.mubr.bf16.gmra.mrb[64].mxu0 %v5485_v21  ;;  %v4127_v26 = vshll.u32 %v13410_v58, 16  ;;  %v4131_v37 = vshrl.u32 %v13410_v58, 16  ;;  %v4571_v29 = vsel %vm258_vm0, %v17532_v63, %v4570_v7  ;;  %v2707_v23 = vmax.f32 %v2691_v59, 0.0 }
 0x3c6   :  { %v2692_v1 = vadd.f32 %v13113_v52, %v2676_v35  ;;  %v4912_v54 = vor.u32 %v4911_v61, %v4910_v32  ;;  %4696 = vrot.lane.b32.xlu1 %v4571_v29, %s9252_s0  ;;  %v2348_v32 = vpop.permute.xlu0 %2347  ;;  %v4572_v57 = vrot.slane %v13410_v58, 1  ;;  %v2376_v21 = vmul.f32 %v13324_v43, %v9506_v42 }
 0x3c7   :  { %v4129_v31 = vrot.slane %v4127_v26, 1  ;;  %v4914_v5 = vrot.slane %v4131_v37, 1  ;;  %v4915_v49 = vrot.slane %v4127_v26, 2  ;;  %v2397_v25 = vmul.f32 %v2348_v32, %v9489_v33 }
 0x3c8   :  { %v2708_v40 = vmax.f32 %v2692_v1, 0.0  ;;  %2784 = vperm.xlu0 %9090, %v17456_v9   ;;  %v4913_v47 = vsel %vm4742_vm4, %v4908_v34, %v4912_v54  ;;  %v13431_v59 = vmul.f32 %v2348_v32, %v9499_v38  ;;  %v13436_v20 = vmul.f32 %v2348_v32, %v9501_v39 }
 0x3c9   :  { %v4130_v28 = vsel %vm3782_vm3, %v4125_v8, %v4129_v31  ;;  %v13438_v34 = vor.u32 %v4915_v49, %v4914_v5  ;;  %v2441_v35 = vrot.slane %v2397_v25, 1  ;;  %v2377_v29 = vmul.f32 %v2348_v32, %v9506_v42  ;;  %v2352_v32 = vpop.permute.xlu1 %2351 }
 0x3ca   :  { %v13423_v41 = vpack.c.bf16 %v2708_v40, %v2707_v23  ;;  %5080 = vrot.lane.b32.xlu1 %v4913_v47, %s9261_s28  ;;  %v2540_v45 = vrot.slane %v13431_v59, 2  ;;  %v2356_v26 = vpop.permute.xlu0 %2355  ;;  %v4573_v40 = vsel %vm258_vm0, %v4570_v7, %v4572_v57  ;;  %v4133_v8 = vor.u32 %v4131_v37, %v4129_v31 }
 0x3cb   :  { %v2442_v23 = vsel %vm258_vm0, %v2439_v3, %v2441_v35  ;;  %v2639_v49 = vrot.slane %v13436_v20, 3  ;;  %v13456_v43 = vmul.f32 %v2356_v26, %v9489_v33  ;;  %v4917_v47 = vsel %vm4742_vm4, %v4912_v54, %v13438_v34 }
 0x3cc   :  { %v4135_v61 = vshll.u32 %v13423_v41, 16  ;;  %4378 = vrot.lane.b32.xlu0 %v4130_v28, %s9260_s26  ;;  %v16883_v50 = vshrl.u32 %v13423_v41, 16  ;;  %v16882_v63 = vrot.slane %v13423_v41, 1  ;;  %v2479_v5 = vadd.f32 %v2442_v23, %v2376_v21 }
 0x3cd   :  { %v2541_v27 = vsel %vm362_vm1, %v2538_v16, %v2540_v45  ;;  %v13464_v3 = vmul.f32 %v2356_v26, %v9499_v38  ;;  %v13472_v54 = vmul.f32 %v2356_v26, %v9501_v39  ;;  %v8874_v16 = vpop.f32.mrb[8].mxu0  ;;  %v2398_v25 = vmul.f32 %v2352_v32, %v9489_v33 }
 0x3ce   :  { %2780 = vperm.xlu1 %9091, %v17406_v4   ;;  %v13445_v1 = vrot.slane %v4135_v61, 1  ;;  %v4918_v7 = vrot.slane %v16883_v50, 1  ;;  %v4919_v37 = vrot.slane %v4135_v61, 2  ;;  %v2578_v31 = vadd.f32 %v2541_v27, %v2479_v5  ;;  %v5714_v21 = vpop.f32.mrb[9].mxu0 }
 0x3cf   :  { %v4575_v17 = vsel %vm258_vm0, %v4572_v57, %v16882_v63  ;;  %v2497_v59 = vmul.f32 %v2352_v32, %v9499_v38  ;;  %v2596_v61 = vmul.f32 %v2352_v32, %v9501_v39  ;;  %v2445_v20 = vrot.slane %v13456_v43, 1  ;;  %v8875_v5 = vpop.f32.mrb[10].mxu0 }
 0x3d0   :  { %4698 = vrot.lane.b32.xlu0 %v4573_v40, %s9252_s0  ;;  %v4138_v28 = vsel %vm3782_vm3, %v4133_v8, %v13445_v1  ;;  %v2640_v23 = vsel %vm466_vm2, %v2637_v56, %v2639_v49  ;;  %v2379_v40 = vmul.f32 %v2356_v26, %v9506_v42  ;;  %v5723_v57 = vadd.f32 %v8874_v16, %v12956_v14  ;;  %v5717_v43 = vpop.f32.mrb[11].mxu0  ;;  %v13494_v26 = vpop.permute.xlu1 %2359 }
 0x3d1   :  { %v5715_v8 = vadd.f32 %v12956_v14, %v5714_v21  ;;  %v2443_v27 = vrot.slane %v2398_v25, 1  ;;  %v2542_v63 = vrot.slane %v2497_v59, 2  ;;  %v2544_v50 = vrot.slane %v13464_v3, 2 }
 0x3d2   :  { %2788 = vperm.xlu1 %9091, %v17462_v10   ;;  %v13489_v15 = vor.u32 %v4919_v37, %v4918_v7  ;;  %v2677_v58 = vadd.f32 %v2640_v23, %v2578_v31  ;;  %v2378_v48 = vmul.f32 %v2352_v32, %v9506_v42  ;;  %v2643_v56 = vrot.slane %v13472_v54, 3 }
 0x3d3   :  { %v2444_v16 = vsel %vm258_vm0, %v2441_v35, %v2443_v27  ;;  %v2641_v25 = vrot.slane %v2596_v61, 3  ;;  %v2446_v59 = vsel %vm258_vm0, %v2443_v27, %v2445_v20  ;;  %v5718_v3 = vadd.f32 %v12956_v14, %v5717_v43 }
 0x3d4   :  { %5082 = vrot.lane.b32.xlu0 %v4917_v47, %s9261_s28  ;;  %v5726_v47 = vadd.f32 %v8875_v5, %v12956_v14  ;;  %v2480_v7 = vadd.f32 %v2444_v16, %v2377_v29  ;;  %v2481_v37 = vadd.f32 %v2446_v59, %v2378_v48  ;;  %v6203_v31 = vmax.f32 %v5723_v57, 0.0 }
 0x3d5   :  { %v2543_v32 = vsel %vm362_vm1, %v2540_v45, %v2542_v63  ;;  %v2545_v54 = vsel %vm362_vm1, %v2542_v63, %v2544_v50  ;;  %v13505_v21 = vmul.f32 %v13494_v26, %v9489_v33  ;;  %v13509_v35 = vmul.f32 %v13494_v26, %v9499_v38 }
 0x3d6   :  { %4380 = vrot.lane.b32.xlu1 %v4138_v28, %s9260_s26  ;;  %v6201_v28 = vmax.f32 %v5715_v8, 0.0  ;;  %v2579_v61 = vadd.f32 %v2543_v32, %v2480_v7  ;;  %v2580_v14 = vadd.f32 %v2545_v54, %v2481_v37  ;;  %v13514_v29 = vmul.f32 %v13494_v26, %v9501_v39 }
 0x3d7   :  { %v6204_v23 = vmax.f32 %v5726_v47, 0.0  ;;  %v2642_v45 = vsel %vm466_vm2, %v2639_v49, %v2641_v25  ;;  %v2447_v63 = vrot.slane %v13505_v21, 1  ;;  %v2546_v57 = vrot.slane %v13509_v35, 2 }
 0x3d8   :  { %2792 = vperm.xlu0 %9090, %v17475_v24   ;;  %v6202_v8 = vmax.f32 %v5718_v3, 0.0  ;;  %v2693_v5 = vadd.f32 %v13113_v52, %v2677_v58  ;;  %v2678_v27 = vadd.f32 %v2642_v45, %v2579_v61  ;;  %v4921_v43 = vsel %vm4742_vm4, %v13438_v34, %v13489_v15 }
 0x3d9   :  { %v13523_v48 = vpack.c.bf16 %v6204_v23, %v6203_v31  ;;  %v2644_v47 = vsel %vm466_vm2, %v2641_v25, %v2643_v56  ;;  %v2448_v49 = vsel %vm258_vm0, %v2445_v20, %v2447_v63  ;;  %v2645_v16 = vrot.slane %v13514_v29, 3 }
 0x3da   :  { %4700 = vrot.lane.b32.xlu1 %v4575_v17, %s9252_s0  ;;  %v9265_v17 = vmov 7   ;;  %v13531_v58 = vpack.c.bf16 %v6202_v8, %v6201_v28  ;;  %v2694_v59 = vadd.f32 %v13113_v52, %v2678_v27  ;;  %v2679_v3 = vadd.f32 %v2644_v47, %v2580_v14 }
 0x3db   :  { %17533 = vst [vmem:[#allocation49_spill] sm:$0xff] %v13523_v48  ;;  %v2482_v34 = vadd.f32 %v2448_v49, %v2379_v40  ;;  %v2547_v25 = vsel %vm362_vm1, %v2544_v50, %v2546_v57  ;;  %v2709_v7 = vmax.f32 %v2693_v5, 0.0  ;;  %v2646_v20 = vsel %vm466_vm2, %v2643_v56, %v2645_v16  ;;  %v4363_v40 = vpop.permute.xlu0 %4362 }
 0x3dc   :  { %9092 = vset.pattern.permute.xlu0 %v9265_v17  ;;  %17534 = vst [vmem:[#allocation79_spill] sm:$0xff] %v13531_v58  ;;  %v2710_v37 = vmax.f32 %v2694_v59, 0.0  ;;  %v17536_v56 = vshrl.u32 %v13423_v41, 16 }
 0x3dd   :  { %3161 = vperm.xlu0 %9092, %v17476_v51   ;;  %v2581_v31 = vadd.f32 %v2547_v25, %v2482_v34  ;;  %v2695_v51 = vadd.f32 %v13113_v52, %v2679_v3 }
 0x3de   :  { %5084 = vrot.lane.b32.xlu1 %v4921_v43, %s9261_s28  ;;  %v13543_v32 = vpack.c.bf16 %v2710_v37, %v2709_v7  ;;  %v4141_v45 = vor.u32 %v17536_v56, %v13445_v1  ;;  %v5196_v1 = vsel %vm5126_vm5, %v12485_v18, %v4363_v40 }
 0x3df   :  { %v2680_v28 = vadd.f32 %v2646_v20, %v2581_v31  ;;  %v2711_v14 = vmax.f32 %v2695_v51, 0.0  ;;  %v4683_v5 = vpop.permute.xlu0 %4682 }
 0x3e0   :  { %17535 = vst [vmem:[#allocation27_spill] sm:$0xff] %v13543_v32  ;;  %v4143_v61 = vshll.u32 %v13543_v32, 16  ;;  %v4147_v50 = vshrl.u32 %v13543_v32, 16  ;;  %v5325_v31 = vsel %vm5255_vm6, %v5196_v1, %v4683_v5 }
 0x3e1   :  { %v2696_v54 = vadd.f32 %v13113_v52, %v2680_v28 }
 0x3e2   :  { %2812 = vperm.xlu1 %9091, %v17477_v44   ;;  %v4145_v8 = vrot.slane %v4143_v61, 1  ;;  %v4576_v44 = vrot.slane %v13543_v32, 1  ;;  %v4922_v47 = vrot.slane %v4147_v50, 1  ;;  %v4923_v49 = vrot.slane %v4143_v61, 2 }
 0x3e3   :  { %v2712_v23 = vmax.f32 %v2696_v54, 0.0 }
 0x3e4   :  { %v4146_v27 = vsel %vm3782_vm3, %v4141_v45, %v4145_v8  ;;  %v4149_v34 = vor.u32 %v4147_v50, %v4145_v8  ;;  %v4924_v7 = vor.u32 %v4923_v49, %v4922_v47  ;;  %v2380_v49 = vmul.f32 %v13494_v26, %v9506_v42 }
 0x3e5   :  { %v13554_v43 = vpack.c.bf16 %v2712_v23, %v2711_v14  ;;  %4382 = vrot.lane.b32.xlu0 %v4146_v27, %s9260_s26 }
 0x3e6   :  { %9093 = vset.pattern.permute.xlu1 %v9265_v17  ;;  %v4925_v54 = vsel %vm4742_vm4, %v13489_v15, %v4924_v7 }
 0x3e7   :  { %3165 = vperm.xlu1 %9093, %v17479_v53   ;;  %17537 = vst [vmem:[#allocation52_spill] sm:$0xff] %v13554_v43  ;;  %v4151_v17 = vshll.u32 %v13554_v43, 16  ;;  %v4155_v59 = vshrl.u32 %v13554_v43, 16  ;;  %v17538_v53 = vrot.slane %v13423_v41, 1  ;;  %v4578_v18 = vrot.slane %v13554_v43, 1 }
 0x3e9   :  { %v4577_v3 = vsel %vm258_vm0, %v17538_v53, %v4576_v44  ;;  %v13565_v25 = vrot.slane %v4151_v17, 1  ;;  %v4365_v37 = vpop.permute.xlu1 %4364  ;;  %v4927_v28 = vrot.slane %v4151_v17, 2  ;;  %v4579_v50 = vsel %vm258_vm0, %v4576_v44, %v4578_v18 }
 0x3ea   :  { %4702 = vrot.lane.b32.xlu0 %v4577_v3, %s9252_s0  ;;  %v5198_v23 = vsel %vm5126_vm5, %v12770_v0, %v4365_v37 }
 0x3eb   :  { %3169 = vperm.xlu1 %9093, %v17488_v55   ;;  %v5067_v20 = vpop.permute.xlu0 %5066  ;;  %v4154_v51 = vsel %vm3782_vm3, %v4149_v34, %v13565_v25  ;;  %v4926_v55 = vrot.slane %v4155_v59, 1 }
 0x3ec   :  { %v5488_v40 = vsel %vm5384_vm7, %v5325_v31, %v5067_v20 }
 0x3ed   :  { %8932 = vmatprep.mubr.bf16.mxu0 %v5488_v40  ;;  %v13582_v14 = vor.u32 %v4927_v28, %v4926_v55 }
 0x3ee   :  { %5086 = vrot.lane.b32.xlu0 %v4925_v54, %s9261_s28 }
 0x3ef   :  { %4384 = vrot.lane.b32.xlu1 %v4154_v51, %s9260_s26  ;;  %v4685_v61 = vpop.permute.xlu1 %4684  ;;  %v4929_v8 = vsel %vm4742_vm4, %v4924_v7, %v13582_v14 }
 0x3f0   :  { %v5327_v56 = vsel %vm5255_vm6, %v5198_v23, %v4685_v61 }
 0x3f2   :  { %3173 = vperm.xlu0 %9092, %v17495_v19  }
 0x3f3   :  { %4704 = vrot.lane.b32.xlu1 %v4579_v50, %s9252_s0  ;;  %v5069_v45 = vpop.permute.xlu1 %5068 }
 0x3f4   :  { %v5491_v15 = vsel %vm5384_vm7, %v5327_v56, %v5069_v45 }
 0x3f5   :  { %8933 = vmatmul.mubr.bf16.gmra.mrb[68].mxu0 %v5491_v15 }
 0x3f6   :  { %3181 = vperm.xlu0 %9092, %v17496_v2  }
 0x3f7   :  { %5088 = vrot.lane.b32.xlu1 %v4929_v8, %s9261_s28 }
 0x3fb   :  { %3177 = vperm.xlu1 %9093, %v17501_v60  }
 0x3fc   :  { %v2364_v44 = vpop.permute.xlu0 %2363 }
 0x3fd   :  { %v2401_v0 = vmul.f32 %v2364_v44, %v9489_v33  ;;  %v2500_v5 = vmul.f32 %v2364_v44, %v9499_v38  ;;  %v2599_v47 = vmul.f32 %v2364_v44, %v9501_v39  ;;  %v2381_v35 = vmul.f32 %v2364_v44, %v9506_v42 }
 0x3ff   :  { %3185 = vperm.xlu1 %9093, %v17506_v36   ;;  %v2449_v19 = vrot.slane %v2401_v0, 1  ;;  %v2548_v27 = vrot.slane %v2500_v5, 2  ;;  %v2647_v1 = vrot.slane %v2599_v47, 3 }
 0x401   :  { %v2450_v2 = vsel %vm258_vm0, %v2447_v63, %v2449_v19  ;;  %v2733_v17 = vpop.permute.xlu0 %2732  ;;  %v2549_v36 = vsel %vm362_vm1, %v2546_v57, %v2548_v27  ;;  %v2648_v57 = vsel %vm466_vm2, %v2645_v16, %v2647_v1 }
 0x402   :  { %v2483_v60 = vadd.f32 %v2450_v2, %v2380_v49  ;;  %v2815_v63 = vmul.f32 %v2733_v17, %v9489_v33  ;;  %v2914_v20 = vmul.f32 %v2733_v17, %v9499_v38  ;;  %v3013_v51 = vmul.f32 %v2733_v17, %v9501_v39 }
 0x403   :  { %v2795_v50 = vmul.f32 %v2733_v17, %v9506_v42  ;;  %v17539_v17 = vld [vmem:[#allocation72_spill] sm:$0xff] }
 0x404   :  { %v2384_v53 = vpop.permute.xlu1 %2383  ;;  %v2582_v3 = vadd.f32 %v2549_v36, %v2483_v60  ;;  %v2849_v29 = vrot.slane %v2815_v63, 1  ;;  %v2948_v8 = vrot.slane %v2914_v20, 2  ;;  %v3047_v0 = vrot.slane %v3013_v51, 3 }
 0x405   :  { %v2402_v34 = vmul.f32 %v2384_v53, %v9489_v33  ;;  %v2501_v7 = vmul.f32 %v2384_v53, %v9499_v38  ;;  %v2600_v37 = vmul.f32 %v2384_v53, %v9501_v39  ;;  %v4367_v26 = vpop.permute.xlu0 %4366 }
 0x406   :  { %v2681_v55 = vadd.f32 %v2648_v57, %v2582_v3  ;;  %v5200_v60 = vsel %vm5126_vm5, %v17539_v17, %v4367_v26  ;;  %v13645_v57 = vld [vmem:[%s16623_s4] ss:$0 sm:$0xff]  ;;  %v4157_v17 = vor.u32 %v4155_v59, %v13565_v25 }
 0x407   :  { %v2451_v31 = vrot.slane %v2402_v34, 1  ;;  %v2550_v21 = vrot.slane %v2501_v7, 2  ;;  %v2649_v40 = vrot.slane %v2600_v37, 3 }
 0x408   :  { %v2697_v47 = vadd.f32 %v13113_v52, %v2681_v55  ;;  %v8878_v63 = vpop.f32.mrb[12].mxu0 }
 0x409   :  { %v2452_v28 = vsel %vm258_vm0, %v2449_v19, %v2451_v31  ;;  %v2737_v54 = vpop.permute.xlu1 %2736  ;;  %v4687_v45 = vpop.permute.xlu0 %4686  ;;  %v2551_v15 = vsel %vm362_vm1, %v2548_v27, %v2550_v21  ;;  %v2650_v49 = vsel %vm466_vm2, %v2647_v1, %v2649_v40  ;;  %v5739_v51 = vadd.f32 %v13645_v57, %v8878_v63 }
 0x40a   :  { %v2484_v61 = vadd.f32 %v2452_v28, %v2381_v35  ;;  %v2816_v23 = vmul.f32 %v2737_v54, %v9489_v33  ;;  %v2915_v56 = vmul.f32 %v2737_v54, %v9499_v38  ;;  %v3014_v16 = vmul.f32 %v2737_v54, %v9501_v39  ;;  %v5730_v55 = vpop.f32.mrb[13].mxu0 }
 0x40b   :  { %v2796_v2 = vmul.f32 %v2737_v54, %v9506_v42  ;;  %v5329_v34 = vsel %vm5255_vm6, %v5200_v60, %v4687_v45 }
 0x40c   :  { %v2583_v44 = vadd.f32 %v2551_v15, %v2484_v61  ;;  %v2850_v5 = vrot.slane %v2816_v23, 1  ;;  %v2949_v19 = vrot.slane %v2915_v56, 2  ;;  %v3048_v3 = vrot.slane %v3014_v16, 3  ;;  %v8879_v23 = vpop.f32.mrb[14].mxu0 }
 0x40d   :  { %v2741_v36 = vpop.permute.xlu1 %2740  ;;  %v5071_v7 = vpop.permute.xlu0 %5070  ;;  %v2713_v56 = vmax.f32 %v2697_v47, 0.0 }
 0x40e   :  { %v2682_v53 = vadd.f32 %v2650_v49, %v2583_v44  ;;  %v2851_v27 = vsel %vm258_vm0, %v2849_v29, %v2850_v5  ;;  %v2950_v31 = vsel %vm362_vm1, %v2948_v8, %v2949_v19  ;;  %v13632_v21 = vmul.f32 %v2741_v36, %v9489_v33  ;;  %v5733_v8 = vpop.f32.mrb[15].mxu0 }
 0x40f   :  { %v2898_v37 = vadd.f32 %v2851_v27, %v2795_v50  ;;  %v13635_v1 = vmul.f32 %v2741_v36, %v9499_v38  ;;  %v13639_v20 = vmul.f32 %v2741_v36, %v9501_v39  ;;  %v5494_v35 = vsel %vm5384_vm7, %v5329_v34, %v5071_v7  ;;  %v17541_v27 = vld [vmem:[#allocation71_spill] sm:$0xff] }
 0x410   :  { %v2698_v26 = vadd.f32 %v13113_v52, %v2682_v53  ;;  %v2852_v40 = vrot.slane %v13632_v21, 1  ;;  %8936 = vmatprep.mubr.bf16.mxu0 %v5494_v35  ;;  %v5731_v50 = vadd.f32 %v13645_v57, %v5730_v55  ;;  %v3049_v15 = vsel %vm466_vm2, %v3047_v0, %v3048_v3 }
 0x411   :  { %v2997_v28 = vadd.f32 %v2950_v31, %v2898_v37  ;;  %v2951_v54 = vrot.slane %v13635_v1, 2  ;;  %v4369_v61 = vpop.permute.xlu1 %4368  ;;  %v3050_v29 = vrot.slane %v13639_v20, 3  ;;  %v2797_v44 = vmul.f32 %v2741_v36, %v9506_v42 }
 0x412   :  { %v2714_v45 = vmax.f32 %v2698_v26, 0.0  ;;  %v2853_v49 = vsel %vm258_vm0, %v2850_v5, %v2852_v40  ;;  %v5202_v47 = vsel %vm5126_vm5, %v17541_v27, %v4369_v61  ;;  %v5742_v0 = vadd.f32 %v13645_v57, %v8879_v23 }
 0x413   :  { %v3096_v16 = vadd.f32 %v3049_v15, %v2997_v28  ;;  %v2899_v53 = vadd.f32 %v2853_v49, %v2796_v2  ;;  %v2952_v34 = vsel %vm362_vm1, %v2949_v19, %v2951_v54  ;;  %v6207_v36 = vmax.f32 %v5739_v51, 0.0  ;;  %v8882_v51 = vpop.f32.mrb[16].mxu0 }
 0x414   :  { %v13658_v60 = vpack.c.bf16 %v2714_v45, %v2713_v56  ;;  %v6205_v37 = vmax.f32 %v5731_v50, 0.0  ;;  %v5734_v5 = vadd.f32 %v13645_v57, %v5733_v8  ;;  %v3051_v59 = vsel %vm466_vm2, %v3048_v3, %v3050_v29  ;;  %v5746_v50 = vpop.f32.mrb[17].mxu0 }
 0x415   :  { %v4689_v7 = vpop.permute.xlu1 %4688  ;;  %v2998_v31 = vadd.f32 %v2952_v34, %v2899_v53  ;;  %v6208_v2 = vmax.f32 %v5742_v0, 0.0  ;;  %v13672_v21 = vadd.f32 %v13113_v52, %v3096_v16  ;;  %v13690_v8 = vpop.f32.mrb[18].mxu0  ;;  %v13695_v16 = vld [vmem:[%s16621_s2] ss:$0 sm:$0xff] }
 0x416   :  { %17540 = vst [vmem:[#allocation24_spill] sm:$0xff] %v13658_v60  ;;  %v4159_v25 = vshll.u32 %v13658_v60, 16  ;;  %v5331_v63 = vsel %vm5255_vm6, %v5202_v47, %v4689_v7  ;;  %v2745_v26 = vpop.permute.xlu0 %2744  ;;  %v6206_v19 = vmax.f32 %v5734_v5, 0.0  ;;  %v16886_v35 = vrot.slane %v13658_v60, 1  ;;  %v13701_v0 = vpop.f32.mrb[19].mxu0 }
 0x417   :  { %v3097_v55 = vadd.f32 %v3051_v59, %v2998_v31  ;;  %v13677_v28 = vmul.f32 %v2745_v26, %v9489_v33  ;;  %v13680_v61 = vmul.f32 %v2745_v26, %v9499_v38  ;;  %v4163_v3 = vshrl.u32 %v13658_v60, 16 }
 0x418   :  { %v13684_v52 = vmul.f32 %v2745_v26, %v9501_v39  ;;  %v4161_v56 = vrot.slane %v4159_v25, 1  ;;  %v13686_v45 = vpack.c.bf16 %v6208_v2, %v6207_v36  ;;  %v13688_v15 = vpack.c.bf16 %v6206_v19, %v6205_v37  ;;  %v13746_v20 = vpop.f32.mrb[20].mxu0 }
 0x419   :  { %v5073_v23 = vpop.permute.xlu1 %5072  ;;  %v3113_v49 = vadd.f32 %v13695_v16, %v3097_v55  ;;  %v2854_v53 = vrot.slane %v13677_v28, 1  ;;  %v2953_v27 = vrot.slane %v13680_v61, 2  ;;  %v3128_v34 = vmax.f32 %v13672_v21, 0.0 }
 0x41a   :  { %17542 = vst [vmem:[#allocation53_spill] sm:$0xff] %v13686_v45  ;;  %17543 = vst [vmem:[#allocation28_spill] sm:$0xff] %v13688_v15  ;;  %v5497_v47 = vsel %vm5384_vm7, %v5331_v63, %v5073_v23  ;;  %v3052_v7 = vrot.slane %v13684_v52, 3  ;;  %v2753_v36 = vpop.permute.xlu0 %2752  ;;  %v4162_v37 = vsel %vm3782_vm3, %v4157_v17, %v4161_v56  ;;  %v13707_v5 = vadd.f32 %v13645_v57, %v8882_v51 }
 0x41b   :  { %8937 = vmatmul.mubr.bf16.gmra.mrb[72].mxu0 %v5497_v47  ;;  %v3129_v31 = vmax.f32 %v3113_v49, 0.0  ;;  %v2798_v59 = vmul.f32 %v2745_v26, %v9506_v42  ;;  %v2855_v2 = vsel %vm258_vm0, %v2852_v40, %v2854_v53  ;;  %4386 = vrot.lane.b32.xlu0 %v4162_v37, %s9260_s26  ;;  %v4581_v21 = vsel %vm258_vm0, %v4578_v18, %v16886_v35 }
 0x41c   :  { %v2900_v63 = vadd.f32 %v2855_v2, %v2797_v44  ;;  %v2954_v17 = vsel %vm362_vm1, %v2951_v54, %v2953_v27  ;;  %v13721_v19 = vmul.f32 %v2753_v36, %v9489_v33  ;;  %v13724_v26 = vmul.f32 %v2753_v36, %v9499_v38 }
 0x41d   :  { %v13727_v40 = vmul.f32 %v2753_v36, %v9506_v42  ;;  %v13730_v51 = vmul.f32 %v2753_v36, %v9501_v39  ;;  %v4930_v18 = vrot.slane %v4163_v3, 1  ;;  %v4931_v44 = vrot.slane %v4159_v25, 2 }
 0x41e   :  { %v2999_v55 = vadd.f32 %v2954_v17, %v2900_v63  ;;  %v3053_v1 = vsel %vm466_vm2, %v3050_v29, %v3052_v7  ;;  %v4371_v28 = vpop.permute.xlu0 %4370  ;;  %v13739_v52 = vadd.f32 %v13645_v57, %v5746_v50  ;;  %v2858_v23 = vrot.slane %v13721_v19, 1  ;;  %v13752_v50 = vpop.f32.mrb[21].mxu0 }
 0x41f   :  { %v2957_v49 = vrot.slane %v13724_v26, 2  ;;  %4706 = vrot.lane.b32.xlu0 %v4581_v21, %s9252_s0  ;;  %v13750_v2 = vor.u32 %v4931_v44, %v4930_v18  ;;  %v17544_v26 = vld [vmem:[#allocation77_spill] sm:$0xff]  ;;  %v13757_v61 = vpop.f32.mrb[22].mxu0 }
 0x420   :  { %v2749_v54 = vpop.permute.xlu1 %2748  ;;  %v3098_v29 = vadd.f32 %v3053_v1, %v2999_v55  ;;  %v5204_v35 = vsel %vm5126_vm5, %v17544_v26, %v4371_v28  ;;  %v13769_v28 = vpack.c.bf16 %v3129_v31, %v3128_v34 }
 0x421   :  { %v2819_v47 = vmul.f32 %v2749_v54, %v9489_v33  ;;  %v2918_v25 = vmul.f32 %v2749_v54, %v9499_v38  ;;  %v3017_v37 = vmul.f32 %v2749_v54, %v9501_v39  ;;  %v2799_v63 = vmul.f32 %v2749_v54, %v9506_v42 }
 0x422   :  { %v13760_v21 = vadd.f32 %v13695_v16, %v3098_v29  ;;  %v4691_v36 = vpop.permute.xlu0 %4690  ;;  %v4933_v18 = vsel %vm4742_vm4, %v13582_v14, %v13750_v2  ;;  %v13773_v29 = vpop.f32.mrb[23].mxu0 }
 0x423   :  { %v2856_v17 = vrot.slane %v2819_v47, 1  ;;  %v2955_v19 = vrot.slane %v2918_v25, 2  ;;  %v3054_v55 = vrot.slane %v3017_v37, 3  ;;  %5090 = vrot.lane.b32.xlu0 %v4933_v18, %s9261_s28  ;;  %v4165_v25 = vor.u32 %v4163_v3, %v4161_v56 }
 0x424   :  { %v2757_v1 = vpop.permute.xlu1 %2756  ;;  %v17545_v56 = vrot.slane %v13730_v51, 3  ;;  %v5333_v44 = vsel %vm5255_vm6, %v5204_v35, %v4691_v36  ;;  %v17547_v36 = vmax.f32 %v13707_v5, 0.0 }
 0x425   :  { %v2857_v54 = vsel %vm258_vm0, %v2854_v53, %v2856_v17  ;;  %v2859_v47 = vsel %vm258_vm0, %v2856_v17, %v2858_v23  ;;  %v2956_v45 = vsel %vm362_vm1, %v2953_v27, %v2955_v19  ;;  %v2958_v14 = vsel %vm362_vm1, %v2955_v19, %v2957_v49 }
 0x426   :  { %v2901_v37 = vadd.f32 %v2857_v54, %v2798_v59  ;;  %v2902_v26 = vadd.f32 %v2859_v47, %v2799_v63  ;;  %v3055_v53 = vsel %vm466_vm2, %v3052_v7, %v3054_v55  ;;  %v13780_v17 = vmul.f32 %v2757_v1, %v9489_v33  ;;  %v5075_v19 = vpop.permute.xlu0 %5074 }
 0x427   :  { %v13783_v34 = vmul.f32 %v2757_v1, %v9499_v38  ;;  %v3057_v59 = vsel %vm466_vm2, %v3054_v55, %v17545_v56  ;;  %v13789_v27 = vmul.f32 %v2757_v1, %v9501_v39  ;;  %v4167_v54 = vshll.u32 %v13769_v28, 16  ;;  %3189 = vperm.xlu0 %9092, %v17511_v13  }
 0x428   :  { %v3000_v31 = vadd.f32 %v2956_v45, %v2901_v37  ;;  %v3001_v3 = vadd.f32 %v2958_v14, %v2902_v26  ;;  %v4373_v63 = vpop.permute.xlu1 %4372  ;;  %v2860_v18 = vrot.slane %v13780_v17, 1  ;;  %v5758_v47 = vadd.f32 %v13645_v57, %v13690_v8  ;;  %v13797_v45 = vpop.f32.mrb[24].mxu0 }
 0x429   :  { %v2801_v26 = vmul.f32 %v2757_v1, %v9506_v42  ;;  %v3058_v14 = vrot.slane %v13789_v27, 3  ;;  %v13801_v56 = vpop.f32.mrb[25].mxu0  ;;  %v13805_v7 = vrot.slane %v4167_v54, 1 }
 0x42a   :  { %v3099_v37 = vadd.f32 %v3055_v53, %v3000_v31  ;;  %v3100_v55 = vadd.f32 %v3057_v59, %v3001_v3  ;;  %v2861_v17 = vsel %vm258_vm0, %v2858_v23, %v2860_v18  ;;  %v6212_v15 = vmax.f32 %v5758_v47, 0.0  ;;  %v13807_v8 = vpop.f32.mrb[26].mxu0 }
 0x42b   :  { %v2903_v1 = vadd.f32 %v2861_v17, %v13727_v40  ;;  %v17546_v31 = vrot.slane %v13783_v34, 2  ;;  %v13819_v59 = vpop.f32.mrb[27].mxu0  ;;  %v4170_v35 = vsel %vm3782_vm3, %v4165_v25, %v13805_v7  ;;  %v5750_v47 = vadd.f32 %v13645_v57, %v13701_v0  ;;  %3197 = vperm.xlu0 %9092, %v17513_v11  }
 0x42c   :  { %v13810_v13 = vadd.f32 %v13695_v16, %v3099_v37  ;;  %v13813_v53 = vadd.f32 %v13695_v16, %v3100_v55  ;;  %v4693_v23 = vpop.permute.xlu1 %4692  ;;  %v13825_v27 = vpack.c.bf16 %v6212_v15, %v17547_v36  ;;  %v5500_v37 = vsel %vm5384_vm7, %v5333_v44, %v5075_v19  ;;  %4388 = vrot.lane.b32.xlu1 %v4170_v35, %s9260_s26 }
 0x42d   :  { %v2960_v3 = vsel %vm362_vm1, %v2957_v49, %v17546_v31  ;;  %v17549_v49 = vrot.slane %v13730_v51, 3  ;;  %v5206_v25 = vsel %vm5126_vm5, %v13127_v30, %v4373_v63  ;;  %8940 = vmatprep.mubr.bf16.mxu0 %v5500_v37  ;;  %v16889_v15 = vrot.slane %v13769_v28, 1  ;;  %v2761_v5 = vpop.permute.xlu0 %2760  ;;  %v13854_v31 = vpop.f32.mrb[28].mxu0 }
 0x42e   :  { %17548 = vst [vmem:[#allocation56_spill] sm:$0xff] %v13825_v27  ;;  %v3002_v40 = vadd.f32 %v2960_v3, %v2903_v1  ;;  %v6210_v19 = vmax.f32 %v5750_v47, 0.0  ;;  %v13841_v11 = vmul.f32 %v2761_v5, %v9489_v33  ;;  %v17550_v17 = vrot.slane %v13658_v60, 1 }
 0x42f   :  { %v3059_v55 = vsel %vm466_vm2, %v17549_v49, %v3058_v14  ;;  %v13849_v30 = vmul.f32 %v2761_v5, %v9499_v38  ;;  %v13852_v63 = vmul.f32 %v2761_v5, %v9501_v39  ;;  %v17551_v3 = vmax.f32 %v13739_v52, 0.0  ;;  %v13865_v49 = vpop.f32.mrb[29].mxu0 }
 0x430   :  { %v3101_v51 = vadd.f32 %v3059_v55, %v3002_v40  ;;  %v4583_v1 = vsel %vm258_vm0, %v17550_v17, %v16889_v15  ;;  %v16892_v36 = vrot.slane %v13841_v11, 1  ;;  %v5771_v47 = vadd.f32 %v13645_v57, %v13746_v20  ;;  %v5077_v40 = vpop.permute.xlu1 %5076  ;;  %v13874_v44 = vpop.f32.mrb[30].mxu0 }
 0x431   :  { %v13858_v35 = vpack.c.bf16 %v6210_v19, %v17551_v3  ;;  %v5763_v37 = vadd.f32 %v13645_v57, %v13752_v50  ;;  %4708 = vrot.lane.b32.xlu1 %v4583_v1, %s9252_s0  ;;  %v2769_v3 = vpop.permute.xlu0 %2768  ;;  %v5335_v20 = vsel %vm5255_vm6, %v5206_v25, %v4693_v23  ;;  %v2802_v50 = vmul.f32 %v2761_v5, %v9506_v42  ;;  %v13881_v0 = vpop.f32.mrb[31].mxu0 }
 0x432   :  { %v13868_v55 = vadd.f32 %v13695_v16, %v3101_v51  ;;  %v2863_v51 = vsel %vm258_vm0, %v2860_v18, %v16892_v36  ;;  %v4935_v15 = vrot.slane %v4167_v54, 2  ;;  %v6215_v19 = vmax.f32 %v5771_v47, 0.0  ;;  %v13914_v1 = vpop.f32.mrb[32].mxu0 }
 0x433   :  { %17552 = vst [vmem:[#allocation66_spill] sm:$0xff] %v13858_v35  ;;  %v2904_v52 = vadd.f32 %v2863_v51, %v2801_v26  ;;  %v6213_v27 = vmax.f32 %v5763_v37, 0.0  ;;  %v17553_v17 = vrot.slane %v13849_v30, 2  ;;  %v17554_v35 = vrot.slane %v13783_v34, 2 }
 0x434   :  { %v17555_v25 = vshrl.u32 %v13769_v28, 16  ;;  %v5774_v18 = vadd.f32 %v13645_v57, %v13757_v61  ;;  %v13894_v54 = vmul.f32 %v2769_v3, %v9489_v33  ;;  %v17556_v26 = vrot.slane %v13852_v63, 3 }
 0x435   :  { %v2962_v23 = vsel %vm362_vm1, %v17554_v35, %v17553_v17  ;;  %v13900_v37 = vmul.f32 %v2769_v3, %v9499_v38  ;;  %v5766_v34 = vadd.f32 %v13645_v57, %v13773_v29  ;;  %v13907_v51 = vmul.f32 %v2769_v3, %v9501_v39 }
 0x436   :  { %v4934_v5 = vrot.slane %v17555_v25, 1  ;;  %v3003_v36 = vadd.f32 %v2962_v23, %v2904_v52  ;;  %v3061_v47 = vsel %vm466_vm2, %v3058_v14, %v17556_v26  ;;  %v6216_v17 = vmax.f32 %v5774_v18, 0.0 }
 0x437   :  { %v5503_v61 = vsel %vm5384_vm7, %v5335_v20, %v5077_v40  ;;  %v13911_v52 = vmul.f32 %v2769_v3, %v9506_v42  ;;  %v6214_v23 = vmax.f32 %v5766_v34, 0.0  ;;  %v4375_v40 = vpop.permute.xlu0 %4374  ;;  %v13923_v3 = vpop.f32.mrb[33].mxu0  ;;  %v3064_v34 = vrot.slane %v13907_v51, 3 }
 0x438   :  { %v13904_v35 = vor.u32 %v4935_v15, %v4934_v5  ;;  %v3102_v25 = vadd.f32 %v3061_v47, %v3003_v36  ;;  %8941 = vmatmul.mubr.bf16.gmra.mrb[76].mxu0 %v5503_v61  ;;  %v13919_v15 = vpack.c.bf16 %v6216_v17, %v6215_v19  ;;  %v13933_v19 = vpop.f32.mrb[34].mxu0  ;;  %v5787_v5 = vadd.f32 %v13645_v57, %v13797_v45 }
 0x439   :  { %v2765_v26 = vpop.permute.xlu1 %2764  ;;  %v13929_v18 = vpack.c.bf16 %v6214_v23, %v6213_v27  ;;  %v17559_v27 = vld [vmem:[#allocation43_spill] sm:$0xff]  ;;  %v17563_v58 = vrot.slane %v13894_v54, 1 }
 0x43a   :  { %v4937_v29 = vsel %vm4742_vm4, %v13750_v2, %v13904_v35  ;;  %17557 = vst [vmem:[#allocation54_spill] sm:$0xff] %v13919_v15  ;;  %v2823_v36 = vmul.f32 %v2765_v26, %v9489_v33  ;;  %v13926_v20 = vadd.f32 %v13695_v16, %v3102_v25  ;;  %v2922_v47 = vmul.f32 %v2765_v26, %v9499_v38  ;;  %v13939_v25 = vpop.f32.mrb[35].mxu0 }
 0x43b   :  { %5092 = vrot.lane.b32.xlu1 %v4937_v29, %s9261_s28  ;;  %17558 = vst [vmem:[#allocation35_spill] sm:$0xff] %v13929_v18  ;;  %v3021_v2 = vmul.f32 %v2765_v26, %v9501_v39  ;;  %v2803_v17 = vmul.f32 %v2765_v26, %v9506_v42  ;;  %v5208_v23 = vsel %vm5126_vm5, %v17559_v27, %v4375_v40  ;;  %v17560_v15 = vmax.f32 %v13760_v21, 0.0 }
 0x43c   :  { %v2864_v61 = vrot.slane %v2823_v36, 1  ;;  %v2963_v14 = vrot.slane %v2922_v47, 2  ;;  %v17561_v18 = vmax.f32 %v13810_v13, 0.0  ;;  %v17562_v36 = vrot.slane %v13841_v11, 1 }
 0x43d   :  { %v3062_v29 = vrot.slane %v3021_v2, 3  ;;  %v2773_v51 = vpop.permute.xlu1 %2772  ;;  %v5779_v40 = vadd.f32 %v13645_v57, %v13801_v56  ;;  %v6219_v2 = vmax.f32 %v5787_v5, 0.0  ;;  %v17565_v11 = vrot.slane %v13900_v37, 2 }
 0x43e   :  { %v13947_v48 = vpack.c.bf16 %v17561_v18, %v17560_v15  ;;  %v2865_v45 = vsel %vm258_vm0, %v17562_v36, %v2864_v61  ;;  %v2867_v47 = vsel %vm258_vm0, %v2864_v61, %v17563_v58  ;;  %v17564_v15 = vrot.slane %v13849_v30, 2 }
 0x43f   :  { %3193 = vperm.xlu1 %9093, %v17393_v22   ;;  %v2905_v21 = vadd.f32 %v2865_v45, %v2802_v50  ;;  %v2906_v13 = vadd.f32 %v2867_v47, %v2803_v17  ;;  %v2966_v27 = vsel %vm362_vm1, %v2963_v14, %v17565_v11  ;;  %v17566_v36 = vrot.slane %v13852_v63, 3  ;;  %v4695_v22 = vpop.permute.xlu0 %4694 }
 0x440   :  { %v2964_v18 = vsel %vm362_vm1, %v17564_v15, %v2963_v14  ;;  %v3065_v61 = vsel %vm466_vm2, %v3062_v29, %v3064_v34  ;;  %v4175_v56 = vshll.u32 %v13947_v48, 16  ;;  %v17567_v30 = vshrl.u32 %v13769_v28, 16  ;;  %v13975_v14 = vpop.f32.mrb[36].mxu0 }
 0x441   :  { %v3063_v58 = vsel %vm466_vm2, %v17566_v36, %v3062_v29  ;;  %v3004_v50 = vadd.f32 %v2964_v18, %v2905_v21  ;;  %v3005_v17 = vadd.f32 %v2966_v27, %v2906_v13  ;;  %v5790_v5 = vadd.f32 %v13645_v57, %v13807_v8  ;;  %v4377_v47 = vpop.permute.xlu1 %4376  ;;  %v13986_v13 = vpop.f32.mrb[37].mxu0 }
 0x442   :  { %v4173_v45 = vor.u32 %v17567_v30, %v13805_v7  ;;  %v4177_v63 = vrot.slane %v4175_v56, 1  ;;  %v13978_v15 = vmul.f32 %v2773_v51, %v9489_v33  ;;  %v13981_v29 = vmul.f32 %v2773_v51, %v9499_v38  ;;  %v13989_v27 = vpop.f32.mrb[38].mxu0 }
 0x443   :  { %v13984_v21 = vmul.f32 %v2773_v51, %v9501_v39  ;;  %v3103_v18 = vadd.f32 %v3063_v58, %v3004_v50  ;;  %v3104_v7 = vadd.f32 %v3065_v61, %v3005_v17  ;;  %v6217_v11 = vmax.f32 %v5779_v40, 0.0  ;;  %3201 = vperm.xlu1 %9093, %v17526_v62   ;;  %v13995_v43 = vpop.f32.mrb[39].mxu0 }
 0x444   :  { %v6220_v8 = vmax.f32 %v5790_v5, 0.0  ;;  %v4178_v36 = vsel %vm3782_vm3, %v4173_v45, %v4177_v63  ;;  %v2868_v30 = vrot.slane %v13978_v15, 1  ;;  %v16900_v26 = vrot.slane %v13981_v29, 2 }
 0x445   :  { %v16901_v60 = vrot.slane %v13984_v21, 3  ;;  %v13998_v32 = vadd.f32 %v13695_v16, %v3103_v18  ;;  %4390 = vrot.lane.b32.xlu0 %v4178_v36, %s9260_s26  ;;  %v14004_v62 = vmul.f32 %v2773_v51, %v9506_v42  ;;  %v5782_v58 = vadd.f32 %v13645_v57, %v13819_v59  ;;  %v4697_v61 = vpop.permute.xlu1 %4696  ;;  %v5079_v18 = vpop.permute.xlu0 %5078 }
 0x446   :  { %v14001_v40 = vpack.c.bf16 %v6220_v8, %v6219_v2  ;;  %v14009_v50 = vadd.f32 %v13695_v16, %v3104_v7  ;;  %v17569_v17 = vrot.slane %v13894_v54, 1  ;;  %v5337_v5 = vsel %vm5255_vm6, %v5208_v23, %v4695_v22  ;;  %v14044_v36 = vpop.f32.mrb[40].mxu0 }
 0x447   :  { %v4584_v2 = vrot.slane %v13947_v48, 1  ;;  %v17570_v59 = vrot.slane %v13900_v37, 2  ;;  %v3067_v8 = vsel %vm466_vm2, %v3064_v34, %v16901_v60  ;;  %v6218_v54 = vmax.f32 %v5782_v58, 0.0 }
 0x448   :  { %17568 = vst [vmem:[#allocation86_spill] sm:$0xff] %v14001_v40  ;;  %v2869_v45 = vsel %vm258_vm0, %v17569_v17, %v2868_v30  ;;  %v17571_v23 = vrot.slane %v13769_v28, 1  ;;  %v17572_v17 = vmax.f32 %v13813_v53, 0.0  ;;  %v4179_v37 = vshrl.u32 %v13947_v48, 16 }
 0x449   :  { %v2907_v51 = vadd.f32 %v2869_v45, %v13911_v52  ;;  %v2968_v7 = vsel %vm362_vm1, %v17570_v59, %v16900_v26  ;;  %v17573_v52 = vmax.f32 %v13868_v55, 0.0  ;;  %v14038_v26 = vpack.c.bf16 %v6218_v54, %v6217_v11  ;;  %v14050_v11 = vpop.f32.mrb[41].mxu0 }
 0x44a   :  { %v4585_v22 = vsel %vm258_vm0, %v17571_v23, %v4584_v2  ;;  %v5803_v34 = vadd.f32 %v13645_v57, %v13854_v31  ;;  %v5506_v58 = vsel %vm5384_vm7, %v5337_v5, %v5079_v18  ;;  %v5795_v23 = vadd.f32 %v13645_v57, %v13865_v49  ;;  %v5081_v18 = vpop.permute.xlu1 %5080 }
 0x44b   :  { %v14035_v45 = vpack.c.bf16 %v17573_v52, %v17572_v17  ;;  %v3006_v59 = vadd.f32 %v2968_v7, %v2907_v51  ;;  %17574 = vst [vmem:[#allocation59_spill] sm:$0xff] %v14038_v26  ;;  %4710 = vrot.lane.b32.xlu0 %v4585_v22, %s9252_s0  ;;  %8944 = vmatprep.mubr.bf16.mxu0 %v5506_v58  ;;  %v4938_v51 = vrot.slane %v4179_v37, 1  ;;  %v4939_v31 = vrot.slane %v4175_v56, 2  ;;  %v14055_v22 = vpop.f32.mrb[42].mxu0 }
 0x44c   :  { %v5210_v54 = vsel %vm5126_vm5, %v13280_v46, %v4377_v47  ;;  %v4181_v17 = vor.u32 %v4179_v37, %v4177_v63  ;;  %v6223_v58 = vmax.f32 %v5803_v34, 0.0  ;;  %v5806_v49 = vadd.f32 %v13645_v57, %v13874_v44  ;;  %v14061_v53 = vpop.f32.mrb[43].mxu0  ;;  %v2777_v47 = vpop.permute.xlu0 %2776 }
 0x44d   :  { %v4183_v55 = vshll.u32 %v14035_v45, 16  ;;  %v3105_v7 = vadd.f32 %v3067_v8, %v3006_v59  ;;  %v16902_v5 = vrot.slane %v14035_v45, 1  ;;  %v6221_v59 = vmax.f32 %v5795_v23, 0.0 }
 0x44e   :  { %v4940_v46 = vor.u32 %v4939_v31, %v4938_v51  ;;  %v5798_v56 = vadd.f32 %v13645_v57, %v13881_v0  ;;  %v6224_v37 = vmax.f32 %v5806_v49, 0.0  ;;  %v16903_v34 = vshrl.u32 %v14035_v45, 16 }
 0x44f   :  { %v14057_v52 = vrot.slane %v4183_v55, 1  ;;  %v14064_v8 = vadd.f32 %v13695_v16, %v3105_v7  ;;  %v4943_v60 = vrot.slane %v4183_v55, 2  ;;  %v4587_v23 = vsel %vm258_vm0, %v4584_v2, %v16902_v5 }
 0x450   :  { %v4941_v44 = vsel %vm4742_vm4, %v13904_v35, %v4940_v46  ;;  %v5339_v51 = vsel %vm5255_vm6, %v5210_v54, %v4697_v61  ;;  %v6222_v0 = vmax.f32 %v5798_v56, 0.0  ;;  %v14079_v7 = vpack.c.bf16 %v6224_v37, %v6223_v58  ;;  %v2781_v54 = vpop.permute.xlu1 %2780  ;;  %v14093_v58 = vpop.f32.mrb[44].mxu0 }
 0x451   :  { %v4186_v63 = vsel %vm3782_vm3, %v4181_v17, %v14057_v52  ;;  %5094 = vrot.lane.b32.xlu0 %v4941_v44, %s9261_s28  ;;  %v4942_v31 = vrot.slane %v16903_v34, 1  ;;  %v2826_v55 = vmul.f32 %v2777_v47, %v9489_v33  ;;  %v2925_v17 = vmul.f32 %v2777_v47, %v9499_v38  ;;  %v2785_v5 = vpop.permute.xlu0 %2784 }
 0x452   :  { %4392 = vrot.lane.b32.xlu1 %v4186_v63, %s9260_s26  ;;  %17575 = vst [vmem:[#allocation61_spill] sm:$0xff] %v14079_v7  ;;  %v14085_v49 = vpack.c.bf16 %v6222_v0, %v6221_v59  ;;  %v14088_v35 = vmul.f32 %v2777_v47, %v9501_v39  ;;  %v5819_v61 = vadd.f32 %v13645_v57, %v13914_v1  ;;  %v14098_v59 = vpop.f32.mrb[45].mxu0 }
 0x453   :  { %v5509_v2 = vsel %vm5384_vm7, %v5339_v51, %v5081_v18  ;;  %v14096_v63 = vor.u32 %v4943_v60, %v4942_v31  ;;  %v2870_v37 = vrot.slane %v2826_v55, 1  ;;  %v2969_v44 = vrot.slane %v2925_v17, 2  ;;  %v14107_v60 = vpop.f32.mrb[46].mxu0 }
 0x454   :  { %17576 = vst [vmem:[#allocation36_spill] sm:$0xff] %v14085_v49  ;;  %8945 = vmatmul.mubr.bf16.gmra.mrb[80].mxu0 %v5509_v2  ;;  %v2806_v0 = vmul.f32 %v2777_v47, %v9506_v42  ;;  %v3068_v1 = vrot.slane %v14088_v35, 3  ;;  %v5811_v18 = vadd.f32 %v13645_v57, %v13923_v3  ;;  %v5822_v51 = vadd.f32 %v13645_v57, %v13933_v19  ;;  %v14116_v17 = vpop.f32.mrb[47].mxu0  ;;  %v2789_v7 = vpop.permute.xlu1 %2788 }
 0x455   :  { %3205 = vperm.xlu0 %9092, %v17390_v12   ;;  %v4945_v31 = vsel %vm4742_vm4, %v4940_v46, %v14096_v63  ;;  %v2871_v47 = vsel %vm258_vm0, %v2868_v30, %v2870_v37  ;;  %v2807_v55 = vmul.f32 %v2781_v54, %v9506_v42  ;;  %v17577_v19 = vrot.slane %v13981_v29, 2 }
 0x456   :  { %4712 = vrot.lane.b32.xlu1 %v4587_v23, %s9252_s0  ;;  %v6227_v23 = vmax.f32 %v5819_v61, 0.0  ;;  %v2908_v3 = vadd.f32 %v2871_v47, %v14004_v62  ;;  %v6228_v2 = vmax.f32 %v5822_v51, 0.0  ;;  %v2827_v12 = vmul.f32 %v2781_v54, %v9489_v33 }
 0x457   :  { %v2970_v35 = vsel %vm362_vm1, %v17577_v19, %v2969_v44  ;;  %v17578_v46 = vrot.slane %v13984_v21, 3  ;;  %v2926_v30 = vmul.f32 %v2781_v54, %v9499_v38  ;;  %v3025_v61 = vmul.f32 %v2781_v54, %v9501_v39 }
 0x458   :  { %v2828_v56 = vmul.f32 %v2785_v5, %v9489_v33  ;;  %v3007_v62 = vadd.f32 %v2970_v35, %v2908_v3  ;;  %v14130_v47 = vpack.c.bf16 %v6228_v2, %v6227_v23  ;;  %v2872_v29 = vrot.slane %v2827_v12, 1  ;;  %v14138_v23 = vpop.f32.mrb[48].mxu0 }
 0x459   :  { %v3069_v15 = vsel %vm466_vm2, %v17578_v46, %v3068_v1  ;;  %v2927_v51 = vmul.f32 %v2785_v5, %v9499_v38  ;;  %3213 = vperm.xlu0 %9092, %v17456_v9   ;;  %v2971_v19 = vrot.slane %v2926_v30, 2  ;;  %v3070_v21 = vrot.slane %v3025_v61, 3  ;;  %v14142_v12 = vpop.f32.mrb[49].mxu0 }
 0x45a   :  { %5096 = vrot.lane.b32.xlu1 %v4945_v31, %s9261_s28  ;;  %17579 = vst [vmem:[#allocation75_spill] sm:$0xff] %v14130_v47  ;;  %v2874_v34 = vrot.slane %v2828_v56, 1  ;;  %v3026_v46 = vmul.f32 %v2785_v5, %v9501_v39  ;;  %v3106_v49 = vadd.f32 %v3069_v15, %v3007_v62  ;;  %v2873_v54 = vsel %vm258_vm0, %v2870_v37, %v2872_v29  ;;  %v14149_v61 = vpop.f32.mrb[50].mxu0 }
 0x45b   :  { %v2973_v40 = vrot.slane %v2927_v51, 2  ;;  %v5814_v31 = vadd.f32 %v13645_v57, %v13939_v25  ;;  %v6225_v3 = vmax.f32 %v5811_v18, 0.0  ;;  %v2909_v35 = vadd.f32 %v2873_v54, %v2806_v0  ;;  %v4379_v25 = vpop.permute.xlu0 %4378 }
 0x45c   :  { %v2808_v2 = vmul.f32 %v2785_v5, %v9506_v42  ;;  %v2875_v9 = vsel %vm258_vm0, %v2872_v29, %v2874_v34  ;;  %v14145_v56 = vadd.f32 %v13695_v16, %v3106_v49  ;;  %v2972_v37 = vsel %vm362_vm1, %v2969_v44, %v2971_v19  ;;  %v14158_v49 = vpop.f32.mrb[51].mxu0 }
 0x45d   :  { %v2910_v15 = vadd.f32 %v2875_v9, %v2807_v55  ;;  %v3072_v30 = vrot.slane %v3026_v46, 3  ;;  %v3008_v18 = vadd.f32 %v2972_v37, %v2909_v35  ;;  %v2974_v0 = vsel %vm362_vm1, %v2971_v19, %v2973_v40 }
 0x45e   :  { %3209 = vperm.xlu1 %9093, %v17406_v4   ;;  %v6226_v5 = vmax.f32 %v5814_v31, 0.0  ;;  %v17580_v62 = vmax.f32 %v13926_v20, 0.0  ;;  %v17581_v29 = vmax.f32 %v13998_v32, 0.0  ;;  %v3071_v4 = vsel %vm466_vm2, %v3068_v1, %v3070_v21  ;;  %v4381_v31 = vpop.permute.xlu1 %4380 }
 0x45f   :  { %v3009_v44 = vadd.f32 %v2974_v0, %v2910_v15  ;;  %v3073_v55 = vsel %vm466_vm2, %v3070_v21, %v3072_v30  ;;  %v17582_v46 = vshrl.u32 %v14035_v45, 16  ;;  %v3107_v35 = vadd.f32 %v3071_v4, %v3008_v18 }
 0x460   :  { %v14156_v51 = vpack.c.bf16 %v17581_v29, %v17580_v62  ;;  %v14165_v19 = vpack.c.bf16 %v6226_v5, %v6225_v3  ;;  %v14169_v32 = vmul.f32 %v2789_v7, %v9489_v33  ;;  %v14174_v1 = vmul.f32 %v2789_v7, %v9499_v38  ;;  %v4699_v29 = vpop.permute.xlu0 %4698 }
 0x461   :  { %v4189_v54 = vor.u32 %v17582_v46, %v14057_v52  ;;  %v3108_v37 = vadd.f32 %v3073_v55, %v3009_v44  ;;  %v14177_v21 = vmul.f32 %v2789_v7, %v9501_v39  ;;  %v14180_v52 = vadd.f32 %v13695_v16, %v3107_v35 }
 0x462   :  { %17583 = vst [vmem:[#allocation47_spill] sm:$0xff] %v14165_v19  ;;  %v4191_v20 = vshll.u32 %v14156_v51, 16  ;;  %3217 = vperm.xlu1 %9093, %v17462_v10   ;;  %v16909_v15 = vrot.slane %v14169_v32, 1  ;;  %v5835_v18 = vadd.f32 %v13645_v57, %v13975_v14  ;;  %v14186_v0 = vmul.f32 %v2789_v7, %v9506_v42 }
 0x463   :  { %v16907_v10 = vrot.slane %v14174_v1, 2  ;;  %v16908_v5 = vrot.slane %v14177_v21, 3  ;;  %v5827_v62 = vadd.f32 %v13645_v57, %v13986_v13  ;;  %v14193_v4 = vadd.f32 %v13695_v16, %v3108_v37 }
 0x464   :  { %v4193_v3 = vrot.slane %v4191_v20, 1  ;;  %v2877_v14 = vsel %vm258_vm0, %v2874_v34, %v16909_v15  ;;  %v5212_v7 = vsel %vm5126_vm5, %v13297_v6, %v4379_v25  ;;  %v3139_v55 = vmax.f32 %v14180_v52, 0.0 }
 0x465   :  { %v2911_v46 = vadd.f32 %v2877_v14, %v2808_v2  ;;  %v2976_v13 = vsel %vm362_vm1, %v2973_v40, %v16907_v10  ;;  %v6231_v35 = vmax.f32 %v5835_v18, 0.0  ;;  %v4588_v37 = vrot.slane %v14156_v51, 1  ;;  %v4701_v2 = vpop.permute.xlu1 %4700  ;;  %v17586_v18 = vld [vmem:[#allocation73_spill] sm:$0xff] }
 0x466   :  { %v4194_v44 = vsel %vm3782_vm3, %v4189_v54, %v4193_v3  ;;  %v3075_v54 = vsel %vm466_vm2, %v3072_v30, %v16908_v5  ;;  %v17584_v34 = vmax.f32 %v14009_v50, 0.0  ;;  %v17585_v6 = vmax.f32 %v14064_v8, 0.0 }
 0x467   :  { %4394 = vrot.lane.b32.xlu0 %v4194_v44, %s9260_s26  ;;  %v4195_v52 = vshrl.u32 %v14156_v51, 16  ;;  %v3010_v44 = vadd.f32 %v2976_v13, %v2911_v46  ;;  %v6229_v14 = vmax.f32 %v5827_v62, 0.0  ;;  %v5838_v40 = vadd.f32 %v13645_v57, %v13989_v27  ;;  %v5083_v13 = vpop.permute.xlu0 %5082 }
 0x468   :  { %v14214_v25 = vpack.c.bf16 %v17585_v6, %v17584_v34  ;;  %v5214_v10 = vsel %vm5126_vm5, %v17586_v18, %v4381_v31  ;;  %v17587_v30 = vrot.slane %v14035_v45, 1  ;;  %v5341_v8 = vsel %vm5255_vm6, %v5212_v7, %v4699_v29 }
 0x469   :  { %v5830_v34 = vadd.f32 %v13645_v57, %v13995_v43  ;;  %v3109_v6 = vadd.f32 %v3075_v54, %v3010_v44  ;;  %v6232_v62 = vmax.f32 %v5838_v40, 0.0  ;;  %v4946_v46 = vrot.slane %v4195_v52, 1 }
 0x46a   :  { %v4589_v5 = vsel %vm258_vm0, %v17587_v30, %v4588_v37  ;;  %v4199_v50 = vshll.u32 %v14214_v25, 16  ;;  %v4947_v27 = vrot.slane %v4191_v20, 2  ;;  %v4197_v15 = vor.u32 %v4195_v52, %v4193_v3  ;;  %v5085_v3 = vpop.permute.xlu1 %5084 }
 0x46b   :  { %4714 = vrot.lane.b32.xlu0 %v4589_v5, %s9252_s0  ;;  %v6230_v18 = vmax.f32 %v5830_v34, 0.0  ;;  %v4590_v9 = vrot.slane %v14214_v25, 1  ;;  %v14230_v30 = vpack.c.bf16 %v6232_v62, %v6231_v35  ;;  %v5343_v29 = vsel %vm5255_vm6, %v5214_v10, %v4701_v2  ;;  %v14249_v10 = vpop.f32.mrb[52].mxu0 }
 0x46c   :  { %v4201_v31 = vrot.slane %v4199_v50, 1  ;;  %v4948_v47 = vor.u32 %v4947_v27, %v4946_v46  ;;  %v5851_v43 = vadd.f32 %v13645_v57, %v14044_v36  ;;  %v3125_v7 = vadd.f32 %v13695_v16, %v3109_v6 }
 0x46d   :  { %v14237_v54 = vpack.c.bf16 %v6230_v18, %v6229_v14  ;;  %v5512_v20 = vsel %vm5384_vm7, %v5341_v8, %v5083_v13  ;;  %v3140_v52 = vmax.f32 %v14193_v4, 0.0  ;;  %v4591_v36 = vsel %vm258_vm0, %v4588_v37, %v4590_v9  ;;  %v14257_v14 = vpop.f32.mrb[53].mxu0 }
 0x46e   :  { %v4202_v5 = vsel %vm3782_vm3, %v4197_v15, %v4201_v31  ;;  %v4949_v35 = vsel %vm4742_vm4, %v14096_v63, %v4948_v47  ;;  %8948 = vmatprep.mubr.bf16.mxu0 %v5512_v20  ;;  %v5843_v15 = vadd.f32 %v13645_v57, %v14050_v11  ;;  %v4203_v2 = vshrl.u32 %v14214_v25, 16  ;;  %v14262_v34 = vpop.f32.mrb[54].mxu0 }
 0x46f   :  { %17588 = vst [vmem:[#allocation33_spill] sm:$0xff] %v14237_v54  ;;  %4396 = vrot.lane.b32.xlu1 %v4202_v5, %s9260_s26  ;;  %5098 = vrot.lane.b32.xlu0 %v4949_v35, %s9261_s28  ;;  %v4951_v4 = vrot.slane %v4199_v50, 2  ;;  %v5854_v44 = vadd.f32 %v13645_v57, %v14055_v22  ;;  %v5846_v63 = vadd.f32 %v13645_v57, %v14061_v53  ;;  %v6235_v37 = vmax.f32 %v5851_v43, 0.0  ;;  %v2793_v53 = vpop.permute.xlu0 %2792  ;;  %v14268_v27 = vpop.f32.mrb[55].mxu0 }
 0x470   :  { %v6233_v40 = vmax.f32 %v5843_v15, 0.0  ;;  %v5515_v8 = vsel %vm5384_vm7, %v5343_v29, %v5085_v3  ;;  %v5867_v11 = vadd.f32 %v13645_v57, %v14093_v58  ;;  %v4950_v6 = vrot.slane %v4203_v2, 1  ;;  %v2813_v43 = vpop.permute.xlu1 %2812 }
 0x471   :  { %v6236_v62 = vmax.f32 %v5854_v44, 0.0  ;;  %v6234_v50 = vmax.f32 %v5846_v63, 0.0  ;;  %8949 = vmatmul.mubr.bf16.gmra.mrb[84].mxu0 %v5515_v8  ;;  %v17589_v22 = vmax.f32 %v14145_v56, 0.0  ;;  %v3141_v13 = vmax.f32 %v3125_v7, 0.0  ;;  %v14293_v63 = vpop.f32.mrb[56].mxu0 }
 0x472   :  { %v6239_v18 = vmax.f32 %v5867_v11, 0.0  ;;  %v5859_v58 = vadd.f32 %v13645_v57, %v14098_v59  ;;  %v5870_v29 = vadd.f32 %v13645_v57, %v14107_v60  ;;  %v14276_v5 = vor.u32 %v4951_v4, %v4950_v6 }
 0x473   :  { %v14266_v46 = vpack.c.bf16 %v3139_v55, %v17589_v22  ;;  %4716 = vrot.lane.b32.xlu1 %v4591_v36, %s9252_s0  ;;  %3221 = vperm.xlu0 %9092, %v17475_v24   ;;  %v14278_v56 = vpack.c.bf16 %v6236_v62, %v6235_v37  ;;  %v14280_v55 = vpack.c.bf16 %v6234_v50, %v6233_v40  ;;  %v17591_v6 = vrot.slane %v14169_v32, 1 }
 0x474   :  { %v4205_v20 = vor.u32 %v4203_v2, %v4201_v31  ;;  %v6240_v3 = vmax.f32 %v5870_v29, 0.0  ;;  %v5862_v35 = vadd.f32 %v13645_v57, %v14116_v17  ;;  %v2830_v59 = vmul.f32 %v2793_v53, %v9489_v33  ;;  %v14307_v22 = vpop.permute.xlu1 %3165 }
 0x475   :  { %v4207_v7 = vshll.u32 %v14266_v46, 16  ;;  %v4953_v60 = vsel %vm4742_vm4, %v4948_v47, %v14276_v5  ;;  %v2929_v24 = vmul.f32 %v2793_v53, %v9499_v38  ;;  %v3028_v15 = vmul.f32 %v2793_v53, %v9501_v39  ;;  %v14298_v47 = vpop.f32.mrb[57].mxu0 }
 0x476   :  { %v6237_v4 = vmax.f32 %v5859_v58, 0.0  ;;  %v14291_v44 = vpack.c.bf16 %v6240_v3, %v6239_v18  ;;  %v6238_v31 = vmax.f32 %v5862_v35, 0.0  ;;  %v2878_v2 = vrot.slane %v2830_v59, 1  ;;  %v14309_v18 = vpop.f32.mrb[58].mxu0 }
 0x477   :  { %v4209_v36 = vrot.slane %v4207_v7, 1  ;;  %5100 = vrot.lane.b32.xlu1 %v4953_v60, %s9261_s28  ;;  %v2977_v17 = vrot.slane %v2929_v24, 2  ;;  %v3076_v37 = vrot.slane %v3028_v15, 3  ;;  %v14296_v40 = vpack.c.bf16 %v3141_v13, %v3140_v52  ;;  %v14317_v32 = vpop.f32.mrb[59].mxu0 }
 0x478   :  { %v14300_v8 = vpack.c.bf16 %v6238_v31, %v6237_v4  ;;  %v2810_v11 = vmul.f32 %v2793_v53, %v9506_v42  ;;  %v2879_v62 = vsel %vm258_vm0, %v17591_v6, %v2878_v2  ;;  %v4592_v50 = vrot.slane %v14266_v46, 1  ;;  %v14333_v4 = vld [vmem:[%s16623_s4] ss:$0 sm:$0xff] }
 0x479   :  { %v4210_v57 = vsel %vm3782_vm3, %v4205_v20, %v4209_v36  ;;  %17590 = vst [vmem:[#allocation62_spill] sm:$0xff] %v14296_v40  ;;  %v2912_v58 = vadd.f32 %v2879_v62, %v14186_v0  ;;  %v17592_v52 = vrot.slane %v14174_v1, 2  ;;  %v4211_v29 = vshrl.u32 %v14266_v46, 16  ;;  %v3162_v20 = vpop.permute.xlu0 %3161 }
 0x47a   :  { %v16911_v53 = vshll.u32 %v14296_v40, 16  ;;  %v17593_v3 = vrot.slane %v14177_v21, 3  ;;  %v2831_v59 = vmul.f32 %v2813_v43, %v9489_v33  ;;  %v2930_v0 = vmul.f32 %v2813_v43, %v9499_v38 }
 0x47b   :  { %v2978_v13 = vsel %vm362_vm1, %v17592_v52, %v2977_v17  ;;  %4398 = vrot.lane.b32.xlu1 %v4210_v57, %s9260_s26  ;;  %v3029_v1 = vmul.f32 %v2813_v43, %v9501_v39  ;;  %v4213_v24 = vor.u32 %v4211_v29, %v4209_v36  ;;  %v5883_v21 = vadd.f32 %v14333_v4, %v14138_v23 }
 0x47c   :  { %v3077_v35 = vsel %vm466_vm2, %v17593_v3, %v3076_v37  ;;  %v3011_v60 = vadd.f32 %v2978_v13, %v2912_v58  ;;  %v14328_v15 = vrot.slane %v16911_v53, 1  ;;  %v2880_v31 = vrot.slane %v2831_v59, 1  ;;  %v14349_v59 = vpop.permute.xlu1 %3169 }
 0x47d   :  { %v2979_v57 = vrot.slane %v2930_v0, 2  ;;  %v3078_v6 = vrot.slane %v3029_v1, 3  ;;  %v3245_v62 = vmul.f32 %v3162_v20, %v9489_v33  ;;  %v4593_v36 = vsel %vm258_vm0, %v4590_v9, %v4592_v50 }
 0x47e   :  { %v3110_v43 = vadd.f32 %v3077_v35, %v3011_v60  ;;  %v4218_v58 = vsel %vm3782_vm3, %v4213_v24, %v14328_v15  ;;  %v3344_v52 = vmul.f32 %v3162_v20, %v9499_v38  ;;  %v2881_v23 = vsel %vm258_vm0, %v2878_v2, %v2880_v31  ;;  %v4383_v31 = vpop.permute.xlu0 %4382 }
 0x47f   :  { %4718 = vrot.lane.b32.xlu1 %v4593_v36, %s9252_s0  ;;  %4400 = vrot.lane.b32.xlu0 %v4218_v58, %s9260_s26  ;;  %v2980_v13 = vsel %vm362_vm1, %v2977_v17, %v2979_v57  ;;  %v6243_v3 = vmax.f32 %v5883_v21, 0.0  ;;  %v3224_v35 = vmul.f32 %v3162_v20, %v9506_v42  ;;  %v2913_v0 = vadd.f32 %v2881_v23, %v2810_v11 }
 0x480   :  { %v3126_v9 = vadd.f32 %v13695_v16, %v3110_v43  ;;  %v3079_v1 = vsel %vm466_vm2, %v3076_v37, %v3078_v6  ;;  %v3279_v60 = vrot.slane %v3245_v62, 1  ;;  %v5875_v24 = vadd.f32 %v14333_v4, %v14142_v12  ;;  %v14367_v62 = vpop.f32.mrb[60].mxu0 }
 0x481   :  { %v4954_v36 = vrot.slane %v4211_v29, 1  ;;  %v4955_v58 = vrot.slane %v4207_v7, 2  ;;  %v16912_v2 = vrot.slane %v14296_v40, 1  ;;  %v3012_v17 = vadd.f32 %v2980_v13, %v2913_v0  ;;  %v14375_v23 = vpop.f32.mrb[61].mxu0 }
 0x482   :  { %v3378_v21 = vrot.slane %v3344_v52, 2  ;;  %v3443_v57 = vmul.f32 %v3162_v20, %v9501_v39  ;;  %v5886_v53 = vadd.f32 %v14333_v4, %v14149_v61  ;;  %v3142_v16 = vmax.f32 %v3126_v9, 0.0  ;;  %v4385_v52 = vpop.permute.xlu1 %4384 }
 0x483   :  { %v4956_v11 = vor.u32 %v4955_v58, %v4954_v36  ;;  %v4595_v37 = vsel %vm258_vm0, %v4592_v50, %v16912_v2  ;;  %v5878_v12 = vadd.f32 %v14333_v4, %v14158_v49  ;;  %v3111_v7 = vadd.f32 %v3079_v1, %v3012_v17  ;;  %v14386_v1 = vpop.f32.mrb[62].mxu0 }
 0x484   :  { %v6241_v29 = vmax.f32 %v5875_v24, 0.0  ;;  %4720 = vrot.lane.b32.xlu0 %v4595_v37, %s9252_s0  ;;  %v6244_v6 = vmax.f32 %v5886_v53, 0.0  ;;  %v3246_v20 = vmul.f32 %v14307_v22, %v9489_v33  ;;  %v3345_v50 = vmul.f32 %v14307_v22, %v9499_v38  ;;  %v14380_v53 = vld [vmem:[%s16621_s2] ss:$0 sm:$0xff]  ;;  %v4703_v37 = vpop.permute.xlu0 %4702 }
 0x485   :  { %v4957_v61 = vsel %vm4742_vm4, %v14276_v5, %v4956_v11  ;;  %v6242_v43 = vmax.f32 %v5878_v12, 0.0  ;;  %v3444_v49 = vmul.f32 %v14307_v22, %v9501_v39  ;;  %v3127_v13 = vadd.f32 %v14380_v53, %v3111_v7  ;;  %v14391_v12 = vpop.f32.mrb[63].mxu0 }
 0x486   :  { %v3477_v9 = vrot.slane %v3443_v57, 3  ;;  %5102 = vrot.lane.b32.xlu1 %v4957_v61, %s9261_s28  ;;  %v14384_v5 = vpack.c.bf16 %v6244_v6, %v6243_v3  ;;  %v3280_v0 = vrot.slane %v3246_v20, 1  ;;  %v3379_v36 = vrot.slane %v3345_v50, 2 }
 0x487   :  { %v14388_v24 = vpack.c.bf16 %v6242_v43, %v6241_v29  ;;  %v3478_v58 = vrot.slane %v3444_v49, 3  ;;  %v4219_v17 = vshrl.u32 %v14296_v40, 16  ;;  %v3143_v2 = vmax.f32 %v3127_v13, 0.0 }
 0x488   :  { %v3281_v7 = vsel %vm258_vm0, %v3279_v60, %v3280_v0  ;;  %v17594_v57 = vshll.u32 %v14296_v40, 16  ;;  %v5899_v3 = vadd.f32 %v14333_v4, %v14249_v10  ;;  %v3225_v29 = vmul.f32 %v14307_v22, %v9506_v42 }
 0x489   :  { %v3328_v6 = vadd.f32 %v3281_v7, %v3224_v35  ;;  %v5216_v20 = vsel %vm5126_vm5, %v13423_v41, %v4383_v31  ;;  %v4958_v43 = vrot.slane %v4219_v17, 1  ;;  %v14402_v50 = vpack.c.bf16 %v3143_v2, %v3142_v16  ;;  %v4705_v35 = vpop.permute.xlu1 %4704 }
 0x48a   :  { %v4959_v61 = vrot.slane %v17594_v57, 2  ;;  %v3380_v49 = vsel %vm362_vm1, %v3378_v21, %v3379_v36  ;;  %v3479_v60 = vsel %vm466_vm2, %v3477_v9, %v3478_v58  ;;  %v14408_v13 = vmul.f32 %v14349_v59, %v9489_v33 }
 0x48b   :  { %17595 = vst [vmem:[#allocation68_spill] sm:$0xff] %v14402_v50  ;;  %v3427_v57 = vadd.f32 %v3380_v49, %v3328_v6  ;;  %v14414_v22 = vmul.f32 %v14349_v59, %v9499_v38  ;;  %v14418_v41 = vmul.f32 %v14349_v59, %v9501_v39  ;;  %v6247_v2 = vmax.f32 %v5899_v3, 0.0 }
 0x48c   :  { %v14410_v10 = vor.u32 %v4959_v61, %v4958_v43  ;;  %v3282_v31 = vrot.slane %v14408_v13, 1  ;;  %v5891_v21 = vadd.f32 %v14333_v4, %v14257_v14  ;;  %v5902_v16 = vadd.f32 %v14333_v4, %v14262_v34  ;;  %v5087_v43 = vpop.permute.xlu0 %5086 }
 0x48d   :  { %v3526_v9 = vadd.f32 %v3479_v60, %v3427_v57  ;;  %v3381_v61 = vrot.slane %v14414_v22, 2  ;;  %v3226_v3 = vmul.f32 %v14349_v59, %v9506_v42  ;;  %v5894_v34 = vadd.f32 %v14333_v4, %v14268_v27 }
 0x48e   :  { %v4961_v7 = vsel %vm4742_vm4, %v4956_v11, %v14410_v10  ;;  %v3283_v49 = vsel %vm258_vm0, %v3280_v0, %v3282_v31  ;;  %v6248_v14 = vmax.f32 %v5902_v16, 0.0  ;;  %v5345_v13 = vsel %vm5255_vm6, %v5216_v20, %v4703_v37  ;;  %v5089_v20 = vpop.permute.xlu1 %5088 }
 0x48f   :  { %5104 = vrot.lane.b32.xlu0 %v4961_v7, %s9261_s28  ;;  %v14436_v60 = vadd.f32 %v14380_v53, %v3526_v9  ;;  %v3329_v11 = vadd.f32 %v3283_v49, %v3225_v29  ;;  %v6245_v57 = vmax.f32 %v5891_v21, 0.0  ;;  %v3382_v7 = vsel %vm362_vm1, %v3379_v36, %v3381_v61  ;;  %v17597_v9 = vld [vmem:[#allocation27_spill] sm:$0xff] }
 0x490   :  { %v14442_v6 = vpack.c.bf16 %v6248_v14, %v6247_v2  ;;  %v6246_v59 = vmax.f32 %v5894_v34, 0.0  ;;  %v5518_v0 = vsel %vm5384_vm7, %v5345_v13, %v5087_v43  ;;  %v17596_v19 = vrot.slane %v14418_v41, 3 }
 0x491   :  { %v3428_v16 = vadd.f32 %v3382_v7, %v3329_v11  ;;  %v5218_v29 = vsel %vm5126_vm5, %v17597_v9, %v4385_v52  ;;  %8952 = vmatprep.mubr.bf16.mxu0 %v5518_v0  ;;  %v5915_v37 = vadd.f32 %v14333_v4, %v14293_v63  ;;  %v5907_v36 = vadd.f32 %v14333_v4, %v14298_v47 }
 0x492   :  { %v3481_v27 = vsel %vm466_vm2, %v3478_v58, %v17596_v19  ;;  %v14452_v21 = vpack.c.bf16 %v6246_v59, %v6245_v57  ;;  %v5918_v2 = vadd.f32 %v14333_v4, %v14309_v18  ;;  %v5910_v43 = vadd.f32 %v14333_v4, %v14317_v32  ;;  %v3174_v19 = vpop.permute.xlu0 %3173  ;;  %v3178_v7 = vpop.permute.xlu1 %3177 }
 0x493   :  { %v3527_v58 = vadd.f32 %v3481_v27, %v3428_v16  ;;  %v6251_v49 = vmax.f32 %v5915_v37, 0.0  ;;  %v5347_v52 = vsel %vm5255_vm6, %v5218_v29, %v4705_v35  ;;  %v4223_v14 = vshll.u32 %v14402_v50, 16 }
 0x494   :  { %v6249_v63 = vmax.f32 %v5907_v36, 0.0  ;;  %v6252_v34 = vmax.f32 %v5918_v2, 0.0  ;;  %v6250_v11 = vmax.f32 %v5910_v43, 0.0  ;;  %v5521_v13 = vsel %vm5384_vm7, %v5347_v52, %v5089_v20 }
 0x495   :  { %v14464_v47 = vadd.f32 %v14380_v53, %v3527_v58  ;;  %v4221_v18 = vor.u32 %v4219_v17, %v14328_v15  ;;  %v14467_v57 = vrot.slane %v4223_v14, 1  ;;  %8953 = vmatmul.mubr.bf16.gmra.mrb[88].mxu0 %v5521_v13  ;;  %v3248_v32 = vmul.f32 %v3174_v19, %v9489_v33 }
 0x496   :  { %v14470_v59 = vpack.c.bf16 %v6252_v34, %v6251_v49  ;;  %v14472_v35 = vpack.c.bf16 %v6250_v11, %v6249_v63  ;;  %v3347_v0 = vmul.f32 %v3174_v19, %v9499_v38  ;;  %v3446_v16 = vmul.f32 %v3174_v19, %v9501_v39  ;;  %v3182_v2 = vpop.permute.xlu0 %3181 }
 0x497   :  { %v3558_v27 = vmax.f32 %v14436_v60, 0.0  ;;  %v4226_v9 = vsel %vm3782_vm3, %v4221_v18, %v14467_v57  ;;  %v3284_v15 = vrot.slane %v3248_v32, 1  ;;  %v16914_v17 = vrot.slane %v14402_v50, 1 }
 0x498   :  { %17598 = vst [vmem:[#allocation41_spill] sm:$0xff] %v14470_v59  ;;  %17599 = vst [vmem:[#allocation38_spill] sm:$0xff] %v14472_v35  ;;  %v3559_v29 = vmax.f32 %v14464_v47, 0.0  ;;  %4402 = vrot.lane.b32.xlu1 %v4226_v9, %s9260_s26  ;;  %v3227_v37 = vmul.f32 %v3174_v19, %v9506_v42  ;;  %v3383_v20 = vrot.slane %v3347_v0, 2  ;;  %v3249_v36 = vmul.f32 %v3178_v7, %v9489_v33  ;;  %v14497_v32 = vpop.f32.mrb[64].mxu0 }
 0x499   :  { %v3285_v43 = vsel %vm258_vm0, %v3282_v31, %v3284_v15  ;;  %v3482_v58 = vrot.slane %v3446_v16, 3  ;;  %v3348_v60 = vmul.f32 %v3178_v7, %v9499_v38  ;;  %v3447_v49 = vmul.f32 %v3178_v7, %v9501_v39  ;;  %v14503_v9 = vpop.f32.mrb[65].mxu0 }
 0x49a   :  { %v3330_v52 = vadd.f32 %v3285_v43, %v3226_v3  ;;  %v17600_v63 = vrot.slane %v14296_v40, 1  ;;  %v3228_v19 = vmul.f32 %v3178_v7, %v9506_v42  ;;  %v3286_v11 = vrot.slane %v3249_v36, 1 }
 0x49b   :  { %v3384_v13 = vsel %vm362_vm1, %v3381_v61, %v3383_v20  ;;  %v3385_v31 = vrot.slane %v3348_v60, 2  ;;  %v3484_v47 = vrot.slane %v3447_v49, 3  ;;  %v3250_v18 = vmul.f32 %v3182_v2, %v9489_v33  ;;  %v14509_v49 = vpop.permute.xlu1 %3185 }
 0x49c   :  { %v4597_v34 = vsel %vm258_vm0, %v17600_v63, %v16914_v17  ;;  %v3429_v3 = vadd.f32 %v3384_v13, %v3330_v52  ;;  %v3287_v0 = vsel %vm258_vm0, %v3284_v15, %v3286_v11  ;;  %v3349_v16 = vmul.f32 %v3182_v2, %v9499_v38  ;;  %v14511_v52 = vpop.f32.mrb[66].mxu0  ;;  %v14514_v17 = vpop.permute.xlu0 %4386 }
 0x49d   :  { %4722 = vrot.lane.b32.xlu1 %v4597_v34, %s9252_s0  ;;  %v3448_v7 = vmul.f32 %v3182_v2, %v9501_v39  ;;  %v17601_v22 = vrot.slane %v14418_v41, 3  ;;  %v3331_v36 = vadd.f32 %v3287_v0, %v3227_v37  ;;  %v3386_v43 = vsel %vm362_vm1, %v3383_v20, %v3385_v31  ;;  %v14516_v26 = vpop.f32.mrb[67].mxu0 }
 0x49e   :  { %v3288_v60 = vrot.slane %v3250_v18, 1  ;;  %v3387_v15 = vrot.slane %v3349_v16, 2  ;;  %v4227_v13 = vshrl.u32 %v14402_v50, 16  ;;  %v4963_v20 = vrot.slane %v4223_v14, 2 }
 0x49f   :  { %v3483_v61 = vsel %vm466_vm2, %v17601_v22, %v3482_v58  ;;  %v3486_v34 = vrot.slane %v3448_v7, 3  ;;  %v3430_v41 = vadd.f32 %v3386_v43, %v3331_v36  ;;  %v3229_v22 = vmul.f32 %v3182_v2, %v9506_v42 }
 0x4a0   :  { %v3528_v63 = vadd.f32 %v3483_v61, %v3429_v3  ;;  %v3289_v37 = vsel %vm258_vm0, %v3286_v11, %v3288_v60  ;;  %v3485_v0 = vsel %vm466_vm2, %v3482_v58, %v3484_v47  ;;  %v3388_v3 = vsel %vm362_vm1, %v3385_v31, %v3387_v15 }
 0x4a1   :  { %v3332_v59 = vadd.f32 %v3289_v37, %v3228_v19  ;;  %v3529_v16 = vadd.f32 %v3485_v0, %v3430_v41  ;;  %v4962_v7 = vrot.slane %v4227_v13, 1  ;;  %v14525_v61 = vmul.f32 %v14509_v49, %v9489_v33  ;;  %v4707_v0 = vpop.permute.xlu0 %4706 }
 0x4a2   :  { %v3544_v18 = vadd.f32 %v14380_v53, %v3528_v63  ;;  %v14529_v36 = vmul.f32 %v14509_v49, %v9499_v38  ;;  %v3487_v14 = vsel %vm466_vm2, %v3484_v47, %v3486_v34  ;;  %v14534_v11 = vmul.f32 %v14509_v49, %v9501_v39 }
 0x4a3   :  { %v3431_v2 = vadd.f32 %v3388_v3, %v3332_v59  ;;  %v14536_v58 = vpack.c.bf16 %v3559_v29, %v3558_v27  ;;  %v3545_v19 = vadd.f32 %v14380_v53, %v3529_v16  ;;  %v14539_v31 = vor.u32 %v4963_v20, %v4962_v7  ;;  %v4389_v16 = vpop.permute.xlu1 %4388  ;;  %v9102_v7 = vld [vmem:[#allocation9] sm:$0xff]  }
 0x4a4   :  { %v16919_v43 = vrot.slane %v14525_v61, 1  ;;  %v16918_v63 = vrot.slane %v14529_v36, 2  ;;  %v16917_v37 = vrot.slane %v14534_v11, 3  ;;  %v4229_v59 = vor.u32 %v4227_v13, %v14467_v57  ;;  %9008 = vmatpush1.bf16.msra.mxu1 %v9102_v7  ;;  %8188 = vmatpush1.bf16.msra.mxu0 %v9102_v7 }
 0x4a5   :  { %17602 = vst [vmem:[#allocation50_spill] sm:$0xff] %v14536_v58  ;;  %v3530_v41 = vadd.f32 %v3487_v14, %v3431_v2  ;;  %v4231_v47 = vshll.u32 %v14536_v58, 16  ;;  %v3561_v3 = vmax.f32 %v3545_v19, 0.0  ;;  %v4965_v27 = vsel %vm4742_vm4, %v14410_v10, %v14539_v31 }
 0x4a6   :  { %v3291_v29 = vsel %vm258_vm0, %v3288_v60, %v16919_v43  ;;  %v3390_v20 = vsel %vm362_vm1, %v3387_v15, %v16918_v63  ;;  %5106 = vrot.lane.b32.xlu1 %v4965_v27, %s9261_s28  ;;  %v3489_v2 = vsel %vm466_vm2, %v3486_v34, %v16917_v37  ;;  %v5931_v14 = vadd.f32 %v14333_v4, %v14367_v62  ;;  %v9103_v63 = vld [vmem:[#allocation9 + $0x8] sm:$0xff]  }
 0x4a7   :  { %v3546_v57 = vadd.f32 %v14380_v53, %v3530_v41  ;;  %v3333_v13 = vadd.f32 %v3291_v29, %v3229_v22  ;;  %v4233_v10 = vrot.slane %v4231_v47, 1  ;;  %v5923_v60 = vadd.f32 %v14333_v4, %v14375_v23 }
 0x4a8   :  { %v5934_v15 = vadd.f32 %v14333_v4, %v14386_v1  ;;  %v4598_v19 = vrot.slane %v14536_v58, 1  ;;  %v3560_v41 = vmax.f32 %v3544_v18, 0.0  ;;  %v5926_v34 = vadd.f32 %v14333_v4, %v14391_v12 }
 0x4a9   :  { %v3432_v22 = vadd.f32 %v3390_v20, %v3333_v13  ;;  %v4234_v27 = vsel %vm3782_vm3, %v4229_v59, %v4233_v10  ;;  %v17603_v29 = vmov 0   ;;  %v3562_v62 = vmax.f32 %v3546_v57, 0.0  ;;  %v5091_v59 = vpop.permute.xlu0 %5090  ;;  %v17606_v57 = vld [vmem:[#allocation52_spill] sm:$0xff] }
 0x4aa   :  { %8993 = vmatprep.subr.bf16.mxu1 %v17603_v29  ;;  %8189 = vmatprep.subr.bf16.mxu0 %v17603_v29  ;;  %v6255_v23 = vmax.f32 %v5931_v14, 0.0  ;;  %v6253_v1 = vmax.f32 %v5923_v60, 0.0  ;;  %v6256_v37 = vmax.f32 %v5934_v15, 0.0  ;;  %v6254_v7 = vmax.f32 %v5926_v34, 0.0  ;;  %v4709_v60 = vpop.permute.xlu1 %4708  ;;  %v17609_v34 = vld [vmem:[#allocation24_spill] sm:$0xff] }
 0x4ab   :  { %4404 = vrot.lane.b32.xlu0 %v4234_v27, %s9260_s26  ;;  %v3531_v43 = vadd.f32 %v3489_v2, %v3432_v22  ;;  %v4235_v18 = vshrl.u32 %v14536_v58, 16  ;;  %v4967_v20 = vrot.slane %v4231_v47, 2  ;;  %v17605_v12 = vrot.slane %v14402_v50, 1  ;;  %9009 = vmatpush1.bf16.msra.mxu1 %v9103_v63 }
 0x4ac   :  { %v14574_v13 = vpack.c.bf16 %v6256_v37, %v6255_v23  ;;  %v5220_v27 = vsel %vm5126_vm5, %v17606_v57, %v14514_v17  ;;  %v14582_v14 = vpack.c.bf16 %v3561_v3, %v3560_v41  ;;  %v14585_v15 = vpack.c.bf16 %v6254_v7, %v6253_v1  ;;  %8994 = vmatprep.subr.bf16.mxu1 %v17603_v29 }
 0x4ad   :  { %v4599_v40 = vsel %vm258_vm0, %v17605_v12, %v4598_v19  ;;  %v3547_v2 = vadd.f32 %v14380_v53, %v3531_v43  ;;  %v4966_v47 = vrot.slane %v4235_v18, 1  ;;  %v5349_v37 = vsel %vm5255_vm6, %v5220_v27, %v4707_v0  ;;  %8190 = vmatpush1.bf16.msra.mxu0 %v9103_v63  ;;  %v9104_v43 = vld [vmem:[#allocation9 + $0x10] sm:$0xff]   ;;  %v14600_v57 = vpop.permute.xlu0 %3189 }
 0x4ae   :  { %17604 = vst [vmem:[#allocation76_spill] sm:$0xff] %v14574_v13  ;;  %17607 = vst [vmem:[#allocation40_spill] sm:$0xff] %v14582_v14  ;;  %v4239_v22 = vshll.u32 %v14582_v14, 16  ;;  %v5222_v17 = vsel %vm5126_vm5, %v17609_v34, %v4389_v16  ;;  %v5524_v3 = vsel %vm5384_vm7, %v5349_v37, %v5091_v59  ;;  %v4600_v41 = vrot.slane %v14582_v14, 1  ;;  %8191 = vmatprep.subr.bf16.mxu0 %v17603_v29  ;;  %v9117_v13 = vld [vmem:[#allocation9 + $0x78] sm:$0xff]  }
 0x4af   :  { %17608 = vst [vmem:[#allocation60_spill] sm:$0xff] %v14585_v15  ;;  %4724 = vrot.lane.b32.xlu0 %v4599_v40, %s9252_s0  ;;  %v3563_v23 = vmax.f32 %v3547_v2, 0.0  ;;  %v4968_v1 = vor.u32 %v4967_v20, %v4966_v47  ;;  %v4237_v0 = vor.u32 %v4235_v18, %v4233_v10  ;;  %8956 = vmatprep.mubr.bf16.mxu0 %v5524_v3  ;;  %v4243_v63 = vshrl.u32 %v14582_v14, 16 }
 0x4b0   :  { %v4241_v7 = vrot.slane %v4239_v22, 1  ;;  %v5351_v40 = vsel %vm5255_vm6, %v5222_v17, %v4709_v60  ;;  %v4971_v12 = vrot.slane %v4239_v22, 2  ;;  %v5947_v16 = vadd.f32 %v14333_v4, %v14497_v32  ;;  %9010 = vmatpush1.bf16.msra.mxu1 %v9104_v43  ;;  %v5093_v60 = vpop.permute.xlu1 %5092 }
 0x4b1   :  { %v4969_v59 = vsel %vm4742_vm4, %v14539_v31, %v4968_v1  ;;  %v14604_v27 = vpack.c.bf16 %v3563_v23, %v3562_v62  ;;  %v4970_v20 = vrot.slane %v4243_v63, 1  ;;  %v5939_v10 = vadd.f32 %v14333_v4, %v14503_v9  ;;  %8995 = vmatprep.subr.bf16.mxu1 %v17603_v29  ;;  %8192 = vmatpush1.bf16.msra.mxu0 %v9104_v43  ;;  %v9105_v62 = vld [vmem:[#allocation9 + $0x18] sm:$0xff]  }
 0x4b2   :  { %v4242_v18 = vsel %vm3782_vm3, %v4237_v0, %v4241_v7  ;;  %v4601_v32 = vsel %vm258_vm0, %v4598_v19, %v4600_v41  ;;  %v5950_v31 = vadd.f32 %v14333_v4, %v14511_v52  ;;  %8193 = vmatprep.subr.bf16.mxu0 %v17603_v29  ;;  %v4245_v9 = vor.u32 %v4243_v63, %v4241_v7 }
 0x4b3   :  { %17610 = vst [vmem:[#allocation48_spill] sm:$0xff] %v14604_v27  ;;  %5108 = vrot.lane.b32.xlu0 %v4969_v59, %s9261_s28  ;;  %4406 = vrot.lane.b32.xlu1 %v4242_v18, %s9260_s26  ;;  %v4247_v2 = vshll.u32 %v14604_v27, 16  ;;  %v5527_v47 = vsel %vm5384_vm7, %v5351_v40, %v5093_v60  ;;  %v6259_v37 = vmax.f32 %v5947_v16, 0.0  ;;  %v4972_v22 = vor.u32 %v4971_v12, %v4970_v20  ;;  %v3198_v12 = vpop.permute.xlu0 %3197 }
 0x4b4   :  { %8957 = vmatmul.mubr.bf16.gmra.mrb[92].mxu0 %v5527_v47  ;;  %v4251_v34 = vshrl.u32 %v14604_v27, 16  ;;  %v6260_v19 = vmax.f32 %v5950_v31, 0.0  ;;  %v5942_v17 = vadd.f32 %v14333_v4, %v14516_v26  ;;  %9011 = vmatpush1.bf16.msra.mxu1 %v9105_v62  ;;  %v16922_v3 = vrot.slane %v14604_v27, 1  ;;  %v9106_v26 = vld [vmem:[#allocation9 + $0x20] sm:$0xff]   ;;  %v9107_v47 = vld [vmem:[#allocation9 + $0x28] sm:$0xff]  }
 0x4b5   :  { %v14623_v52 = vrot.slane %v4247_v2, 1  ;;  %v4975_v43 = vrot.slane %v4247_v2, 2  ;;  %v6257_v23 = vmax.f32 %v5939_v10, 0.0  ;;  %8996 = vmatprep.subr.bf16.mxu1 %v17603_v29  ;;  %8194 = vmatpush1.bf16.msra.mxu0 %v9105_v62  ;;  %v6530_v40 = vshll.u32 %v14237_v54, 16 }
 0x4b6   :  { %v4974_v0 = vrot.slane %v4251_v34, 1  ;;  %v14629_v63 = vpack.c.bf16 %v6260_v19, %v6259_v37  ;;  %v6258_v7 = vmax.f32 %v5942_v17, 0.0  ;;  %8195 = vmatprep.subr.bf16.mxu0 %v17603_v29  ;;  %v16924_v59 = vshrl.u32 %v14237_v54, 16 }
 0x4b7   :  { %4726 = vrot.lane.b32.xlu1 %v4601_v32, %s9252_s0  ;;  %v4250_v16 = vsel %vm3782_vm3, %v4245_v9, %v14623_v52  ;;  %v16923_v20 = vshll.u32 %v14230_v30, 16  ;;  %v16921_v10 = vshrl.u32 %v14230_v30, 16  ;;  %v4973_v60 = vsel %vm4742_vm4, %v4968_v1, %v4972_v22 }
 0x4b8   :  { %17611 = vst [vmem:[#allocation55_spill] sm:$0xff] %v14629_v63  ;;  %4408 = vrot.lane.b32.xlu0 %v4250_v16, %s9260_s26  ;;  %v14640_v18 = vpack.c.bf16 %v6258_v7, %v6257_v23  ;;  %9012 = vmatpush1.bf16.msra.mxu1 %v9106_v26  ;;  %v14643_v31 = vor.u32 %v4975_v43, %v4974_v0  ;;  %v7287_v62 = vrot.slane %v16924_v59, 1  ;;  %v7288_v9 = vrot.slane %v6530_v40, 2  ;;  %v4391_v23 = vpop.permute.xlu0 %4390 }
 0x4b9   :  { %v14647_v32 = vmul.f32 %v14600_v57, %v9489_v33  ;;  %8997 = vmatprep.subr.bf16.mxu1 %v17603_v29  ;;  %8196 = vmatpush1.bf16.msra.mxu0 %v9106_v26  ;;  %v7291_v2 = vrot.slane %v16921_v10, 1  ;;  %v7292_v1 = vrot.slane %v16923_v20, 2  ;;  %v4603_v37 = vsel %vm258_vm0, %v4600_v41, %v16922_v3 }
 0x4ba   :  { %17612 = vst [vmem:[#allocation89_spill] sm:$0xff] %v14640_v18  ;;  %8197 = vmatprep.subr.bf16.mxu0 %v17603_v29  ;;  %v14668_v17 = vmul.f32 %v14600_v57, %v9499_v38  ;;  %v14673_v43 = vmul.f32 %v14600_v57, %v9501_v39  ;;  %v4977_v41 = vsel %vm4742_vm4, %v4972_v22, %v14643_v31  ;;  %v17614_v26 = vrot.slane %v14525_v61, 1 }
 0x4bb   :  { %5110 = vrot.lane.b32.xlu1 %v4973_v60, %s9261_s28  ;;  %v3292_v19 = vrot.slane %v14647_v32, 1  ;;  %v14678_v0 = vor.u32 %v7288_v9, %v7287_v62  ;;  %v14680_v7 = vor.u32 %v7292_v1, %v7291_v2  ;;  %v9108_v60 = vld [vmem:[#allocation9 + $0x30] sm:$0xff]   ;;  %v3230_v32 = vmul.f32 %v14509_v49, %v9506_v42 }
 0x4bc   :  { %4728 = vrot.lane.b32.xlu0 %v4603_v37, %s9252_s0  ;;  %9013 = vmatpush1.bf16.msra.mxu1 %v9107_v47  ;;  %v14691_v22 = vmul.f32 %v3198_v12, %v9489_v33  ;;  %v16925_v62 = vrot.slane %v14673_v43, 3  ;;  %v14695_v9 = vmul.f32 %v3198_v12, %v9499_v38  ;;  %v14698_v2 = vmul.f32 %v3198_v12, %v9501_v39 }
 0x4bd   :  { %8998 = vmatprep.subr.bf16.mxu1 %v17603_v29  ;;  %8198 = vmatpush1.bf16.msra.mxu0 %v9107_v47  ;;  %17613 = vst [vmem:[#allocation80_spill] sm:$0xff] %v14678_v0  ;;  %v3293_v16 = vsel %vm258_vm0, %v17614_v26, %v3292_v19  ;;  %v3391_v47 = vrot.slane %v14668_v17, 2  ;;  %v7294_v49 = vsel %vm4742_vm4, %v14678_v0, %v14680_v7  ;;  %v4711_v37 = vpop.permute.xlu0 %4710  ;;  %v9109_v17 = vld [vmem:[#allocation9 + $0x38] sm:$0xff]  }
 0x4be   :  { %8199 = vmatprep.subr.bf16.mxu0 %v17603_v29  ;;  %v3334_v61 = vadd.f32 %v3293_v16, %v3230_v32  ;;  %v3231_v1 = vmul.f32 %v14600_v57, %v9506_v42  ;;  %v14712_v16 = vmul.f32 %v3198_v12, %v9506_v42  ;;  %v5224_v32 = vsel %vm5126_vm5, %v13769_v28, %v4391_v23  ;;  %v3194_v10 = vpop.permute.xlu1 %3193 }
 0x4bf   :  { %5112 = vrot.lane.b32.xlu1 %v4977_v41, %s9261_s28  ;;  %v17615_v41 = vrot.slane %v14529_v36, 2  ;;  %v17616_v57 = vrot.slane %v14534_v11, 3  ;;  %v3253_v36 = vmul.f32 %v3194_v10, %v9489_v33  ;;  %v3451_v20 = vmul.f32 %v3194_v10, %v9501_v39 }
 0x4c0   :  { %9014 = vmatpush1.bf16.msra.mxu1 %v9108_v60  ;;  %v5353_v59 = vsel %vm5255_vm6, %v5224_v32, %v4711_v37  ;;  %v17619_v37 = vrot.slane %v14695_v9, 2 }
 0x4c1   :  { %8999 = vmatprep.subr.bf16.mxu1 %v17603_v29  ;;  %8200 = vmatpush1.bf16.msra.mxu0 %v9108_v60  ;;  %v3392_v26 = vsel %vm362_vm1, %v17615_v41, %v3391_v47  ;;  %v3296_v60 = vrot.slane %v14691_v22, 1  ;;  %v3491_v3 = vsel %vm466_vm2, %v17616_v57, %v16925_v62  ;;  %v3352_v41 = vmul.f32 %v3194_v10, %v9499_v38  ;;  %v9110_v62 = vld [vmem:[#allocation9 + $0x40] sm:$0xff]  }
 0x4c2   :  { %8201 = vmatprep.subr.bf16.mxu0 %v17603_v29  ;;  %v3433_v12 = vadd.f32 %v3392_v26, %v3334_v61  ;;  %v3294_v11 = vrot.slane %v3253_v36, 1  ;;  %v14732_v57 = vor.u32 %v4251_v34, %v14623_v52  ;;  %v3232_v61 = vmul.f32 %v3194_v10, %v9506_v42  ;;  %v14737_v26 = vpop.permute.xlu1 %3201 }
 0x4c3   :  { %7512 = vrot.lane.b32.xlu1 %v7294_v49, %s9252_s0  ;;  %v3393_v23 = vrot.slane %v3352_v41, 2  ;;  %v14743_v36 = vrot.slane %v6530_v40, 1  ;;  %v3492_v41 = vrot.slane %v3451_v20, 3  ;;  %v5095_v49 = vpop.permute.xlu0 %5094  ;;  %v17618_v22 = vshrl.u32 %v14280_v55, 16 }
 0x4c4   :  { %9015 = vmatpush1.bf16.msra.mxu1 %v9109_v17  ;;  %v3295_v34 = vsel %vm258_vm0, %v3292_v19, %v3294_v11  ;;  %v3297_v52 = vsel %vm258_vm0, %v3294_v11, %v3296_v60  ;;  %v3532_v10 = vadd.f32 %v3491_v3, %v3433_v12  ;;  %v14754_v19 = vmul.f32 %v14737_v26, %v9489_v33 }
 0x4c5   :  { %9000 = vmatprep.subr.bf16.mxu1 %v17603_v29  ;;  %8202 = vmatpush1.bf16.msra.mxu0 %v9109_v17  ;;  %17617 = vst [vmem:[#allocation90_spill] sm:$0xff] %v14743_v36  ;;  %v3335_v28 = vadd.f32 %v3295_v34, %v3231_v1  ;;  %v3336_v0 = vadd.f32 %v3297_v52, %v3232_v61  ;;  %v7295_v14 = vrot.slane %v17618_v22, 1  ;;  %v9111_v1 = vld [vmem:[#allocation9 + $0x48] sm:$0xff]   ;;  %v17620_v11 = vshll.u32 %v14280_v55, 16 }
 0x4c6   :  { %8203 = vmatprep.subr.bf16.mxu0 %v17603_v29  ;;  %v3394_v40 = vsel %vm362_vm1, %v3391_v47, %v3393_v23  ;;  %v14758_v20 = vmul.f32 %v14737_v26, %v9499_v38  ;;  %v14762_v3 = vmul.f32 %v14737_v26, %v9501_v39  ;;  %v3396_v32 = vsel %vm362_vm1, %v3393_v23, %v17619_v37  ;;  %v4393_v47 = vpop.permute.xlu1 %4392 }
 0x4c7   :  { %v3434_v12 = vadd.f32 %v3394_v40, %v3335_v28  ;;  %v5530_v22 = vsel %vm5384_vm7, %v5353_v59, %v5095_v49  ;;  %v7296_v61 = vrot.slane %v17620_v11, 2  ;;  %v3435_v34 = vadd.f32 %v3396_v32, %v3336_v0 }
 0x4c8   :  { %9016 = vmatpush1.bf16.msra.mxu1 %v9110_v62  ;;  %v17621_v52 = vrot.slane %v14673_v43, 3  ;;  %v16931_v58 = vrot.slane %v14758_v20, 2  ;;  %8960 = vmatprep.mubr.bf16.mxu0 %v5530_v22  ;;  %v3548_v28 = vadd.f32 %v14380_v53, %v3532_v10  ;;  %v17622_v59 = vshrl.u32 %v14278_v56, 16 }
 0x4c9   :  { %9001 = vmatprep.subr.bf16.mxu1 %v17603_v29  ;;  %8204 = vmatpush1.bf16.msra.mxu0 %v9110_v62  ;;  %v16929_v62 = vrot.slane %v14754_v19, 1  ;;  %v17623_v40 = vshll.u32 %v14278_v56, 16  ;;  %v17624_v32 = vshrl.u32 %v14237_v54, 16  ;;  %v17626_v11 = vrot.slane %v14698_v2, 3 }
 0x4ca   :  { %8205 = vmatprep.subr.bf16.mxu0 %v17603_v29  ;;  %v3493_v17 = vsel %vm466_vm2, %v17621_v52, %v3492_v41  ;;  %v7299_v49 = vrot.slane %v17622_v59, 1  ;;  %v14798_v0 = vor.u32 %v7296_v61, %v7295_v14 }
 0x4cb   :  { %v3533_v23 = vadd.f32 %v3493_v17, %v3434_v12  ;;  %v7300_v37 = vrot.slane %v17623_v40, 2  ;;  %v3299_v43 = vsel %vm258_vm0, %v3296_v60, %v16929_v62  ;;  %v6536_v22 = vor.u32 %v17624_v32, %v14743_v36  ;;  %v9112_v12 = vld [vmem:[#allocation9 + $0x50] sm:$0xff]   ;;  %v4713_v40 = vpop.permute.xlu1 %4712  ;;  %v8934_v62 = vpop.f32.mrb[68].mxu0 }
 0x4cc   :  { %9017 = vmatpush1.bf16.msra.mxu1 %v9111_v1  ;;  %v17625_v17 = vshll.u32 %v14230_v30, 16  ;;  %v3495_v52 = vsel %vm466_vm2, %v3492_v41, %v17626_v11  ;;  %v3337_v60 = vadd.f32 %v3299_v43, %v14712_v16  ;;  %v5963_v36 = vadd.f32 %v14333_v4, %v8934_v62  ;;  %v5954_v41 = vpop.f32.mrb[69].mxu0 }
 0x4cd   :  { %9002 = vmatprep.subr.bf16.mxu1 %v17603_v29  ;;  %8206 = vmatpush1.bf16.msra.mxu0 %v9111_v1  ;;  %v3549_v59 = vadd.f32 %v14380_v53, %v3533_v23  ;;  %v3534_v32 = vadd.f32 %v3495_v52, %v3435_v34  ;;  %v14808_v23 = vmul.f32 0.0, %v9489_v33  ;;  %v3564_v16 = vmax.f32 %v3548_v28, 0.0  ;;  %v8935_v61 = vpop.f32.mrb[70].mxu0 }
 0x4ce   :  { %v14791_v10 = vrot.slane %v17625_v17, 1  ;;  %8207 = vmatprep.subr.bf16.mxu0 %v17603_v29  ;;  %v17627_v17 = vrot.slane %v14695_v9, 2  ;;  %v14810_v11 = vor.u32 %v7300_v37, %v7299_v49  ;;  %v17628_v34 = vrot.slane %v14762_v3, 3 }
 0x4cf   :  { %v3565_v43 = vmax.f32 %v3549_v59, 0.0  ;;  %v17629_v9 = vrot.slane %v14698_v2, 3  ;;  %v5226_v62 = vsel %vm5126_vm5, %v13947_v48, %v4393_v47  ;;  %v5966_v28 = vadd.f32 %v14333_v4, %v8935_v61  ;;  %v5957_v59 = vpop.f32.mrb[71].mxu0 }
 0x4d0   :  { %v3398_v1 = vsel %vm362_vm1, %v17627_v17, %v16931_v58  ;;  %9018 = vmatpush1.bf16.msra.mxu1 %v9112_v12  ;;  %v5955_v17 = vadd.f32 %v14333_v4, %v5954_v41  ;;  %v5355_v37 = vsel %vm5255_vm6, %v5226_v62, %v4713_v40  ;;  %v5958_v2 = vadd.f32 %v14333_v4, %v5957_v59 }
 0x4d1   :  { %v3436_v14 = vadd.f32 %v3398_v1, %v3337_v60  ;;  %9003 = vmatprep.subr.bf16.mxu1 %v17603_v29  ;;  %v3497_v52 = vsel %vm466_vm2, %v17629_v9, %v17628_v34  ;;  %v9113_v60 = vld [vmem:[#allocation9 + $0x58] sm:$0xff]   ;;  %8208 = vmatpush1.bf16.msra.mxu0 %v9112_v12  ;;  %v5097_v1 = vpop.permute.xlu1 %5096  ;;  %v14823_v58 = vpack.c.bf16 %v3565_v43, %v3564_v16  ;;  %v6263_v47 = vmax.f32 %v5963_v36, 0.0 }
 0x4d2   :  { %8209 = vmatprep.subr.bf16.mxu0 %v17603_v29  ;;  %v3550_v34 = vadd.f32 %v14380_v53, %v3534_v32  ;;  %v5533_v48 = vsel %vm5384_vm7, %v5355_v37, %v5097_v1  ;;  %v6264_v41 = vmax.f32 %v5966_v28, 0.0  ;;  %v14834_v16 = vsel %vm3782_vm3, %v6536_v22, %v14791_v10 }
 0x4d3   :  { %v3535_v49 = vadd.f32 %v3497_v52, %v3436_v14  ;;  %8961 = vmatmul.mubr.bf16.gmra.mrb[96].mxu0 %v5533_v48  ;;  %v4255_v12 = vshll.u32 %v14823_v58, 16  ;;  %v4259_v40 = vshrl.u32 %v14823_v58, 16  ;;  %v6261_v4 = vmax.f32 %v5955_v17, 0.0 }
 0x4d4   :  { %9019 = vmatpush1.bf16.msra.mxu1 %v9113_v60  ;;  %v14837_v32 = vpack.c.bf16 %v6264_v41, %v6263_v47  ;;  %v6262_v43 = vmax.f32 %v5958_v2, 0.0  ;;  %v14842_v36 = vsel %vm4742_vm4, %v14798_v0, %v14810_v11  ;;  %v16933_v62 = vshll.u32 %v14300_v8, 16  ;;  %v3206_v28 = vpop.permute.xlu0 %3205 }
 0x4d5   :  { %v3551_v61 = vadd.f32 %v14380_v53, %v3535_v49  ;;  %9004 = vmatprep.subr.bf16.mxu1 %v17603_v29  ;;  %v9114_v53 = vld [vmem:[#allocation9 + $0x60] sm:$0xff]   ;;  %8210 = vmatpush1.bf16.msra.mxu0 %v9113_v60  ;;  %v4257_v9 = vrot.slane %v4255_v12, 1  ;;  %v4978_v52 = vrot.slane %v4259_v40, 1  ;;  %v3566_v22 = vmax.f32 %v3550_v34, 0.0 }
 0x4d6   :  { %17630 = vst [vmem:[#allocation67_spill] sm:$0xff] %v14837_v32  ;;  %8211 = vmatprep.subr.bf16.mxu0 %v17603_v29  ;;  %v14846_v17 = vpack.c.bf16 %v6262_v43, %v6261_v4  ;;  %v4979_v59 = vrot.slane %v4255_v12, 2  ;;  %v16932_v49 = vshrl.u32 %v14300_v8, 16  ;;  %v14850_v37 = vmul.f32 %v3206_v28, %v9489_v33  ;;  %v9115_v12 = vld [vmem:[#allocation9 + $0x68] sm:$0xff]  }
 0x4d7   :  { %v3567_v14 = vmax.f32 %v3551_v61, 0.0  ;;  %v14853_v60 = vmul.f32 %v3206_v28, %v9499_v38  ;;  %v16937_v1 = vrot.slane %v14823_v58, 1  ;;  %v3234_v34 = vmul.f32 %v14737_v26, %v9506_v42 }
 0x4d8   :  { %17631 = vst [vmem:[#allocation63_spill] sm:$0xff] %v14846_v17  ;;  %9020 = vmatpush1.bf16.msra.mxu1 %v9114_v53  ;;  %v4258_v48 = vsel %vm3782_vm3, %v14732_v57, %v4257_v9  ;;  %v17632_v41 = vshll.u32 %v14280_v55, 16  ;;  %v3300_v4 = vrot.slane %v14850_v37, 1  ;;  %v14870_v43 = vmul.f32 %v3206_v28, %v9501_v39 }
 0x4d9   :  { %9005 = vmatprep.subr.bf16.mxu1 %v17603_v29  ;;  %v14862_v47 = vpack.c.bf16 %v3567_v14, %v3566_v22  ;;  %8212 = vmatpush1.bf16.msra.mxu0 %v9114_v53  ;;  %v14873_v2 = vor.u32 %v4979_v59, %v4978_v52  ;;  %v3399_v57 = vrot.slane %v14853_v60, 2  ;;  %v3214_v14 = vpop.permute.xlu0 %3213  ;;  %v14881_v53 = vrot.slane %v16932_v49, 1 }
 0x4da   :  { %v14866_v61 = vrot.slane %v17632_v41, 1  ;;  %4410 = vrot.lane.b32.xlu1 %v4258_v48, %s9260_s26  ;;  %8213 = vmatprep.subr.bf16.mxu0 %v17603_v29  ;;  %v14885_v37 = vrot.slane %v16933_v62, 2  ;;  %v3235_v52 = vmul.f32 %v3206_v28, %v9506_v42  ;;  %v17633_v59 = vrot.slane %v14754_v19, 1 }
 0x4db   :  { %v4263_v22 = vshll.u32 %v14862_v47, 16  ;;  %v17634_v60 = vrot.slane %v14604_v27, 1  ;;  %v17635_v49 = vshrl.u32 %v14291_v44, 16  ;;  %v14902_v32 = vmul.f32 %v3214_v14, %v9489_v33 }
 0x4dc   :  { %9021 = vmatpush1.bf16.msra.mxu1 %v9115_v12  ;;  %v3301_v48 = vsel %vm258_vm0, %v17633_v59, %v3300_v4  ;;  %v4261_v28 = vor.u32 %v4259_v40, %v4257_v9  ;;  %v9116_v59 = vld [vmem:[#allocation9 + $0x70] sm:$0xff]   ;;  %v3498_v17 = vrot.slane %v14870_v43, 3  ;;  %v17636_v40 = vrot.slane %v14758_v20, 2 }
 0x4dd   :  { %v4605_v41 = vsel %vm258_vm0, %v17634_v60, %v16937_v1  ;;  %v14898_v26 = vrot.slane %v17635_v49, 1  ;;  %9006 = vmatprep.subr.bf16.mxu1 %v17603_v29  ;;  %v3338_v62 = vadd.f32 %v3301_v48, %v3234_v34  ;;  %8214 = vmatpush1.bf16.msra.mxu0 %v9115_v12  ;;  %v3210_v27 = vpop.permute.xlu1 %3209  ;;  %v14907_v60 = vmul.f32 %v3214_v14, %v9499_v38  ;;  %v4395_v48 = vpop.permute.xlu0 %4394 }
 0x4de   :  { %4730 = vrot.lane.b32.xlu1 %v4605_v41, %s9252_s0  ;;  %v14910_v49 = vrot.slane %v4263_v22, 1  ;;  %v4981_v34 = vsel %vm4742_vm4, %v14643_v31, %v14873_v2  ;;  %8215 = vmatprep.subr.bf16.mxu0 %v17603_v29  ;;  %v3400_v9 = vsel %vm362_vm1, %v17636_v40, %v3399_v57  ;;  %v3257_v12 = vmul.f32 %v3210_v27, %v9489_v33 }
 0x4df   :  { %v3356_v43 = vmul.f32 %v3210_v27, %v9499_v38  ;;  %v3437_v41 = vadd.f32 %v3400_v9, %v3338_v62  ;;  %v3455_v19 = vmul.f32 %v3210_v27, %v9501_v39  ;;  %v3304_v54 = vrot.slane %v14902_v32, 1 }
 0x4e0   :  { %9022 = vmatpush1.bf16.msra.mxu1 %v9116_v59  ;;  %v14925_v31 = vmul.f32 %v3214_v14, %v9501_v39  ;;  %v3302_v20 = vrot.slane %v3257_v12, 1  ;;  %v17637_v63 = vshrl.u32 %v14862_v47, 16  ;;  %v4983_v50 = vrot.slane %v4263_v22, 2 }
 0x4e1   :  { %9007 = vmatprep.subr.bf16.mxu1 %v17603_v29  ;;  %v3401_v40 = vrot.slane %v3356_v43, 2  ;;  %8216 = vmatpush1.bf16.msra.mxu0 %v9116_v59  ;;  %v17638_v1 = vrot.slane %v14762_v3, 3  ;;  %v3236_v9 = vmul.f32 %v3210_v27, %v9506_v42  ;;  %v3403_v32 = vrot.slane %v14907_v60, 2  ;;  %v14935_v15 = vpop.permute.xlu1 %3217  ;;  %v4715_v27 = vpop.permute.xlu0 %4714 }
 0x4e2   :  { %v4982_v18 = vrot.slane %v17637_v63, 1  ;;  %v4266_v12 = vsel %vm3782_vm3, %v4261_v28, %v14910_v49  ;;  %5114 = vrot.lane.b32.xlu1 %v4981_v34, %s9261_s28  ;;  %8217 = vmatprep.subr.bf16.mxu0 %v17603_v29  ;;  %v3303_v63 = vsel %vm258_vm0, %v3300_v4, %v3302_v20  ;;  %v3500_v22 = vrot.slane %v3455_v19, 3 }
 0x4e3   :  { %v3499_v62 = vsel %vm466_vm2, %v17638_v1, %v3498_v17  ;;  %v3237_v3 = vmul.f32 %v3214_v14, %v9506_v42  ;;  %v3305_v1 = vsel %vm258_vm0, %v3302_v20, %v3304_v54  ;;  %4412 = vrot.lane.b32.xlu0 %v4266_v12, %s9260_s26  ;;  %v3339_v60 = vadd.f32 %v3303_v63, %v3235_v52 }
 0x4e4   :  { %v3536_v59 = vadd.f32 %v3499_v62, %v3437_v41  ;;  %v3340_v43 = vadd.f32 %v3305_v1, %v3236_v9  ;;  %v17639_v35 = vrot.slane %v14862_v47, 1  ;;  %v17640_v28 = vrot.slane %v14823_v58, 1  ;;  %9023 = vmatpush1.bf16.msra.mxu1 %v9117_v13  ;;  %v14977_v62 = vld [vmem:[%s16621_s2] ss:$0 sm:$0xff] }
 0x4e5   :  { %v3402_v29 = vsel %vm362_vm1, %v3399_v57, %v3401_v40  ;;  %v3502_v4 = vrot.slane %v14925_v31, 3  ;;  %v14954_v14 = vmul.f32 %v14935_v15, %v9489_v33  ;;  %v14956_v19 = vor.u32 %v4983_v50, %v4982_v18  ;;  %8218 = vmatpush1.bf16.msra.mxu0 %v9117_v13  ;;  %v4397_v57 = vpop.permute.xlu1 %4396 }
 0x4e6   :  { %v4607_v34 = vsel %vm258_vm0, %v17640_v28, %v17639_v35  ;;  %v3438_v52 = vadd.f32 %v3402_v29, %v3339_v60  ;;  %v3404_v41 = vsel %vm362_vm1, %v3401_v40, %v3403_v32  ;;  %v14961_v20 = vmul.f32 %v14935_v15, %v9499_v38  ;;  %7516 = vrot.lane.b32.xlu1 %v14842_v36, %s9252_s0  ;;  %v5099_v40 = vpop.permute.xlu0 %5098 }
 0x4e7   :  { %v14965_v35 = vmul.f32 %v14935_v15, %v9501_v39  ;;  %v3501_v31 = vsel %vm466_vm2, %v3498_v17, %v3500_v22  ;;  %v3439_v50 = vadd.f32 %v3404_v41, %v3340_v43  ;;  %v3306_v13 = vrot.slane %v14954_v14, 1  ;;  %4732 = vrot.lane.b32.xlu0 %v4607_v34, %s9252_s0 }
 0x4e8   :  { %v5228_v18 = vsel %vm5126_vm5, %v14035_v45, %v4395_v48  ;;  %v3552_v9 = vadd.f32 %v14977_v62, %v3536_v59  ;;  %v3537_v12 = vadd.f32 %v3501_v31, %v3438_v52  ;;  %v3405_v36 = vrot.slane %v14961_v20, 2 }
 0x4e9   :  { %v5357_v17 = vsel %vm5255_vm6, %v5228_v18, %v4715_v27  ;;  %v3307_v63 = vsel %vm258_vm0, %v3304_v54, %v3306_v13  ;;  %v3504_v45 = vrot.slane %v14965_v35, 3  ;;  %v17641_v1 = vshll.u32 %v14291_v44, 16  ;;  %v4717_v34 = vpop.permute.xlu1 %4716 }
 0x4ea   :  { %v5536_v48 = vsel %vm5384_vm7, %v5357_v17, %v5099_v40  ;;  %v3553_v43 = vadd.f32 %v14977_v62, %v3537_v12  ;;  %v3503_v59 = vsel %vm466_vm2, %v3500_v22, %v3502_v4  ;;  %v3341_v28 = vadd.f32 %v3307_v63, %v3237_v3 }
 0x4eb   :  { %v7308_v60 = vrot.slane %v17641_v1, 2  ;;  %8964 = vmatprep.mubr.bf16.mxu0 %v5536_v48  ;;  %v4985_v27 = vsel %vm4742_vm4, %v14873_v2, %v14956_v19  ;;  %v3538_v29 = vadd.f32 %v3503_v59, %v3439_v50  ;;  %v3406_v54 = vsel %vm362_vm1, %v3403_v32, %v3405_v36  ;;  %6933 = vrot.lane.b32.xlu0 %v14834_v16, %s9252_s0 }
 0x4ec   :  { %v15000_v52 = vmul.f32 0.0, %v9499_v38  ;;  %v15003_v22 = vmul.f32 0.0, %v9501_v39  ;;  %5116 = vrot.lane.b32.xlu1 %v4985_v27, %s9261_s28  ;;  %v3568_v3 = vmax.f32 %v3552_v9, 0.0  ;;  %v3569_v41 = vmax.f32 %v3553_v43, 0.0 }
 0x4ed   :  { %v3440_v31 = vadd.f32 %v3406_v54, %v3341_v28  ;;  %v17642_v2 = vshrl.u32 %v14230_v30, 16  ;;  %v3505_v32 = vsel %vm466_vm2, %v3502_v4, %v3504_v45  ;;  %v5230_v16 = vsel %vm5126_vm5, %v14156_v51, %v4397_v57  ;;  %v5101_v17 = vpop.permute.xlu1 %5100 }
 0x4ee   :  { %v15016_v18 = vor.u32 %v14885_v37, %v14881_v53  ;;  %v15019_v40 = vor.u32 %v7308_v60, %v14898_v26  ;;  %v5359_v12 = vsel %vm5255_vm6, %v5230_v16, %v4717_v34  ;;  %v15024_v63 = vpack.c.bf16 %v3569_v41, %v3568_v3  ;;  %v8938_v16 = vpop.f32.mrb[72].mxu0 }
 0x4ef   :  { %v6544_v50 = vor.u32 %v17642_v2, %v14791_v10  ;;  %v3539_v9 = vadd.f32 %v3505_v32, %v3440_v31  ;;  %v3554_v4 = vadd.f32 %v14977_v62, %v3538_v29  ;;  %v3310_v51 = vrot.slane %v14808_v23, 1 }
 0x4f0   :  { %v5539_v57 = vsel %vm5384_vm7, %v5359_v12, %v5101_v17  ;;  %v17643_v26 = vshrl.u32 %v14280_v55, 16  ;;  %v3409_v48 = vrot.slane %v15000_v52, 2  ;;  %v3508_v1 = vrot.slane %v15003_v22, 3 }
 0x4f1   :  { %v6549_v10 = vsel %vm3782_vm3, %v6544_v50, %v14866_v61  ;;  %v3555_v37 = vadd.f32 %v14977_v62, %v3539_v9  ;;  %8965 = vmatmul.mubr.bf16.gmra.mrb[100].mxu0 %v5539_v57  ;;  %v4271_v60 = vshll.u32 %v15024_v63, 16  ;;  %v7298_v23 = vsel %vm4742_vm4, %v14680_v7, %v14798_v0  ;;  %v4399_v29 = vpop.permute.xlu1 %4398  ;;  %v5970_v57 = vpop.f32.mrb[73].mxu0 }
 0x4f2   :  { %6935 = vrot.lane.b32.xlu0 %v6549_v10, %s9252_s0  ;;  %v6552_v53 = vor.u32 %v17643_v26, %v14866_v61  ;;  %v4275_v43 = vshrl.u32 %v15024_v63, 16  ;;  %v15044_v59 = vsel %vm4742_vm4, %v15016_v18, %v15019_v40  ;;  %v17644_v61 = vshll.u32 %v14278_v56, 16  ;;  %v3222_v3 = vpop.permute.xlu0 %3221 }
 0x4f3   :  { %v3238_v34 = vmul.f32 %v14935_v15, %v9506_v42  ;;  %v3571_v27 = vmax.f32 %v3555_v37, 0.0  ;;  %v17645_v54 = vshrl.u32 %v14862_v47, 16  ;;  %v4273_v0 = vrot.slane %v4271_v60, 1 }
 0x4f4   :  { %v15048_v28 = vrot.slane %v17644_v61, 1  ;;  %v3570_v52 = vmax.f32 %v3554_v4, 0.0  ;;  %v16946_v41 = vrot.slane %v15024_v63, 1  ;;  %v17646_v2 = vshll.u32 %v14300_v8, 16 }
 0x4f5   :  { %v4269_v7 = vor.u32 %v17645_v54, %v14910_v49  ;;  %v3260_v50 = vmul.f32 %v3222_v3, %v9489_v33  ;;  %v3359_v32 = vmul.f32 %v3222_v3, %v9499_v38  ;;  %v3458_v49 = vmul.f32 %v3222_v3, %v9501_v39  ;;  %v4719_v37 = vpop.permute.xlu1 %4718  ;;  %v8939_v33 = vpop.f32.mrb[74].mxu0 }
 0x4f6   :  { %7514 = vrot.lane.b32.xlu0 %v7298_v23, %s9252_s0  ;;  %v15059_v31 = vsel %vm3782_vm3, %v6552_v53, %v15048_v28  ;;  %v15063_v15 = vrot.slane %v17646_v2, 1  ;;  %v6578_v9 = vshll.u32 %v14388_v24, 16  ;;  %v15070_v17 = vpack.c.bf16 %v3571_v27, %v3570_v52  ;;  %v4401_v27 = vpop.permute.xlu0 %4400  ;;  %v5973_v52 = vpop.f32.mrb[75].mxu0 }
 0x4f7   :  { %v4274_v12 = vsel %vm3782_vm3, %v4269_v7, %v4273_v0  ;;  %v4986_v10 = vrot.slane %v4275_v43, 1  ;;  %v4987_v4 = vrot.slane %v4271_v60, 2  ;;  %v3308_v26 = vrot.slane %v3260_v50, 1 }
 0x4f8   :  { %v3407_v53 = vrot.slane %v3359_v32, 2  ;;  %4414 = vrot.lane.b32.xlu1 %v4274_v12, %s9260_s26  ;;  %v6582_v38 = vshrl.u32 %v14388_v24, 16  ;;  %v3239_v23 = vmul.f32 %v3222_v3, %v9506_v42  ;;  %v5232_v61 = vsel %vm5126_vm5, %v14214_v25, %v4399_v29 }
 0x4f9   :  { %v17647_v60 = vrot.slane %v14862_v47, 1  ;;  %v4279_v7 = vshll.u32 %v15070_v17, 16  ;;  %v3309_v2 = vsel %vm258_vm0, %v3306_v13, %v3308_v26  ;;  %v3311_v50 = vsel %vm258_vm0, %v3308_v26, %v3310_v51  ;;  %v5103_v13 = vpop.permute.xlu1 %5102 }
 0x4fa   :  { %v3506_v42 = vrot.slane %v3458_v49, 3  ;;  %v4283_v3 = vshrl.u32 %v15070_v17, 16  ;;  %v3342_v25 = vadd.f32 %v3309_v2, %v3238_v34  ;;  %v3343_v29 = vadd.f32 %v3311_v50, %v3239_v23  ;;  %v4721_v26 = vpop.permute.xlu0 %4720 }
 0x4fb   :  { %v4609_v54 = vsel %vm258_vm0, %v17647_v60, %v16946_v41  ;;  %v4277_v32 = vor.u32 %v4275_v43, %v4273_v0  ;;  %v4988_v12 = vor.u32 %v4987_v4, %v4986_v10  ;;  %v3408_v60 = vsel %vm362_vm1, %v3405_v36, %v3407_v53  ;;  %v15099_v43 = vld [vmem:[%s16623_s4] ss:$0 sm:$0xff] }
 0x4fc   :  { %v3410_v41 = vsel %vm362_vm1, %v3407_v53, %v3409_v48  ;;  %v5361_v39 = vsel %vm5255_vm6, %v5232_v61, %v4719_v37  ;;  %4734 = vrot.lane.b32.xlu1 %v4609_v54, %s9252_s0  ;;  %v4281_v14 = vrot.slane %v4279_v7, 1  ;;  %v3441_v51 = vadd.f32 %v3408_v60, %v3342_v25 }
 0x4fd   :  { %v3442_v49 = vadd.f32 %v3410_v41, %v3343_v29  ;;  %v5542_v34 = vsel %vm5384_vm7, %v5361_v39, %v5103_v13  ;;  %v5979_v20 = vadd.f32 %v15099_v43, %v8938_v16  ;;  %v3507_v36 = vsel %vm466_vm2, %v3504_v45, %v3506_v42 }
 0x4fe   :  { %v3509_v48 = vsel %vm466_vm2, %v3506_v42, %v3508_v1  ;;  %v4282_v0 = vsel %vm3782_vm3, %v4277_v32, %v4281_v14  ;;  %8968 = vmatprep.mubr.bf16.mxu0 %v5542_v34  ;;  %v4990_v41 = vrot.slane %v4283_v3, 1  ;;  %v3540_v10 = vadd.f32 %v3507_v36, %v3441_v51 }
 0x4ff   :  { %v3541_v4 = vadd.f32 %v3509_v48, %v3442_v49  ;;  %4416 = vrot.lane.b32.xlu0 %v4282_v0, %s9260_s26  ;;  %v4991_v53 = vrot.slane %v4279_v7, 2  ;;  %v5971_v37 = vadd.f32 %v15099_v43, %v5970_v57  ;;  %v4989_v35 = vsel %vm4742_vm4, %v14956_v19, %v4988_v12 }
 0x500   :  { %7520 = vrot.lane.b32.xlu1 %v15044_v59, %s9252_s0  ;;  %v5982_v45 = vadd.f32 %v15099_v43, %v8939_v33  ;;  %v5974_v22 = vadd.f32 %v15099_v43, %v5973_v52  ;;  %v6590_v1 = vshrl.u32 %v14384_v5, 16  ;;  %v3556_v16 = vadd.f32 %v14977_v62, %v3540_v10 }
 0x501   :  { %v3557_v39 = vadd.f32 %v14977_v62, %v3541_v4  ;;  %v5234_v23 = vsel %vm5126_vm5, %v14266_v46, %v4401_v27  ;;  %v6267_v57 = vmax.f32 %v5979_v20, 0.0  ;;  %v5105_v59 = vpop.permute.xlu0 %5104  ;;  %v6265_v54 = vmax.f32 %v5971_v37, 0.0 }
 0x502   :  { %v5363_v61 = vsel %vm5255_vm6, %v5234_v23, %v4721_v26  ;;  %v6268_v7 = vmax.f32 %v5982_v45, 0.0  ;;  %v6266_v19 = vmax.f32 %v5974_v22, 0.0  ;;  %v3572_v2 = vmax.f32 %v3556_v16, 0.0 }
 0x503   :  { %v3573_v33 = vmax.f32 %v3557_v39, 0.0  ;;  %6937 = vrot.lane.b32.xlu0 %v15059_v31, %s9252_s0  ;;  %v5545_v52 = vsel %vm5384_vm7, %v5363_v61, %v5105_v59  ;;  %v15126_v50 = vor.u32 %v4991_v53, %v4990_v41  ;;  %v17648_v46 = vshrl.u32 %v14278_v56, 16 }
 0x504   :  { %8969 = vmatmul.mubr.bf16.gmra.mrb[104].mxu0 %v5545_v52  ;;  %5118 = vrot.lane.b32.xlu1 %v4989_v35, %s9261_s28  ;;  %v15132_v27 = vpack.c.bf16 %v6268_v7, %v6267_v57  ;;  %v15134_v42 = vpack.c.bf16 %v6266_v19, %v6265_v54  ;;  %v7311_v29 = vrot.slane %v6582_v38, 1  ;;  %v7312_v32 = vrot.slane %v6578_v9, 2 }
 0x505   :  { %v6560_v62 = vor.u32 %v17648_v46, %v15048_v28  ;;  %v15136_v25 = vpack.c.bf16 %v3573_v33, %v3572_v2  ;;  %v4993_v28 = vsel %vm4742_vm4, %v4988_v12, %v15126_v50  ;;  %v7315_v13 = vrot.slane %v6590_v1, 1 }
 0x506   :  { %v17649_v51 = vshll.u32 %v14384_v5, 16  ;;  %v4285_v26 = vor.u32 %v4283_v3, %v4281_v14  ;;  %v7306_v20 = vsel %vm4742_vm4, %v14810_v11, %v15016_v18  ;;  %v4610_v36 = vrot.slane %v15070_v17, 1 }
 0x507   :  { %v6565_v31 = vsel %vm3782_vm3, %v6560_v62, %v15063_v15  ;;  %v4287_v60 = vshll.u32 %v15136_v25, 16  ;;  %v7313_v48 = vor.u32 %v7312_v32, %v7311_v29  ;;  %v4291_v41 = vshrl.u32 %v15136_v25, 16 }
 0x508   :  { %6939 = vrot.lane.b32.xlu0 %v6565_v31, %s9252_s0  ;;  %v7316_v49 = vrot.slane %v17649_v51, 2  ;;  %5120 = vrot.lane.b32.xlu1 %v4993_v28, %s9261_s28  ;;  %v17650_v3 = vshrl.u32 %v14300_v8, 16  ;;  %v17651_v11 = vrot.slane %v15024_v63, 1  ;;  %v17652_v4 = vshll.u32 %v14291_v44, 16  ;;  %v17654_v28 = vld [vmem:[#allocation38_spill] sm:$0xff] }
 0x509   :  { %v15153_v34 = vrot.slane %v4287_v60, 1  ;;  %v4612_v35 = vrot.slane %v15136_v25, 1  ;;  %v4994_v45 = vrot.slane %v4291_v41, 1  ;;  %v4995_v22 = vrot.slane %v4287_v60, 2 }
 0x50a   :  { %v15162_v0 = vor.u32 %v7316_v49, %v7315_v13  ;;  %v6568_v14 = vor.u32 %v17650_v3, %v15063_v15  ;;  %v4403_v10 = vpop.permute.xlu1 %4402  ;;  %v4611_v18 = vsel %vm258_vm0, %v17651_v11, %v4610_v36  ;;  %v6572_v53 = vrot.slane %v17652_v4, 1 }
 0x50b   :  { %v4290_v12 = vsel %vm3782_vm3, %v4285_v26, %v15153_v34  ;;  %v6580_v16 = vrot.slane %v6578_v9, 1  ;;  %v17653_v39 = vshrl.u32 %v14291_v44, 16  ;;  %v8942_v57 = vpop.f32.mrb[76].mxu0  ;;  %v6594_v61 = vshll.u32 %v14452_v21, 16 }
 0x50c   :  { %7518 = vrot.lane.b32.xlu0 %v7306_v20, %s9252_s0  ;;  %4418 = vrot.lane.b32.xlu1 %v4290_v12, %s9260_s26  ;;  %v7318_v37 = vsel %vm4742_vm4, %v7313_v48, %v15162_v0  ;;  %v6573_v15 = vsel %vm3782_vm3, %v6568_v14, %v6572_v53  ;;  %v6598_v59 = vshrl.u32 %v14452_v21, 16  ;;  %v6602_v54 = vshll.u32 %v14442_v6, 16  ;;  %v5986_v33 = vpop.f32.mrb[77].mxu0 }
 0x50d   :  { %v6576_v23 = vor.u32 %v17653_v39, %v6572_v53  ;;  %v4613_v7 = vsel %vm258_vm0, %v4610_v36, %v4612_v35  ;;  %v4996_v19 = vor.u32 %v4995_v22, %v4994_v45  ;;  %v5995_v2 = vadd.f32 %v15099_v43, %v8942_v57  ;;  %v8943_v62 = vpop.f32.mrb[78].mxu0  ;;  %v17655_v53 = vld [vmem:[#allocation62_spill] sm:$0xff] }
 0x50e   :  { %v6606_v9 = vshrl.u32 %v14442_v6, 16  ;;  %v5987_v46 = vadd.f32 %v15099_v43, %v5986_v33  ;;  %v5998_v29 = vadd.f32 %v15099_v43, %v8943_v62  ;;  %v5989_v32 = vpop.f32.mrb[79].mxu0  ;;  %v6610_v60 = vshll.u32 %v17654_v28, 16 }
 0x50f   :  { %v4723_v52 = vpop.permute.xlu1 %4722  ;;  %v6581_v31 = vsel %vm3782_vm3, %v6576_v23, %v6580_v16  ;;  %v6614_v13 = vshrl.u32 %v17654_v28, 16  ;;  %v7319_v51 = vrot.slane %v6598_v59, 1  ;;  %v7320_v49 = vrot.slane %v6594_v61, 2 }
 0x510   :  { %4736 = vrot.lane.b32.xlu0 %v4611_v18, %s9252_s0  ;;  %7524 = vrot.lane.b32.xlu1 %v7318_v37, %s9252_s0  ;;  %v7324_v26 = vrot.slane %v6602_v54, 2  ;;  %v5990_v20 = vadd.f32 %v15099_v43, %v5989_v32  ;;  %v4997_v36 = vsel %vm4742_vm4, %v15126_v50, %v4996_v19  ;;  %v6271_v12 = vmax.f32 %v5995_v2, 0.0  ;;  %v17657_v32 = vld [vmem:[#allocation60_spill] sm:$0xff] }
 0x511   :  { %v7323_v3 = vrot.slane %v6606_v9, 1  ;;  %v6272_v14 = vmax.f32 %v5998_v29, 0.0  ;;  %v7314_v11 = vsel %vm4742_vm4, %v15019_v40, %v7313_v48  ;;  %v6269_v18 = vmax.f32 %v5987_v46, 0.0  ;;  %v17656_v40 = vld [vmem:[#allocation41_spill] sm:$0xff] }
 0x512   :  { %v6270_v4 = vmax.f32 %v5990_v20, 0.0  ;;  %v5236_v37 = vsel %vm5126_vm5, %v17655_v53, %v4403_v10  ;;  %v7327_v50 = vrot.slane %v6614_v13, 1  ;;  %v7328_v22 = vrot.slane %v6610_v60, 2  ;;  %v17661_v53 = vld [vmem:[#allocation89_spill] sm:$0xff] }
 0x513   :  { %v15218_v45 = vpack.c.bf16 %v6272_v14, %v6271_v12  ;;  %v6618_v48 = vshll.u32 %v17656_v40, 16  ;;  %v6622_v57 = vshrl.u32 %v17656_v40, 16  ;;  %v7321_v10 = vor.u32 %v7320_v49, %v7319_v51  ;;  %v17659_v14 = vld [vmem:[#allocation76_spill] sm:$0xff] }
 0x514   :  { %6941 = vrot.lane.b32.xlu0 %v6573_v15, %s9252_s0  ;;  %4738 = vrot.lane.b32.xlu1 %v4613_v7, %s9252_s0  ;;  %v5365_v15 = vsel %vm5255_vm6, %v5236_v37, %v4723_v52  ;;  %v15225_v23 = vpack.c.bf16 %v6270_v4, %v6269_v18  ;;  %v7325_v2 = vor.u32 %v7324_v26, %v7323_v3  ;;  %v6626_v51 = vshll.u32 %v17657_v32, 16 }
 0x515   :  { %v4293_v52 = vor.u32 %v4291_v41, %v15153_v34  ;;  %v7329_v46 = vor.u32 %v7328_v22, %v7327_v50  ;;  %v7331_v62 = vrot.slane %v6622_v57, 1  ;;  %v6584_v34 = vor.u32 %v6582_v38, %v6580_v16  ;;  %v17660_v16 = vld [vmem:[#allocation68_spill] sm:$0xff] }
 0x516   :  { %v7326_v29 = vsel %vm4742_vm4, %v7321_v10, %v7325_v2  ;;  %v17658_v41 = vshll.u32 %v14384_v5, 16  ;;  %v7336_v3 = vrot.slane %v6626_v51, 2  ;;  %v16950_v38 = vshrl.u32 %v17659_v14, 16 }
 0x517   :  { %v7330_v20 = vsel %vm4742_vm4, %v7325_v2, %v7329_v46  ;;  %v6596_v4 = vrot.slane %v6594_v61, 1  ;;  %v16949_v37 = vshrl.u32 %v17661_v53, 16  ;;  %v6604_v2 = vrot.slane %v6602_v54, 1 }
 0x518   :  { %6943 = vrot.lane.b32.xlu0 %v6581_v31, %s9252_s0  ;;  %5122 = vrot.lane.b32.xlu1 %v4997_v36, %s9261_s28  ;;  %v5107_v39 = vpop.permute.xlu1 %5106  ;;  %v7332_v31 = vrot.slane %v6618_v48, 2  ;;  %v6588_v26 = vrot.slane %v17658_v41, 1 }
 0x519   :  { %v5548_v7 = vsel %vm5384_vm7, %v5365_v15, %v5107_v39  ;;  %v7343_v54 = vrot.slane %v16949_v37, 1 }
 0x51a   :  { %8972 = vmatprep.mubr.bf16.mxu0 %v5548_v7  ;;  %v7333_v36 = vor.u32 %v7332_v31, %v7331_v62  ;;  %v6589_v39 = vsel %vm3782_vm3, %v6584_v34, %v6588_v26  ;;  %v6600_v31 = vor.u32 %v6598_v59, %v6596_v4 }
 0x51c   :  { %7522 = vrot.lane.b32.xlu0 %v7314_v11, %s9252_s0  ;;  %5124 = vrot.lane.b32.xlu1 %v4996_v19, %s9261_s28  ;;  %v6630_v19 = vshrl.u32 %v17657_v32, 16  ;;  %v6634_v11 = vshll.u32 %v17659_v14, 16  ;;  %v7334_v61 = vsel %vm4742_vm4, %v7329_v46, %v7333_v36  ;;  %v6592_v46 = vor.u32 %v6590_v1, %v6588_v26 }
 0x51d   :  { %v4405_v33 = vpop.permute.xlu0 %4404  ;;  %v6608_v1 = vor.u32 %v6606_v9, %v6604_v2  ;;  %v6605_v26 = vsel %vm3782_vm3, %v6600_v31, %v6604_v2 }
 0x51e   :  { %v7335_v12 = vrot.slane %v6630_v19, 1  ;;  %v5238_v18 = vsel %vm5126_vm5, %v17660_v16, %v4405_v33  ;;  %v7340_v62 = vrot.slane %v6634_v11, 2 }
 0x520   :  { %4420 = vrot.lane.b32.xlu0 %v4293_v52, %s9260_s26  ;;  %7528 = vrot.lane.b32.xlu1 %v7326_v29, %s9252_s0  ;;  %v7337_v33 = vor.u32 %v7336_v3, %v7335_v12  ;;  %v7339_v52 = vrot.slane %v16950_v38, 1  ;;  %v6597_v3 = vsel %vm3782_vm3, %v6592_v46, %v6596_v4  ;;  %v17665_v46 = vld [vmem:[#allocation63_spill] sm:$0xff] }
 0x521   :  { %v4725_v49 = vpop.permute.xlu0 %4724 }
 0x522   :  { %v5367_v50 = vsel %vm5255_vm6, %v5238_v18, %v4725_v49  ;;  %v17662_v49 = vld [vmem:[#allocation55_spill] sm:$0xff]  ;;  %v7338_v16 = vsel %vm4742_vm4, %v7333_v36, %v7337_v33  ;;  %v7341_v18 = vor.u32 %v7340_v62, %v7339_v52 }
 0x523   :  { %v16948_v34 = vshll.u32 %v17662_v49, 16  ;;  %v16947_v41 = vshrl.u32 %v17662_v49, 16 }
 0x524   :  { %4740 = vrot.lane.b32.xlu0 %v4612_v35, %s9252_s0  ;;  %7530 = vrot.lane.b32.xlu1 %v7330_v20, %s9252_s0  ;;  %v6642_v35 = vshll.u32 %v17661_v53, 16  ;;  %v7322_v20 = vsel %vm4742_vm4, %v15162_v0, %v7321_v10  ;;  %v6612_v0 = vrot.slane %v6610_v60, 1 }
 0x525   :  { %v5109_v22 = vpop.permute.xlu0 %5108  ;;  %v4407_v7 = vpop.permute.xlu1 %4406  ;;  %v7347_v9 = vrot.slane %v16947_v41, 1  ;;  %v7348_v52 = vrot.slane %v16948_v34, 2  ;;  %v16952_v41 = vrot.slane %v14230_v30, 1  ;;  %v17666_v34 = vld [vmem:[#allocation40_spill] sm:$0xff] }
 0x526   :  { %v5551_v15 = vsel %vm5384_vm7, %v5367_v50, %v5109_v22  ;;  %v7344_v29 = vrot.slane %v6642_v35, 2 }
 0x527   :  { %8973 = vmatmul.mubr.bf16.gmra.mrb[108].mxu0 %v5551_v15  ;;  %v8946_v50 = vpop.f32.mrb[80].mxu0 }
 0x528   :  { %6945 = vrot.lane.b32.xlu0 %v6589_v39, %s9252_s0  ;;  %7532 = vrot.lane.b32.xlu1 %v7334_v61, %s9252_s0  ;;  %v6011_v22 = vadd.f32 %v15099_v43, %v8946_v50  ;;  %v7345_v10 = vor.u32 %v7344_v29, %v7343_v54  ;;  %v6002_v15 = vpop.f32.mrb[81].mxu0  ;;  %v17663_v39 = vld [vmem:[#allocation50_spill] sm:$0xff]  ;;  %v17664_v54 = vld [vmem:[#allocation33_spill] sm:$0xff]  ;;  %v7342_v50 = vsel %vm4742_vm4, %v7337_v33, %v7341_v18 }
 0x529   :  { %v4727_v12 = vpop.permute.xlu1 %4726  ;;  %v5240_v4 = vsel %vm5126_vm5, %v17663_v39, %v4407_v7  ;;  %v6003_v36 = vadd.f32 %v15099_v43, %v6002_v15  ;;  %v8947_v61 = vpop.f32.mrb[82].mxu0  ;;  %v16951_v29 = vrot.slane %v17664_v54, 1  ;;  %v6662_v39 = vshrl.u32 %v17665_v46, 16 }
 0x52a   :  { %v4409_v59 = vpop.permute.xlu0 %4408  ;;  %v5369_v2 = vsel %vm5255_vm6, %v5240_v4, %v4727_v12  ;;  %v6014_v31 = vadd.f32 %v15099_v43, %v8947_v61  ;;  %v6005_v60 = vpop.f32.mrb[83].mxu0  ;;  %v6275_v12 = vmax.f32 %v6011_v22, 0.0  ;;  %v7346_v4 = vsel %vm4742_vm4, %v7341_v18, %v7345_v10  ;;  %v17667_v22 = vld [vmem:[#allocation67_spill] sm:$0xff] }
 0x52b   :  { %v6006_v15 = vadd.f32 %v15099_v43, %v6005_v60  ;;  %v6273_v37 = vmax.f32 %v6003_v36, 0.0  ;;  %v6613_v36 = vsel %vm3782_vm3, %v6608_v1, %v6612_v0 }
 0x52c   :  { %7526 = vrot.lane.b32.xlu0 %v7322_v20, %s9252_s0  ;;  %7534 = vrot.lane.b32.xlu1 %v7338_v16, %s9252_s0  ;;  %v6658_v20 = vshll.u32 %v17665_v46, 16  ;;  %v6276_v61 = vmax.f32 %v6014_v31, 0.0 }
 0x52d   :  { %v5111_v62 = vpop.permute.xlu1 %5110 }
 0x52e   :  { %v4729_v7 = vpop.permute.xlu0 %4728  ;;  %v5554_v16 = vsel %vm5384_vm7, %v5369_v2, %v5111_v62  ;;  %v6274_v2 = vmax.f32 %v6006_v15, 0.0  ;;  %v7349_v62 = vor.u32 %v7348_v52, %v7347_v9  ;;  %v15321_v38 = vpack.c.bf16 %v6276_v61, %v6275_v12 }
 0x52f   :  { %8976 = vmatprep.mubr.bf16.mxu0 %v5554_v16  ;;  %v7352_v16 = vrot.slane %v6658_v20, 2  ;;  %v6678_v15 = vshrl.u32 %v15134_v42, 16 }
 0x530   :  { %6947 = vrot.lane.b32.xlu0 %v6597_v3, %s9252_s0  ;;  %7536 = vrot.lane.b32.xlu1 %v7342_v50, %s9252_s0  ;;  %v5242_v3 = vsel %vm5126_vm5, %v17666_v34, %v4409_v59  ;;  %v6666_v50 = vshll.u32 %v17667_v22, 16  ;;  %v15328_v31 = vpack.c.bf16 %v6274_v2, %v6273_v37  ;;  %v7351_v34 = vrot.slane %v6662_v39, 1 }
 0x531   :  { %v5371_v33 = vsel %vm5255_vm6, %v5242_v3, %v4729_v7  ;;  %v5113_v60 = vpop.permute.xlu1 %5112  ;;  %v6670_v59 = vshrl.u32 %v17667_v22, 16  ;;  %v6616_v37 = vor.u32 %v6614_v13, %v6612_v0  ;;  %v7350_v52 = vsel %vm4742_vm4, %v7345_v10, %v7349_v62 }
 0x532   :  { %v5557_v18 = vsel %vm5384_vm7, %v5371_v33, %v5113_v60  ;;  %v6674_v7 = vshll.u32 %v15134_v42, 16  ;;  %v7353_v12 = vor.u32 %v7352_v16, %v7351_v34  ;;  %v7356_v61 = vrot.slane %v6666_v50, 2 }
 0x533   :  { %8977 = vmatmul.mubr.bf16.gmra.mrb[112].mxu0 %v5557_v18  ;;  %v6620_v13 = vrot.slane %v6618_v48, 1  ;;  %v6628_v0 = vrot.slane %v6626_v51, 1  ;;  %v7359_v3 = vrot.slane %v6678_v15, 1  ;;  %v6682_v33 = vshll.u32 %v15132_v27, 16 }
 0x534   :  { %6949 = vrot.lane.b32.xlu0 %v6605_v26, %s9252_s0  ;;  %7538 = vrot.lane.b32.xlu1 %v7346_v4, %s9252_s0  ;;  %v7127_v26 = vsel %vm258_vm0, %v16951_v29, %v16952_v41  ;;  %v7355_v4 = vrot.slane %v6670_v59, 1  ;;  %v7360_v2 = vrot.slane %v6674_v7, 2  ;;  %v7354_v60 = vsel %vm4742_vm4, %v7349_v62, %v7353_v12 }
 0x535   :  { %v7513_v9 = vpop.permute.xlu1 %7512  ;;  %v6621_v10 = vsel %vm3782_vm3, %v6616_v37, %v6620_v13  ;;  %v16958_v16 = vshrl.u32 %v15132_v27, 16  ;;  %v6624_v51 = vor.u32 %v6622_v57, %v6620_v13  ;;  %v6632_v34 = vor.u32 %v6630_v19, %v6628_v0 }
 0x536   :  { %v7870_v1 = vsel %vm5255_vm6, %v7127_v26, %v7513_v9  ;;  %v7357_v48 = vor.u32 %v7356_v61, %v7355_v4  ;;  %v7364_v26 = vrot.slane %v6682_v33, 2  ;;  %v6690_v57 = vshll.u32 %v15225_v23, 16 }
 0x537   :  { %8336 = vmatprep.mubr.bf16.mxu1 %v7870_v1  ;;  %v6629_v18 = vsel %vm3782_vm3, %v6624_v51, %v6628_v0  ;;  %v7363_v9 = vrot.slane %v16958_v16, 1  ;;  %v16957_v37 = vshrl.u32 %v15225_v23, 16  ;;  %v6644_v19 = vrot.slane %v6642_v35, 1 }
 0x538   :  { %6951 = vrot.lane.b32.xlu0 %v6613_v36, %s9252_s0  ;;  %7540 = vrot.lane.b32.xlu1 %v7350_v52, %s9252_s0  ;;  %v7361_v36 = vor.u32 %v7360_v2, %v7359_v3  ;;  %v7358_v62 = vsel %vm4742_vm4, %v7353_v12, %v7357_v48  ;;  %v6636_v52 = vrot.slane %v6634_v11, 1  ;;  %v16955_v12 = vshll.u32 %v15218_v45, 16 }
 0x539   :  { %v7365_v61 = vor.u32 %v7364_v26, %v7363_v9  ;;  %v7367_v13 = vrot.slane %v16957_v37, 1  ;;  %v7368_v11 = vrot.slane %v6690_v57, 2  ;;  %v16953_v0 = vshrl.u32 %v15218_v45, 16 }
 0x53a   :  { %v6637_v1 = vsel %vm3782_vm3, %v6632_v34, %v6636_v52  ;;  %v7362_v4 = vsel %vm4742_vm4, %v7357_v48, %v7361_v36  ;;  %v17669_v3 = vshrl.u32 %v17661_v53, 16  ;;  %v17670_v48 = vshll.u32 %v17662_v49, 16 }
 0x53b   :  { %v16954_v34 = vshrl.u32 %v15328_v31, 16  ;;  %v7369_v9 = vor.u32 %v7368_v11, %v7367_v13  ;;  %v6714_v13 = vshll.u32 %v15321_v38, 16 }
 0x53c   :  { %6953 = vrot.lane.b32.xlu0 %v6621_v10, %s9252_s0  ;;  %7542 = vrot.lane.b32.xlu1 %v7354_v60, %s9252_s0  ;;  %v17668_v10 = vshrl.u32 %v17659_v14, 16  ;;  %v6648_v2 = vor.u32 %v17669_v3, %v6644_v19  ;;  %v6652_v51 = vrot.slane %v17670_v48, 1 }
 0x53d   :  { %v7375_v48 = vrot.slane %v16954_v34, 1  ;;  %v7370_v29 = vsel %vm4742_vm4, %v7365_v61, %v7369_v9 }
 0x53e   :  { %v6640_v35 = vor.u32 %v17668_v10, %v6636_v52  ;;  %v7371_v52 = vrot.slane %v16953_v0, 1  ;;  %v6653_v10 = vsel %vm3782_vm3, %v6648_v2, %v6652_v51 }
 0x540   :  { %6955 = vrot.lane.b32.xlu0 %v6629_v18, %s9252_s0  ;;  %7544 = vrot.lane.b32.xlu1 %v7358_v62, %s9252_s0  ;;  %v6645_v60 = vsel %vm3782_vm3, %v6640_v35, %v6644_v19  ;;  %v16956_v18 = vshll.u32 %v15328_v31, 16  ;;  %v7366_v62 = vsel %vm4742_vm4, %v7361_v36, %v7365_v61  ;;  %v6660_v36 = vrot.slane %v6658_v20, 1 }
 0x541   :  { %v7380_v61 = vrot.slane %v6714_v13, 2 }
 0x542   :  { %v6664_v37 = vor.u32 %v6662_v39, %v6660_v36 }
 0x544   :  { %6957 = vrot.lane.b32.xlu0 %v6637_v1, %s9252_s0  ;;  %7546 = vrot.lane.b32.xlu1 %v7362_v4, %s9252_s0  ;;  %v8950_v26 = vpop.f32.mrb[84].mxu0  ;;  %v7372_v1 = vrot.slane %v16955_v12, 2 }
 0x545   :  { %v6027_v19 = vadd.f32 %v15099_v43, %v8950_v26  ;;  %v6018_v4 = vpop.f32.mrb[85].mxu0  ;;  %v7376_v26 = vrot.slane %v16956_v18, 2 }
 0x546   :  { %v6019_v35 = vadd.f32 %v15099_v43, %v6018_v4  ;;  %v8951_v3 = vpop.f32.mrb[86].mxu0  ;;  %v17671_v4 = vshrl.u32 %v17662_v49, 16  ;;  %v7373_v41 = vor.u32 %v7372_v1, %v7371_v52  ;;  %v6668_v1 = vrot.slane %v6666_v50, 1 }
 0x547   :  { %v6030_v11 = vadd.f32 %v15099_v43, %v8951_v3  ;;  %v6279_v3 = vmax.f32 %v6027_v19, 0.0 }
 0x548   :  { %6959 = vrot.lane.b32.xlu0 %v6645_v60, %s9252_s0  ;;  %7548 = vrot.lane.b32.xlu1 %v7366_v62, %s9252_s0  ;;  %v6021_v60 = vpop.f32.mrb[87].mxu0  ;;  %v6718_v62 = vshrl.u32 %v15321_v38, 16  ;;  %v6656_v20 = vor.u32 %v17671_v4, %v6652_v51  ;;  %v6277_v34 = vmax.f32 %v6019_v35, 0.0  ;;  %v6669_v19 = vsel %vm3782_vm3, %v6664_v37, %v6668_v1 }
 0x549   :  { %v6022_v2 = vadd.f32 %v15099_v43, %v6021_v60  ;;  %v6280_v0 = vmax.f32 %v6030_v11, 0.0  ;;  %v7377_v60 = vor.u32 %v7376_v26, %v7375_v48  ;;  %v6676_v35 = vrot.slane %v6674_v7, 1 }
 0x54a   :  { %v6661_v18 = vsel %vm3782_vm3, %v6656_v20, %v6660_v36  ;;  %v7379_v51 = vrot.slane %v6718_v62, 1  ;;  %v6672_v37 = vor.u32 %v6670_v59, %v6668_v1 }
 0x54b   :  { %v6278_v12 = vmax.f32 %v6022_v2, 0.0  ;;  %v6680_v26 = vor.u32 %v6678_v15, %v6676_v35  ;;  %v6684_v15 = vrot.slane %v6682_v33, 1 }
 0x54c   :  { %6961 = vrot.lane.b32.xlu0 %v6653_v10, %s9252_s0  ;;  %7550 = vrot.lane.b32.xlu1 %v7370_v29, %s9252_s0  ;;  %v15431_v10 = vpack.c.bf16 %v6280_v0, %v6279_v3  ;;  %v4411_v16 = vpop.permute.xlu1 %4410  ;;  %v7374_v29 = vsel %vm4742_vm4, %v7369_v9, %v7373_v41  ;;  %v6677_v48 = vsel %vm3782_vm3, %v6672_v37, %v6676_v35 }
 0x54d   :  { %v15437_v52 = vpack.c.bf16 %v6278_v12, %v6277_v34  ;;  %v7378_v12 = vsel %vm4742_vm4, %v7373_v41, %v7377_v60  ;;  %v7381_v34 = vor.u32 %v7380_v61, %v7379_v51  ;;  %v17672_v41 = vld [vmem:[#allocation48_spill] sm:$0xff] }
 0x54e   :  { %v6730_v36 = vshll.u32 %v15431_v10, 16  ;;  %v6734_v11 = vshrl.u32 %v15431_v10, 16  ;;  %v5244_v7 = vsel %vm5126_vm5, %v17672_v41, %v4411_v16 }
 0x54f   :  { %v6722_v39 = vshll.u32 %v15437_v52, 16  ;;  %v6726_v0 = vshrl.u32 %v15437_v52, 16  ;;  %v7382_v2 = vsel %vm4742_vm4, %v7377_v60, %v7381_v34  ;;  %v6685_v60 = vsel %vm3782_vm3, %v6680_v26, %v6684_v15 }
 0x550   :  { %6963 = vrot.lane.b32.xlu0 %v6661_v18, %s9252_s0  ;;  %7552 = vrot.lane.b32.xlu1 %v7374_v29, %s9252_s0  ;;  %v4731_v18 = vpop.permute.xlu1 %4730  ;;  %v7387_v59 = vrot.slane %v6734_v11, 1  ;;  %v7388_v16 = vrot.slane %v6730_v36, 2  ;;  %v6692_v29 = vrot.slane %v6690_v57, 1  ;;  %v17674_v57 = vshrl.u32 %v15225_v23, 16 }
 0x551   :  { %v7383_v50 = vrot.slane %v6726_v0, 1  ;;  %v7384_v9 = vrot.slane %v6722_v39, 2  ;;  %v5373_v4 = vsel %vm5255_vm6, %v5244_v7, %v4731_v18  ;;  %v17673_v18 = vshrl.u32 %v15132_v27, 16 }
 0x552   :  { %v6696_v37 = vor.u32 %v17674_v57, %v6692_v29  ;;  %v17675_v26 = vshll.u32 %v15218_v45, 16 }
 0x553   :  { %v7385_v51 = vor.u32 %v7384_v9, %v7383_v50  ;;  %v6688_v50 = vor.u32 %v17673_v18, %v6684_v15 }
 0x554   :  { %6965 = vrot.lane.b32.xlu0 %v6669_v19, %s9252_s0  ;;  %7554 = vrot.lane.b32.xlu1 %v7378_v12, %s9252_s0  ;;  %v5115_v20 = vpop.permute.xlu1 %5114  ;;  %v15481_v12 = vor.u32 %v7388_v16, %v7387_v59  ;;  %v7128_v16 = vrot.slane %v14280_v55, 1 }
 0x555   :  { %v4413_v3 = vpop.permute.xlu0 %4412  ;;  %v5560_v61 = vsel %vm5384_vm7, %v5373_v4, %v5115_v20  ;;  %v7386_v19 = vsel %vm4742_vm4, %v7381_v34, %v7385_v51  ;;  %v6693_v9 = vsel %vm3782_vm3, %v6688_v50, %v6692_v29  ;;  %v17679_v50 = vrot.slane %v14230_v30, 1 }
 0x556   :  { %8980 = vmatprep.mubr.bf16.mxu0 %v5560_v61  ;;  %v5246_v33 = vsel %vm5126_vm5, %v14823_v58, %v4413_v3  ;;  %v7390_v41 = vsel %vm4742_vm4, %v7385_v51, %v15481_v12  ;;  %v17676_v3 = vshll.u32 %v15328_v31, 16  ;;  %v17677_v61 = vshrl.u32 %v15218_v45, 16 }
 0x558   :  { %6967 = vrot.lane.b32.xlu0 %v6677_v48, %s9252_s0  ;;  %7556 = vrot.lane.b32.xlu1 %v7382_v2, %s9252_s0  ;;  %v7517_v1 = vpop.permute.xlu1 %7516  ;;  %v6700_v2 = vrot.slane %v17675_v26, 1  ;;  %v6708_v59 = vrot.slane %v17676_v3, 1  ;;  %v6724_v26 = vrot.slane %v6722_v39, 1 }
 0x559   :  { %v4733_v35 = vpop.permute.xlu0 %4732 }
 0x55a   :  { %v5375_v34 = vsel %vm5255_vm6, %v5246_v33, %v4733_v35  ;;  %v6701_v20 = vsel %vm3782_vm3, %v6696_v37, %v6700_v2  ;;  %v6704_v15 = vor.u32 %v17677_v61, %v6700_v2  ;;  %v7129_v33 = vsel %vm258_vm0, %v17679_v50, %v7128_v16 }
 0x55c   :  { %6969 = vrot.lane.b32.xlu0 %v6685_v60, %s9252_s0  ;;  %7558 = vrot.lane.b32.xlu1 %v7386_v19, %s9252_s0  ;;  %v16960_v60 = vrot.slane %v14278_v56, 1  ;;  %v6709_v29 = vsel %vm3782_vm3, %v6704_v15, %v6708_v59  ;;  %v17678_v19 = vshrl.u32 %v15328_v31, 16  ;;  %v6728_v15 = vor.u32 %v6726_v0, %v6724_v26 }
 0x55d   :  { %v6934_v7 = vpop.permute.xlu0 %6933 }
 0x55e   :  { %v5117_v48 = vpop.permute.xlu1 %5116  ;;  %v7659_v58 = vsel %vm5255_vm6, %v17664_v54, %v6934_v7  ;;  %v6712_v35 = vor.u32 %v17678_v19, %v6708_v59 }
 0x55f   :  { %v5563_v4 = vsel %vm5384_vm7, %v5375_v34, %v5117_v48  ;;  %8337 = vmatmul.mubr.bf16.vlgmr.msra.gmra.mrb[0].mxu1 %v7659_v58  ;;  %v7131_v34 = vsel %vm258_vm0, %v7128_v16, %v16960_v60 }
 0x560   :  { %6971 = vrot.lane.b32.xlu0 %v6693_v9, %s9252_s0  ;;  %7560 = vrot.lane.b32.xlu1 %v7390_v41, %s9252_s0  ;;  %v6716_v9 = vrot.slane %v6714_v13, 1  ;;  %v7878_v13 = vsel %vm5255_vm6, %v7131_v34, %v7517_v1 }
 0x561   :  { %8981 = vmatmul.mubr.bf16.gmra.mrb[116].mxu0 %v5563_v4 }
 0x562   :  { %v6717_v41 = vsel %vm3782_vm3, %v6712_v35, %v6716_v9 }
 0x564   :  { %6973 = vrot.lane.b32.xlu0 %v6701_v20, %s9252_s0  ;;  %v6936_v51 = vpop.permute.xlu0 %6935  ;;  %v6720_v20 = vor.u32 %v6718_v62, %v6716_v9  ;;  %v17681_v62 = vld [vmem:[#allocation44_spill] sm:$0xff] }
 0x565   :  { %v7662_v37 = vsel %vm5255_vm6, %v14230_v30, %v6936_v51  ;;  %v17680_v51 = vld [vmem:[#allocation42_spill] sm:$0xff]  ;;  %v6389_v50 = vshll.u32 %v17681_v62, 16 }
 0x566   :  { %v6394_v39 = vshll.u32 %v17680_v51, 16  ;;  %v6725_v16 = vsel %vm3782_vm3, %v6720_v20, %v6724_v26 }
 0x567   :  { %v6391_v26 = vrot.slane %v6389_v50, 1  ;;  %v7217_v20 = vrot.slane %v6389_v50, 2 }
 0x568   :  { %6975 = vrot.lane.b32.xlu0 %v6709_v29, %s9252_s0  ;;  %v7515_v18 = vpop.permute.xlu0 %7514  ;;  %v8954_v7 = vpop.f32.mrb[88].mxu0  ;;  %v16959_v29 = vshrl.u32 %v17680_v51, 16 }
 0x569   :  { %v7874_v57 = vsel %vm5255_vm6, %v7129_v33, %v7515_v18  ;;  %v6043_v2 = vadd.f32 %v15099_v43, %v8954_v7  ;;  %v6034_v58 = vpop.f32.mrb[89].mxu0  ;;  %v6387_v18 = vshrl.u32 %v17681_v62, 16 }
 0x56a   :  { %8342 = vmatprep.mubr.bf16.mxu1 %v7874_v57  ;;  %v4415_v48 = vpop.permute.xlu1 %4414  ;;  %v6035_v30 = vadd.f32 %v15099_v43, %v6034_v58  ;;  %v8955_v4 = vpop.f32.mrb[90].mxu0  ;;  %v6732_v57 = vrot.slane %v6730_v36, 1  ;;  %v7220_v58 = vrot.slane %v6394_v39, 2 }
 0x56b   :  { %8343 = vmatmul.mubr.bf16.gmra.mrb[4].mxu1 %v7662_v37  ;;  %v6046_v3 = vadd.f32 %v15099_v43, %v8955_v4  ;;  %v6037_v59 = vpop.f32.mrb[91].mxu0  ;;  %v6283_v19 = vmax.f32 %v6043_v2, 0.0  ;;  %v7219_v2 = vrot.slane %v16959_v29, 1  ;;  %v5248_v36 = vsel %vm5126_vm5, %v14862_v47, %v4415_v48 }
 0x56c   :  { %6977 = vrot.lane.b32.xlu0 %v6717_v41, %s9252_s0  ;;  %8348 = vmatprep.mubr.bf16.mxu1 %v7878_v13  ;;  %v6038_v1 = vadd.f32 %v15099_v43, %v6037_v59  ;;  %v6281_v33 = vmax.f32 %v6035_v30, 0.0  ;;  %v6733_v41 = vsel %vm3782_vm3, %v6728_v15, %v6732_v57  ;;  %v7216_v13 = vrot.slane %v6387_v18, 1 }
 0x56d   :  { %v6284_v35 = vmax.f32 %v6046_v3, 0.0 }
 0x56e   :  { %v4735_v61 = vpop.permute.xlu1 %4734  ;;  %v6282_v9 = vmax.f32 %v6038_v1, 0.0  ;;  %v7218_v29 = vor.u32 %v7217_v20, %v7216_v13 }
 0x56f   :  { %v15545_v37 = vpack.c.bf16 %v6284_v35, %v6283_v19  ;;  %v5377_v3 = vsel %vm5255_vm6, %v5248_v36, %v4735_v61  ;;  %v7132_v36 = vrot.slane %v14300_v8, 1 }
 0x570   :  { %6979 = vrot.lane.b32.xlu0 %v6725_v16, %s9252_s0  ;;  %v15549_v0 = vpack.c.bf16 %v6282_v9, %v6281_v33  ;;  %v6736_v16 = vor.u32 %v6734_v11, %v6732_v57  ;;  %v6396_v11 = vrot.slane %v6394_v39, 1  ;;  %v7134_v39 = vrot.slane %v14291_v44, 1 }
 0x571   :  { %v15547_v34 = vpop.permute.xlu0 %4416  ;;  %v6746_v1 = vshll.u32 %v15545_v37, 16 }
 0x572   :  { %v7521_v7 = vpop.permute.xlu1 %7520  ;;  %v6738_v30 = vshll.u32 %v15549_v0, 16  ;;  %v6742_v4 = vshrl.u32 %v15549_v0, 16 }
 0x574   :  { %6981 = vrot.lane.b32.xlu0 %v6733_v41, %s9252_s0  ;;  %v6740_v47 = vrot.slane %v6738_v30, 1  ;;  %v7391_v48 = vrot.slane %v6742_v4, 1  ;;  %v7392_v33 = vrot.slane %v6738_v30, 2  ;;  %v6392_v41 = vor.u32 %v6391_v26, %v6387_v18 }
 0x575   :  { %v6938_v59 = vpop.permute.xlu0 %6937 }
 0x576   :  { %v7665_v19 = vsel %vm5255_vm6, %v14280_v55, %v6938_v59  ;;  %v5119_v35 = vpop.permute.xlu1 %5118  ;;  %v6741_v61 = vsel %vm3782_vm3, %v6736_v16, %v6740_v47  ;;  %v7393_v9 = vor.u32 %v7392_v33, %v7391_v48  ;;  %v7221_v55 = vor.u32 %v7220_v58, %v7219_v2  ;;  %v17682_v59 = vld [vmem:[#allocation45_spill] sm:$0xff] }
 0x577   :  { %8349 = vmatmul.mubr.bf16.gmra.mrb[8].mxu1 %v7665_v19  ;;  %v5566_v50 = vsel %vm5384_vm7, %v5377_v3, %v5119_v35  ;;  %v6402_v60 = vshll.u32 %v17682_v59, 16  ;;  %v17683_v3 = vshrl.u32 %v15545_v37, 16  ;;  %v7396_v16 = vrot.slane %v6746_v1, 2 }
 0x578   :  { %8984 = vmatprep.mubr.bf16.mxu0 %v5566_v50  ;;  %6983 = vrot.lane.b32.xlu0 %v6741_v61, %s9252_s0  ;;  %v7394_v30 = vsel %vm4742_vm4, %v15481_v12, %v7393_v9  ;;  %v6406_v18 = vshrl.u32 %v17682_v59, 16  ;;  %v6397_v26 = vsel %vm3782_vm3, %v6392_v41, %v6396_v11  ;;  %v6744_v13 = vor.u32 %v6742_v4, %v6740_v47 }
 0x579   :  { %v7395_v19 = vrot.slane %v17683_v3, 1  ;;  %7562 = vrot.lane.b32.xlu1 %v7394_v30, %s9252_s0  ;;  %v17684_v58 = vrot.slane %v14278_v56, 1  ;;  %v7222_v12 = vsel %vm4742_vm4, %v7218_v29, %v7221_v55  ;;  %v7224_v35 = vrot.slane %v6402_v60, 2 }
 0x57a   :  { %v6940_v57 = vpop.permute.xlu0 %6939  ;;  %v5121_v15 = vpop.permute.xlu1 %5120  ;;  %v15585_v50 = vrot.slane %v6746_v1, 1  ;;  %v7223_v4 = vrot.slane %v6406_v18, 1  ;;  %v7135_v41 = vsel %vm258_vm0, %v7132_v36, %v7134_v39  ;;  %v15598_v30 = vrot.slane %v6402_v60, 1 }
 0x57b   :  { %v7133_v20 = vsel %vm258_vm0, %v17684_v58, %v7132_v36  ;;  %v15587_v61 = vor.u32 %v7396_v16, %v7395_v19  ;;  %v7668_v47 = vsel %vm5255_vm6, %v14278_v56, %v6940_v57  ;;  %v7886_v29 = vsel %vm5255_vm6, %v7135_v41, %v7521_v7 }
 0x57c   :  { %6897 = vrot.lane.b32.xlu0 %v6397_v26, %s9252_s0  ;;  %v6749_v1 = vsel %vm3782_vm3, %v6744_v13, %v15585_v50  ;;  %v5250_v3 = vsel %vm5126_vm5, %v15024_v63, %v15547_v34  ;;  %v17685_v7 = vshrl.u32 %v17680_v51, 16  ;;  %v15609_v26 = vor.u32 %v7224_v35, %v7223_v4 }
 0x57d   :  { %7476 = vrot.lane.b32.xlu1 %v7222_v12, %s9252_s0  ;;  %v7398_v36 = vsel %vm4742_vm4, %v7393_v9, %v15587_v61  ;;  %v7138_v4 = vrot.slane %v14384_v5, 1 }
 0x57e   :  { %v7519_v2 = vpop.permute.xlu0 %7518  ;;  %v4419_v33 = vpop.permute.xlu1 %4418  ;;  %v6400_v16 = vor.u32 %v17685_v7, %v6396_v11  ;;  %v7226_v11 = vsel %vm4742_vm4, %v7221_v55, %v15609_v26 }
 0x57f   :  { %v7882_v48 = vsel %vm5255_vm6, %v7133_v20, %v7519_v2  ;;  %v5252_v2 = vsel %vm5126_vm5, %v15070_v17, %v4419_v33  ;;  %v7136_v20 = vrot.slane %v14388_v24, 1 }
 0x580   :  { %8354 = vmatprep.mubr.bf16.mxu1 %v7882_v48  ;;  %6985 = vrot.lane.b32.xlu0 %v6749_v1, %s9252_s0  ;;  %v6405_v63 = vsel %vm3782_vm3, %v6400_v16, %v15598_v30 }
 0x581   :  { %8355 = vmatmul.mubr.bf16.gmra.mrb[12].mxu1 %v7668_v47  ;;  %7564 = vrot.lane.b32.xlu1 %v7398_v36, %s9252_s0  ;;  %v7139_v16 = vsel %vm258_vm0, %v7136_v20, %v7138_v4 }
 0x582   :  { %8360 = vmatprep.mubr.bf16.mxu1 %v7886_v29  ;;  %v4737_v19 = vpop.permute.xlu0 %4736  ;;  %v7525_v57 = vpop.permute.xlu1 %7524 }
 0x583   :  { %v5379_v56 = vsel %vm5255_vm6, %v5250_v3, %v4737_v19  ;;  %v7137_v3 = vsel %vm258_vm0, %v7134_v39, %v7136_v20 }
 0x584   :  { %v5569_v60 = vsel %vm5384_vm7, %v5379_v56, %v5121_v15  ;;  %6899 = vrot.lane.b32.xlu0 %v6405_v63, %s9252_s0 }
 0x585   :  { %8985 = vmatmul.mubr.bf16.gmra.mrb[120].mxu0 %v5569_v60  ;;  %7478 = vrot.lane.b32.xlu1 %v7226_v11, %s9252_s0  ;;  %v7894_v11 = vsel %vm5255_vm6, %v7139_v16, %v7525_v57 }
 0x586   :  { %v6942_v34 = vpop.permute.xlu0 %6941  ;;  %v4739_v9 = vpop.permute.xlu1 %4738 }
 0x587   :  { %v7671_v13 = vsel %vm5255_vm6, %v14300_v8, %v6942_v34  ;;  %v8958_v15 = vpop.f32.mrb[92].mxu0  ;;  %v5381_v48 = vsel %vm5255_vm6, %v5252_v2, %v4739_v9 }
 0x588   :  { %v6059_v12 = vadd.f32 %v15099_v43, %v8958_v15  ;;  %v6050_v35 = vpop.f32.mrb[93].mxu0 }
 0x589   :  { %8361 = vmatmul.mubr.bf16.gmra.mrb[16].mxu1 %v7671_v13  ;;  %v6051_v55 = vadd.f32 %v15099_v43, %v6050_v35  ;;  %v8959_v47 = vpop.f32.mrb[94].mxu0 }
 0x58a   :  { %v6944_v58 = vpop.permute.xlu0 %6943  ;;  %v5123_v8 = vpop.permute.xlu1 %5122  ;;  %v6062_v29 = vadd.f32 %v15099_v43, %v8959_v47  ;;  %v6287_v19 = vmax.f32 %v6059_v12, 0.0 }
 0x58b   :  { %v5572_v41 = vsel %vm5384_vm7, %v5381_v48, %v5123_v8  ;;  %v6053_v1 = vpop.f32.mrb[95].mxu0  ;;  %v6285_v60 = vmax.f32 %v6051_v55, 0.0  ;;  %v7674_v34 = vsel %vm5255_vm6, %v14291_v44, %v6944_v58  ;;  %v17689_v44 = vshrl.u32 %v15545_v37, 16 }
 0x58c   :  { %8988 = vmatprep.mubr.bf16.mxu0 %v5572_v41  ;;  %v6054_v17 = vadd.f32 %v15099_v43, %v6053_v1  ;;  %v6288_v56 = vmax.f32 %v6062_v29, 0.0  ;;  %v17687_v43 = vld [vmem:[#allocation84_spill] sm:$0xff] }
 0x58d   :  { %v6410_v9 = vshll.u32 %v17687_v43, 16  ;;  %v6414_v39 = vshrl.u32 %v17687_v43, 16  ;;  %v6752_v58 = vor.u32 %v17689_v44, %v15585_v50 }
 0x58e   :  { %v7523_v33 = vpop.permute.xlu0 %7522  ;;  %v5125_v7 = vpop.permute.xlu1 %5124  ;;  %v6286_v63 = vmax.f32 %v6054_v17, 0.0  ;;  %v15638_v13 = vpack.c.bf16 %v6288_v56, %v6287_v19  ;;  %v6408_v56 = vor.u32 %v6406_v18, %v15598_v30  ;;  %v7140_v18 = vrot.slane %v14452_v21, 1 }
 0x58f   :  { %v7890_v36 = vsel %vm5255_vm6, %v7137_v3, %v7523_v33  ;;  %v7227_v48 = vrot.slane %v6414_v39, 1  ;;  %v7228_v8 = vrot.slane %v6410_v9, 2  ;;  %v6412_v16 = vrot.slane %v6410_v9, 1 }
 0x590   :  { %8366 = vmatprep.mubr.bf16.mxu1 %v7890_v36  ;;  %17686 = vst [vmem:[#allocation65_spill] sm:$0xff] %v15638_v13  ;;  %v15643_v15 = vpack.c.bf16 %v6286_v63, %v6285_v60  ;;  %v6762_v55 = vshll.u32 %v15638_v13, 16  ;;  %v6766_v29 = vshrl.u32 %v15638_v13, 16  ;;  %v17690_v60 = vld [vmem:[#allocation79_spill] sm:$0xff] }
 0x591   :  { %8367 = vmatmul.mubr.bf16.gmra.mrb[20].mxu1 %v7674_v34  ;;  %v6418_v63 = vshll.u32 %v17690_v60, 16  ;;  %v6413_v9 = vsel %vm3782_vm3, %v6408_v56, %v6412_v16 }
 0x592   :  { %17688 = vst [vmem:[#allocation74_spill] sm:$0xff] %v15643_v15  ;;  %8372 = vmatprep.mubr.bf16.mxu1 %v7894_v11  ;;  %v4421_v2 = vpop.permute.xlu0 %4420  ;;  %v15645_v20 = vpop.permute.xlu1 %7528  ;;  %v6754_v12 = vshll.u32 %v15643_v15, 16  ;;  %v6758_v35 = vshrl.u32 %v15643_v15, 16  ;;  %v7229_v11 = vor.u32 %v7228_v8, %v7227_v48  ;;  %v15683_v8 = vrot.slane %v6762_v55, 1 }
 0x593   :  { %v5254_v1 = vsel %vm5126_vm5, %v15136_v25, %v4421_v2  ;;  %v6422_v25 = vshrl.u32 %v17690_v60, 16  ;;  %v7403_v2 = vrot.slane %v6766_v29, 1 }
 0x594   :  { %v6756_v47 = vrot.slane %v6754_v12, 1  ;;  %v7399_v57 = vrot.slane %v6758_v35, 1  ;;  %v7400_v41 = vrot.slane %v6754_v12, 2  ;;  %v7404_v12 = vrot.slane %v6762_v55, 2 }
 0x595   :  { %v7230_v48 = vsel %vm4742_vm4, %v15609_v26, %v7229_v11  ;;  %v15697_v55 = vrot.slane %v6418_v63, 1 }
 0x596   :  { %v4741_v17 = vpop.permute.xlu0 %4740  ;;  %v15657_v3 = vpop.permute.xlu1 %7530  ;;  %v6757_v19 = vsel %vm3782_vm3, %v6752_v58, %v6756_v47  ;;  %v7401_v50 = vor.u32 %v7400_v41, %v7399_v57  ;;  %v6760_v58 = vor.u32 %v6758_v35, %v6756_v47  ;;  %v15685_v57 = vor.u32 %v7404_v12, %v7403_v2 }
 0x597   :  { %v5383_v33 = vsel %vm5255_vm6, %v5254_v1, %v4741_v17  ;;  %6987 = vrot.lane.b32.xlu0 %v6757_v19, %s9252_s0  ;;  %v7232_v41 = vrot.slane %v6418_v63, 2  ;;  %v7141_v1 = vsel %vm258_vm0, %v7138_v4, %v7140_v18  ;;  %v7142_v17 = vrot.slane %v14442_v6, 1 }
 0x598   :  { %v5575_v36 = vsel %vm5384_vm7, %v5383_v33, %v5125_v7  ;;  %v7402_v34 = vsel %vm4742_vm4, %v15587_v61, %v7401_v50  ;;  %v7231_v61 = vrot.slane %v6422_v25, 1  ;;  %v6765_v26 = vsel %vm3782_vm3, %v6760_v58, %v15683_v8 }
 0x599   :  { %8989 = vmatmul.mubr.bf16.gmra.mrb[124].mxu0 %v5575_v36  ;;  %7566 = vrot.lane.b32.xlu1 %v7402_v34, %s9252_s0  ;;  %v7406_v33 = vsel %vm4742_vm4, %v7401_v50, %v15685_v57  ;;  %v6416_v4 = vor.u32 %v6414_v39, %v6412_v16  ;;  %v7143_v34 = vsel %vm258_vm0, %v7140_v18, %v7142_v17  ;;  %v7144_v12 = vrot.slane %v17654_v28, 1 }
 0x59a   :  { %v6946_v44 = vpop.permute.xlu0 %6945  ;;  %v15675_v7 = vpop.permute.xlu1 %7532  ;;  %v15702_v19 = vor.u32 %v7232_v41, %v7231_v61  ;;  %v7902_v50 = vsel %vm5255_vm6, %v7143_v34, %v15645_v20 }
 0x59b   :  { %v7677_v30 = vsel %vm5255_vm6, %v14388_v24, %v6946_v44  ;;  %6901 = vrot.lane.b32.xlu0 %v6413_v9, %s9252_s0  ;;  %v6421_v63 = vsel %vm3782_vm3, %v6416_v4, %v15697_v55  ;;  %v7145_v20 = vsel %vm258_vm0, %v7142_v17, %v7144_v12  ;;  %v15727_v9 = vld [vmem:[%s16623_s4] ss:$0 sm:$0xff] }
 0x59c   :  { %8373 = vmatmul.mubr.bf16.gmra.mrb[24].mxu1 %v7677_v30  ;;  %v7234_v39 = vsel %vm4742_vm4, %v7229_v11, %v15702_v19  ;;  %v7906_v61 = vsel %vm5255_vm6, %v7145_v20, %v15657_v3  ;;  %v17692_v3 = vld [vmem:[#allocation49_spill] sm:$0xff] }
 0x59d   :  { %7480 = vrot.lane.b32.xlu1 %v7230_v48, %s9252_s0 }
 0x59e   :  { %v7527_v24 = vpop.permute.xlu0 %7526  ;;  %v15692_v47 = vpop.permute.xlu1 %7534 }
 0x59f   :  { %v7898_v35 = vsel %vm5255_vm6, %v7141_v1, %v7527_v24  ;;  %6989 = vrot.lane.b32.xlu0 %v6765_v26, %s9252_s0  ;;  %v7146_v26 = vrot.slane %v17656_v40, 1 }
 0x5a0   :  { %8380 = vmatprep.mubr.bf16.mxu1 %v7898_v35 }
 0x5a1   :  { %7568 = vrot.lane.b32.xlu1 %v7406_v33, %s9252_s0  ;;  %v7147_v20 = vsel %vm258_vm0, %v7144_v12, %v7146_v26 }
 0x5a2   :  { %v6948_v56 = vpop.permute.xlu0 %6947  ;;  %v15708_v2 = vpop.permute.xlu1 %7536 }
 0x5a3   :  { %v7680_v36 = vsel %vm5255_vm6, %v14384_v5, %v6948_v56  ;;  %6903 = vrot.lane.b32.xlu0 %v6421_v63, %s9252_s0  ;;  %v6426_v63 = vshll.u32 %v17692_v3, 16 }
 0x5a4   :  { %8381 = vmatmul.mubr.bf16.gmra.mrb[28].mxu1 %v7680_v36 }
 0x5a5   :  { %8387 = vmatprep.mubr.bf16.mxu1 %v7902_v50  ;;  %7482 = vrot.lane.b32.xlu1 %v7234_v39, %s9252_s0  ;;  %v6430_v50 = vshrl.u32 %v17692_v3, 16 }
 0x5a6   :  { %v6950_v16 = vpop.permute.xlu0 %6949  ;;  %v15718_v5 = vpop.permute.xlu1 %7538 }
 0x5a7   :  { %v8962_v18 = vpop.f32.mrb[96].mxu0  ;;  %v7683_v30 = vsel %vm5255_vm6, %v14452_v21, %v6950_v16 }
 0x5a8   :  { %v6075_v11 = vadd.f32 %v15727_v9, %v8962_v18  ;;  %v6066_v58 = vpop.f32.mrb[97].mxu0 }
 0x5a9   :  { %v6067_v48 = vadd.f32 %v15727_v9, %v6066_v58  ;;  %v8963_v41 = vpop.f32.mrb[98].mxu0 }
 0x5aa   :  { %v6952_v44 = vpop.permute.xlu0 %6951  ;;  %v15733_v24 = vpop.permute.xlu1 %7540  ;;  %v6078_v21 = vadd.f32 %v15727_v9, %v8963_v41  ;;  %v6291_v33 = vmax.f32 %v6075_v11, 0.0  ;;  %v7910_v11 = vsel %vm5255_vm6, %v7147_v20, %v15675_v7  ;;  %v7235_v41 = vrot.slane %v6430_v50, 1 }
 0x5ab   :  { %v6069_v1 = vpop.f32.mrb[99].mxu0  ;;  %v6289_v56 = vmax.f32 %v6067_v48, 0.0  ;;  %v6768_v48 = vor.u32 %v6766_v29, %v15683_v8  ;;  %v6424_v29 = vor.u32 %v6422_v25, %v15697_v55 }
 0x5ac   :  { %8388 = vmatmul.mubr.bf16.gmra.mrb[32].mxu1 %v7683_v30  ;;  %v6070_v17 = vadd.f32 %v15727_v9, %v6069_v1  ;;  %v6292_v4 = vmax.f32 %v6078_v21, 0.0  ;;  %v7686_v30 = vsel %vm5255_vm6, %v14442_v6, %v6952_v44  ;;  %v7236_v21 = vrot.slane %v6426_v63, 2 }
 0x5ad   :  { %8393 = vmatprep.mubr.bf16.mxu1 %v7906_v61 }
 0x5ae   :  { %v6954_v35 = vpop.permute.xlu0 %6953  ;;  %v6290_v36 = vmax.f32 %v6070_v17, 0.0  ;;  %v15738_v34 = vpack.c.bf16 %v6292_v4, %v6291_v33  ;;  %v15744_v18 = vpop.permute.xlu1 %7542  ;;  %v7148_v33 = vrot.slane %v17657_v32, 1 }
 0x5af   :  { %v7689_v25 = vsel %vm5255_vm6, %v17654_v28, %v6954_v35 }
 0x5b0   :  { %17691 = vst [vmem:[#allocation64_spill] sm:$0xff] %v15738_v34  ;;  %v15742_v16 = vpack.c.bf16 %v6290_v36, %v6289_v56  ;;  %v6778_v1 = vshll.u32 %v15738_v34, 16  ;;  %v6428_v36 = vrot.slane %v6426_v63, 1  ;;  %v7149_v55 = vsel %vm258_vm0, %v7146_v26, %v7148_v33 }
 0x5b1   :  { %v7914_v63 = vsel %vm5255_vm6, %v7149_v55, %v15692_v47  ;;  %v7150_v47 = vrot.slane %v17659_v14, 1 }
 0x5b2   :  { %v6956_v39 = vpop.permute.xlu0 %6955  ;;  %17693 = vst [vmem:[#allocation85_spill] sm:$0xff] %v15742_v16  ;;  %v6770_v58 = vshll.u32 %v15742_v16, 16  ;;  %v6774_v61 = vshrl.u32 %v15742_v16, 16  ;;  %v15765_v8 = vpop.permute.xlu1 %7544  ;;  %v7412_v54 = vrot.slane %v6778_v1, 2  ;;  %v6780_v35 = vrot.slane %v6778_v1, 1 }
 0x5b3   :  { %v6432_v1 = vor.u32 %v6430_v50, %v6428_v36 }
 0x5b4   :  { %8394 = vmatmul.mubr.bf16.gmra.mrb[36].mxu1 %v7686_v30  ;;  %v6772_v12 = vrot.slane %v6770_v58, 1  ;;  %v7407_v44 = vrot.slane %v6774_v61, 1  ;;  %v7408_v17 = vrot.slane %v6770_v58, 2  ;;  %v17694_v30 = vld [vmem:[#allocation28_spill] sm:$0xff] }
 0x5b5   :  { %8399 = vmatprep.mubr.bf16.mxu1 %v7910_v11  ;;  %v6434_v20 = vshll.u32 %v17694_v30, 16 }
 0x5b6   :  { %v15757_v6 = vpop.permute.xlu0 %6957  ;;  %v6773_v4 = vsel %vm3782_vm3, %v6768_v48, %v6772_v12  ;;  %v7409_v56 = vor.u32 %v7408_v17, %v7407_v44  ;;  %v7237_v48 = vor.u32 %v7236_v21, %v7235_v41  ;;  %v17695_v44 = vshrl.u32 %v15738_v34, 16 }
 0x5b7   :  { %6991 = vrot.lane.b32.xlu0 %v6773_v4, %s9252_s0  ;;  %v6429_v4 = vsel %vm3782_vm3, %v6424_v29, %v6428_v36  ;;  %v6776_v11 = vor.u32 %v6774_v61, %v6772_v12  ;;  %v6436_v12 = vrot.slane %v6434_v20, 1  ;;  %v7152_v36 = vrot.slane %v17661_v53, 1 }
 0x5b8   :  { %v7410_v7 = vsel %vm4742_vm4, %v15685_v57, %v7409_v56  ;;  %v7411_v17 = vrot.slane %v17695_v44, 1  ;;  %v17696_v57 = vshrl.u32 %v17694_v30, 16  ;;  %v7238_v28 = vsel %vm4742_vm4, %v15702_v19, %v7237_v48  ;;  %v15792_v44 = vpop.permute.xlu1 %7546 }
 0x5b9   :  { %7570 = vrot.lane.b32.xlu1 %v7410_v7, %s9252_s0  ;;  %v7240_v7 = vrot.slane %v6434_v20, 2  ;;  %v6781_v61 = vsel %vm3782_vm3, %v6776_v11, %v6780_v35  ;;  %v6437_v11 = vsel %vm3782_vm3, %v6432_v1, %v6436_v12 }
 0x5ba   :  { %v15770_v58 = vpop.permute.xlu0 %6959  ;;  %v7239_v41 = vrot.slane %v17696_v57, 1  ;;  %v15790_v26 = vor.u32 %v7412_v54, %v7411_v17  ;;  %v7692_v17 = vsel %vm5255_vm6, %v17656_v40, %v6956_v39 }
 0x5bb   :  { %6905 = vrot.lane.b32.xlu0 %v6429_v4, %s9252_s0 }
 0x5bc   :  { %8400 = vmatmul.mubr.bf16.gmra.mrb[40].mxu1 %v7689_v25  ;;  %v7414_v19 = vsel %vm4742_vm4, %v7409_v56, %v15790_v26  ;;  %v15802_v54 = vor.u32 %v7240_v7, %v7239_v41  ;;  %v7151_v25 = vsel %vm258_vm0, %v7148_v33, %v7150_v47  ;;  %v15811_v55 = vpop.permute.xlu1 %7548 }
 0x5bd   :  { %8405 = vmatprep.mubr.bf16.mxu1 %v7914_v63  ;;  %7484 = vrot.lane.b32.xlu1 %v7238_v28, %s9252_s0  ;;  %v7918_v20 = vsel %vm5255_vm6, %v7151_v25, %v15708_v2 }
 0x5be   :  { %v15786_v21 = vpop.permute.xlu0 %6961  ;;  %v7242_v40 = vsel %vm4742_vm4, %v7237_v48, %v15802_v54  ;;  %v7695_v48 = vsel %vm5255_vm6, %v17657_v32, %v15757_v6  ;;  %v7154_v6 = vrot.slane %v17662_v49, 1 }
 0x5bf   :  { %6993 = vrot.lane.b32.xlu0 %v6781_v61, %s9252_s0 }
 0x5c0   :  { %v15830_v1 = vpop.permute.xlu1 %7550 }
 0x5c1   :  { %7572 = vrot.lane.b32.xlu1 %v7414_v19, %s9252_s0  ;;  %v7153_v19 = vsel %vm258_vm0, %v7150_v47, %v7152_v36 }
 0x5c2   :  { %v15798_v29 = vpop.permute.xlu0 %6963 }
 0x5c3   :  { %6907 = vrot.lane.b32.xlu0 %v6437_v11, %s9252_s0 }
 0x5c4   :  { %8406 = vmatmul.mubr.bf16.gmra.mrb[44].mxu1 %v7692_v17  ;;  %v8966_v56 = vpop.f32.mrb[100].mxu0 }
 0x5c5   :  { %8411 = vmatprep.mubr.bf16.mxu1 %v7918_v20  ;;  %v6091_v39 = vadd.f32 %v15727_v9, %v8966_v56  ;;  %v6082_v33 = vpop.f32.mrb[101].mxu0  ;;  %7486 = vrot.lane.b32.xlu1 %v7242_v40, %s9252_s0  ;;  %v7922_v20 = vsel %vm5255_vm6, %v7153_v19, %v15718_v5  ;;  %v17697_v56 = vld [vmem:[#allocation53_spill] sm:$0xff] }
 0x5c6   :  { %v15814_v50 = vpop.permute.xlu0 %6965  ;;  %v6083_v2 = vadd.f32 %v15727_v9, %v6082_v33  ;;  %v8967_v63 = vpop.f32.mrb[102].mxu0  ;;  %v6442_v40 = vshll.u32 %v17697_v56, 16 }
 0x5c7   :  { %v6094_v4 = vadd.f32 %v15727_v9, %v8967_v63  ;;  %v6085_v57 = vpop.f32.mrb[103].mxu0  ;;  %v6295_v7 = vmax.f32 %v6091_v39, 0.0  ;;  %v6446_v39 = vshrl.u32 %v17697_v56, 16  ;;  %v17699_v63 = vshrl.u32 %v15738_v34, 16 }
 0x5c8   :  { %v6086_v28 = vadd.f32 %v15727_v9, %v6085_v57  ;;  %v6293_v17 = vmax.f32 %v6083_v2, 0.0  ;;  %v7244_v57 = vrot.slane %v6442_v40, 2  ;;  %v17700_v56 = vshrl.u32 %v17694_v30, 16 }
 0x5c9   :  { %v6296_v61 = vmax.f32 %v6094_v4, 0.0  ;;  %v6784_v5 = vor.u32 %v17699_v63, %v6780_v35  ;;  %v7243_v4 = vrot.slane %v6446_v39, 1 }
 0x5ca   :  { %v15823_v41 = vpop.permute.xlu0 %6967  ;;  %v6294_v25 = vmax.f32 %v6086_v28, 0.0  ;;  %v6440_v16 = vor.u32 %v17700_v56, %v6436_v12  ;;  %v7156_v12 = vrot.slane %v17665_v46, 1 }
 0x5cb   :  { %v15834_v11 = vpack.c.bf16 %v6296_v61, %v6295_v7  ;;  %v15848_v7 = vpop.permute.xlu1 %7552 }
 0x5cc   :  { %8412 = vmatmul.mubr.bf16.gmra.mrb[48].mxu1 %v7695_v48  ;;  %v15838_v33 = vpack.c.bf16 %v6294_v25, %v6293_v17  ;;  %v17701_v25 = vld [vmem:[#allocation66_spill] sm:$0xff] }
 0x5cd   :  { %8417 = vmatprep.mubr.bf16.mxu1 %v7922_v20  ;;  %v6794_v28 = vshll.u32 %v15834_v11, 16  ;;  %v7698_v20 = vsel %vm5255_vm6, %v17659_v14, %v15770_v58  ;;  %v6450_v13 = vshll.u32 %v17701_v25, 16  ;;  %v16974_v14 = vshrl.u32 %v17701_v25, 16 }
 0x5ce   :  { %17698 = vst [vmem:[#allocation57_spill] sm:$0xff] %v15838_v33  ;;  %v15840_v32 = vpop.permute.xlu0 %6969  ;;  %v6786_v47 = vshll.u32 %v15838_v33, 16  ;;  %v6790_v2 = vshrl.u32 %v15838_v33, 16  ;;  %v7155_v33 = vsel %vm258_vm0, %v7152_v36, %v7154_v6 }
 0x5cf   :  { %v7926_v35 = vsel %vm5255_vm6, %v7155_v33, %v15733_v24  ;;  %v7245_v24 = vor.u32 %v7244_v57, %v7243_v4  ;;  %v17702_v33 = vshrl.u32 %v15834_v11, 16  ;;  %v15873_v56 = vpop.permute.xlu1 %7554  ;;  %v7247_v4 = vrot.slane %v16974_v14, 1 }
 0x5d0   :  { %v6788_v48 = vrot.slane %v6786_v47, 1  ;;  %v7415_v19 = vrot.slane %v6790_v2, 1  ;;  %v7416_v17 = vrot.slane %v6786_v47, 2  ;;  %v6444_v47 = vrot.slane %v6442_v40, 1 }
 0x5d1   :  { %v7248_v57 = vrot.slane %v6450_v13, 2  ;;  %v7246_v30 = vsel %vm4742_vm4, %v15802_v54, %v7245_v24 }
 0x5d2   :  { %v15850_v61 = vpop.permute.xlu0 %6971  ;;  %v6789_v63 = vsel %vm3782_vm3, %v6784_v5, %v6788_v48  ;;  %v7417_v34 = vor.u32 %v7416_v17, %v7415_v19  ;;  %v7419_v5 = vrot.slane %v17702_v33, 1  ;;  %v7420_v19 = vrot.slane %v6794_v28, 2 }
 0x5d3   :  { %6995 = vrot.lane.b32.xlu0 %v6789_v63, %s9252_s0  ;;  %v6445_v17 = vsel %vm3782_vm3, %v6440_v16, %v6444_v47  ;;  %v6796_v16 = vrot.slane %v6794_v28, 1 }
 0x5d4   :  { %8418 = vmatmul.mubr.bf16.gmra.mrb[52].mxu1 %v7698_v20  ;;  %v7418_v36 = vsel %vm4742_vm4, %v15790_v26, %v7417_v34  ;;  %v6792_v20 = vor.u32 %v6790_v2, %v6788_v48  ;;  %v6448_v26 = vor.u32 %v6446_v39, %v6444_v47  ;;  %v7421_v2 = vor.u32 %v7420_v19, %v7419_v5  ;;  %v17703_v5 = vld [vmem:[#allocation56_spill] sm:$0xff] }
 0x5d5   :  { %8423 = vmatprep.mubr.bf16.mxu1 %v7926_v35  ;;  %7574 = vrot.lane.b32.xlu1 %v7418_v36, %s9252_s0  ;;  %v7701_v39 = vsel %vm5255_vm6, %v17661_v53, %v15786_v21  ;;  %v7157_v47 = vsel %vm258_vm0, %v7154_v6, %v7156_v12  ;;  %v6458_v19 = vshll.u32 %v17703_v5, 16  ;;  %v7249_v53 = vor.u32 %v7248_v57, %v7247_v4 }
 0x5d6   :  { %v15865_v58 = vpop.permute.xlu0 %6973  ;;  %v7930_v54 = vsel %vm5255_vm6, %v7157_v47, %v15744_v18  ;;  %v6797_v28 = vsel %vm3782_vm3, %v6792_v20, %v6796_v16  ;;  %v16975_v21 = vshrl.u32 %v17703_v5, 16  ;;  %v7422_v18 = vsel %vm4742_vm4, %v7417_v34, %v7421_v2 }
 0x5d7   :  { %v8970_v40 = vpop.f32.mrb[104].mxu0  ;;  %6909 = vrot.lane.b32.xlu0 %v6445_v17, %s9252_s0  ;;  %v6452_v17 = vrot.slane %v6450_v13, 1  ;;  %v7158_v20 = vrot.slane %v17667_v22, 1  ;;  %v7250_v57 = vsel %vm4742_vm4, %v7245_v24, %v7249_v53  ;;  %v17705_v24 = vshrl.u32 %v15834_v11, 16 }
 0x5d8   :  { %v6107_v35 = vadd.f32 %v15727_v9, %v8970_v40  ;;  %v6098_v63 = vpop.f32.mrb[105].mxu0 }
 0x5d9   :  { %v6099_v36 = vadd.f32 %v15727_v9, %v6098_v63  ;;  %v8971_v33 = vpop.f32.mrb[106].mxu0  ;;  %7488 = vrot.lane.b32.xlu1 %v7246_v30, %s9252_s0  ;;  %v15898_v30 = vpop.permute.xlu1 %7556  ;;  %v6453_v4 = vsel %vm3782_vm3, %v6448_v26, %v6452_v17  ;;  %v7159_v47 = vsel %vm258_vm0, %v7156_v12, %v7158_v20  ;;  %v7704_v26 = vsel %vm5255_vm6, %v17662_v49, %v15798_v29 }
 0x5da   :  { %v15881_v15 = vpop.permute.xlu0 %6975  ;;  %v6110_v48 = vadd.f32 %v15727_v9, %v8971_v33  ;;  %v6101_v40 = vpop.f32.mrb[107].mxu0  ;;  %v6299_v33 = vmax.f32 %v6107_v35, 0.0 }
 0x5db   :  { %v6102_v63 = vadd.f32 %v15727_v9, %v6101_v40  ;;  %6997 = vrot.lane.b32.xlu0 %v6797_v28, %s9252_s0  ;;  %v6297_v13 = vmax.f32 %v6099_v36, 0.0  ;;  %v7252_v36 = vrot.slane %v6458_v19, 2  ;;  %v6800_v28 = vor.u32 %v17705_v24, %v6796_v16 }
 0x5dc   :  { %8424 = vmatmul.mubr.bf16.gmra.mrb[56].mxu1 %v7701_v39  ;;  %v6300_v14 = vmax.f32 %v6110_v48, 0.0  ;;  %v6460_v16 = vrot.slane %v6458_v19, 1 }
 0x5dd   :  { %8431 = vmatprep.mubr.bf16.mxu1 %v7930_v54  ;;  %v6298_v6 = vmax.f32 %v6102_v63, 0.0  ;;  %7576 = vrot.lane.b32.xlu1 %v7422_v18, %s9252_s0  ;;  %v7251_v63 = vrot.slane %v16975_v21, 1  ;;  %v7934_v54 = vsel %vm5255_vm6, %v7159_v47, %v15765_v8  ;;  %v17706_v8 = vshrl.u32 %v17701_v25, 16  ;;  %v17707_v21 = vld [vmem:[#allocation35_spill] sm:$0xff] }
 0x5de   :  { %v15900_v40 = vpop.permute.xlu0 %6977  ;;  %v15904_v39 = vpack.c.bf16 %v6300_v14, %v6299_v33  ;;  %v15928_v33 = vpop.permute.xlu1 %7558  ;;  %v7160_v47 = vrot.slane %v15134_v42, 1 }
 0x5df   :  { %v15907_v35 = vpack.c.bf16 %v6298_v6, %v6297_v13  ;;  %6911 = vrot.lane.b32.xlu0 %v6453_v4, %s9252_s0  ;;  %v7253_v24 = vor.u32 %v7252_v36, %v7251_v63  ;;  %v7707_v36 = vsel %vm5255_vm6, %v17665_v46, %v15814_v50 }
 0x5e0   :  { %v6810_v12 = vshll.u32 %v15904_v39, 16  ;;  %v16978_v4 = vshrl.u32 %v15904_v39, 16 }
 0x5e1   :  { %17704 = vst [vmem:[#allocation29_spill] sm:$0xff] %v15907_v35  ;;  %v6802_v34 = vshll.u32 %v15907_v35, 16  ;;  %v6806_v14 = vshrl.u32 %v15907_v35, 16  ;;  %7490 = vrot.lane.b32.xlu1 %v7250_v57, %s9252_s0  ;;  %v6456_v57 = vor.u32 %v17706_v8, %v6452_v17  ;;  %v7254_v63 = vsel %vm4742_vm4, %v7249_v53, %v7253_v24 }
 0x5e2   :  { %v15912_v48 = vpop.permute.xlu0 %6979  ;;  %v15944_v17 = vpop.permute.xlu1 %7560 }
 0x5e3   :  { %v6804_v13 = vrot.slane %v6802_v34, 1  ;;  %v7423_v6 = vrot.slane %v6806_v14, 1  ;;  %v7424_v18 = vrot.slane %v6802_v34, 2  ;;  %v6461_v19 = vsel %vm3782_vm3, %v6456_v57, %v6460_v16 }
 0x5e4   :  { %8432 = vmatmul.mubr.bf16.gmra.mrb[60].mxu1 %v7704_v26  ;;  %v6466_v26 = vshll.u32 %v17707_v21, 16 }
 0x5e5   :  { %8438 = vmatprep.mubr.bf16.mxu1 %v7934_v54  ;;  %v6805_v49 = vsel %vm3782_vm3, %v6800_v28, %v6804_v13  ;;  %v7425_v29 = vor.u32 %v7424_v18, %v7423_v6  ;;  %v7427_v54 = vrot.slane %v16978_v4, 1  ;;  %v7428_v28 = vrot.slane %v6810_v12, 2 }
 0x5e6   :  { %6999 = vrot.lane.b32.xlu0 %v6805_v49, %s9252_s0  ;;  %v15937_v35 = vpop.permute.xlu0 %6981  ;;  %v6470_v6 = vshrl.u32 %v17707_v21, 16  ;;  %v6808_v18 = vor.u32 %v6806_v14, %v6804_v13  ;;  %v7256_v49 = vrot.slane %v6466_v26, 2  ;;  %v15957_v4 = vrot.slane %v6810_v12, 1 }
 0x5e7   :  { %v7426_v34 = vsel %vm4742_vm4, %v7421_v2, %v7425_v29  ;;  %v7161_v2 = vsel %vm258_vm0, %v7158_v20, %v7160_v47  ;;  %v15959_v14 = vor.u32 %v7428_v28, %v7427_v54  ;;  %v15968_v20 = vrot.slane %v6466_v26, 1 }
 0x5e8   :  { %7578 = vrot.lane.b32.xlu1 %v7426_v34, %s9252_s0  ;;  %v7938_v8 = vsel %vm5255_vm6, %v7161_v2, %v15792_v44  ;;  %v7255_v46 = vrot.slane %v6470_v6, 1  ;;  %v6813_v53 = vsel %vm3782_vm3, %v6808_v18, %v15957_v4  ;;  %v7089_v44 = vrot.slane %v17681_v62, 1 }
 0x5e9   :  { %v7090_v12 = vrot.slane %v17680_v51, 1  ;;  %v7162_v13 = vrot.slane %v15132_v27, 1  ;;  %v7430_v57 = vsel %vm4742_vm4, %v7425_v29, %v15959_v14  ;;  %v17708_v28 = vshrl.u32 %v17703_v5, 16 }
 0x5ea   :  { %6913 = vrot.lane.b32.xlu0 %v6461_v19, %s9252_s0  ;;  %v15955_v34 = vpop.permute.xlu0 %6983 }
 0x5eb   :  { %v15964_v50 = vpop.permute.xlu1 %7562  ;;  %v6464_v19 = vor.u32 %v17708_v28, %v6460_v16  ;;  %v7091_v2 = vsel %vm258_vm0, %v7089_v44, %v7090_v12  ;;  %v7163_v29 = vsel %vm258_vm0, %v7160_v47, %v7162_v13  ;;  %v7164_v47 = vrot.slane %v15225_v23, 1 }
 0x5ec   :  { %8439 = vmatmul.mubr.bf16.gmra.mrb[64].mxu1 %v7707_v36  ;;  %7492 = vrot.lane.b32.xlu1 %v7254_v63, %s9252_s0  ;;  %v15978_v36 = vor.u32 %v7256_v49, %v7255_v46  ;;  %v7710_v63 = vsel %vm5255_vm6, %v17667_v22, %v15823_v41  ;;  %v7942_v49 = vsel %vm5255_vm6, %v7163_v29, %v15811_v55  ;;  %v16982_v41 = vrot.slane %v17682_v59, 1 }
 0x5ed   :  { %8444 = vmatprep.mubr.bf16.mxu1 %v7938_v8  ;;  %v6469_v18 = vsel %vm3782_vm3, %v6464_v19, %v15968_v20  ;;  %v7166_v29 = vrot.slane %v15218_v45, 1 }
 0x5ee   :  { %7001 = vrot.lane.b32.xlu0 %v6813_v53, %s9252_s0  ;;  %v6898_v54 = vpop.permute.xlu0 %6897  ;;  %v7258_v8 = vsel %vm4742_vm4, %v7253_v24, %v15978_v36  ;;  %v7093_v24 = vsel %vm258_vm0, %v7090_v12, %v16982_v41 }
 0x5ef   :  { %v7477_v26 = vpop.permute.xlu1 %7476  ;;  %v7605_v53 = vsel %vm5255_vm6, %v17681_v62, %v6898_v54  ;;  %v7713_v62 = vsel %vm5255_vm6, %v15134_v42, %v15840_v32  ;;  %v7165_v54 = vsel %vm258_vm0, %v7162_v13, %v7164_v47 }
 0x5f0   :  { %7580 = vrot.lane.b32.xlu1 %v7430_v57, %s9252_s0  ;;  %v7798_v16 = vsel %vm5255_vm6, %v7091_v2, %v7477_v26 }
 0x5f1   :  { %8219 = vmatprep.mubr.bf16.mxu0 %v7798_v16 }
 0x5f2   :  { %6915 = vrot.lane.b32.xlu0 %v6469_v18, %s9252_s0  ;;  %v15994_v46 = vpop.permute.xlu0 %6985  ;;  %8220 = vmatmul.mubr.bf16.vlgmr.msra.gmra.mrb[128].mxu0 %v7605_v53  ;;  %v7946_v18 = vsel %vm5255_vm6, %v7165_v54, %v15830_v1  ;;  %v17709_v53 = vld [vmem:[#allocation54_spill] sm:$0xff] }
 0x5f3   :  { %v15999_v22 = vpop.permute.xlu1 %7564 }
 0x5f4   :  { %8445 = vmatmul.mubr.bf16.gmra.mrb[68].mxu1 %v7710_v63  ;;  %7494 = vrot.lane.b32.xlu1 %v7258_v8, %s9252_s0 }
 0x5f5   :  { %8450 = vmatprep.mubr.bf16.mxu1 %v7942_v49 }
 0x5f6   :  { %v6900_v55 = vpop.permute.xlu0 %6899 }
 0x5f7   :  { %v7479_v44 = vpop.permute.xlu1 %7478  ;;  %v7608_v63 = vsel %vm5255_vm6, %v17680_v51, %v6900_v55  ;;  %v7716_v51 = vsel %vm5255_vm6, %v15132_v27, %v15850_v61  ;;  %v7167_v55 = vsel %vm258_vm0, %v7164_v47, %v7166_v29  ;;  %v16980_v61 = vrot.slane %v15328_v31, 1 }
 0x5f8   :  { %v7802_v28 = vsel %vm5255_vm6, %v7093_v24, %v7479_v44  ;;  %v6474_v44 = vshll.u32 %v17709_v53, 16  ;;  %v7950_v54 = vsel %vm5255_vm6, %v7167_v55, %v15848_v7 }
 0x5f9   :  { %8227 = vmatprep.mubr.bf16.mxu0 %v7802_v28 }
 0x5fa   :  { %v8974_v57 = vpop.f32.mrb[108].mxu0  ;;  %8228 = vmatmul.mubr.bf16.gmra.mrb[132].mxu0 %v7608_v63 }
 0x5fb   :  { %v6123_v19 = vadd.f32 %v15727_v9, %v8974_v57  ;;  %v6114_v26 = vpop.f32.mrb[109].mxu0  ;;  %v16981_v57 = vshrl.u32 %v17709_v53, 16 }
 0x5fc   :  { %8451 = vmatmul.mubr.bf16.gmra.mrb[72].mxu1 %v7713_v62  ;;  %v6115_v2 = vadd.f32 %v15727_v9, %v6114_v26  ;;  %v8975_v12 = vpop.f32.mrb[110].mxu0  ;;  %v7260_v26 = vrot.slane %v6474_v44, 2 }
 0x5fd   :  { %8456 = vmatprep.mubr.bf16.mxu1 %v7946_v18  ;;  %v6126_v42 = vadd.f32 %v15727_v9, %v8975_v12  ;;  %v6117_v32 = vpop.f32.mrb[111].mxu0  ;;  %v6303_v16 = vmax.f32 %v6123_v19, 0.0  ;;  %v17710_v18 = vshrl.u32 %v15904_v39, 16  ;;  %v7259_v12 = vrot.slane %v16981_v57, 1 }
 0x5fe   :  { %v6118_v13 = vadd.f32 %v15727_v9, %v6117_v32  ;;  %v6301_v8 = vmax.f32 %v6115_v2, 0.0  ;;  %v6472_v32 = vor.u32 %v6470_v6, %v15968_v20 }
 0x5ff   :  { %v6304_v49 = vmax.f32 %v6126_v42, 0.0  ;;  %v6816_v2 = vor.u32 %v17710_v18, %v15957_v4  ;;  %v7094_v4 = vrot.slane %v17687_v43, 1 }
 0x600   :  { %v6302_v1 = vmax.f32 %v6118_v13, 0.0  ;;  %v6476_v13 = vrot.slane %v6474_v44, 1  ;;  %v7169_v44 = vsel %vm258_vm0, %v7166_v29, %v16980_v61 }
 0x601   :  { %v16021_v24 = vpack.c.bf16 %v6304_v49, %v6303_v16 }
 0x602   :  { %v16024_v62 = vpack.c.bf16 %v6302_v1, %v6301_v8  ;;  %v6477_v61 = vsel %vm3782_vm3, %v6472_v32, %v6476_v13 }
 0x603   :  { %v6826_v27 = vshll.u32 %v16021_v24, 16  ;;  %v16979_v42 = vshrl.u32 %v16021_v24, 16 }
 0x604   :  { %8457 = vmatmul.mubr.bf16.gmra.mrb[76].mxu1 %v7716_v51  ;;  %v6818_v28 = vshll.u32 %v16024_v62, 16  ;;  %v6822_v19 = vshrl.u32 %v16024_v62, 16  ;;  %v17711_v51 = vld [vmem:[#allocation59_spill] sm:$0xff] }
 0x605   :  { %8462 = vmatprep.mubr.bf16.mxu1 %v7950_v54  ;;  %v6482_v55 = vshll.u32 %v17711_v51, 16  ;;  %v6486_v54 = vshrl.u32 %v17711_v51, 16 }
 0x606   :  { %v6820_v47 = vrot.slane %v6818_v28, 1  ;;  %v7431_v63 = vrot.slane %v6822_v19, 1  ;;  %v7432_v7 = vrot.slane %v6818_v28, 2  ;;  %v8978_v16 = vpop.f32.mrb[112].mxu0  ;;  %v16050_v28 = vor.u32 %v7260_v26, %v7259_v12 }
 0x607   :  { %v6130_v1 = vpop.f32.mrb[113].mxu0  ;;  %v6139_v18 = vadd.f32 %v15727_v9, %v8978_v16  ;;  %v7719_v26 = vsel %vm5255_vm6, %v15225_v23, %v15865_v58  ;;  %v7263_v23 = vrot.slane %v6486_v54, 1  ;;  %v7264_v58 = vrot.slane %v6482_v55, 2 }
 0x608   :  { %v6821_v49 = vsel %vm3782_vm3, %v6816_v2, %v6820_v47  ;;  %v7433_v8 = vor.u32 %v7432_v7, %v7431_v63  ;;  %v6131_v6 = vadd.f32 %v15727_v9, %v6130_v1  ;;  %v8979_v20 = vpop.f32.mrb[114].mxu0  ;;  %v7435_v7 = vrot.slane %v16979_v42, 1 }
 0x609   :  { %7003 = vrot.lane.b32.xlu0 %v6821_v49, %s9252_s0  ;;  %v16057_v2 = vpop.permute.xlu0 %6987  ;;  %v7436_v49 = vrot.slane %v6826_v27, 2  ;;  %v6133_v12 = vpop.f32.mrb[115].mxu0  ;;  %v6142_v16 = vadd.f32 %v15727_v9, %v8979_v20  ;;  %v7954_v1 = vsel %vm5255_vm6, %v7169_v44, %v15873_v56  ;;  %v6824_v57 = vor.u32 %v6822_v19, %v6820_v47 }
 0x60a   :  { %v7434_v63 = vsel %vm4742_vm4, %v15959_v14, %v7433_v8  ;;  %v6134_v29 = vadd.f32 %v15727_v9, %v6133_v12  ;;  %v6307_v20 = vmax.f32 %v6139_v18, 0.0  ;;  %v7262_v56 = vsel %vm4742_vm4, %v15978_v36, %v16050_v28  ;;  %v17712_v18 = vld [vmem:[#allocation86_spill] sm:$0xff] }
 0x60b   :  { %7582 = vrot.lane.b32.xlu1 %v7434_v63, %s9252_s0  ;;  %v16071_v14 = vpop.permute.xlu1 %7566  ;;  %v6305_v63 = vmax.f32 %v6131_v6, 0.0  ;;  %v6828_v44 = vrot.slane %v6826_v27, 1  ;;  %v7437_v42 = vor.u32 %v7436_v49, %v7435_v7  ;;  %v7170_v19 = vrot.slane %v15321_v38, 1 }
 0x60c   :  { %8463 = vmatmul.mubr.bf16.gmra.mrb[80].mxu1 %v7719_v26  ;;  %v6308_v26 = vmax.f32 %v6142_v16, 0.0  ;;  %v6306_v12 = vmax.f32 %v6134_v29, 0.0  ;;  %v6490_v6 = vshll.u32 %v17712_v18, 16  ;;  %v17713_v16 = vrot.slane %v17682_v59, 1 }
 0x60d   :  { %8468 = vmatprep.mubr.bf16.mxu1 %v7954_v1  ;;  %6917 = vrot.lane.b32.xlu0 %v6477_v61, %s9252_s0  ;;  %v6902_v41 = vpop.permute.xlu0 %6901  ;;  %v6829_v36 = vsel %vm3782_vm3, %v6824_v57, %v6828_v44  ;;  %v6484_v27 = vrot.slane %v6482_v55, 1  ;;  %v16983_v49 = vshrl.u32 %v17712_v18, 16  ;;  %v7265_v1 = vor.u32 %v7264_v58, %v7263_v23 }
 0x60e   :  { %v16083_v47 = vpack.c.bf16 %v6308_v26, %v6307_v20  ;;  %v16085_v32 = vpack.c.bf16 %v6306_v12, %v6305_v63  ;;  %v7095_v29 = vsel %vm258_vm0, %v17713_v16, %v7094_v4  ;;  %v7611_v12 = vsel %vm5255_vm6, %v17682_v59, %v6902_v41 }
 0x60f   :  { %7496 = vrot.lane.b32.xlu1 %v7262_v56, %s9252_s0  ;;  %v7481_v61 = vpop.permute.xlu1 %7480  ;;  %v7438_v57 = vsel %vm4742_vm4, %v7433_v8, %v7437_v42  ;;  %v17714_v55 = vshrl.u32 %v17709_v53, 16  ;;  %v17715_v23 = vrot.slane %v15328_v31, 1 }
 0x610   :  { %v7806_v7 = vsel %vm5255_vm6, %v7095_v29, %v7481_v61  ;;  %v6834_v20 = vshll.u32 %v16085_v32, 16  ;;  %v6838_v63 = vshrl.u32 %v16085_v32, 16  ;;  %v7722_v61 = vsel %vm5255_vm6, %v15218_v45, %v15881_v15 }
 0x611   :  { %7005 = vrot.lane.b32.xlu0 %v6829_v36, %s9252_s0  ;;  %8234 = vmatprep.mubr.bf16.mxu0 %v7806_v7  ;;  %v16099_v26 = vpop.permute.xlu0 %6989  ;;  %v6480_v56 = vor.u32 %v17714_v55, %v6476_v13  ;;  %v7171_v58 = vsel %vm258_vm0, %v17715_v23, %v7170_v19  ;;  %v17716_v45 = vshrl.u32 %v16021_v24, 16  ;;  %v7266_v36 = vsel %vm4742_vm4, %v16050_v28, %v7265_v1 }
 0x612   :  { %8235 = vmatmul.mubr.bf16.gmra.mrb[136].mxu0 %v7611_v12  ;;  %v7958_v59 = vsel %vm5255_vm6, %v7171_v58, %v15898_v30  ;;  %v6836_v41 = vrot.slane %v6834_v20, 1  ;;  %v7439_v8 = vrot.slane %v6838_v63, 1  ;;  %v7440_v16 = vrot.slane %v6834_v20, 2 }
 0x613   :  { %7584 = vrot.lane.b32.xlu1 %v7438_v57, %s9252_s0  ;;  %v16115_v29 = vpop.permute.xlu1 %7568  ;;  %v6485_v13 = vsel %vm3782_vm3, %v6480_v56, %v6484_v27  ;;  %v6832_v15 = vor.u32 %v17716_v45, %v6828_v44  ;;  %v7267_v30 = vrot.slane %v16983_v49, 1  ;;  %v7268_v12 = vrot.slane %v6490_v6, 2  ;;  %v17718_v45 = vld [vmem:[#allocation36_spill] sm:$0xff] }
 0x614   :  { %8469 = vmatmul.mubr.bf16.gmra.mrb[84].mxu1 %v7722_v61  ;;  %v7441_v7 = vor.u32 %v7440_v16, %v7439_v8  ;;  %v7172_v57 = vrot.slane %v15437_v52, 1  ;;  %v6842_v55 = vshll.u32 %v16083_v47, 16  ;;  %v6846_v61 = vshrl.u32 %v16083_v47, 16 }
 0x615   :  { %8474 = vmatprep.mubr.bf16.mxu1 %v7958_v59  ;;  %6919 = vrot.lane.b32.xlu0 %v6485_v13, %s9252_s0  ;;  %v6837_v20 = vsel %vm3782_vm3, %v6832_v15, %v6836_v41  ;;  %v6904_v56 = vpop.permute.xlu0 %6903  ;;  %v17717_v23 = vrot.slane %v17690_v60, 1  ;;  %v6488_v59 = vor.u32 %v6486_v54, %v6484_v27  ;;  %v6492_v8 = vrot.slane %v6490_v6, 1 }
 0x616   :  { %v7442_v58 = vsel %vm4742_vm4, %v7437_v42, %v7441_v7  ;;  %v7269_v13 = vor.u32 %v7268_v12, %v7267_v30  ;;  %v6498_v15 = vshll.u32 %v17718_v45, 16  ;;  %v7614_v49 = vsel %vm5255_vm6, %v17687_v43, %v6904_v56 }
 0x617   :  { %7498 = vrot.lane.b32.xlu1 %v7266_v36, %s9252_s0  ;;  %v7483_v44 = vpop.permute.xlu1 %7482  ;;  %v7097_v28 = vsel %vm258_vm0, %v7094_v4, %v17717_v23  ;;  %v6502_v36 = vshrl.u32 %v17718_v45, 16  ;;  %v7725_v42 = vsel %vm5255_vm6, %v15328_v31, %v15900_v40  ;;  %v7173_v4 = vsel %vm258_vm0, %v7170_v19, %v7172_v57 }
 0x618   :  { %v7810_v16 = vsel %vm5255_vm6, %v7097_v28, %v7483_v44  ;;  %v7443_v54 = vrot.slane %v6846_v61, 1  ;;  %v7444_v6 = vrot.slane %v6842_v55, 2  ;;  %v7962_v27 = vsel %vm5255_vm6, %v7173_v4, %v15928_v33 }
 0x619   :  { %7007 = vrot.lane.b32.xlu0 %v6837_v20, %s9252_s0  ;;  %8240 = vmatprep.mubr.bf16.mxu0 %v7810_v16  ;;  %v6493_v30 = vsel %vm3782_vm3, %v6488_v59, %v6492_v8  ;;  %v6840_v43 = vor.u32 %v6838_v63, %v6836_v41  ;;  %v7270_v31 = vsel %vm4742_vm4, %v7265_v1, %v7269_v13  ;;  %v7271_v40 = vrot.slane %v6502_v36, 1 }
 0x61a   :  { %8241 = vmatmul.mubr.bf16.gmra.mrb[140].mxu0 %v7614_v49  ;;  %v16158_v19 = vrot.slane %v6842_v55, 1  ;;  %v16160_v49 = vor.u32 %v7444_v6, %v7443_v54  ;;  %v7174_v12 = vrot.slane %v15431_v10, 1  ;;  %v7272_v20 = vrot.slane %v6498_v15, 2 }
 0x61b   :  { %7586 = vrot.lane.b32.xlu1 %v7442_v58, %s9252_s0  ;;  %v16166_v63 = vrot.slane %v6498_v15, 1  ;;  %v17719_v1 = vshrl.u32 %v17712_v18, 16  ;;  %v7728_v56 = vsel %vm5255_vm6, %v15321_v38, %v15912_v48  ;;  %v7176_v38 = vrot.slane %v15549_v0, 1 }
 0x61c   :  { %8475 = vmatmul.mubr.bf16.gmra.mrb[88].mxu1 %v7725_v42  ;;  %v6845_v33 = vsel %vm3782_vm3, %v6840_v43, %v16158_v19  ;;  %v7446_v55 = vsel %vm4742_vm4, %v7441_v7, %v16160_v49  ;;  %v7175_v44 = vsel %vm258_vm0, %v7172_v57, %v7174_v12  ;;  %v16177_v23 = vor.u32 %v7272_v20, %v7271_v40  ;;  %v17721_v20 = vld [vmem:[#allocation28_spill] sm:$0xff] }
 0x61d   :  { %8482 = vmatprep.mubr.bf16.mxu1 %v7962_v27  ;;  %6921 = vrot.lane.b32.xlu0 %v6493_v30, %s9252_s0  ;;  %v6496_v41 = vor.u32 %v17719_v1, %v6492_v8  ;;  %v7966_v28 = vsel %vm5255_vm6, %v7175_v44, %v15944_v17  ;;  %v7731_v48 = vsel %vm5255_vm6, %v15437_v52, %v15937_v35  ;;  %v7098_v16 = vrot.slane %v17692_v3, 1 }
 0x61e   :  { %v7274_v7 = vsel %vm4742_vm4, %v7269_v13, %v16177_v23  ;;  %v7177_v57 = vsel %vm258_vm0, %v7174_v12, %v7176_v38  ;;  %v7178_v13 = vrot.slane %v15545_v37, 1  ;;  %v17720_v4 = vrot.slane %v17690_v60, 1 }
 0x61f   :  { %7500 = vrot.lane.b32.xlu1 %v7270_v31, %s9252_s0  ;;  %v6501_v58 = vsel %vm3782_vm3, %v6496_v41, %v16166_v63  ;;  %v7970_v59 = vsel %vm5255_vm6, %v7177_v57, %v15964_v50  ;;  %v7734_v54 = vsel %vm5255_vm6, %v15431_v10, %v15955_v34  ;;  %v7100_v10 = vrot.slane %v17721_v20, 1 }
 0x620   :  { %v7099_v52 = vsel %vm258_vm0, %v17720_v4, %v7098_v16  ;;  %v7179_v50 = vsel %vm258_vm0, %v7176_v38, %v7178_v13 }
 0x621   :  { %7009 = vrot.lane.b32.xlu0 %v6845_v33, %s9252_s0  ;;  %v7974_v27 = vsel %vm5255_vm6, %v7179_v50, %v15999_v22  ;;  %v17722_v33 = vld [vmem:[#allocation74_spill] sm:$0xff]  ;;  %v7101_v38 = vsel %vm258_vm0, %v7098_v16, %v7100_v10 }
 0x622   :  { %v7180_v1 = vrot.slane %v17722_v33, 1 }
 0x623   :  { %7588 = vrot.lane.b32.xlu1 %v7446_v55, %s9252_s0 }
 0x624   :  { %8483 = vmatmul.mubr.bf16.gmra.mrb[92].mxu1 %v7728_v56  ;;  %v7181_v57 = vsel %vm258_vm0, %v7178_v13, %v7180_v1 }
 0x625   :  { %8489 = vmatprep.mubr.bf16.mxu1 %v7966_v28  ;;  %6923 = vrot.lane.b32.xlu0 %v6501_v58, %s9252_s0  ;;  %v7978_v4 = vsel %vm5255_vm6, %v7181_v57, %v16071_v14  ;;  %v6504_v57 = vor.u32 %v6502_v36, %v16166_v63 }
 0x627   :  { %7502 = vrot.lane.b32.xlu1 %v7274_v7, %s9252_s0 }
 0x629   :  { %v16193_v17 = vpop.permute.xlu0 %6991 }
 0x62b   :  { %v16197_v8 = vpop.permute.xlu1 %7570 }
 0x62c   :  { %8490 = vmatmul.mubr.bf16.gmra.mrb[96].mxu1 %v7731_v48  ;;  %v7737_v48 = vsel %vm5255_vm6, %v15549_v0, %v15994_v46  ;;  %v17723_v46 = vld [vmem:[#allocation61_spill] sm:$0xff] }
 0x62d   :  { %8495 = vmatprep.mubr.bf16.mxu1 %v7970_v59  ;;  %v6906_v15 = vpop.permute.xlu0 %6905  ;;  %v6506_v16 = vshll.u32 %v17723_v46, 16  ;;  %v6510_v13 = vshrl.u32 %v17723_v46, 16 }
 0x62e   :  { %v7617_v6 = vsel %vm5255_vm6, %v17690_v60, %v6906_v15 }
 0x62f   :  { %v7485_v42 = vpop.permute.xlu1 %7484 }
 0x630   :  { %v7814_v35 = vsel %vm5255_vm6, %v7099_v52, %v7485_v42 }
 0x631   :  { %8246 = vmatprep.mubr.bf16.mxu0 %v7814_v35  ;;  %v16213_v30 = vpop.permute.xlu0 %6993 }
 0x632   :  { %8247 = vmatmul.mubr.bf16.gmra.mrb[144].mxu0 %v7617_v6  ;;  %v8338_v43 = vpop.f32.mrb[0].mxu1 }
 0x633   :  { %v8339_v40 = vpop.f32.mrb[1].mxu1  ;;  %v16218_v60 = vpop.permute.xlu1 %7572 }
 0x634   :  { %8496 = vmatmul.mubr.bf16.gmra.mrb[100].mxu1 %v7734_v54  ;;  %v8982_v31 = vpop.f32.mrb[116].mxu0  ;;  %v8340_v34 = vpop.f32.mrb[2].mxu1 }
 0x635   :  { %8501 = vmatprep.mubr.bf16.mxu1 %v7974_v27  ;;  %v6146_v12 = vpop.f32.mrb[117].mxu0  ;;  %v6155_v41 = vadd.f32 %v15727_v9, %v8982_v31  ;;  %v8341_v55 = vpop.f32.mrb[3].mxu1  ;;  %v17724_v27 = vld [vmem:[#allocation65_spill] sm:$0xff] }
 0x636   :  { %v6147_v22 = vadd.f32 %v15727_v9, %v6146_v12  ;;  %v8983_v56 = vpop.f32.mrb[118].mxu0  ;;  %v6908_v7 = vpop.permute.xlu0 %6907  ;;  %v7182_v43 = vrot.slane %v17724_v27, 1  ;;  %v7276_v55 = vrot.slane %v6506_v16, 2 }
 0x637   :  { %v6158_v44 = vadd.f32 %v15727_v9, %v8983_v56  ;;  %v6149_v28 = vpop.f32.mrb[119].mxu0  ;;  %v6311_v59 = vmax.f32 %v6155_v41, 0.0  ;;  %v7487_v42 = vpop.permute.xlu1 %7486  ;;  %v7620_v0 = vsel %vm5255_vm6, %v17692_v3, %v6908_v7  ;;  %v6848_v3 = vor.u32 %v6846_v61, %v16158_v19 }
 0x638   :  { %v6150_v58 = vadd.f32 %v15727_v9, %v6149_v28  ;;  %v6309_v52 = vmax.f32 %v6147_v22, 0.0  ;;  %v7818_v35 = vsel %vm5255_vm6, %v7101_v38, %v7487_v42  ;;  %v7275_v41 = vrot.slane %v6510_v13, 1  ;;  %v17725_v42 = vld [vmem:[#allocation47_spill] sm:$0xff] }
 0x639   :  { %v6312_v15 = vmax.f32 %v6158_v44, 0.0  ;;  %8252 = vmatprep.mubr.bf16.mxu0 %v7818_v35  ;;  %v7740_v7 = vsel %vm5255_vm6, %v15545_v37, %v16057_v2  ;;  %v7183_v38 = vsel %vm258_vm0, %v7180_v1, %v7182_v43  ;;  %v6514_v37 = vshll.u32 %v17725_v42, 16 }
 0x63a   :  { %v6310_v9 = vmax.f32 %v6150_v58, 0.0  ;;  %8253 = vmatmul.mubr.bf16.gmra.mrb[148].mxu0 %v7620_v0  ;;  %v7982_v61 = vsel %vm5255_vm6, %v7183_v38, %v16115_v29 }
 0x63b   :  { %v16233_v54 = vpack.c.bf16 %v6312_v15, %v6311_v59  ;;  %v6508_v59 = vrot.slane %v6506_v16, 1  ;;  %v7277_v15 = vor.u32 %v7276_v55, %v7275_v41 }
 0x63c   :  { %8502 = vmatmul.mubr.bf16.gmra.mrb[104].mxu1 %v7737_v48  ;;  %v16239_v50 = vpack.c.bf16 %v6310_v9, %v6309_v52  ;;  %v17726_v9 = vld [vmem:[#allocation85_spill] sm:$0xff] }
 0x63d   :  { %8507 = vmatprep.mubr.bf16.mxu1 %v7978_v4  ;;  %v6858_v22 = vshll.u32 %v16233_v54, 16  ;;  %v6862_v58 = vshrl.u32 %v16233_v54, 16  ;;  %v6518_v4 = vshrl.u32 %v17725_v42, 16  ;;  %v7184_v36 = vrot.slane %v17726_v9, 1 }
 0x63e   :  { %v8344_v6 = vpop.f32.mrb[4].mxu1  ;;  %v6850_v40 = vshll.u32 %v16239_v50, 16  ;;  %v6854_v12 = vshrl.u32 %v16239_v50, 16  ;;  %v6509_v63 = vsel %vm3782_vm3, %v6504_v57, %v6508_v59  ;;  %v6512_v38 = vor.u32 %v6510_v13, %v6508_v59 }
 0x63f   :  { %v8345_v14 = vpop.f32.mrb[5].mxu1  ;;  %v7451_v29 = vrot.slane %v6862_v58, 1  ;;  %v7452_v1 = vrot.slane %v6858_v22, 2  ;;  %v7278_v6 = vsel %vm4742_vm4, %v16177_v23, %v7277_v15  ;;  %v7185_v41 = vsel %vm258_vm0, %v7182_v43, %v7184_v36 }
 0x640   :  { %v8346_v31 = vpop.f32.mrb[6].mxu1  ;;  %v6852_v56 = vrot.slane %v6850_v40, 1  ;;  %v7447_v44 = vrot.slane %v6854_v12, 1  ;;  %v7448_v28 = vrot.slane %v6850_v40, 2  ;;  %v16279_v14 = vrot.slane %v6858_v22, 1 }
 0x641   :  { %v8347_v34 = vpop.f32.mrb[7].mxu1  ;;  %v16281_v31 = vor.u32 %v7452_v1, %v7451_v29  ;;  %v7279_v40 = vrot.slane %v6518_v4, 1  ;;  %v7986_v22 = vsel %vm5255_vm6, %v7185_v41, %v16197_v8  ;;  %v7104_v13 = vrot.slane %v17701_v25, 1 }
 0x642   :  { %v6853_v19 = vsel %vm3782_vm3, %v6848_v3, %v6852_v56  ;;  %v7449_v48 = vor.u32 %v7448_v28, %v7447_v44  ;;  %v6856_v35 = vor.u32 %v6854_v12, %v6852_v56  ;;  %v7280_v34 = vrot.slane %v6514_v37, 2 }
 0x643   :  { %7011 = vrot.lane.b32.xlu0 %v6853_v19, %s9252_s0  ;;  %v7743_v12 = vsel %vm5255_vm6, %v17722_v33, %v16099_v26  ;;  %v16294_v44 = vrot.slane %v6514_v37, 1 }
 0x644   :  { %8508 = vmatmul.mubr.bf16.gmra.mrb[108].mxu1 %v7740_v7  ;;  %v7450_v2 = vsel %vm4742_vm4, %v16160_v49, %v7449_v48  ;;  %v17727_v49 = vld [vmem:[#allocation53_spill] sm:$0xff]  ;;  %v6861_v56 = vsel %vm3782_vm3, %v6856_v35, %v16279_v14  ;;  %v7454_v8 = vsel %vm4742_vm4, %v7449_v48, %v16281_v31 }
 0x645   :  { %8513 = vmatprep.mubr.bf16.mxu1 %v7982_v61  ;;  %v16268_v52 = vpop.permute.xlu0 %6995  ;;  %7590 = vrot.lane.b32.xlu1 %v7450_v2, %s9252_s0  ;;  %v7102_v16 = vrot.slane %v17727_v49, 1  ;;  %v16305_v61 = vor.u32 %v7280_v34, %v7279_v40  ;;  %v6517_v2 = vsel %vm3782_vm3, %v6512_v38, %v16294_v44 }
 0x647   :  { %v16273_v0 = vpop.permute.xlu1 %7574  ;;  %6925 = vrot.lane.b32.xlu0 %v6509_v63, %s9252_s0  ;;  %v7103_v26 = vsel %vm258_vm0, %v7100_v10, %v7102_v16  ;;  %v17728_v10 = vld [vmem:[#allocation64_spill] sm:$0xff]  ;;  %v7282_v59 = vsel %vm4742_vm4, %v7277_v15, %v16305_v61  ;;  %v7105_v34 = vsel %vm258_vm0, %v7102_v16, %v7104_v13 }
 0x648   :  { %v7186_v37 = vrot.slane %v17728_v10, 1 }
 0x649   :  { %v6910_v55 = vpop.permute.xlu0 %6909  ;;  %7504 = vrot.lane.b32.xlu1 %v7278_v6, %s9252_s0 }
 0x64a   :  { %v8350_v3 = vpop.f32.mrb[8].mxu1  ;;  %v7623_v57 = vsel %vm5255_vm6, %v17721_v20, %v6910_v55  ;;  %v7746_v20 = vsel %vm5255_vm6, %v17724_v27, %v16193_v17  ;;  %v7187_v29 = vsel %vm258_vm0, %v7184_v36, %v7186_v37  ;;  %v17729_v27 = vld [vmem:[#allocation57_spill] sm:$0xff] }
 0x64b   :  { %v8351_v23 = vpop.f32.mrb[9].mxu1  ;;  %v7489_v7 = vpop.permute.xlu1 %7488  ;;  %7013 = vrot.lane.b32.xlu0 %v6861_v56, %s9252_s0  ;;  %v7990_v35 = vsel %vm5255_vm6, %v7187_v29, %v16218_v60  ;;  %v7188_v36 = vrot.slane %v17729_v27, 1  ;;  %v16336_v60 = vld [vmem:[%s16623_s4] ss:$0 sm:$0xff] }
 0x64c   :  { %8514 = vmatmul.mubr.bf16.gmra.mrb[112].mxu1 %v7743_v12  ;;  %v8352_v28 = vpop.f32.mrb[10].mxu1  ;;  %v7822_v43 = vsel %vm5255_vm6, %v7103_v26, %v7489_v7  ;;  %v7749_v7 = vsel %vm5255_vm6, %v17726_v9, %v16213_v30 }
 0x64d   :  { %8519 = vmatprep.mubr.bf16.mxu1 %v7986_v22  ;;  %v8353_v33 = vpop.f32.mrb[11].mxu1  ;;  %8258 = vmatprep.mubr.bf16.mxu0 %v7822_v43  ;;  %v16307_v19 = vpop.permute.xlu0 %6997  ;;  %v7106_v43 = vrot.slane %v17703_v5, 1 }
 0x64e   :  { %7592 = vrot.lane.b32.xlu1 %v7454_v8, %s9252_s0  ;;  %8259 = vmatmul.mubr.bf16.gmra.mrb[152].mxu0 %v7623_v57  ;;  %v7189_v33 = vsel %vm258_vm0, %v7186_v37, %v7188_v36  ;;  %v7190_v37 = vrot.slane %v15834_v11, 1 }
 0x64f   :  { %v16315_v48 = vpop.permute.xlu1 %7576  ;;  %6927 = vrot.lane.b32.xlu0 %v6517_v2, %s9252_s0  ;;  %v7994_v57 = vsel %vm5255_vm6, %v7189_v33, %v16273_v0  ;;  %v7107_v0 = vsel %vm258_vm0, %v7104_v13, %v7106_v43 }
 0x651   :  { %v6912_v1 = vpop.permute.xlu0 %6911 }
 0x652   :  { %7506 = vrot.lane.b32.xlu1 %v7282_v59, %s9252_s0  ;;  %v7626_v17 = vsel %vm5255_vm6, %v17727_v49, %v6912_v1  ;;  %v17730_v1 = vld [vmem:[#allocation75_spill] sm:$0xff] }
 0x653   :  { %v7491_v40 = vpop.permute.xlu1 %7490  ;;  %v6522_v30 = vshll.u32 %v17730_v1, 16 }
 0x654   :  { %v8356_v63 = vpop.f32.mrb[12].mxu1  ;;  %8520 = vmatmul.mubr.bf16.gmra.mrb[116].mxu1 %v7746_v20  ;;  %v7826_v3 = vsel %vm5255_vm6, %v7105_v34, %v7491_v40 }
 0x655   :  { %v8357_v6 = vpop.f32.mrb[13].mxu1  ;;  %8525 = vmatprep.mubr.bf16.mxu1 %v7990_v35  ;;  %8264 = vmatprep.mubr.bf16.mxu0 %v7826_v3 }
 0x656   :  { %v8358_v15 = vpop.f32.mrb[14].mxu1  ;;  %8265 = vmatmul.mubr.bf16.gmra.mrb[156].mxu0 %v7626_v17  ;;  %v6526_v6 = vshrl.u32 %v17730_v1, 16 }
 0x657   :  { %v8359_v12 = vpop.f32.mrb[15].mxu1 }
 0x658   :  { %v8986_v41 = vpop.f32.mrb[120].mxu0  ;;  %v16339_v23 = vpop.permute.xlu0 %6999 }
 0x659   :  { %v6171_v55 = vadd.f32 %v16336_v60, %v8986_v41  ;;  %v6162_v16 = vpop.f32.mrb[121].mxu0 }
 0x65a   :  { %v6163_v22 = vadd.f32 %v16336_v60, %v6162_v16  ;;  %v8987_v56 = vpop.f32.mrb[122].mxu0  ;;  %v16346_v26 = vpop.permute.xlu1 %7578  ;;  %v7284_v16 = vrot.slane %v6522_v30, 2 }
 0x65b   :  { %v6174_v28 = vadd.f32 %v16336_v60, %v8987_v56  ;;  %v6165_v49 = vpop.f32.mrb[123].mxu0  ;;  %v6315_v2 = vmax.f32 %v6171_v55, 0.0  ;;  %v7108_v55 = vrot.slane %v17707_v21, 1 }
 0x65c   :  { %v6166_v8 = vadd.f32 %v16336_v60, %v6165_v49  ;;  %v8362_v38 = vpop.f32.mrb[16].mxu1  ;;  %8526 = vmatmul.mubr.bf16.gmra.mrb[120].mxu1 %v7749_v7  ;;  %v6914_v29 = vpop.permute.xlu0 %6913  ;;  %v6313_v9 = vmax.f32 %v6163_v22, 0.0  ;;  %v7191_v22 = vsel %vm258_vm0, %v7188_v36, %v7190_v37  ;;  %v7752_v49 = vsel %vm5255_vm6, %v17728_v10, %v16268_v52 }
 0x65d   :  { %v6316_v59 = vmax.f32 %v6174_v28, 0.0  ;;  %v8363_v20 = vpop.f32.mrb[17].mxu1  ;;  %8533 = vmatprep.mubr.bf16.mxu1 %v7994_v57  ;;  %v7629_v41 = vsel %vm5255_vm6, %v17701_v25, %v6914_v29  ;;  %v7283_v28 = vrot.slane %v6526_v6, 1  ;;  %v7998_v25 = vsel %vm5255_vm6, %v7191_v22, %v16315_v48 }
 0x65e   :  { %v6314_v63 = vmax.f32 %v6166_v8, 0.0  ;;  %v8364_v35 = vpop.f32.mrb[18].mxu1  ;;  %v7493_v15 = vpop.permute.xlu1 %7492  ;;  %v6864_v36 = vor.u32 %v6862_v58, %v16279_v14  ;;  %v6520_v58 = vor.u32 %v6518_v4, %v16294_v44 }
 0x65f   :  { %v16356_v40 = vpack.c.bf16 %v6316_v59, %v6315_v2  ;;  %v8365_v34 = vpop.f32.mrb[19].mxu1  ;;  %v7830_v12 = vsel %vm5255_vm6, %v7107_v0, %v7493_v15  ;;  %v7109_v35 = vsel %vm258_vm0, %v7106_v43, %v7108_v55  ;;  %v17731_v15 = vld [vmem:[#allocation29_spill] sm:$0xff] }
 0x660   :  { %v16359_v3 = vpack.c.bf16 %v6314_v63, %v6313_v9  ;;  %8270 = vmatprep.mubr.bf16.mxu0 %v7830_v12  ;;  %v16362_v17 = vpop.permute.xlu0 %7001  ;;  %v6524_v63 = vrot.slane %v6522_v30, 1  ;;  %v7285_v34 = vor.u32 %v7284_v16, %v7283_v28  ;;  %v7192_v0 = vrot.slane %v17731_v15, 1 }
 0x661   :  { %8271 = vmatmul.mubr.bf16.gmra.mrb[160].mxu0 %v7629_v41  ;;  %v6874_v33 = vshll.u32 %v16356_v40, 16  ;;  %v6878_v59 = vshrl.u32 %v16356_v40, 16 }
 0x662   :  { %v6866_v56 = vshll.u32 %v16359_v3, 16  ;;  %v6870_v13 = vshrl.u32 %v16359_v3, 16  ;;  %v16375_v7 = vpop.permute.xlu1 %7580  ;;  %v6525_v43 = vsel %vm3782_vm3, %v6520_v58, %v6524_v63  ;;  %v7193_v22 = vsel %vm258_vm0, %v7190_v37, %v7192_v0 }
 0x663   :  { %v7459_v4 = vrot.slane %v6878_v59, 1  ;;  %v7460_v44 = vrot.slane %v6874_v33, 2  ;;  %v7286_v28 = vsel %vm4742_vm4, %v16305_v61, %v7285_v34 }
 0x664   :  { %v8368_v8 = vpop.f32.mrb[20].mxu1  ;;  %8534 = vmatmul.mubr.bf16.gmra.mrb[124].mxu1 %v7752_v49  ;;  %v6868_v38 = vrot.slane %v6866_v56, 1  ;;  %v7455_v57 = vrot.slane %v6870_v13, 1  ;;  %v7456_v2 = vrot.slane %v6866_v56, 2  ;;  %v6916_v29 = vpop.permute.xlu0 %6915  ;;  %v6876_v49 = vrot.slane %v6874_v33, 1 }
 0x665   :  { %v8369_v20 = vpop.f32.mrb[21].mxu1  ;;  %8540 = vmatprep.mubr.bf16.mxu1 %v7998_v25  ;;  %v7632_v30 = vsel %vm5255_vm6, %v17703_v5, %v6916_v29  ;;  %v8002_v5 = vsel %vm5255_vm6, %v7193_v22, %v16346_v26  ;;  %v16411_v25 = vor.u32 %v7460_v44, %v7459_v4  ;;  %v17733_v4 = vld [vmem:[#allocation80_spill] sm:$0xff] }
 0x666   :  { %v8370_v52 = vpop.f32.mrb[22].mxu1  ;;  %v6869_v10 = vsel %vm3782_vm3, %v6864_v36, %v6868_v38  ;;  %v7457_v48 = vor.u32 %v7456_v2, %v7455_v57  ;;  %v7495_v9 = vpop.permute.xlu1 %7494  ;;  %v6872_v16 = vor.u32 %v6870_v13, %v6868_v38  ;;  %v6528_v57 = vor.u32 %v6526_v6, %v6524_v63 }
 0x667   :  { %v8371_v14 = vpop.f32.mrb[23].mxu1  ;;  %7015 = vrot.lane.b32.xlu0 %v6869_v10, %s9252_s0  ;;  %v7834_v41 = vsel %vm5255_vm6, %v7109_v35, %v7495_v9  ;;  %v7194_v2 = vrot.slane %v15904_v39, 1  ;;  %v17732_v9 = vld [vmem:[#allocation90_spill] sm:$0xff] }
 0x668   :  { %v7458_v12 = vsel %vm4742_vm4, %v16281_v31, %v7457_v48  ;;  %8278 = vmatprep.mubr.bf16.mxu0 %v7834_v41  ;;  %v7755_v31 = vsel %vm5255_vm6, %v17729_v27, %v16307_v19  ;;  %v16418_v19 = vld [vmem:[%s16625_s6] ss:$0 sm:$0xff]  ;;  %v6877_v37 = vsel %vm3782_vm3, %v6872_v16, %v6876_v49  ;;  %v7462_v29 = vsel %vm4742_vm4, %v7457_v48, %v16411_v25 }
 0x669   :  { %7594 = vrot.lane.b32.xlu1 %v7458_v12, %s9252_s0  ;;  %8279 = vmatmul.mubr.bf16.gmra.mrb[164].mxu0 %v7632_v30  ;;  %v6533_v35 = vsel %vm3782_vm3, %v6528_v57, %v17732_v9  ;;  %v7758_v48 = vsel %vm5255_vm6, %v15834_v11, %v16339_v23  ;;  %v7196_v57 = vrot.slane %v16024_v62, 1 }
 0x66b   :  { %6929 = vrot.lane.b32.xlu0 %v6525_v43, %s9252_s0  ;;  %v7195_v43 = vsel %vm258_vm0, %v7192_v0, %v7194_v2 }
 0x66c   :  { %v8990_v56 = vpop.f32.mrb[124].mxu0  ;;  %8541 = vmatmul.mubr.bf16.gmra.mrb[128].mxu1 %v7755_v31 }
 0x66d   :  { %v6187_v13 = vadd.f32 %v16336_v60, %v8990_v56  ;;  %7508 = vrot.lane.b32.xlu1 %v7286_v28, %s9252_s0  ;;  %v6178_v36 = vpop.f32.mrb[125].mxu0  ;;  %8546 = vmatprep.mubr.bf16.mxu1 %v8002_v5 }
 0x66e   :  { %v6179_v27 = vadd.f32 %v16336_v60, %v6178_v36  ;;  %v8991_v61 = vpop.f32.mrb[126].mxu0 }
 0x66f   :  { %v6319_v26 = vmax.f32 %v6187_v13, 0.0  ;;  %v6190_v33 = vadd.f32 %v16336_v60, %v8991_v61  ;;  %v6181_v8 = vpop.f32.mrb[127].mxu0  ;;  %v8374_v38 = vpop.f32.mrb[24].mxu1  ;;  %7017 = vrot.lane.b32.xlu0 %v6877_v37, %s9252_s0 }
 0x670   :  { %v6182_v20 = vadd.f32 %v16336_v60, %v6181_v8  ;;  %v8375_v52 = vadd.f32 %v16418_v19, %v8374_v38  ;;  %v8376_v10 = vpop.f32.mrb[25].mxu1  ;;  %v6317_v12 = vmax.f32 %v6179_v27, 0.0  ;;  %v7290_v60 = vsel %vm4742_vm4, %v7285_v34, %v17733_v4 }
 0x671   :  { %v6320_v58 = vmax.f32 %v6190_v33, 0.0  ;;  %7596 = vrot.lane.b32.xlu1 %v7462_v29, %s9252_s0  ;;  %v8377_v14 = vpop.f32.mrb[26].mxu1  ;;  %v16437_v44 = vpack.c.bf16 %v6319_v26, %v6319_v26  ;;  %v8006_v34 = vsel %vm5255_vm6, %v7195_v43, %v16375_v7  ;;  %v6880_v27 = vor.u32 %v6878_v59, %v6876_v49 }
 0x672   :  { %v6318_v41 = vmax.f32 %v6182_v20, 0.0  ;;  %v8378_v6 = vadd.f32 %v16418_v19, %v8377_v14  ;;  %v8379_v63 = vpop.f32.mrb[27].mxu1  ;;  %v8637_v31 = vmax.f32 %v8375_v52, 0.0  ;;  %v7761_v59 = vsel %vm5255_vm6, %v17731_v15, %v16362_v17 }
 0x673   :  { %v16439_v30 = vpack.c.bf16 %v6320_v58, %v6319_v26  ;;  %6931 = vrot.lane.b32.xlu0 %v6533_v35, %s9252_s0  ;;  %v6890_v7 = vshll.u32 %v16437_v44, 16  ;;  %v7110_v63 = vrot.slane %v17709_v53, 1  ;;  %v7197_v4 = vsel %vm258_vm0, %v7194_v2, %v7196_v57 }
 0x674   :  { %v16446_v16 = vpack.c.bf16 %v6318_v41, %v6317_v12  ;;  %v8638_v22 = vmax.f32 %v8378_v6, 0.0  ;;  %8547 = vmatmul.mubr.bf16.gmra.mrb[132].mxu1 %v7758_v48 }
 0x675   :  { %v7468_v56 = vshrl.u32 %v16439_v30, 16  ;;  %v7471_v28 = vshll.u32 %v16439_v30, 16  ;;  %7510 = vrot.lane.b32.xlu1 %v7290_v60, %s9252_s0  ;;  %8552 = vmatprep.mubr.bf16.mxu1 %v8006_v34  ;;  %v6892_v35 = vrot.slane %v6890_v7, 1 }
 0x676   :  { %v8683_v5 = vmax.f32 %v8637_v31, %v8638_v22  ;;  %v6882_v11 = vshll.u32 %v16446_v16, 16  ;;  %v6886_v23 = vshrl.u32 %v16446_v16, 16 }
 0x677   :  { %v7470_v0 = vrot.slane %v7468_v56, 1  ;;  %v7473_v13 = vrot.slane %v7471_v28, 2  ;;  %v8382_v36 = vpop.f32.mrb[28].mxu1 }
 0x678   :  { %v8383_v61 = vadd.f32 %v16418_v19, %v8382_v36  ;;  %v8384_v37 = vpop.f32.mrb[29].mxu1  ;;  %v6884_v26 = vrot.slane %v6882_v11, 1  ;;  %v7463_v33 = vrot.slane %v6886_v23, 1  ;;  %v7464_v8 = vrot.slane %v6882_v11, 2 }
 0x679   :  { %v8385_v38 = vpop.f32.mrb[30].mxu1  ;;  %v7474_v12 = vor.u32 %v7473_v13, %v7470_v0  ;;  %v7112_v37 = vrot.slane %v17711_v51, 1 }
 0x67a   :  { %v8639_v20 = vmax.f32 %v8383_v61, 0.0  ;;  %v8386_v52 = vpop.f32.mrb[31].mxu1  ;;  %v6885_v10 = vsel %vm3782_vm3, %v6880_v27, %v6884_v26  ;;  %v7465_v29 = vor.u32 %v7464_v8, %v7463_v33  ;;  %v6888_v58 = vor.u32 %v6886_v23, %v6884_v26 }
 0x67b   :  { %7019 = vrot.lane.b32.xlu0 %v6885_v10, %s9252_s0  ;;  %v7004_v49 = vpop.permute.xlu0 %7003  ;;  %v7198_v23 = vrot.slane %v16021_v24, 1 }
 0x67c   :  { %v8682_v14 = vsel %vm258_vm0, %v8639_v20, -inf  ;;  %8553 = vmatmul.mubr.bf16.gmra.mrb[136].mxu1 %v7761_v59  ;;  %v7466_v9 = vsel %vm4742_vm4, %v16411_v25, %v7465_v29  ;;  %v6893_v60 = vsel %vm3782_vm3, %v6888_v58, %v6892_v35  ;;  %v6894_v25 = vshrl.u32 %v16437_v44, 16 }
 0x67d   :  { %v8684_v41 = vmax.f32 %v8683_v5, %v8682_v14  ;;  %7598 = vrot.lane.b32.xlu1 %v7466_v9, %s9252_s0  ;;  %v7583_v6 = vpop.permute.xlu1 %7582  ;;  %v7475_v22 = vsel %vm4742_vm4, %v7465_v29, %v7474_v12  ;;  %v7111_v5 = vsel %vm258_vm0, %v7108_v55, %v7110_v63  ;;  %v7764_v36 = vsel %vm5255_vm6, %v15904_v39, %v7004_v49 }
 0x67e   :  { %v8010_v15 = vsel %vm5255_vm6, %v7197_v4, %v7583_v6  ;;  %v6896_v2 = vor.u32 %v6894_v25, %v6892_v35  ;;  %v7199_v26 = vsel %vm258_vm0, %v7196_v57, %v7198_v23  ;;  %v7113_v29 = vsel %vm258_vm0, %v7110_v63, %v7112_v37 }
 0x67f   :  { %v8685_v17 = vrot.slane %v8684_v41, 4  ;;  %v8389_v48 = vpop.f32.mrb[32].mxu1  ;;  %7021 = vrot.lane.b32.xlu0 %v6893_v60, %s9252_s0  ;;  %v6918_v43 = vpop.permute.xlu0 %6917  ;;  %8558 = vmatprep.mubr.bf16.mxu1 %v8010_v15  ;;  %v7200_v59 = vrot.slane %v16085_v32, 1 }
 0x680   :  { %v8390_v31 = vpop.f32.mrb[33].mxu1  ;;  %v7635_v7 = vsel %vm5255_vm6, %v17707_v21, %v6918_v43 }
 0x681   :  { %v8686_v34 = vmax.f32 %v8684_v41, %v8685_v17  ;;  %7600 = vrot.lane.b32.xlu1 %v7475_v22, %s9252_s0  ;;  %v8391_v56 = vpop.f32.mrb[34].mxu1  ;;  %v7497_v28 = vpop.permute.xlu1 %7496  ;;  %v7114_v41 = vrot.slane %v17712_v18, 1 }
 0x682   :  { %v8392_v11 = vpop.f32.mrb[35].mxu1  ;;  %v7838_v13 = vsel %vm5255_vm6, %v7111_v5, %v7497_v28 }
 0x683   :  { %v8687_v0 = vrot.slane %v8686_v34, 2  ;;  %7023 = vrot.lane.b32.xlu0 %v6896_v2, %s9252_s0  ;;  %8285 = vmatprep.mubr.bf16.mxu0 %v7838_v13  ;;  %v7006_v27 = vpop.permute.xlu0 %7005  ;;  %v7115_v48 = vsel %vm258_vm0, %v7112_v37, %v7114_v41  ;;  %v7116_v2 = vrot.slane %v17718_v45, 1 }
 0x684   :  { %8559 = vmatmul.mubr.bf16.gmra.mrb[140].mxu1 %v7764_v36  ;;  %8286 = vmatmul.mubr.bf16.gmra.mrb[168].mxu0 %v7635_v7  ;;  %v7767_v57 = vsel %vm5255_vm6, %v16024_v62, %v7006_v27 }
 0x685   :  { %v8688_v61 = vmax.f32 %v8686_v34, %v8687_v0  ;;  %7602 = vrot.lane.b32.xlu1 %v7474_v12, %s9252_s0  ;;  %v7585_v55 = vpop.permute.xlu1 %7584  ;;  %v7201_v12 = vsel %vm258_vm0, %v7198_v23, %v7200_v59  ;;  %v7117_v36 = vsel %vm258_vm0, %v7114_v41, %v7116_v2 }
 0x686   :  { %v8014_v8 = vsel %vm5255_vm6, %v7199_v26, %v7585_v55 }
 0x687   :  { %v8689_v33 = vrot.slane %v8688_v61, 1  ;;  %v8395_v38 = vpop.f32.mrb[36].mxu1  ;;  %v6920_v39 = vpop.permute.xlu0 %6919  ;;  %8564 = vmatprep.mubr.bf16.mxu1 %v8014_v8 }
 0x688   :  { %v8396_v20 = vpop.f32.mrb[37].mxu1  ;;  %v7638_v14 = vsel %vm5255_vm6, %v17709_v53, %v6920_v39  ;;  %v7202_v53 = vrot.slane %v16083_v47, 1 }
 0x689   :  { %v8690_v52 = vmax.f32 %v8688_v61, %v8689_v33  ;;  %v8397_v10 = vpop.f32.mrb[38].mxu1  ;;  %v7499_v21 = vpop.permute.xlu1 %7498 }
 0x68a   :  { %v8398_v58 = vpop.f32.mrb[39].mxu1  ;;  %v7842_v49 = vsel %vm5255_vm6, %v7113_v29, %v7499_v21  ;;  %v7203_v56 = vsel %vm258_vm0, %v7200_v59, %v7202_v53  ;;  %v7204_v59 = vrot.slane %v16239_v50, 1 }
 0x68b   :  { %8691 = vst [vmem:[#allocation11 + $0x3] sm:$0x1] %v8690_v52  ;;  %8291 = vmatprep.mubr.bf16.mxu0 %v7842_v49  ;;  %v7008_v9 = vpop.permute.xlu0 %7007 }
 0x68c   :  { %8565 = vmatmul.mubr.bf16.gmra.mrb[144].mxu1 %v7767_v57  ;;  %8292 = vmatmul.mubr.bf16.gmra.mrb[172].mxu0 %v7638_v14  ;;  %v7770_v43 = vsel %vm5255_vm6, %v16021_v24, %v7008_v9 }
 0x68d   :  { %v7587_v35 = vpop.permute.xlu1 %7586 }
 0x68e   :  { %v8018_v63 = vsel %vm5255_vm6, %v7201_v12, %v7587_v35 }
 0x68f   :  { %v8401_v6 = vpop.f32.mrb[40].mxu1  ;;  %8570 = vmatprep.mubr.bf16.mxu1 %v8018_v63  ;;  %v6922_v4 = vpop.permute.xlu0 %6921  ;;  %v7118_v63 = vrot.slane %v17723_v46, 1 }
 0x690   :  { %v8402_v60 = vpop.f32.mrb[41].mxu1  ;;  %v7641_v22 = vsel %vm5255_vm6, %v17711_v51, %v6922_v4  ;;  %v7205_v6 = vsel %vm258_vm0, %v7202_v53, %v7204_v59  ;;  %v7206_v53 = vrot.slane %v16233_v54, 1 }
 0x691   :  { %v8403_v17 = vpop.f32.mrb[42].mxu1  ;;  %v7501_v62 = vpop.permute.xlu1 %7500 }
 0x692   :  { %v8404_v15 = vpop.f32.mrb[43].mxu1  ;;  %v7846_v25 = vsel %vm5255_vm6, %v7115_v48, %v7501_v62 }
 0x693   :  { %8297 = vmatprep.mubr.bf16.mxu0 %v7846_v25  ;;  %v7010_v31 = vpop.permute.xlu0 %7009 }
 0x694   :  { %8571 = vmatmul.mubr.bf16.gmra.mrb[148].mxu1 %v7770_v43  ;;  %8298 = vmatmul.mubr.bf16.gmra.mrb[176].mxu0 %v7641_v22  ;;  %v7773_v27 = vsel %vm5255_vm6, %v16085_v32, %v7010_v31  ;;  %v7119_v31 = vsel %vm258_vm0, %v7116_v2, %v7118_v63  ;;  %v7207_v2 = vsel %vm258_vm0, %v7204_v59, %v7206_v53 }
 0x695   :  { %v7589_v34 = vpop.permute.xlu1 %7588 }
 0x696   :  { %v8022_v5 = vsel %vm5255_vm6, %v7203_v56, %v7589_v34 }
 0x697   :  { %v8407_v28 = vpop.f32.mrb[44].mxu1  ;;  %8576 = vmatprep.mubr.bf16.mxu1 %v8022_v5  ;;  %v6924_v23 = vpop.permute.xlu0 %6923 }
 0x698   :  { %v8408_v11 = vpop.f32.mrb[45].mxu1  ;;  %v7644_v7 = vsel %vm5255_vm6, %v17712_v18, %v6924_v23 }
 0x699   :  { %v8409_v0 = vpop.f32.mrb[46].mxu1  ;;  %v7503_v24 = vpop.permute.xlu1 %7502 }
 0x69a   :  { %v8410_v13 = vpop.f32.mrb[47].mxu1  ;;  %v7850_v51 = vsel %vm5255_vm6, %v7117_v36, %v7503_v24  ;;  %v7120_v24 = vrot.slane %v17725_v42, 1 }
 0x69b   :  { %8303 = vmatprep.mubr.bf16.mxu0 %v7850_v51 }
 0x69c   :  { %8577 = vmatmul.mubr.bf16.gmra.mrb[152].mxu1 %v7773_v27  ;;  %8304 = vmatmul.mubr.bf16.gmra.mrb[180].mxu0 %v7644_v7 }
 0x69f   :  { %v8413_v61 = vpop.f32.mrb[48].mxu1 }
 0x6a0   :  { %v8414_v55 = vpop.f32.mrb[49].mxu1 }
 0x6a1   :  { %v8415_v37 = vpop.f32.mrb[50].mxu1  ;;  %v7121_v55 = vsel %vm258_vm0, %v7118_v63, %v7120_v24 }
 0x6a2   :  { %v8416_v26 = vpop.f32.mrb[51].mxu1 }
 0x6a7   :  { %v8419_v33 = vpop.f32.mrb[52].mxu1 }
 0x6a8   :  { %v8420_v8 = vpop.f32.mrb[53].mxu1 }
 0x6a9   :  { %v8421_v38 = vpop.f32.mrb[54].mxu1 }
 0x6aa   :  { %v8422_v39 = vpop.f32.mrb[55].mxu1 }
 0x6af   :  { %v8425_v20 = vpop.f32.mrb[56].mxu1 }
 0x6b0   :  { %v8426_v52 = vadd.f32 %v16418_v19, %v8425_v20  ;;  %v8427_v10 = vpop.f32.mrb[57].mxu1 }
 0x6b1   :  { %v8428_v21 = vpop.f32.mrb[58].mxu1 }
 0x6b2   :  { %v8429_v32 = vadd.f32 %v16418_v19, %v8428_v21  ;;  %v8430_v29 = vpop.f32.mrb[59].mxu1  ;;  %v8640_v58 = vmax.f32 %v8426_v52, 0.0 }
 0x6b4   :  { %v8641_v18 = vmax.f32 %v8429_v32, 0.0 }
 0x6b5   :  { %v7012_v14 = vpop.permute.xlu0 %7011 }
 0x6b6   :  { %v8693_v49 = vmax.f32 %v8640_v58, %v8641_v18  ;;  %v7776_v15 = vsel %vm5255_vm6, %v16083_v47, %v7012_v14 }
 0x6b7   :  { %v8433_v57 = vpop.f32.mrb[60].mxu1  ;;  %v7591_v41 = vpop.permute.xlu1 %7590 }
 0x6b8   :  { %v8434_v9 = vadd.f32 %v16418_v19, %v8433_v57  ;;  %v8435_v35 = vpop.f32.mrb[61].mxu1  ;;  %v8026_v17 = vsel %vm5255_vm6, %v7205_v6, %v7591_v41 }
 0x6b9   :  { %v8436_v12 = vpop.f32.mrb[62].mxu1  ;;  %8584 = vmatprep.mubr.bf16.mxu1 %v8026_v17  ;;  %v6926_v62 = vpop.permute.xlu0 %6925 }
 0x6ba   :  { %v8642_v4 = vmax.f32 %v8434_v9, 0.0  ;;  %v8437_v60 = vpop.f32.mrb[63].mxu1  ;;  %8585 = vmatmul.mubr.bf16.gmra.mrb[156].mxu1 %v7776_v15  ;;  %v7647_v5 = vsel %vm5255_vm6, %v17718_v45, %v6926_v62  ;;  %v7208_v15 = vrot.slane %v16359_v3, 1 }
 0x6bb   :  { %v7505_v43 = vpop.permute.xlu1 %7504 }
 0x6bc   :  { %v8692_v48 = vsel %vm258_vm0, %v8642_v4, -inf  ;;  %v7854_v22 = vsel %vm5255_vm6, %v7119_v31, %v7505_v43 }
 0x6bd   :  { %v8694_v25 = vmax.f32 %v8693_v49, %v8692_v48  ;;  %8309 = vmatprep.mubr.bf16.mxu0 %v7854_v22  ;;  %v7014_v28 = vpop.permute.xlu0 %7013 }
 0x6be   :  { %8310 = vmatmul.mubr.bf16.gmra.mrb[184].mxu0 %v7647_v5  ;;  %v7779_v27 = vsel %vm5255_vm6, %v16239_v50, %v7014_v28  ;;  %v7209_v28 = vsel %vm258_vm0, %v7206_v53, %v7208_v15  ;;  %v7122_v5 = vrot.slane %v17730_v1, 1  ;;  %v7210_v53 = vrot.slane %v16356_v40, 1 }
 0x6bf   :  { %v8695_v34 = vrot.slane %v8694_v25, 4  ;;  %v8440_v56 = vpop.f32.mrb[64].mxu1 }
 0x6c0   :  { %v8441_v11 = vpop.f32.mrb[65].mxu1  ;;  %v7593_v0 = vpop.permute.xlu1 %7592 }
 0x6c1   :  { %v8696_v47 = vmax.f32 %v8694_v25, %v8695_v34  ;;  %v8442_v23 = vpop.f32.mrb[66].mxu1  ;;  %v8030_v36 = vsel %vm5255_vm6, %v7207_v2, %v7593_v0  ;;  %v6928_v45 = vpop.permute.xlu0 %6927 }
 0x6c2   :  { %v8443_v13 = vpop.f32.mrb[67].mxu1  ;;  %8591 = vmatprep.mubr.bf16.mxu1 %v8030_v36  ;;  %v7650_v8 = vsel %vm5255_vm6, %v17723_v46, %v6928_v45 }
 0x6c3   :  { %v8697_v51 = vrot.slane %v8696_v47, 2  ;;  %8592 = vmatmul.mubr.bf16.gmra.mrb[160].mxu1 %v7779_v27 }
 0x6c4   :  { %v7507_v61 = vpop.permute.xlu1 %7506 }
 0x6c5   :  { %v8698_v7 = vmax.f32 %v8696_v47, %v8697_v51  ;;  %v7858_v37 = vsel %vm5255_vm6, %v7121_v55, %v7507_v61  ;;  %v8221_v20 = vpop.f32.mrb[128].mxu0  ;;  %v7123_v51 = vsel %vm258_vm0, %v7120_v24, %v7122_v5 }
 0x6c6   :  { %8315 = vmatprep.mubr.bf16.mxu0 %v7858_v37  ;;  %v8222_v10 = vadd.f32 %v16418_v19, %v8221_v20  ;;  %v8223_v21 = vpop.f32.mrb[129].mxu0 }
 0x6c7   :  { %v8699_v26 = vrot.slane %v8698_v7, 1  ;;  %v8446_v33 = vpop.f32.mrb[68].mxu1  ;;  %8316 = vmatmul.mubr.bf16.gmra.mrb[188].mxu0 %v7650_v8  ;;  %v8224_v32 = vpop.f32.mrb[130].mxu0  ;;  %v7211_v8 = vsel %vm258_vm0, %v7208_v15, %v7210_v53 }
 0x6c8   :  { %v8447_v38 = vpop.f32.mrb[69].mxu1  ;;  %v8225_v29 = vadd.f32 %v16418_v19, %v8224_v32  ;;  %v8226_v58 = vpop.f32.mrb[131].mxu0  ;;  %v8628_v18 = vmax.f32 %v8222_v10, 0.0  ;;  %v17734_v10 = vld [vmem:[#allocation33_spill] sm:$0xff] }
 0x6c9   :  { %v8700_v39 = vmax.f32 %v8698_v7, %v8699_v26  ;;  %v8448_v50 = vpop.f32.mrb[70].mxu1 }
 0x6ca   :  { %v8449_v52 = vpop.f32.mrb[71].mxu1  ;;  %v8629_v59 = vmax.f32 %v8225_v29, 0.0 }
 0x6cb   :  { %8701 = vst [vmem:[#allocation11 + $0x4] sm:$0x1] %v8700_v39 }
 0x6cc   :  { %v8653_v57 = vmax.f32 %v8628_v18, %v8629_v59 }
 0x6cd   :  { %v8229_v9 = vpop.f32.mrb[132].mxu0 }
 0x6ce   :  { %v8230_v12 = vadd.f32 %v16418_v19, %v8229_v9  ;;  %v8231_v41 = vpop.f32.mrb[133].mxu0 }
 0x6cf   :  { %v8452_v49 = vpop.f32.mrb[72].mxu1  ;;  %v8232_v6 = vpop.f32.mrb[134].mxu0 }
 0x6d0   :  { %v8453_v14 = vpop.f32.mrb[73].mxu1  ;;  %v8630_v63 = vmax.f32 %v8230_v12, 0.0  ;;  %v8233_v4 = vpop.f32.mrb[135].mxu0 }
 0x6d1   :  { %v8454_v46 = vpop.f32.mrb[74].mxu1  ;;  %v7212_v14 = vrot.slane %v16446_v16, 1 }
 0x6d2   :  { %v8455_v35 = vpop.f32.mrb[75].mxu1  ;;  %v8652_v60 = vsel %vm258_vm0, %v8630_v63, -inf }
 0x6d3   :  { %v8654_v17 = vmax.f32 %v8653_v57, %v8652_v60  ;;  %v7214_v35 = vrot.slane %v16439_v30, 1  ;;  %v7213_v6 = vsel %vm258_vm0, %v7210_v53, %v7212_v14 }
 0x6d5   :  { %v8655_v25 = vrot.slane %v8654_v17, 4 }
 0x6d7   :  { %v8458_v62 = vpop.f32.mrb[76].mxu1  ;;  %v8656_v34 = vmax.f32 %v8654_v17, %v8655_v25 }
 0x6d8   :  { %v8459_v48 = vpop.f32.mrb[77].mxu1 }
 0x6d9   :  { %v8460_v43 = vpop.f32.mrb[78].mxu1  ;;  %v7016_v31 = vpop.permute.xlu0 %7015  ;;  %v8657_v47 = vrot.slane %v8656_v34, 2 }
 0x6da   :  { %v8461_v22 = vpop.f32.mrb[79].mxu1  ;;  %v7782_v0 = vsel %vm5255_vm6, %v16233_v54, %v7016_v31  ;;  %v7215_v43 = vsel %vm258_vm0, %v7212_v14, %v7214_v35 }
 0x6db   :  { %v7595_v56 = vpop.permute.xlu1 %7594  ;;  %v8658_v2 = vmax.f32 %v8656_v34, %v8657_v47 }
 0x6dc   :  { %v8034_v11 = vsel %vm5255_vm6, %v7209_v28, %v7595_v56 }
 0x6dd   :  { %8597 = vmatprep.mubr.bf16.mxu1 %v8034_v11  ;;  %v6930_v23 = vpop.permute.xlu0 %6929  ;;  %v8659_v7 = vrot.slane %v8658_v2, 1 }
 0x6de   :  { %8598 = vmatmul.mubr.bf16.gmra.mrb[164].mxu1 %v7782_v0  ;;  %v7653_v54 = vsel %vm5255_vm6, %v17725_v42, %v6930_v23  ;;  %v17735_v42 = vrot.slane %v17734_v10, 1 }
 0x6df   :  { %v7509_v13 = vpop.permute.xlu1 %7508  ;;  %v8464_v36 = vpop.f32.mrb[80].mxu1  ;;  %v8660_v26 = vmax.f32 %v8658_v2, %v8659_v7 }
 0x6e0   :  { %v8465_v27 = vpop.f32.mrb[81].mxu1  ;;  %v7862_v45 = vsel %vm5255_vm6, %v7123_v51, %v7509_v13  ;;  %v7125_v21 = vsel %vm258_vm0, %v7122_v5, %v17735_v42 }
 0x6e1   :  { %8321 = vmatprep.mubr.bf16.mxu0 %v7862_v45  ;;  %v8466_v61 = vpop.f32.mrb[82].mxu1  ;;  %v7018_v55 = vpop.permute.xlu0 %7017  ;;  %8661 = vst [vmem:[#allocation11] sm:$0x1] %v8660_v26 }
 0x6e2   :  { %8322 = vmatmul.mubr.bf16.gmra.mrb[192].mxu0 %v7653_v54  ;;  %v8467_v37 = vpop.f32.mrb[83].mxu1  ;;  %v7785_v38 = vsel %vm5255_vm6, %v16359_v3, %v7018_v55 }
 0x6e3   :  { %v7597_v33 = vpop.permute.xlu1 %7596 }
 0x6e4   :  { %v8038_v24 = vsel %vm5255_vm6, %v7211_v8, %v7597_v33 }
 0x6e5   :  { %8603 = vmatprep.mubr.bf16.mxu1 %v8038_v24  ;;  %v6932_v39 = vpop.permute.xlu0 %6931  ;;  %v8236_v50 = vpop.f32.mrb[136].mxu0 }
 0x6e6   :  { %8604 = vmatmul.mubr.bf16.gmra.mrb[168].mxu1 %v7785_v38  ;;  %v8237_v58 = vpop.f32.mrb[137].mxu0  ;;  %v7656_v59 = vsel %vm5255_vm6, %v17730_v1, %v6932_v39 }
 0x6e7   :  { %v7511_v20 = vpop.permute.xlu1 %7510  ;;  %v8470_v52 = vpop.f32.mrb[84].mxu1 }
 0x6e8   :  { %v8471_v32 = vpop.f32.mrb[85].mxu1  ;;  %v7866_v29 = vsel %vm5255_vm6, %v7125_v21, %v7511_v20  ;;  %v8238_v49 = vpop.f32.mrb[138].mxu0 }
 0x6e9   :  { %8329 = vmatprep.mubr.bf16.mxu0 %v7866_v29  ;;  %v8472_v18 = vpop.f32.mrb[86].mxu1  ;;  %v8239_v57 = vpop.f32.mrb[139].mxu0 }
 0x6ea   :  { %8330 = vmatmul.mubr.bf16.gmra.mrb[196].mxu0 %v7656_v59  ;;  %v8473_v3 = vpop.f32.mrb[87].mxu1 }
 0x6ed   :  { %v7020_v46 = vpop.permute.xlu0 %7019  ;;  %v8242_v9 = vpop.f32.mrb[140].mxu0 }
 0x6ee   :  { %v8243_v1 = vpop.f32.mrb[141].mxu0  ;;  %v7788_v62 = vsel %vm5255_vm6, %v16356_v40, %v7020_v46 }
 0x6ef   :  { %v7599_v12 = vpop.permute.xlu1 %7598  ;;  %v8476_v41 = vpop.f32.mrb[88].mxu1 }
 0x6f0   :  { %v8477_v63 = vadd.f32 %v16418_v19, %v8476_v41  ;;  %v8478_v4 = vpop.f32.mrb[89].mxu1  ;;  %v8042_v60 = vsel %vm5255_vm6, %v7213_v6, %v7599_v12  ;;  %v8244_v30 = vpop.f32.mrb[142].mxu0 }
 0x6f1   :  { %v8479_v17 = vpop.f32.mrb[90].mxu1  ;;  %8609 = vmatprep.mubr.bf16.mxu1 %v8042_v60  ;;  %v8245_v31 = vpop.f32.mrb[143].mxu0 }
 0x6f2   :  { %v8480_v15 = vadd.f32 %v16418_v19, %v8479_v17  ;;  %v8481_v48 = vpop.f32.mrb[91].mxu1  ;;  %8610 = vmatmul.mubr.bf16.gmra.mrb[172].mxu1 %v7788_v62  ;;  %v8643_v22 = vmax.f32 %v8477_v63, 0.0  ;;  %v7022_v5 = vpop.permute.xlu0 %7021 }
 0x6f3   :  { %v7601_v25 = vpop.permute.xlu1 %7600  ;;  %v7791_v2 = vsel %vm5255_vm6, %v16446_v16, %v7022_v5 }
 0x6f4   :  { %v8644_v34 = vmax.f32 %v8480_v15, 0.0  ;;  %v8046_v56 = vsel %vm5255_vm6, %v7215_v43, %v7601_v25 }
 0x6f5   :  { %8615 = vmatprep.mubr.bf16.mxu1 %v8046_v56 }
 0x6f6   :  { %v8703_v28 = vmax.f32 %v8643_v22, %v8644_v34  ;;  %v7024_v45 = vpop.permute.xlu0 %7023 }
 0x6f7   :  { %v7603_v11 = vpop.permute.xlu1 %7602  ;;  %v8484_v47 = vpop.f32.mrb[92].mxu1  ;;  %v7794_v26 = vsel %vm5255_vm6, %v16437_v44, %v7024_v45 }
 0x6f8   :  { %v8485_v40 = vadd.f32 %v16418_v19, %v8484_v47  ;;  %v8486_v23 = vpop.f32.mrb[93].mxu1  ;;  %v8050_v51 = vsel %vm5255_vm6, %v7214_v35, %v7603_v11 }
 0x6f9   :  { %v8487_v0 = vpop.f32.mrb[94].mxu1 }
 0x6fa   :  { %v8645_v13 = vmax.f32 %v8485_v40, 0.0  ;;  %v8488_v36 = vpop.f32.mrb[95].mxu1  ;;  %8616 = vmatmul.mubr.bf16.gmra.mrb[176].mxu1 %v7791_v2 }
 0x6fb   :  { %8621 = vmatprep.mubr.bf16.mxu1 %v8050_v51 }
 0x6fc   :  { %v8702_v53 = vsel %vm258_vm0, %v8645_v13, -inf }
 0x6fd   :  { %v8704_v27 = vmax.f32 %v8703_v28, %v8702_v53 }
 0x6ff   :  { %v8705_v7 = vrot.slane %v8704_v27, 4  ;;  %v8491_v61 = vpop.f32.mrb[96].mxu1 }
 0x700   :  { %v8492_v55 = vpop.f32.mrb[97].mxu1 }
 0x701   :  { %v8706_v54 = vmax.f32 %v8704_v27, %v8705_v7  ;;  %v8493_v37 = vpop.f32.mrb[98].mxu1 }
 0x702   :  { %v8494_v33 = vpop.f32.mrb[99].mxu1  ;;  %8622 = vmatmul.mubr.bf16.gmra.mrb[180].mxu1 %v7794_v26 }
 0x703   :  { %v8707_v16 = vrot.slane %v8706_v54, 2 }
 0x705   :  { %v8708_v8 = vmax.f32 %v8706_v54, %v8707_v16  ;;  %v8248_v39 = vpop.f32.mrb[144].mxu0 }
 0x706   :  { %v8249_v20 = vpop.f32.mrb[145].mxu0 }
 0x707   :  { %v8709_v24 = vrot.slane %v8708_v8, 1  ;;  %v8497_v38 = vpop.f32.mrb[100].mxu1  ;;  %v8250_v42 = vpop.f32.mrb[146].mxu0 }
 0x708   :  { %v8498_v50 = vpop.f32.mrb[101].mxu1  ;;  %v8251_v32 = vpop.f32.mrb[147].mxu0 }
 0x709   :  { %v8710_v52 = vmax.f32 %v8708_v8, %v8709_v24  ;;  %v8499_v10 = vpop.f32.mrb[102].mxu1 }
 0x70a   :  { %v8500_v21 = vpop.f32.mrb[103].mxu1 }
 0x70b   :  { %8711 = vst [vmem:[#allocation11 + $0x5] sm:$0x1] %v8710_v52 }
 0x70d   :  { %v8254_v59 = vpop.f32.mrb[148].mxu0 }
 0x70e   :  { %v8255_v49 = vpop.f32.mrb[149].mxu0 }
 0x70f   :  { %v8503_v29 = vpop.f32.mrb[104].mxu1  ;;  %v8256_v3 = vpop.f32.mrb[150].mxu0 }
 0x710   :  { %v8504_v58 = vpop.f32.mrb[105].mxu1  ;;  %v8257_v57 = vpop.f32.mrb[151].mxu0 }
 0x711   :  { %v8505_v18 = vpop.f32.mrb[106].mxu1 }
 0x712   :  { %v8506_v44 = vpop.f32.mrb[107].mxu1 }
 0x717   :  { %v8509_v14 = vpop.f32.mrb[108].mxu1 }
 0x718   :  { %v8510_v46 = vpop.f32.mrb[109].mxu1 }
 0x719   :  { %v8511_v9 = vpop.f32.mrb[110].mxu1 }
 0x71a   :  { %v8512_v35 = vpop.f32.mrb[111].mxu1 }
 0x71f   :  { %v8515_v12 = vpop.f32.mrb[112].mxu1 }
 0x720   :  { %v8516_v41 = vpop.f32.mrb[113].mxu1 }
 0x721   :  { %v8517_v6 = vpop.f32.mrb[114].mxu1  ;;  %v8260_v4 = vpop.f32.mrb[152].mxu0 }
 0x722   :  { %v8518_v63 = vpop.f32.mrb[115].mxu1  ;;  %v8261_v60 = vpop.f32.mrb[153].mxu0 }
 0x723   :  { %v8262_v1 = vpop.f32.mrb[154].mxu0 }
 0x724   :  { %v8263_v17 = vpop.f32.mrb[155].mxu0 }
 0x727   :  { %v8521_v62 = vpop.f32.mrb[116].mxu1 }
 0x728   :  { %v8522_v15 = vpop.f32.mrb[117].mxu1 }
 0x729   :  { %v8523_v48 = vpop.f32.mrb[118].mxu1  ;;  %v8266_v25 = vpop.f32.mrb[156].mxu0 }
 0x72a   :  { %v8524_v30 = vpop.f32.mrb[119].mxu1  ;;  %v8267_v43 = vpop.f32.mrb[157].mxu0 }
 0x72b   :  { %v8268_v31 = vpop.f32.mrb[158].mxu0 }
 0x72c   :  { %v8269_v22 = vpop.f32.mrb[159].mxu0 }
 0x72f   :  { %v8527_v34 = vpop.f32.mrb[120].mxu1 }
 0x730   :  { %v8528_v56 = vadd.f32 %v16418_v19, %v8527_v34  ;;  %v8529_v28 = vpop.f32.mrb[121].mxu1 }
 0x731   :  { %v8530_v5 = vpop.f32.mrb[122].mxu1 }
 0x732   :  { %v8531_v11 = vadd.f32 %v16418_v19, %v8530_v5  ;;  %v8532_v47 = vpop.f32.mrb[123].mxu1  ;;  %v8646_v40 = vmax.f32 %v8528_v56, 0.0 }
 0x734   :  { %v8647_v23 = vmax.f32 %v8531_v11, 0.0  ;;  %v8272_v0 = vpop.f32.mrb[160].mxu0 }
 0x735   :  { %v8273_v13 = vadd.f32 %v16418_v19, %v8272_v0  ;;  %v8274_v36 = vpop.f32.mrb[161].mxu0 }
 0x736   :  { %v8713_v2 = vmax.f32 %v8646_v40, %v8647_v23  ;;  %v8275_v53 = vpop.f32.mrb[162].mxu0 }
 0x737   :  { %v8535_v51 = vpop.f32.mrb[124].mxu1  ;;  %v8276_v7 = vadd.f32 %v16418_v19, %v8275_v53  ;;  %v8277_v61 = vpop.f32.mrb[163].mxu0  ;;  %v8631_v54 = vmax.f32 %v8273_v13, 0.0 }
 0x738   :  { %v8536_v27 = vadd.f32 %v16418_v19, %v8535_v51  ;;  %v8537_v45 = vpop.f32.mrb[125].mxu1 }
 0x739   :  { %v8538_v55 = vpop.f32.mrb[126].mxu1  ;;  %v8632_v26 = vmax.f32 %v8276_v7, 0.0 }
 0x73a   :  { %v8648_v37 = vmax.f32 %v8536_v27, 0.0  ;;  %v8539_v33 = vpop.f32.mrb[127].mxu1 }
 0x73b   :  { %v8663_v8 = vmax.f32 %v8631_v54, %v8632_v26 }
 0x73c   :  { %v8712_v16 = vsel %vm258_vm0, %v8648_v37, -inf  ;;  %v8280_v38 = vpop.f32.mrb[164].mxu0 }
 0x73d   :  { %v8714_v24 = vmax.f32 %v8713_v2, %v8712_v16  ;;  %v8281_v39 = vadd.f32 %v16418_v19, %v8280_v38  ;;  %v8282_v50 = vpop.f32.mrb[165].mxu0 }
 0x73e   :  { %v8283_v10 = vpop.f32.mrb[166].mxu0 }
 0x73f   :  { %v8715_v20 = vrot.slane %v8714_v24, 4  ;;  %v8542_v52 = vpop.f32.mrb[128].mxu1  ;;  %v8633_v42 = vmax.f32 %v8281_v39, 0.0  ;;  %v8284_v32 = vpop.f32.mrb[167].mxu0 }
 0x740   :  { %v8543_v21 = vpop.f32.mrb[129].mxu1 }
 0x741   :  { %v8716_v29 = vmax.f32 %v8714_v24, %v8715_v20  ;;  %v8544_v58 = vpop.f32.mrb[130].mxu1  ;;  %v8662_v18 = vsel %vm258_vm0, %v8633_v42, -inf }
 0x742   :  { %v8545_v59 = vpop.f32.mrb[131].mxu1  ;;  %v8664_v49 = vmax.f32 %v8663_v8, %v8662_v18 }
 0x743   :  { %v8717_v44 = vrot.slane %v8716_v29, 2 }
 0x744   :  { %v8665_v57 = vrot.slane %v8664_v49, 4 }
 0x745   :  { %v8718_v3 = vmax.f32 %v8716_v29, %v8717_v44 }
 0x746   :  { %v8666_v46 = vmax.f32 %v8664_v49, %v8665_v57 }
 0x747   :  { %v8719_v14 = vrot.slane %v8718_v3, 1  ;;  %v8548_v9 = vpop.f32.mrb[132].mxu1 }
 0x748   :  { %v8549_v35 = vpop.f32.mrb[133].mxu1  ;;  %v8667_v41 = vrot.slane %v8666_v46, 2 }
 0x749   :  { %v8720_v12 = vmax.f32 %v8718_v3, %v8719_v14  ;;  %v8550_v6 = vpop.f32.mrb[134].mxu1 }
 0x74a   :  { %v8551_v63 = vpop.f32.mrb[135].mxu1  ;;  %v8668_v4 = vmax.f32 %v8666_v46, %v8667_v41 }
 0x74b   :  { %8721 = vst [vmem:[#allocation11 + $0x6] sm:$0x1] %v8720_v12 }
 0x74c   :  { %v8669_v60 = vrot.slane %v8668_v4, 1 }
 0x74e   :  { %v8670_v1 = vmax.f32 %v8668_v4, %v8669_v60 }
 0x74f   :  { %v8554_v17 = vpop.f32.mrb[136].mxu1 }
 0x750   :  { %v8555_v62 = vpop.f32.mrb[137].mxu1  ;;  %8671 = vst [vmem:[#allocation11 + $0x1] sm:$0x1] %v8670_v1 }
 0x751   :  { %v8556_v15 = vpop.f32.mrb[138].mxu1 }
 0x752   :  { %v8557_v48 = vpop.f32.mrb[139].mxu1 }
 0x757   :  { %v8560_v30 = vpop.f32.mrb[140].mxu1  ;;  %v8287_v25 = vpop.f32.mrb[168].mxu0 }
 0x758   :  { %v8561_v43 = vpop.f32.mrb[141].mxu1  ;;  %v8288_v31 = vpop.f32.mrb[169].mxu0 }
 0x759   :  { %v8562_v22 = vpop.f32.mrb[142].mxu1  ;;  %v8289_v34 = vpop.f32.mrb[170].mxu0 }
 0x75a   :  { %v8563_v56 = vpop.f32.mrb[143].mxu1  ;;  %v8290_v28 = vpop.f32.mrb[171].mxu0  ;;  %v9130_v22 = vld [vmem:[%s16625_s6] ss:$0 sm:$0xff]  ;;  %s9266_s6 = smov [#allocation11]  }
 0x75b   :  { %s8738_s30 = sshll.u32 %s9266_s6, 4  ;;  %s8739_s30 = int_to_ptr.vmem [resolvable:$true] %s8738_s30 }
 0x75c   :  { %s9219_s8 = scalar_lea.vmem %s8739_s30, 128  ;;  %p9224_p5 = scmp.lt.s32.totalorder %s8739_s30, %s8739_s30 }
 0x75d   :  { %p9220_p4 = scmp.ne.s32.totalorder %s8739_s30, %s9219_s8  ;;  %p9225_p6 = scmp.lt.s32.totalorder %s9219_s8, %s9219_s8 }
 0x75f   :  { %v8566_v5 = vpop.f32.mrb[144].mxu1  ;;  %v8293_v11 = vpop.f32.mrb[172].mxu0  ;;  %p9226_p7 = por %p9225_p6, %p9224_p5 }
 0x760   :  { %v8567_v47 = vpop.f32.mrb[145].mxu1  ;;  %v8294_v40 = vpop.f32.mrb[173].mxu0 }
 0x761   :  { %v8568_v23 = vpop.f32.mrb[146].mxu1  ;;  %v8295_v0 = vpop.f32.mrb[174].mxu0  ;;  %p9227_p8 = pnand %p9226_p7, %p9220_p4 }
 0x762   :  { %v8569_v2 = vpop.f32.mrb[147].mxu1  ;;  %v8296_v13 = vpop.f32.mrb[175].mxu0 }
 0x767   :  { %v8572_v36 = vpop.f32.mrb[148].mxu1  ;;  %v8299_v51 = vpop.f32.mrb[176].mxu0 }
 0x768   :  { %v8573_v53 = vpop.f32.mrb[149].mxu1  ;;  %v8300_v27 = vpop.f32.mrb[177].mxu0 }
 0x769   :  { %v8574_v45 = vpop.f32.mrb[150].mxu1  ;;  %v8301_v7 = vpop.f32.mrb[178].mxu0 }
 0x76a   :  { %v8575_v61 = vpop.f32.mrb[151].mxu1  ;;  %v8302_v55 = vpop.f32.mrb[179].mxu0 }
 0x76f   :  { %v8578_v54 = vpop.f32.mrb[152].mxu1  ;;  %v8305_v37 = vpop.f32.mrb[180].mxu0 }
 0x770   :  { %v8579_v26 = vadd.f32 %v16418_v19, %v8578_v54  ;;  %v8580_v33 = vpop.f32.mrb[153].mxu1  ;;  %v8306_v16 = vpop.f32.mrb[181].mxu0 }
 0x771   :  { %v8581_v8 = vpop.f32.mrb[154].mxu1  ;;  %v8307_v24 = vpop.f32.mrb[182].mxu0 }
 0x772   :  { %v8582_v38 = vadd.f32 %v16418_v19, %v8581_v8  ;;  %v8583_v39 = vpop.f32.mrb[155].mxu1  ;;  %v8308_v50 = vpop.f32.mrb[183].mxu0  ;;  %v8649_v20 = vmax.f32 %v8579_v26, 0.0 }
 0x774   :  { %v8650_v52 = vmax.f32 %v8582_v38, 0.0 }
 0x776   :  { %v8723_v10 = vmax.f32 %v8649_v20, %v8650_v52 }
 0x78d   :  { %v8586_v42 = vpop.f32.mrb[156].mxu1 }
 0x78e   :  { %v8587_v21 = vadd.f32 %v16418_v19, %v8586_v42  ;;  %v8588_v32 = vpop.f32.mrb[157].mxu1 }
 0x78f   :  { %v8589_v29 = vpop.f32.mrb[158].mxu1 }
 0x790   :  { %v8651_v58 = vmax.f32 %v8587_v21, 0.0  ;;  %v8590_v18 = vpop.f32.mrb[159].mxu1 }
 0x791   :  { %v8311_v59 = vpop.f32.mrb[184].mxu0 }
 0x792   :  { %v8722_v44 = vsel %vm258_vm0, %v8651_v58, -inf  ;;  %v8312_v49 = vpop.f32.mrb[185].mxu0 }
 0x793   :  { %v8724_v3 = vmax.f32 %v8723_v10, %v8722_v44  ;;  %v8313_v57 = vpop.f32.mrb[186].mxu0 }
 0x794   :  { %v8314_v14 = vpop.f32.mrb[187].mxu0 }
 0x795   :  { %v8725_v46 = vrot.slane %v8724_v3, 4 }
 0x796   :  { %v8593_v9 = vpop.f32.mrb[160].mxu1 }
 0x797   :  { %v8594_v35 = vpop.f32.mrb[161].mxu1  ;;  %v8726_v12 = vmax.f32 %v8724_v3, %v8725_v46 }
 0x798   :  { %v8595_v41 = vpop.f32.mrb[162].mxu1 }
 0x799   :  { %v8596_v6 = vpop.f32.mrb[163].mxu1  ;;  %v8727_v63 = vrot.slane %v8726_v12, 2 }
 0x79a   :  { %v8317_v4 = vpop.f32.mrb[188].mxu0 }
 0x79b   :  { %v8318_v19 = vpop.f32.mrb[189].mxu0  ;;  %v8728_v60 = vmax.f32 %v8726_v12, %v8727_v63 }
 0x79c   :  { %v8319_v1 = vpop.f32.mrb[190].mxu0 }
 0x79d   :  { %v8320_v17 = vpop.f32.mrb[191].mxu0  ;;  %v8729_v62 = vrot.slane %v8728_v60, 1 }
 0x79f   :  { %v8730_v15 = vmax.f32 %v8728_v60, %v8729_v62 }
 0x7a1   :  { %8731 = vst [vmem:[#allocation11 + $0x7] sm:$0x1] %v8730_v15 }
 0x7b1   :  { %v8599_v48 = vpop.f32.mrb[164].mxu1 }
 0x7b2   :  { %v8600_v30 = vpop.f32.mrb[165].mxu1 }
 0x7b3   :  { %v8601_v25 = vpop.f32.mrb[166].mxu1 }
 0x7b4   :  { %v8602_v43 = vpop.f32.mrb[167].mxu1 }
 0x7b5   :  { %v8323_v31 = vpop.f32.mrb[192].mxu0 }
 0x7b6   :  { %v8324_v34 = vadd.f32 %v9130_v22, %v8323_v31  ;;  %v8325_v56 = vpop.f32.mrb[193].mxu0 }
 0x7b7   :  { %v8326_v28 = vpop.f32.mrb[194].mxu0 }
 0x7b8   :  { %v8327_v5 = vadd.f32 %v9130_v22, %v8326_v28  ;;  %v8328_v11 = vpop.f32.mrb[195].mxu0  ;;  %v8634_v40 = vmax.f32 %v8324_v34, 0.0 }
 0x7b9   :  { %v8605_v47 = vpop.f32.mrb[168].mxu1 }
 0x7ba   :  { %v8635_v23 = vmax.f32 %v8327_v5, 0.0  ;;  %v8606_v0 = vpop.f32.mrb[169].mxu1 }
 0x7bb   :  { %v8607_v2 = vpop.f32.mrb[170].mxu1 }
 0x7bc   :  { %v8673_v13 = vmax.f32 %v8634_v40, %v8635_v23  ;;  %v8608_v36 = vpop.f32.mrb[171].mxu1 }
 0x7bd   :  { %v8331_v51 = vpop.f32.mrb[196].mxu0 }
 0x7be   :  { %v8332_v53 = vadd.f32 %v9130_v22, %v8331_v51  ;;  %v8333_v27 = vpop.f32.mrb[197].mxu0 }
 0x7bf   :  { %v8334_v45 = vpop.f32.mrb[198].mxu0 }
 0x7c0   :  { %v8636_v7 = vmax.f32 %v8332_v53, 0.0  ;;  %v8335_v61 = vpop.f32.mrb[199].mxu0 }
 0x7c2   :  { %v8672_v55 = vsel %vm258_vm0, %v8636_v7, -inf }
 0x7c3   :  { %v8674_v54 = vmax.f32 %v8673_v13, %v8672_v55 }
 0x7c5   :  { %v8675_v37 = vrot.slane %v8674_v54, 4  ;;  %v8611_v26 = vpop.f32.mrb[172].mxu1 }
 0x7c6   :  { %v8612_v33 = vpop.f32.mrb[173].mxu1 }
 0x7c7   :  { %v8676_v16 = vmax.f32 %v8674_v54, %v8675_v37  ;;  %v8613_v8 = vpop.f32.mrb[174].mxu1 }
 0x7c8   :  { %v8614_v24 = vpop.f32.mrb[175].mxu1 }
 0x7c9   :  { %v8677_v38 = vrot.slane %v8676_v16, 2 }
 0x7cb   :  { %v8678_v39 = vmax.f32 %v8676_v16, %v8677_v38 }
 0x7cd   :  { %v8679_v50 = vrot.slane %v8678_v39, 1  ;;  %v8617_v20 = vpop.f32.mrb[176].mxu1 }
 0x7ce   :  { %v8618_v52 = vpop.f32.mrb[177].mxu1 }
 0x7cf   :  { %v8680_v10 = vmax.f32 %v8678_v39, %v8679_v50  ;;  %v8619_v42 = vpop.f32.mrb[178].mxu1 }
 0x7d0   :  { %v8620_v21 = vpop.f32.mrb[179].mxu1 }
 0x7d1   :  { %8681 = vst [vmem:[#allocation11 + $0x2] sm:$0x1] %v8680_v10 }
 0x7d2   :  { %9230 = shalt.err (!%p9227_p8)
}
 0x7d3   :  { %s9231_s11 = scalar_lea.hbm %s16626_s7, 128 }
 0x7d4   :  { %p9232_p9 = scmp.ne.s32.totalorder %s16626_s7, %s9231_s11  ;;  %p9235_p10 = scmp.lt.u32.totalorder %s9231_s11, %s16626_s7 }
 0x7d6   :  { %p9237_p11 = pnand %p9235_p10, %p9232_p9 }
 0x7d8   :  { %9240 = shalt.err (!%p9237_p11)
}
 0x7d9   :  { %8741 = dma.vmem_to_hbm [thread:$0]  %s8739_s30, 128, %s16626_s7, [#allocation5]   ;;  %v8623_v32 = vpop.f32.mrb[180].mxu1 }
 0x7da   :  { %v8624_v29 = vpop.f32.mrb[181].mxu1 }
 0x7db   :  { %v8625_v58 = vpop.f32.mrb[182].mxu1 }
 0x7dc   :  { %v8626_v18 = vpop.f32.mrb[183].mxu1 }
 0x7dd   :  { %9247 = dma.done.wait [#allocation5], 128  }
 0x7de   :  { %9248 = vsyncadd [#allocation5], 4294967168 }
 0x7df   :  { %8745 = vsyncpa [#allocation4], 1 }
 0x7e0   :  { %8746 = vsyncpa [#allocation7], 1 }
 0x7e1   :  { %8747 = vsyncpa [#allocation10], 1 }
 0x7e2   :  { %8748 = vsyncpa [#allocation5], 1 }

</bundles_post_ra>
